<compile_context>
chip_gen: v5e
topology: v5e:2x2
jax: 0.10.0
libtpu: 0.0.40
codegen_flags: <defaults>
</compile_context>

<pallas_src>
import functools

import jax
import jax.numpy as jnp
from jax.experimental import pallas as pl
from jax.experimental.pallas import tpu as pltpu


# ---------------------------------------------------------------------------
# row-tiling helpers
# ---------------------------------------------------------------------------
def _round_up(x, m):
    return ((x + m - 1) // m) * m


def _row_tiles(m, max_tile, min_programs=2):
    """Pick a row tile (multiple of 8) with at least `min_programs` grid steps
    (keeps both v7x TensorCores busy) and return (padded_rows, tile)."""
    mp = _round_up(m, 8)
    tm = min(max_tile, mp)
    if mp // tm < min_programs and mp >= 8 * min_programs:
        tm = min(max_tile, _round_up(pl.cdiv(mp, min_programs), 8))
    mp = _round_up(m, tm)
    return mp, tm


def _pad_rows(x, mp):
    m = x.shape[0]
    if mp == m:
        return x
    return jnp.pad(x, ((0, mp - m),) + ((0, 0),) * (x.ndim - 1))


# ---------------------------------------------------------------------------
# generic fused linear / 2-layer MLP kernels (row-tiled, bias+act fused, bf16)
# ---------------------------------------------------------------------------
def _linear_kernel(x_ref, w_ref, b_ref, o_ref, *, act):
    y = jnp.dot(x_ref[...], w_ref[...], preferred_element_type=jnp.float32) + b_ref[...]
    if act == "relu":
        y = jnp.maximum(y, 0.0)
    elif act == "sigmoid":
        y = jax.nn.sigmoid(y)
    o_ref[...] = y.astype(o_ref.dtype)


def pallas_linear(x, w, b, act="none", max_tile=512, out_dtype=jnp.bfloat16):
    """act(x @ w + b); x: (M, K), w: (K, N).  bf16 inputs, f32 accumulation."""
    m, k = x.shape
    n = w.shape[1]
    mp, tm = _row_tiles(m, max_tile)
    xp = _pad_rows(x.astype(jnp.bfloat16), mp)
    out = pl.pallas_call(
        functools.partial(_linear_kernel, act=act),
        out_shape=jax.ShapeDtypeStruct((mp, n), out_dtype),
        grid=(mp // tm,),
        in_specs=[
            pl.BlockSpec((tm, k), lambda i: (i, 0)),
            pl.BlockSpec((k, n), lambda i: (0, 0)),
            pl.BlockSpec((1, n), lambda i: (0, 0)),
        ],
        out_specs=pl.BlockSpec((tm, n), lambda i: (i, 0)),
        compiler_params=pltpu.CompilerParams(dimension_semantics=("parallel",)),
    )(xp, w.astype(jnp.bfloat16), b.reshape(1, n).astype(jnp.float32))
    return out if mp == m else out[:m]


def _mlp2_kernel(x_ref, w1_ref, b1_ref, w2_ref, b2_ref, o_ref):
    h = jnp.maximum(
        jnp.dot(x_ref[...], w1_ref[...], preferred_element_type=jnp.float32) + b1_ref[...], 0.0)
    y = jnp.maximum(
        jnp.dot(h.astype(jnp.bfloat16), w2_ref[...],
                preferred_element_type=jnp.float32) + b2_ref[...], 0.0)
    o_ref[...] = y.astype(o_ref.dtype)


def pallas_mlp2(x, w1, b1, w2, b2, max_tile=512, out_dtype=jnp.bfloat16):
    """relu(relu(x@w1+b1)@w2+b2) in ONE kernel (hidden never hits HBM)."""
    m, k = x.shape
    h = w1.shape[1]
    n = w2.shape[1]
    mp, tm = _row_tiles(m, max_tile)
    xp = _pad_rows(x.astype(jnp.bfloat16), mp)
    out = pl.pallas_call(
        _mlp2_kernel,
        out_shape=jax.ShapeDtypeStruct((mp, n), out_dtype),
        grid=(mp // tm,),
        in_specs=[
            pl.BlockSpec((tm, k), lambda i: (i, 0)),
            pl.BlockSpec((k, h), lambda i: (0, 0)),
            pl.BlockSpec((1, h), lambda i: (0, 0)),
            pl.BlockSpec((h, n), lambda i: (0, 0)),
            pl.BlockSpec((1, n), lambda i: (0, 0)),
        ],
        out_specs=pl.BlockSpec((tm, n), lambda i: (i, 0)),
        compiler_params=pltpu.CompilerParams(dimension_semantics=("parallel",)),
    )(xp, w1.astype(jnp.bfloat16), b1.reshape(1, h).astype(jnp.float32),
      w2.astype(jnp.bfloat16), b2.reshape(1, n).astype(jnp.float32))
    return out if mp == m else out[:m]


# ---------------------------------------------------------------------------
# fused EdgeConv layer kernel (single tall matmul, N-tiled)
# ---------------------------------------------------------------------------
def _edgeconv_kernel(x_ref, nbr_ref, wcmn_ref, wn_ref, b_ref, o_ref):
    # x_ref: (1, tn, C) centre points; nbr_ref: (1, K, tn, C) gathered neighbours.
    kk, tn, c = nbr_ref.shape[1], nbr_ref.shape[2], nbr_ref.shape[3]
    x = x_ref[0]                                                         # (tn, C)
    # edge = [centre, nbr - centre] @ W  ==  centre @ (Wc - Wn) + nbr @ Wn
    center = jnp.dot(x, wcmn_ref[...], preferred_element_type=jnp.float32) + b_ref[...]
    nbr = nbr_ref[0].reshape(kk * tn, c)                                 # one tall matmul
    t = jnp.dot(nbr, wn_ref[...], preferred_element_type=jnp.float32)    # (K*tn, Co)
    co = t.shape[1]
    h = jnp.maximum(t.reshape(kk, tn, co) + center[None, :, :], 0.0)
    o_ref[0] = jnp.max(h, axis=0).astype(o_ref.dtype)                    # max over K


def pallas_edgeconv(x, nbr, w, b, n_tile=512):
    """Fused EdgeConv: relu([x_i, x_j - x_i] @ W + b) max-reduced over K neighbours.

    x: (B, N, C) channels-last; nbr: (B, K, N, C) K-major gathered neighbours;
    w: (2C, Co) (first C rows act on the centre, last C on (nbr - centre)).
    Returns (B, N, Co) in bf16.
    """
    batch, n, c = x.shape
    kk = nbr.shape[1]
    co = w.shape[1]
    w_cmn = (w[:c] - w[c:]).astype(jnp.bfloat16)
    w_n = w[c:].astype(jnp.bfloat16)

    np_ = _round_up(n, 8)
    tn = min(n_tile, np_)
    np_ = _round_up(n, tn)
    xb = x.astype(jnp.bfloat16)
    nbrb = nbr.astype(jnp.bfloat16)
    if np_ != n:
        xb = jnp.pad(xb, ((0, 0), (0, np_ - n), (0, 0)))
        nbrb = jnp.pad(nbrb, ((0, 0), (0, 0), (0, np_ - n), (0, 0)))

    # TODO(synk): lane-pack the C=3 neighbour slab as (B, N, K*C) to avoid
    # 128-lane padding of the 3-wide last dim in VMEM / strided DMA.
    out = pl.pallas_call(
        _edgeconv_kernel,
        out_shape=jax.ShapeDtypeStruct((batch, np_, co), jnp.bfloat16),
        grid=(batch, np_ // tn),
        in_specs=[
            pl.BlockSpec((1, tn, c), lambda bi, ni: (bi, ni, 0)),
            pl.BlockSpec((1, kk, tn, c), lambda bi, ni: (bi, 0, ni, 0)),
            pl.BlockSpec((c, co), lambda bi, ni: (0, 0)),
            pl.BlockSpec((c, co), lambda bi, ni: (0, 0)),
            pl.BlockSpec((1, co), lambda bi, ni: (0, 0)),
        ],
        out_specs=pl.BlockSpec((1, tn, co), lambda bi, ni: (bi, ni, 0)),
        compiler_params=pltpu.CompilerParams(dimension_semantics=("parallel", "parallel")),
    )(xb, nbrb, w_cmn, w_n, b.reshape(1, co).astype(jnp.float32))
    return out[:, :n] if np_ != n else out


# ---------------------------------------------------------------------------
# fused decoder kernel (mlp_pos + DecodeNet + max over decode_knn + conv_1)
# decode_knn is a trailing "arbitrary" grid axis; running max and the CBN
# gamma/beta block live in VMEM scratch.
# ---------------------------------------------------------------------------
def _decoder_kernel(pc_ref, c_ref,
                    mp0w_ref, mp0b_ref, mp1w_ref, mp1b_ref,
                    fcpr_ref, fcph_ref, fcpb_ref,
                    cbnw_ref, cbnb_ref,
                    fcw_ref, fcb_ref,
                    fcow_ref, fcob_ref,
                    c1w_ref, c1b_ref,
                    o_ref,
                    gb_ref, acc_ref):
    nblk = fcw_ref.shape[0] // 2
    hdim = fcow_ref.shape[0]
    k = pl.program_id(1)
    bf16 = jnp.bfloat16

    @pl.when(k == 0)
    def _():
        # all conditional-BN gammas/betas in ONE wide matmul, computed once per row tile
        gb_ref[...] = (jnp.dot(c_ref[...], cbnw_ref[...],
                               preferred_element_type=jnp.float32) + cbnb_ref[...])
        acc_ref[...] = jnp.full(acc_ref.shape, -jnp.inf, dtype=acc_ref.dtype)

    r = pc_ref[0]                                                        # (tm, 3) bf16
    # mlp_pos: relu(r@W0+b0)@W1+b1
    hp = jnp.maximum(
        jnp.dot(r, mp0w_ref[...], preferred_element_type=jnp.float32) + mp0b_ref[...], 0.0)
    hp = jnp.dot(hp.astype(bf16), mp1w_ref[...],
                 preferred_element_type=jnp.float32) + mp1b_ref[...]
    # fc_p of concat([r, mlp_pos(r)]) as split matmuls (no concat materialised)
    net = (jnp.dot(r, fcpr_ref[...], preferred_element_type=jnp.float32)
           + jnp.dot(hp.astype(bf16), fcph_ref[...], preferred_element_type=jnp.float32)
           + fcpb_ref[...])
    for blk in range(nblk):                                              # 3 blocks, static
        off = blk * 4 * hdim
        # TODO(synk): conditional BatchNorm treated as eval-mode identity BN + affine-from-code.
        h = jnp.maximum(gb_ref[:, off:off + hdim] * net
                        + gb_ref[:, off + hdim:off + 2 * hdim], 0.0)
        h = (jnp.dot(h.astype(bf16), fcw_ref[2 * blk],
                     preferred_element_type=jnp.float32) + fcb_ref[2 * blk])
        h = jnp.maximum(gb_ref[:, off + 2 * hdim:off + 3 * hdim] * h
                        + gb_ref[:, off + 3 * hdim:off + 4 * hdim], 0.0)
        net = net + (jnp.dot(h.astype(bf16), fcw_ref[2 * blk + 1],
                             preferred_element_type=jnp.float32) + fcb_ref[2 * blk + 1])
    offf = nblk * 4 * hdim
    h = jnp.maximum(gb_ref[:, offf:offf + hdim] * net
                    + gb_ref[:, offf + hdim:offf + 2 * hdim], 0.0)
    out_k = (jnp.dot(h.astype(bf16), fcow_ref[...],
                     preferred_element_type=jnp.float32) + fcob_ref[...])
    acc_ref[...] = jnp.maximum(acc_ref[...], out_k)                      # max over decode_knn

    @pl.when(k == pl.num_programs(1) - 1)
    def _():
        # conv_1 (Conv1D 128->128 + relu) fused; the maxed feature never hits HBM
        rows = jnp.maximum(
            jnp.dot(acc_ref[...].astype(bf16), c1w_ref[...],
                    preferred_element_type=jnp.float32) + c1b_ref[...], 0.0)
        o_ref[...] = rows.astype(o_ref.dtype)


def pallas_decoder(nn_pc, c, dp, mp0_w, mp0_b, mp1_w, mp1_b, c1_w, c1_b, max_tile=128):
    """ONE fused kernel: mlp_pos -> DecodeNet (fc_p, 3 CBN ResNet blocks, final CBN,
    fc_out) -> max over decode_knn -> conv_1(+relu).

    nn_pc: (M, Kd, 3) relative neighbour coords; c: (M, Cdim) per-row code.
    Returns (M, 128) rows (channels-last / lane-dense), f32.
    """
    m, kd, _ = nn_pc.shape
    cdim = c.shape[-1]
    hdim = dp["fc_p_w"].shape[1]
    out_dim = dp["fc_out_w"].shape[1]
    nblk = len(dp["blocks"])
    pos_dim = mp0_w.shape[1]
    bf16 = jnp.bfloat16

    # ---- pack weights: all CBN matmuls -> one (Cdim, (4*nblk+2)*H) matmul ------
    cw_list, cb_list = [], []
    for blk in dp["blocks"]:
        cw_list += [blk["g0_w"], blk["be0_w"], blk["g1_w"], blk["be1_w"]]
        cb_list += [blk["g0_b"], blk["be0_b"], blk["g1_b"], blk["be1_b"]]
    cw_list += [dp["gf_w"], dp["bf_w"]]
    cb_list += [dp["gf_b"], dp["bf_b"]]
    cbn_w = jnp.concatenate(cw_list, axis=1).astype(bf16)                # (Cdim, 14*H)
    cbn_b = jnp.concatenate(cb_list, axis=0).reshape(1, -1)
    fc_w = jnp.stack([w for blk in dp["blocks"]
                      for w in (blk["fc0_w"], blk["fc1_w"])]).astype(bf16)
    fc_b = jnp.stack([bb for blk in dp["blocks"]
                      for bb in (blk["fc0_b"], blk["fc1_b"])]).reshape(2 * nblk, 1, hdim)
    fcp_r = dp["fc_p_w"][:3].astype(bf16)
    fcp_h = dp["fc_p_w"][3:].astype(bf16)
    fcp_b = dp["fc_p_b"].reshape(1, hdim)
    fco_w = dp["fc_out_w"].astype(bf16)
    fco_b = dp["fc_out_b"].reshape(1, out_dim)
    c1wb = c1_w.astype(bf16)
    c1bb = c1_b.reshape(1, -1)
    n_final = c1_w.shape[1]

    # ---- row tiling over M = B*num_out ------------------------------------------
    mp, tm = _row_tiles(m, max_tile)
    # TODO(synk): could lane-pack nn_pc as (M, Kd*3) to drop this (tiny) transpose.
    pc_t = jnp.transpose(nn_pc, (1, 0, 2)).astype(bf16)                  # (Kd, M, 3)
    cb = c.astype(bf16)
    if mp != m:
        pc_t = jnp.pad(pc_t, ((0, 0), (0, mp - m), (0, 0)))
        cb = jnp.pad(cb, ((0, mp - m), (0, 0)))

    n_cbn = cbn_w.shape[1]
    flops = mp * (2 * cdim * n_cbn
                  + kd * 2 * (3 * pos_dim + pos_dim * pos_dim + 3 * hdim + pos_dim * hdim
                              + nblk * 2 * hdim * hdim + hdim * out_dim)
                  + 2 * out_dim * n_final)
    bytes_acc = (2 * (pc_t.size + cb.size + cbn_w.size + fc_w.size + fcp_r.size
                      + fcp_h.size + fco_w.size + c1wb.size)
                 + 4 * (cbn_b.size + fc_b.size + mp * n_final))

    out = pl.pallas_call(
        _decoder_kernel,
        out_shape=jax.ShapeDtypeStruct((mp, n_final), jnp.float32),
        grid=(mp // tm, kd),
        in_specs=[
            pl.BlockSpec((1, tm, 3), lambda i, k: (k, i, 0)),
            pl.BlockSpec((tm, cdim), lambda i, k: (i, 0)),
            pl.BlockSpec(mp0_w.shape, lambda i, k: (0, 0)),
            pl.BlockSpec((1, pos_dim), lambda i, k: (0, 0)),
            pl.BlockSpec(mp1_w.shape, lambda i, k: (0, 0)),
            pl.BlockSpec((1, pos_dim), lambda i, k: (0, 0)),
            pl.BlockSpec(fcp_r.shape, lambda i, k: (0, 0)),
            pl.BlockSpec(fcp_h.shape, lambda i, k: (0, 0)),
            pl.BlockSpec(fcp_b.shape, lambda i, k: (0, 0)),
            pl.BlockSpec(cbn_w.shape, lambda i, k: (0, 0)),
            pl.BlockSpec(cbn_b.shape, lambda i, k: (0, 0)),
            pl.BlockSpec(fc_w.shape, lambda i, k: (0, 0, 0)),
            pl.BlockSpec(fc_b.shape, lambda i, k: (0, 0, 0)),
            pl.BlockSpec(fco_w.shape, lambda i, k: (0, 0)),
            pl.BlockSpec(fco_b.shape, lambda i, k: (0, 0)),
            pl.BlockSpec(c1wb.shape, lambda i, k: (0, 0)),
            pl.BlockSpec(c1bb.shape, lambda i, k: (0, 0)),
        ],
        out_specs=pl.BlockSpec((tm, n_final), lambda i, k: (i, 0)),
        scratch_shapes=[pltpu.VMEM((tm, n_cbn), jnp.float32),
                        pltpu.VMEM((tm, out_dim), jnp.float32)],
        compiler_params=pltpu.CompilerParams(
            dimension_semantics=("parallel", "arbitrary")),
        cost_estimate=pl.CostEstimate(flops=int(flops), transcendentals=0,
                                      bytes_accessed=int(bytes_acc)),
    )(pc_t, cb, mp0_w.astype(bf16), mp0_b.reshape(1, -1), mp1_w.astype(bf16),
      mp1_b.reshape(1, -1), fcp_r, fcp_h, fcp_b, cbn_w, cbn_b, fc_w, fc_b,
      fco_w, fco_b, c1wb, c1bb)
    return out if mp == m else out[:m]


# ---------------------------------------------------------------------------
# fused head kernel (conv_w + sigmoid weights + conv_2 + max + mlp_n + normalize)
# ---------------------------------------------------------------------------
def _head_kernel(feat_ref, cww_ref, cwb_ref, w2_ref, b2_ref, mnw_ref, mnb_ref,
                 wts_ref, nrm_ref):
    f = feat_ref[0]                                                      # (num_out, C) f32
    # conv_w (C -> 1): VPU multiply + lane reduce (avoids a 1-lane MXU matmul)
    logit = jnp.sum(f * cww_ref[...], axis=-1, keepdims=True) + cwb_ref[...]
    wts_col = 0.01 + jax.nn.sigmoid(logit)                               # (num_out, 1)
    wts_ref[0] = wts_col.astype(wts_ref.dtype)
    # conv_2 (+relu) on weighted features, then max over points
    fw = (f * wts_col).astype(jnp.bfloat16)
    h = jnp.maximum(
        jnp.dot(fw, w2_ref[...], preferred_element_type=jnp.float32) + b2_ref[...], 0.0)
    mx = jnp.max(h, axis=0, keepdims=True)                               # (1, C)
    # mlp_n + L2 normalize (rsqrt -> EUP slot)
    nv = jnp.dot(mx, mnw_ref[...], preferred_element_type=jnp.float32) + mnb_ref[...]
    ss = jnp.sum(nv * nv, axis=-1, keepdims=True)
    nrm_ref[0] = (nv * jax.lax.rsqrt(jnp.maximum(ss, 1e-24))).astype(nrm_ref.dtype)


def pallas_head(feat, cw_w, cw_b, w2, b2, mn_w, mn_b):
    """feat: (B, num_out, C) channels-last.  Returns weights (B, 1, num_out) and
    the L2-normalized normal (B, 3)."""
    # TODO(synk): for B==1 on v7x the batch-only grid leaves one TensorCore idle;
    # splitting over num_out would need a cross-program max reduction.
    batch, npts, c = feat.shape
    wts, nrm = pl.pallas_call(
        _head_kernel,
        out_shape=(jax.ShapeDtypeStruct((batch, npts, 1), jnp.float32),
                   jax.ShapeDtypeStruct((batch, 1, 3), jnp.float32)),
        grid=(batch,),
        in_specs=[
            pl.BlockSpec((1, npts, c), lambda bi: (bi, 0, 0)),
            pl.BlockSpec((1, c), lambda bi: (0, 0)),
            pl.BlockSpec((1, 1), lambda bi: (0, 0)),
            pl.BlockSpec((c, c), lambda bi: (0, 0)),
            pl.BlockSpec((1, c), lambda bi: (0, 0)),
            pl.BlockSpec((c, 3), lambda bi: (0, 0)),
            pl.BlockSpec((1, 3), lambda bi: (0, 0)),
        ],
        out_specs=(pl.BlockSpec((1, npts, 1), lambda bi: (bi, 0, 0)),
                   pl.BlockSpec((1, 1, 3), lambda bi: (bi, 0, 0))),
        compiler_params=pltpu.CompilerParams(dimension_semantics=("parallel",)),
    )(feat, cw_w.reshape(1, c), cw_b.reshape(1, 1), w2.astype(jnp.bfloat16),
      b2.reshape(1, c), mn_w, mn_b.reshape(1, 3))
    return jnp.transpose(wts, (0, 2, 1)), nrm.reshape(batch, 3)


# ---------------------------------------------------------------------------
# XLA glue (knn search / gathers)
# ---------------------------------------------------------------------------
def knn_indices(pos, k):
    # TODO(synk): knn_points' neighbour search (pairwise dist + top-k) has no clean
    # Pallas equivalent; lax.top_k in XLA glue.
    sq = jnp.sum(pos * pos, axis=-1)
    d = sq[:, :, None] + sq[:, None, :] - 2.0 * jnp.einsum("bnc,bmc->bnm", pos, pos)
    _, idx = jax.lax.top_k(-d, k)
    return idx  # (B, N, K): ascending distance, self at index 0


def knn_gather(x, idx):
    # x: (B, N, C), idx: (B, M, K) -> (B, M, K, C)
    b, m, k = idx.shape
    c = x.shape[-1]
    flat = jnp.take_along_axis(x, idx.reshape(b, m * k, 1), axis=1)
    return flat.reshape(b, m, k, c)


def knn_gather_kmajor(x, idx):
    # x: (B, N, C), idx: (B, M, K) -> (B, K, M, C): each neighbour slab (M, C)
    # is contiguous for the fused EdgeConv kernel.
    # TODO(synk): ideally this gather moves inside the EdgeConv kernel (scalar-
    # prefetched indices + in-kernel gather) to avoid the K-fold HBM round trip.
    b, m, k = idx.shape
    c = x.shape[-1]
    idx_t = jnp.transpose(idx, (0, 2, 1)).reshape(b, k * m, 1)
    flat = jnp.take_along_axis(x, idx_t, axis=1)
    return flat.reshape(b, k, m, c)


# ---------------------------------------------------------------------------
# Sub-networks (channels-last everywhere, bf16 activations between kernels)
# ---------------------------------------------------------------------------
def encode_net(layers, pos, knn_idx):
    # TODO(synk): EncodeNet source unavailable; DGCNN-style EdgeConv stack assumed.
    x = pos.astype(jnp.bfloat16)
    feats = []
    for (w, b) in layers:
        nbr = knn_gather_kmajor(x, knn_idx)          # gather stays in XLA glue
        x = pallas_edgeconv(x, nbr, w, b)            # fused edge-feat + tall matmul + relu + max-K
        feats.append(x)
    return jnp.concatenate(feats, axis=-1)           # (B, N, 96) bf16


def global_shift(p, x, num_points, global_feat=None):
    # TODO(synk): GlobalShiftLayer source unavailable; subsample + global-max concat + conv+fc.
    if global_feat is None:
        global_feat = jnp.max(x, axis=1, keepdims=True)                  # (B, 1, C)
    b = x.shape[0]
    xs = x[:, :num_points, :]
    g = jnp.broadcast_to(global_feat, (b, num_points, global_feat.shape[-1]))
    rows = jnp.concatenate([xs, g], axis=-1).reshape(b * num_points, -1)
    h = pallas_mlp2(rows, p["conv_w"], p["conv_b"], p["fc_w"], p["fc_b"])  # conv+fc fused
    h = h.reshape(b, num_points, -1)
    return h, jnp.max(h, axis=1, keepdims=True)


def point_encoder(p, pos, knn_idx, num_out):
    b, n, _ = pos.shape
    y = encode_net(p["encode"], pos, knn_idx)                            # (B, N, 96)
    y = pallas_linear(y.reshape(b * n, -1), p["c1_w"], p["c1_b"], act="relu")
    y = y.reshape(b, n, -1)                                              # (B, N, 128)
    y, g1 = global_shift(p["shift1"], y, num_out * 2)
    y, _g2 = global_shift(p["shift2"], y, num_out, global_feat=g1)
    y, _g3 = global_shift(p["shift3"], y, num_out)
    # conv_2 -> conv_3 fused in one kernel
    y = pallas_mlp2(y.reshape(b * num_out, -1), p["c2_w"], p["c2_b"], p["c3_w"], p["c3_b"])
    return y.reshape(b, num_out, -1)                                     # (B, num_out, 128)


# ---------------------------------------------------------------------------
# Full Network forward
# ---------------------------------------------------------------------------
def network_forward(params, pos, cfg, mode_test=False):
    b, _, _ = pos.shape
    num_out, num_knn, decode_knn = cfg["num_out"], cfg["num_knn"], cfg["decode_knn"]
    out_dim = cfg["out_dim"]

    knn_idx = knn_indices(pos, decode_knn + 1)                           # (B, N, decode_knn+1)
    y = point_encoder(params["enc"], pos, knn_idx[:, :, 1:num_knn + 1], num_out)

    pos_sub = pos[:, :num_out, :]
    knn_d = knn_idx[:, :num_out, :decode_knn]
    nn_pc = knn_gather(pos, knn_d) - pos_sub[:, :, None, :]              # (B, num_out, Kd, 3)

    m = b * num_out
    feat = pallas_decoder(nn_pc.reshape(m, decode_knn, 3),
                          y.reshape(m, y.shape[-1]),
                          params["dec"],
                          params["mlp_pos0_w"], params["mlp_pos0_b"],
                          params["mlp_pos1_w"], params["mlp_pos1_b"],
                          params["c1_w"], params["c1_b"])                # (M, 128) f32
    feat = feat.reshape(b, num_out, out_dim)                             # channels-last

    weights, normal = pallas_head(feat, params["cw_w"], params["cw_b"],
                                  params["c2_w"], params["c2_b"],
                                  params["mlpn_w"], params["mlpn_b"])
    if mode_test:
        return normal
    return normal, weights, None


# ---------------------------------------------------------------------------
# Deterministic parameter init (PyTorch default uniform(-1/sqrt(fan_in), ...))
# ---------------------------------------------------------------------------
def init_params(key, cfg):
    keys = iter(jax.random.split(key, 128))

    def lin(fi, fo):
        kw, kb = jax.random.split(next(keys))
        bound = 1.0 / (fi ** 0.5)
        w = jax.random.uniform(kw, (fi, fo), jnp.float32, -bound, bound)
        b = jax.random.uniform(kb, (fo,), jnp.float32, -bound, bound)
        return w, b

    conv_ch = 24
    enc = {}
    edge = []
    cin = 3
    for _ in range(4):
        edge.append(lin(2 * cin, conv_ch))
        cin = conv_ch
    enc["encode"] = edge
    enc["c1_w"], enc["c1_b"] = lin(4 * conv_ch, 128)

    def shift(ci, co):
        s = {}
        s["conv_w"], s["conv_b"] = lin(2 * ci, co)
        s["fc_w"], s["fc_b"] = lin(co, co)
        return s

    enc["shift1"] = shift(128, 256)
    enc["shift2"] = shift(256, 512)
    enc["shift3"] = shift(512, 512)
    enc["c2_w"], enc["c2_b"] = lin(512, 256)
    enc["c3_w"], enc["c3_b"] = lin(256, 128)

    p = {"enc": enc}
    p["mlp_pos0_w"], p["mlp_pos0_b"] = lin(3, 64)
    p["mlp_pos1_w"], p["mlp_pos1_b"] = lin(64, 64)

    hdim, cp, cdim, out_dim = 128, 64 + 3, 128, cfg["out_dim"]
    dec = {}
    dec["fc_p_w"], dec["fc_p_b"] = lin(cp, hdim)
    blocks = []
    for _ in range(3):
        blk = {}
        blk["g0_w"], blk["g0_b"] = lin(cdim, hdim)
        blk["be0_w"], blk["be0_b"] = lin(cdim, hdim)
        blk["fc0_w"], blk["fc0_b"] = lin(hdim, hdim)
        blk["g1_w"], blk["g1_b"] = lin(cdim, hdim)
        blk["be1_w"], blk["be1_b"] = lin(cdim, hdim)
        blk["fc1_w"], blk["fc1_b"] = lin(hdim, hdim)
        blocks.append(blk)
    dec["blocks"] = blocks
    dec["gf_w"], dec["gf_b"] = lin(cdim, hdim)
    dec["bf_w"], dec["bf_b"] = lin(cdim, hdim)
    dec["fc_out_w"], dec["fc_out_b"] = lin(hdim, out_dim)
    p["dec"] = dec

    p["c1_w"], p["c1_b"] = lin(128, 128)
    p["c2_w"], p["c2_b"] = lin(128, 128)
    p["cw_w"], p["cw_b"] = lin(128, 1)
    p["mlpn_w"], p["mlpn_b"] = lin(128, 3)
    return p


if __name__ == "__main__":
    cfg = dict(num_in=32, num_knn=8, decode_knn=8, out_dim=128)
    cfg["num_out"] = cfg["num_in"] // 4
    assert cfg["decode_knn"] >= cfg["num_knn"]

    key = jax.random.PRNGKey(0)
    kp, kx = jax.random.split(key)
    params = init_params(kp, cfg)

    B = 2
    pos = jax.random.normal(kx, (B, cfg["num_in"], 3), jnp.float32)

    fwd = jax.jit(lambda prm, pts: network_forward(prm, pts, cfg))
    normal, weights, neighbor_normal = fwd(params, pos)
    jax.block_until_ready((normal, weights))

    assert normal.shape == (B, 3)
    assert weights.shape == (B, 1, cfg["num_out"])
    assert neighbor_normal is None
    assert bool(jnp.all(jnp.isfinite(normal))) and bool(jnp.all(jnp.isfinite(weights)))
    print("KERNEL_OK")
</pallas_src>

<mosaic_0001>
module attributes {stable_mosaic.version = 11 : i64} {
  func.func @_edgeconv_kernel(%arg0: i32, %arg1: i32, %arg2: memref<1x32x3xbf16, #tpu.memory_space<vmem>>, %arg3: memref<1x8x32x3xbf16, #tpu.memory_space<vmem>>, %arg4: memref<3x24xbf16, #tpu.memory_space<vmem>>, %arg5: memref<3x24xbf16, #tpu.memory_space<vmem>>, %arg6: memref<1x24xf32, #tpu.memory_space<vmem>>, %arg7: memref<1x32x24xbf16, #tpu.memory_space<vmem>>) attributes {dimension_semantics = [#tpu.dimension_semantics<parallel>, #tpu.dimension_semantics<parallel>], iteration_bounds = array<i64: 2, 1>, scalar_prefetch = 0 : i64, scratch_operands = 0 : i64, tpu.core_type = #tpu.core_type<tc>, window_params = [{transform_indices = @transform_0, window_bounds = array<i64: 1, 32, 3>}, {transform_indices = @transform_1, window_bounds = array<i64: 1, 8, 32, 3>}, {pipeline_mode = #tpu.pipeline_mode<synchronous>, transform_indices = @transform_2, window_bounds = array<i64: 3, 24>}, {pipeline_mode = #tpu.pipeline_mode<synchronous>, transform_indices = @transform_3, window_bounds = array<i64: 3, 24>}, {pipeline_mode = #tpu.pipeline_mode<synchronous>, transform_indices = @transform_4, window_bounds = array<i64: 1, 24>}, {transform_indices = @transform_5, window_bounds = array<i64: 1, 32, 24>}]} {
    %c0 = arith.constant 0 : index
    %c0_0 = arith.constant 0 : index
    %c0_1 = arith.constant 0 : index
    %0 = vector.load %arg2[%c0, %c0_0, %c0_1] : memref<1x32x3xbf16, #tpu.memory_space<vmem>>, vector<1x32x3xbf16>
    %1 = vector.shape_cast %0 : vector<1x32x3xbf16> to vector<32x3xbf16>
    %c0_2 = arith.constant 0 : index
    %c0_3 = arith.constant 0 : index
    %2 = vector.load %arg4[%c0_2, %c0_3] : memref<3x24xbf16, #tpu.memory_space<vmem>>, vector<3x24xbf16>
    %cst = arith.constant dense<0.000000e+00> : vector<32x24xf32>
    %3 = tpu.matmul %1, %2, %cst {dimension_numbers = #tpu.dot_dimension_numbers<[1], [0], [0], [1], [0, 0, 1, 1], [], []>} : vector<32x3xbf16>, vector<3x24xbf16>, vector<32x24xf32> -> vector<32x24xf32>
    %c0_4 = arith.constant 0 : index
    %c0_5 = arith.constant 0 : index
    %4 = vector.load %arg6[%c0_4, %c0_5] : memref<1x24xf32, #tpu.memory_space<vmem>>, vector<1x24xf32>
    %5 = vector.broadcast %4 : vector<1x24xf32> to vector<32x24xf32>
    %6 = arith.addf %3, %5 : vector<32x24xf32>
    %c0_6 = arith.constant 0 : index
    %c0_7 = arith.constant 0 : index
    %c0_8 = arith.constant 0 : index
    %c0_9 = arith.constant 0 : index
    %7 = vector.load %arg3[%c0_6, %c0_7, %c0_8, %c0_9] : memref<1x8x32x3xbf16, #tpu.memory_space<vmem>>, vector<1x8x32x3xbf16>
    %8 = vector.shape_cast %7 : vector<1x8x32x3xbf16> to vector<8x32x3xbf16>
    %9 = vector.shape_cast %8 : vector<8x32x3xbf16> to vector<256x3xbf16>
    %c0_10 = arith.constant 0 : index
    %c0_11 = arith.constant 0 : index
    %10 = vector.load %arg5[%c0_10, %c0_11] : memref<3x24xbf16, #tpu.memory_space<vmem>>, vector<3x24xbf16>
    %cst_12 = arith.constant dense<0.000000e+00> : vector<256x24xf32>
    %11 = tpu.matmul %9, %10, %cst_12 {dimension_numbers = #tpu.dot_dimension_numbers<[1], [0], [0], [1], [0, 0, 1, 1], [], []>} : vector<256x3xbf16>, vector<3x24xbf16>, vector<256x24xf32> -> vector<256x24xf32>
    %12 = vector.shape_cast %11 : vector<256x24xf32> to vector<8x32x24xf32>
    %13 = vector.shape_cast %6 : vector<32x24xf32> to vector<1x32x24xf32>
    %14 = vector.broadcast %13 : vector<1x32x24xf32> to vector<8x32x24xf32>
    %15 = arith.addf %12, %14 : vector<8x32x24xf32>
    %cst_13 = arith.constant 0.000000e+00 : f32
    %16 = vector.broadcast %cst_13 : f32 to vector<8x32x24xf32>
    %17 = arith.maximumf %15, %16 : vector<8x32x24xf32>
    %cst_14 = arith.constant dense<0xFF800000> : vector<32x24xf32>
    %18 = vector.multi_reduction <maximumf>, %17, %cst_14 [0] : vector<8x32x24xf32> to vector<32x24xf32>
    %19 = arith.truncf %18 : vector<32x24xf32> to vector<32x24xbf16>
    %c0_15 = arith.constant 0 : index
    %c0_16 = arith.constant 0 : index
    %c0_17 = arith.constant 0 : index
    %20 = vector.load %arg7[%c0_15, %c0_16, %c0_17] : memref<1x32x24xbf16, #tpu.memory_space<vmem>>, vector<1x32x24xbf16>
    %21 = vector.shape_cast %20 : vector<1x32x24xbf16> to vector<32x24xbf16>
    %22 = vector.shape_cast %19 : vector<32x24xbf16> to vector<1x32x24xbf16>
    tpu.vector_store %arg7[%c0_15, %c0_16, %c0_17], %22 {strides = array<i32>} : memref<1x32x24xbf16, #tpu.memory_space<vmem>>, vector<1x32x24xbf16>,
    return
  }
  func.func @transform_0(%arg0: i32, %arg1: i32) -> (i32, i32, i32) {
    %c0_i32 = arith.constant 0 : i32
    %c0_i32_0 = arith.constant 0 : i32
    return %arg0, %arg1, %c0_i32 : i32, i32, i32
  }
  func.func @transform_1(%arg0: i32, %arg1: i32) -> (i32, i32, i32, i32) {
    %c0_i32 = arith.constant 0 : i32
    %c0_i32_0 = arith.constant 0 : i32
    %c0_i32_1 = arith.constant 0 : i32
    return %arg0, %c0_i32, %arg1, %c0_i32_0 : i32, i32, i32, i32
  }
  func.func @transform_2(%arg0: i32, %arg1: i32) -> (i32, i32) {
    %c0_i32 = arith.constant 0 : i32
    %c0_i32_0 = arith.constant 0 : i32
    %c0_i32_1 = arith.constant 0 : i32
    return %c0_i32, %c0_i32_0 : i32, i32
  }
  func.func @transform_3(%arg0: i32, %arg1: i32) -> (i32, i32) {
    %c0_i32 = arith.constant 0 : i32
    %c0_i32_0 = arith.constant 0 : i32
    %c0_i32_1 = arith.constant 0 : i32
    return %c0_i32, %c0_i32_0 : i32, i32
  }
  func.func @transform_4(%arg0: i32, %arg1: i32) -> (i32, i32) {
    %c0_i32 = arith.constant 0 : i32
    %c0_i32_0 = arith.constant 0 : i32
    %c0_i32_1 = arith.constant 0 : i32
    return %c0_i32, %c0_i32_0 : i32, i32
  }
  func.func @transform_5(%arg0: i32, %arg1: i32) -> (i32, i32, i32) {
    %c0_i32 = arith.constant 0 : i32
    %c0_i32_0 = arith.constant 0 : i32
    return %arg0, %arg1, %c0_i32 : i32, i32, i32
  }
}

module attributes {stable_mosaic.version = 11 : i64} {
  func.func @_edgeconv_kernel(%arg0: i32, %arg1: i32, %arg2: memref<1x32x24xbf16, #tpu.memory_space<vmem>>, %arg3: memref<1x8x32x24xbf16, #tpu.memory_space<vmem>>, %arg4: memref<24x24xbf16, #tpu.memory_space<vmem>>, %arg5: memref<24x24xbf16, #tpu.memory_space<vmem>>, %arg6: memref<1x24xf32, #tpu.memory_space<vmem>>, %arg7: memref<1x32x24xbf16, #tpu.memory_space<vmem>>) attributes {dimension_semantics = [#tpu.dimension_semantics<parallel>, #tpu.dimension_semantics<parallel>], iteration_bounds = array<i64: 2, 1>, scalar_prefetch = 0 : i64, scratch_operands = 0 : i64, tpu.core_type = #tpu.core_type<tc>, window_params = [{transform_indices = @transform_0, window_bounds = array<i64: 1, 32, 24>}, {transform_indices = @transform_1, window_bounds = array<i64: 1, 8, 32, 24>}, {pipeline_mode = #tpu.pipeline_mode<synchronous>, transform_indices = @transform_2, window_bounds = array<i64: 24, 24>}, {pipeline_mode = #tpu.pipeline_mode<synchronous>, transform_indices = @transform_3, window_bounds = array<i64: 24, 24>}, {pipeline_mode = #tpu.pipeline_mode<synchronous>, transform_indices = @transform_4, window_bounds = array<i64: 1, 24>}, {transform_indices = @transform_5, window_bounds = array<i64: 1, 32, 24>}]} {
    %c0 = arith.constant 0 : index
    %c0_0 = arith.constant 0 : index
    %c0_1 = arith.constant 0 : index
    %0 = vector.load %arg2[%c0, %c0_0, %c0_1] : memref<1x32x24xbf16, #tpu.memory_space<vmem>>, vector<1x32x24xbf16>
    %1 = vector.shape_cast %0 : vector<1x32x24xbf16> to vector<32x24xbf16>
    %c0_2 = arith.constant 0 : index
    %c0_3 = arith.constant 0 : index
    %2 = vector.load %arg4[%c0_2, %c0_3] : memref<24x24xbf16, #tpu.memory_space<vmem>>, vector<24x24xbf16>
    %cst = arith.constant dense<0.000000e+00> : vector<32x24xf32>
    %3 = tpu.matmul %1, %2, %cst {dimension_numbers = #tpu.dot_dimension_numbers<[1], [0], [0], [1], [0, 0, 1, 1], [], []>} : vector<32x24xbf16>, vector<24x24xbf16>, vector<32x24xf32> -> vector<32x24xf32>
    %c0_4 = arith.constant 0 : index
    %c0_5 = arith.constant 0 : index
    %4 = vector.load %arg6[%c0_4, %c0_5] : memref<1x24xf32, #tpu.memory_space<vmem>>, vector<1x24xf32>
    %5 = vector.broadcast %4 : vector<1x24xf32> to vector<32x24xf32>
    %6 = arith.addf %3, %5 : vector<32x24xf32>
    %c0_6 = arith.constant 0 : index
    %c0_7 = arith.constant 0 : index
    %c0_8 = arith.constant 0 : index
    %c0_9 = arith.constant 0 : index
    %7 = vector.load %arg3[%c0_6, %c0_7, %c0_8, %c0_9] : memref<1x8x32x24xbf16, #tpu.memory_space<vmem>>, vector<1x8x32x24xbf16>
    %8 = vector.shape_cast %7 : vector<1x8x32x24xbf16> to vector<8x32x24xbf16>
    %9 = vector.shape_cast %8 : vector<8x32x24xbf16> to vector<256x24xbf16>
    %c0_10 = arith.constant 0 : index
    %c0_11 = arith.constant 0 : index
    %10 = vector.load %arg5[%c0_10, %c0_11] : memref<24x24xbf16, #tpu.memory_space<vmem>>, vector<24x24xbf16>
    %cst_12 = arith.constant dense<0.000000e+00> : vector<256x24xf32>
    %11 = tpu.matmul %9, %10, %cst_12 {dimension_numbers = #tpu.dot_dimension_numbers<[1], [0], [0], [1], [0, 0, 1, 1], [], []>} : vector<256x24xbf16>, vector<24x24xbf16>, vector<256x24xf32> -> vector<256x24xf32>
    %12 = vector.shape_cast %11 : vector<256x24xf32> to vector<8x32x24xf32>
    %13 = vector.shape_cast %6 : vector<32x24xf32> to vector<1x32x24xf32>
    %14 = vector.broadcast %13 : vector<1x32x24xf32> to vector<8x32x24xf32>
    %15 = arith.addf %12, %14 : vector<8x32x24xf32>
    %cst_13 = arith.constant 0.000000e+00 : f32
    %16 = vector.broadcast %cst_13 : f32 to vector<8x32x24xf32>
    %17 = arith.maximumf %15, %16 : vector<8x32x24xf32>
    %cst_14 = arith.constant dense<0xFF800000> : vector<32x24xf32>
    %18 = vector.multi_reduction <maximumf>, %17, %cst_14 [0] : vector<8x32x24xf32> to vector<32x24xf32>
    %19 = arith.truncf %18 : vector<32x24xf32> to vector<32x24xbf16>
    %c0_15 = arith.constant 0 : index
    %c0_16 = arith.constant 0 : index
    %c0_17 = arith.constant 0 : index
    %20 = vector.load %arg7[%c0_15, %c0_16, %c0_17] : memref<1x32x24xbf16, #tpu.memory_space<vmem>>, vector<1x32x24xbf16>
    %21 = vector.shape_cast %20 : vector<1x32x24xbf16> to vector<32x24xbf16>
    %22 = vector.shape_cast %19 : vector<32x24xbf16> to vector<1x32x24xbf16>
    tpu.vector_store %arg7[%c0_15, %c0_16, %c0_17], %22 {strides = array<i32>} : memref<1x32x24xbf16, #tpu.memory_space<vmem>>, vector<1x32x24xbf16>,
    return
  }
  func.func @transform_0(%arg0: i32, %arg1: i32) -> (i32, i32, i32) {
    %c0_i32 = arith.constant 0 : i32
    %c0_i32_0 = arith.constant 0 : i32
    return %arg0, %arg1, %c0_i32 : i32, i32, i32
  }
  func.func @transform_1(%arg0: i32, %arg1: i32) -> (i32, i32, i32, i32) {
    %c0_i32 = arith.constant 0 : i32
    %c0_i32_0 = arith.constant 0 : i32
    %c0_i32_1 = arith.constant 0 : i32
    return %arg0, %c0_i32, %arg1, %c0_i32_0 : i32, i32, i32, i32
  }
  func.func @transform_2(%arg0: i32, %arg1: i32) -> (i32, i32) {
    %c0_i32 = arith.constant 0 : i32
    %c0_i32_0 = arith.constant 0 : i32
    %c0_i32_1 = arith.constant 0 : i32
    return %c0_i32, %c0_i32_0 : i32, i32
  }
  func.func @transform_3(%arg0: i32, %arg1: i32) -> (i32, i32) {
    %c0_i32 = arith.constant 0 : i32
    %c0_i32_0 = arith.constant 0 : i32
    %c0_i32_1 = arith.constant 0 : i32
    return %c0_i32, %c0_i32_0 : i32, i32
  }
  func.func @transform_4(%arg0: i32, %arg1: i32) -> (i32, i32) {
    %c0_i32 = arith.constant 0 : i32
    %c0_i32_0 = arith.constant 0 : i32
    %c0_i32_1 = arith.constant 0 : i32
    return %c0_i32, %c0_i32_0 : i32, i32
  }
  func.func @transform_5(%arg0: i32, %arg1: i32) -> (i32, i32, i32) {
    %c0_i32 = arith.constant 0 : i32
    %c0_i32_0 = arith.constant 0 : i32
    return %arg0, %arg1, %c0_i32 : i32, i32, i32
  }
}

module attributes {stable_mosaic.version = 11 : i64} {
  func.func @_linear_kernel(%arg0: i32, %arg1: memref<32x96xbf16, #tpu.memory_space<vmem>>, %arg2: memref<96x128xbf16, #tpu.memory_space<vmem>>, %arg3: memref<1x128xf32, #tpu.memory_space<vmem>>, %arg4: memref<32x128xbf16, #tpu.memory_space<vmem>>) attributes {dimension_semantics = [#tpu.dimension_semantics<parallel>], iteration_bounds = array<i64: 2>, scalar_prefetch = 0 : i64, scratch_operands = 0 : i64, tpu.core_type = #tpu.core_type<tc>, window_params = [{transform_indices = @transform_0, window_bounds = array<i64: 32, 96>}, {pipeline_mode = #tpu.pipeline_mode<synchronous>, transform_indices = @transform_1, window_bounds = array<i64: 96, 128>}, {pipeline_mode = #tpu.pipeline_mode<synchronous>, transform_indices = @transform_2, window_bounds = array<i64: 1, 128>}, {transform_indices = @transform_3, window_bounds = array<i64: 32, 128>}]} {
    %c0 = arith.constant 0 : index
    %c0_0 = arith.constant 0 : index
    %0 = vector.load %arg1[%c0, %c0_0] : memref<32x96xbf16, #tpu.memory_space<vmem>>, vector<32x96xbf16>
    %c0_1 = arith.constant 0 : index
    %c0_2 = arith.constant 0 : index
    %1 = vector.load %arg2[%c0_1, %c0_2] : memref<96x128xbf16, #tpu.memory_space<vmem>>, vector<96x128xbf16>
    %cst = arith.constant dense<0.000000e+00> : vector<32x128xf32>
    %2 = tpu.matmul %0, %1, %cst {dimension_numbers = #tpu.dot_dimension_numbers<[1], [0], [0], [1], [0, 0, 1, 1], [], []>} : vector<32x96xbf16>, vector<96x128xbf16>, vector<32x128xf32> -> vector<32x128xf32>
    %c0_3 = arith.constant 0 : index
    %c0_4 = arith.constant 0 : index
    %3 = vector.load %arg3[%c0_3, %c0_4] : memref<1x128xf32, #tpu.memory_space<vmem>>, vector<1x128xf32>
    %4 = vector.broadcast %3 : vector<1x128xf32> to vector<32x128xf32>
    %5 = arith.addf %2, %4 : vector<32x128xf32>
    %cst_5 = arith.constant 0.000000e+00 : f32
    %6 = vector.broadcast %cst_5 : f32 to vector<32x128xf32>
    %7 = arith.maximumf %5, %6 : vector<32x128xf32>
    %8 = arith.truncf %7 : vector<32x128xf32> to vector<32x128xbf16>
    %c0_6 = arith.constant 0 : index
    %c0_7 = arith.constant 0 : index
    %9 = vector.load %arg4[%c0_6, %c0_7] : memref<32x128xbf16, #tpu.memory_space<vmem>>, vector<32x128xbf16>
    tpu.vector_store %arg4[%c0_6, %c0_7], %8 {strides = array<i32>} : memref<32x128xbf16, #tpu.memory_space<vmem>>, vector<32x128xbf16>,
    return
  }
  func.func @transform_0(%arg0: i32) -> (i32, i32) {
    %c0_i32 = arith.constant 0 : i32
    %c0_i32_0 = arith.constant 0 : i32
    return %arg0, %c0_i32 : i32, i32
  }
  func.func @transform_1(%arg0: i32) -> (i32, i32) {
    %c0_i32 = arith.constant 0 : i32
    %c0_i32_0 = arith.constant 0 : i32
    %c0_i32_1 = arith.constant 0 : i32
    return %c0_i32, %c0_i32_0 : i32, i32
  }
  func.func @transform_2(%arg0: i32) -> (i32, i32) {
    %c0_i32 = arith.constant 0 : i32
    %c0_i32_0 = arith.constant 0 : i32
    %c0_i32_1 = arith.constant 0 : i32
    return %c0_i32, %c0_i32_0 : i32, i32
  }
  func.func @transform_3(%arg0: i32) -> (i32, i32) {
    %c0_i32 = arith.constant 0 : i32
    %c0_i32_0 = arith.constant 0 : i32
    return %arg0, %c0_i32 : i32, i32
  }
}

module attributes {stable_mosaic.version = 11 : i64} {
  func.func @_mlp2_kernel(%arg0: i32, %arg1: memref<16x256xbf16, #tpu.memory_space<vmem>>, %arg2: memref<256x256xbf16, #tpu.memory_space<vmem>>, %arg3: memref<1x256xf32, #tpu.memory_space<vmem>>, %arg4: memref<256x256xbf16, #tpu.memory_space<vmem>>, %arg5: memref<1x256xf32, #tpu.memory_space<vmem>>, %arg6: memref<16x256xbf16, #tpu.memory_space<vmem>>) attributes {dimension_semantics = [#tpu.dimension_semantics<parallel>], iteration_bounds = array<i64: 2>, scalar_prefetch = 0 : i64, scratch_operands = 0 : i64, tpu.core_type = #tpu.core_type<tc>, window_params = [{transform_indices = @transform_0, window_bounds = array<i64: 16, 256>}, {pipeline_mode = #tpu.pipeline_mode<synchronous>, transform_indices = @transform_1, window_bounds = array<i64: 256, 256>}, {pipeline_mode = #tpu.pipeline_mode<synchronous>, transform_indices = @transform_2, window_bounds = array<i64: 1, 256>}, {pipeline_mode = #tpu.pipeline_mode<synchronous>, transform_indices = @transform_3, window_bounds = array<i64: 256, 256>}, {pipeline_mode = #tpu.pipeline_mode<synchronous>, transform_indices = @transform_4, window_bounds = array<i64: 1, 256>}, {transform_indices = @transform_5, window_bounds = array<i64: 16, 256>}]} {
    %c0 = arith.constant 0 : index
    %c0_0 = arith.constant 0 : index
    %0 = vector.load %arg1[%c0, %c0_0] : memref<16x256xbf16, #tpu.memory_space<vmem>>, vector<16x256xbf16>
    %c0_1 = arith.constant 0 : index
    %c0_2 = arith.constant 0 : index
    %1 = vector.load %arg2[%c0_1, %c0_2] : memref<256x256xbf16, #tpu.memory_space<vmem>>, vector<256x256xbf16>
    %cst = arith.constant dense<0.000000e+00> : vector<16x256xf32>
    %2 = tpu.matmul %0, %1, %cst {dimension_numbers = #tpu.dot_dimension_numbers<[1], [0], [0], [1], [0, 0, 1, 1], [], []>} : vector<16x256xbf16>, vector<256x256xbf16>, vector<16x256xf32> -> vector<16x256xf32>
    %c0_3 = arith.constant 0 : index
    %c0_4 = arith.constant 0 : index
    %3 = vector.load %arg3[%c0_3, %c0_4] : memref<1x256xf32, #tpu.memory_space<vmem>>, vector<1x256xf32>
    %4 = vector.broadcast %3 : vector<1x256xf32> to vector<16x256xf32>
    %5 = arith.addf %2, %4 : vector<16x256xf32>
    %cst_5 = arith.constant 0.000000e+00 : f32
    %6 = vector.broadcast %cst_5 : f32 to vector<16x256xf32>
    %7 = arith.maximumf %5, %6 : vector<16x256xf32>
    %8 = arith.truncf %7 : vector<16x256xf32> to vector<16x256xbf16>
    %c0_6 = arith.constant 0 : index
    %c0_7 = arith.constant 0 : index
    %9 = vector.load %arg4[%c0_6, %c0_7] : memref<256x256xbf16, #tpu.memory_space<vmem>>, vector<256x256xbf16>
    %cst_8 = arith.constant dense<0.000000e+00> : vector<16x256xf32>
    %10 = tpu.matmul %8, %9, %cst_8 {dimension_numbers = #tpu.dot_dimension_numbers<[1], [0], [0], [1], [0, 0, 1, 1], [], []>} : vector<16x256xbf16>, vector<256x256xbf16>, vector<16x256xf32> -> vector<16x256xf32>
    %c0_9 = arith.constant 0 : index
    %c0_10 = arith.constant 0 : index
    %11 = vector.load %arg5[%c0_9, %c0_10] : memref<1x256xf32, #tpu.memory_space<vmem>>, vector<1x256xf32>
    %12 = vector.broadcast %11 : vector<1x256xf32> to vector<16x256xf32>
    %13 = arith.addf %10, %12 : vector<16x256xf32>
    %cst_11 = arith.constant 0.000000e+00 : f32
    %14 = vector.broadcast %cst_11 : f32 to vector<16x256xf32>
    %15 = arith.maximumf %13, %14 : vector<16x256xf32>
    %16 = arith.truncf %15 : vector<16x256xf32> to vector<16x256xbf16>
    %c0_12 = arith.constant 0 : index
    %c0_13 = arith.constant 0 : index
    %17 = vector.load %arg6[%c0_12, %c0_13] : memref<16x256xbf16, #tpu.memory_space<vmem>>, vector<16x256xbf16>
    tpu.vector_store %arg6[%c0_12, %c0_13], %16 {strides = array<i32>} : memref<16x256xbf16, #tpu.memory_space<vmem>>, vector<16x256xbf16>,
    return
  }
  func.func @transform_0(%arg0: i32) -> (i32, i32) {
    %c0_i32 = arith.constant 0 : i32
    %c0_i32_0 = arith.constant 0 : i32
    return %arg0, %c0_i32 : i32, i32
  }
  func.func @transform_1(%arg0: i32) -> (i32, i32) {
    %c0_i32 = arith.constant 0 : i32
    %c0_i32_0 = arith.constant 0 : i32
    %c0_i32_1 = arith.constant 0 : i32
    return %c0_i32, %c0_i32_0 : i32, i32
  }
  func.func @transform_2(%arg0: i32) -> (i32, i32) {
    %c0_i32 = arith.constant 0 : i32
    %c0_i32_0 = arith.constant 0 : i32
    %c0_i32_1 = arith.constant 0 : i32
    return %c0_i32, %c0_i32_0 : i32, i32
  }
  func.func @transform_3(%arg0: i32) -> (i32, i32) {
    %c0_i32 = arith.constant 0 : i32
    %c0_i32_0 = arith.constant 0 : i32
    %c0_i32_1 = arith.constant 0 : i32
    return %c0_i32, %c0_i32_0 : i32, i32
  }
  func.func @transform_4(%arg0: i32) -> (i32, i32) {
    %c0_i32 = arith.constant 0 : i32
    %c0_i32_0 = arith.constant 0 : i32
    %c0_i32_1 = arith.constant 0 : i32
    return %c0_i32, %c0_i32_0 : i32, i32
  }
  func.func @transform_5(%arg0: i32) -> (i32, i32) {
    %c0_i32 = arith.constant 0 : i32
    %c0_i32_0 = arith.constant 0 : i32
    return %arg0, %c0_i32 : i32, i32
  }
}

module attributes {stable_mosaic.version = 11 : i64} {
  func.func @_mlp2_kernel(%arg0: i32, %arg1: memref<8x512xbf16, #tpu.memory_space<vmem>>, %arg2: memref<512x512xbf16, #tpu.memory_space<vmem>>, %arg3: memref<1x512xf32, #tpu.memory_space<vmem>>, %arg4: memref<512x512xbf16, #tpu.memory_space<vmem>>, %arg5: memref<1x512xf32, #tpu.memory_space<vmem>>, %arg6: memref<8x512xbf16, #tpu.memory_space<vmem>>) attributes {dimension_semantics = [#tpu.dimension_semantics<parallel>], iteration_bounds = array<i64: 2>, scalar_prefetch = 0 : i64, scratch_operands = 0 : i64, tpu.core_type = #tpu.core_type<tc>, window_params = [{transform_indices = @transform_0, window_bounds = array<i64: 8, 512>}, {pipeline_mode = #tpu.pipeline_mode<synchronous>, transform_indices = @transform_1, window_bounds = array<i64: 512, 512>}, {pipeline_mode = #tpu.pipeline_mode<synchronous>, transform_indices = @transform_2, window_bounds = array<i64: 1, 512>}, {pipeline_mode = #tpu.pipeline_mode<synchronous>, transform_indices = @transform_3, window_bounds = array<i64: 512, 512>}, {pipeline_mode = #tpu.pipeline_mode<synchronous>, transform_indices = @transform_4, window_bounds = array<i64: 1, 512>}, {transform_indices = @transform_5, window_bounds = array<i64: 8, 512>}]} {
    %c0 = arith.constant 0 : index
    %c0_0 = arith.constant 0 : index
    %0 = vector.load %arg1[%c0, %c0_0] : memref<8x512xbf16, #tpu.memory_space<vmem>>, vector<8x512xbf16>
    %c0_1 = arith.constant 0 : index
    %c0_2 = arith.constant 0 : index
    %1 = vector.load %arg2[%c0_1, %c0_2] : memref<512x512xbf16, #tpu.memory_space<vmem>>, vector<512x512xbf16>
    %cst = arith.constant dense<0.000000e+00> : vector<8x512xf32>
    %2 = tpu.matmul %0, %1, %cst {dimension_numbers = #tpu.dot_dimension_numbers<[1], [0], [0], [1], [0, 0, 1, 1], [], []>} : vector<8x512xbf16>, vector<512x512xbf16>, vector<8x512xf32> -> vector<8x512xf32>
    %c0_3 = arith.constant 0 : index
    %c0_4 = arith.constant 0 : index
    %3 = vector.load %arg3[%c0_3, %c0_4] : memref<1x512xf32, #tpu.memory_space<vmem>>, vector<1x512xf32>
    %4 = vector.broadcast %3 : vector<1x512xf32> to vector<8x512xf32>
    %5 = arith.addf %2, %4 : vector<8x512xf32>
    %cst_5 = arith.constant 0.000000e+00 : f32
    %6 = vector.broadcast %cst_5 : f32 to vector<8x512xf32>
    %7 = arith.maximumf %5, %6 : vector<8x512xf32>
    %8 = arith.truncf %7 : vector<8x512xf32> to vector<8x512xbf16>
    %c0_6 = arith.constant 0 : index
    %c0_7 = arith.constant 0 : index
    %9 = vector.load %arg4[%c0_6, %c0_7] : memref<512x512xbf16, #tpu.memory_space<vmem>>, vector<512x512xbf16>
    %cst_8 = arith.constant dense<0.000000e+00> : vector<8x512xf32>
    %10 = tpu.matmul %8, %9, %cst_8 {dimension_numbers = #tpu.dot_dimension_numbers<[1], [0], [0], [1], [0, 0, 1, 1], [], []>} : vector<8x512xbf16>, vector<512x512xbf16>, vector<8x512xf32> -> vector<8x512xf32>
    %c0_9 = arith.constant 0 : index
    %c0_10 = arith.constant 0 : index
    %11 = vector.load %arg5[%c0_9, %c0_10] : memref<1x512xf32, #tpu.memory_space<vmem>>, vector<1x512xf32>
    %12 = vector.broadcast %11 : vector<1x512xf32> to vector<8x512xf32>
    %13 = arith.addf %10, %12 : vector<8x512xf32>
    %cst_11 = arith.constant 0.000000e+00 : f32
    %14 = vector.broadcast %cst_11 : f32 to vector<8x512xf32>
    %15 = arith.maximumf %13, %14 : vector<8x512xf32>
    %16 = arith.truncf %15 : vector<8x512xf32> to vector<8x512xbf16>
    %c0_12 = arith.constant 0 : index
    %c0_13 = arith.constant 0 : index
    %17 = vector.load %arg6[%c0_12, %c0_13] : memref<8x512xbf16, #tpu.memory_space<vmem>>, vector<8x512xbf16>
    tpu.vector_store %arg6[%c0_12, %c0_13], %16 {strides = array<i32>} : memref<8x512xbf16, #tpu.memory_space<vmem>>, vector<8x512xbf16>,
    return
  }
  func.func @transform_0(%arg0: i32) -> (i32, i32) {
    %c0_i32 = arith.constant 0 : i32
    %c0_i32_0 = arith.constant 0 : i32
    return %arg0, %c0_i32 : i32, i32
  }
  func.func @transform_1(%arg0: i32) -> (i32, i32) {
    %c0_i32 = arith.constant 0 : i32
    %c0_i32_0 = arith.constant 0 : i32
    %c0_i32_1 = arith.constant 0 : i32
    return %c0_i32, %c0_i32_0 : i32, i32
  }
  func.func @transform_2(%arg0: i32) -> (i32, i32) {
    %c0_i32 = arith.constant 0 : i32
    %c0_i32_0 = arith.constant 0 : i32
    %c0_i32_1 = arith.constant 0 : i32
    return %c0_i32, %c0_i32_0 : i32, i32
  }
  func.func @transform_3(%arg0: i32) -> (i32, i32) {
    %c0_i32 = arith.constant 0 : i32
    %c0_i32_0 = arith.constant 0 : i32
    %c0_i32_1 = arith.constant 0 : i32
    return %c0_i32, %c0_i32_0 : i32, i32
  }
  func.func @transform_4(%arg0: i32) -> (i32, i32) {
    %c0_i32 = arith.constant 0 : i32
    %c0_i32_0 = arith.constant 0 : i32
    %c0_i32_1 = arith.constant 0 : i32
    return %c0_i32, %c0_i32_0 : i32, i32
  }
  func.func @transform_5(%arg0: i32) -> (i32, i32) {
    %c0_i32 = arith.constant 0 : i32
    %c0_i32_0 = arith.constant 0 : i32
    return %arg0, %c0_i32 : i32, i32
  }
}

module attributes {stable_mosaic.version = 11 : i64} {
  func.func @_mlp2_kernel(%arg0: i32, %arg1: memref<8x1024xbf16, #tpu.memory_space<vmem>>, %arg2: memref<1024x512xbf16, #tpu.memory_space<vmem>>, %arg3: memref<1x512xf32, #tpu.memory_space<vmem>>, %arg4: memref<512x512xbf16, #tpu.memory_space<vmem>>, %arg5: memref<1x512xf32, #tpu.memory_space<vmem>>, %arg6: memref<8x512xbf16, #tpu.memory_space<vmem>>) attributes {dimension_semantics = [#tpu.dimension_semantics<parallel>], iteration_bounds = array<i64: 2>, scalar_prefetch = 0 : i64, scratch_operands = 0 : i64, tpu.core_type = #tpu.core_type<tc>, window_params = [{transform_indices = @transform_0, window_bounds = array<i64: 8, 1024>}, {pipeline_mode = #tpu.pipeline_mode<synchronous>, transform_indices = @transform_1, window_bounds = array<i64: 1024, 512>}, {pipeline_mode = #tpu.pipeline_mode<synchronous>, transform_indices = @transform_2, window_bounds = array<i64: 1, 512>}, {pipeline_mode = #tpu.pipeline_mode<synchronous>, transform_indices = @transform_3, window_bounds = array<i64: 512, 512>}, {pipeline_mode = #tpu.pipeline_mode<synchronous>, transform_indices = @transform_4, window_bounds = array<i64: 1, 512>}, {transform_indices = @transform_5, window_bounds = array<i64: 8, 512>}]} {
    %c0 = arith.constant 0 : index
    %c0_0 = arith.constant 0 : index
    %0 = vector.load %arg1[%c0, %c0_0] : memref<8x1024xbf16, #tpu.memory_space<vmem>>, vector<8x1024xbf16>
    %c0_1 = arith.constant 0 : index
    %c0_2 = arith.constant 0 : index
    %1 = vector.load %arg2[%c0_1, %c0_2] : memref<1024x512xbf16, #tpu.memory_space<vmem>>, vector<1024x512xbf16>
    %cst = arith.constant dense<0.000000e+00> : vector<8x512xf32>
    %2 = tpu.matmul %0, %1, %cst {dimension_numbers = #tpu.dot_dimension_numbers<[1], [0], [0], [1], [0, 0, 1, 1], [], []>} : vector<8x1024xbf16>, vector<1024x512xbf16>, vector<8x512xf32> -> vector<8x512xf32>
    %c0_3 = arith.constant 0 : index
    %c0_4 = arith.constant 0 : index
    %3 = vector.load %arg3[%c0_3, %c0_4] : memref<1x512xf32, #tpu.memory_space<vmem>>, vector<1x512xf32>
    %4 = vector.broadcast %3 : vector<1x512xf32> to vector<8x512xf32>
    %5 = arith.addf %2, %4 : vector<8x512xf32>
    %cst_5 = arith.constant 0.000000e+00 : f32
    %6 = vector.broadcast %cst_5 : f32 to vector<8x512xf32>
    %7 = arith.maximumf %5, %6 : vector<8x512xf32>
    %8 = arith.truncf %7 : vector<8x512xf32> to vector<8x512xbf16>
    %c0_6 = arith.constant 0 : index
    %c0_7 = arith.constant 0 : index
    %9 = vector.load %arg4[%c0_6, %c0_7] : memref<512x512xbf16, #tpu.memory_space<vmem>>, vector<512x512xbf16>
    %cst_8 = arith.constant dense<0.000000e+00> : vector<8x512xf32>
    %10 = tpu.matmul %8, %9, %cst_8 {dimension_numbers = #tpu.dot_dimension_numbers<[1], [0], [0], [1], [0, 0, 1, 1], [], []>} : vector<8x512xbf16>, vector<512x512xbf16>, vector<8x512xf32> -> vector<8x512xf32>
    %c0_9 = arith.constant 0 : index
    %c0_10 = arith.constant 0 : index
    %11 = vector.load %arg5[%c0_9, %c0_10] : memref<1x512xf32, #tpu.memory_space<vmem>>, vector<1x512xf32>
    %12 = vector.broadcast %11 : vector<1x512xf32> to vector<8x512xf32>
    %13 = arith.addf %10, %12 : vector<8x512xf32>
    %cst_11 = arith.constant 0.000000e+00 : f32
    %14 = vector.broadcast %cst_11 : f32 to vector<8x512xf32>
    %15 = arith.maximumf %13, %14 : vector<8x512xf32>
    %16 = arith.truncf %15 : vector<8x512xf32> to vector<8x512xbf16>
    %c0_12 = arith.constant 0 : index
    %c0_13 = arith.constant 0 : index
    %17 = vector.load %arg6[%c0_12, %c0_13] : memref<8x512xbf16, #tpu.memory_space<vmem>>, vector<8x512xbf16>
    tpu.vector_store %arg6[%c0_12, %c0_13], %16 {strides = array<i32>} : memref<8x512xbf16, #tpu.memory_space<vmem>>, vector<8x512xbf16>,
    return
  }
  func.func @transform_0(%arg0: i32) -> (i32, i32) {
    %c0_i32 = arith.constant 0 : i32
    %c0_i32_0 = arith.constant 0 : i32
    return %arg0, %c0_i32 : i32, i32
  }
  func.func @transform_1(%arg0: i32) -> (i32, i32) {
    %c0_i32 = arith.constant 0 : i32
    %c0_i32_0 = arith.constant 0 : i32
    %c0_i32_1 = arith.constant 0 : i32
    return %c0_i32, %c0_i32_0 : i32, i32
  }
  func.func @transform_2(%arg0: i32) -> (i32, i32) {
    %c0_i32 = arith.constant 0 : i32
    %c0_i32_0 = arith.constant 0 : i32
    %c0_i32_1 = arith.constant 0 : i32
    return %c0_i32, %c0_i32_0 : i32, i32
  }
  func.func @transform_3(%arg0: i32) -> (i32, i32) {
    %c0_i32 = arith.constant 0 : i32
    %c0_i32_0 = arith.constant 0 : i32
    %c0_i32_1 = arith.constant 0 : i32
    return %c0_i32, %c0_i32_0 : i32, i32
  }
  func.func @transform_4(%arg0: i32) -> (i32, i32) {
    %c0_i32 = arith.constant 0 : i32
    %c0_i32_0 = arith.constant 0 : i32
    %c0_i32_1 = arith.constant 0 : i32
    return %c0_i32, %c0_i32_0 : i32, i32
  }
  func.func @transform_5(%arg0: i32) -> (i32, i32) {
    %c0_i32 = arith.constant 0 : i32
    %c0_i32_0 = arith.constant 0 : i32
    return %arg0, %c0_i32 : i32, i32
  }
}

module attributes {stable_mosaic.version = 11 : i64} {
  func.func @_mlp2_kernel(%arg0: i32, %arg1: memref<8x512xbf16, #tpu.memory_space<vmem>>, %arg2: memref<512x256xbf16, #tpu.memory_space<vmem>>, %arg3: memref<1x256xf32, #tpu.memory_space<vmem>>, %arg4: memref<256x128xbf16, #tpu.memory_space<vmem>>, %arg5: memref<1x128xf32, #tpu.memory_space<vmem>>, %arg6: memref<8x128xbf16, #tpu.memory_space<vmem>>) attributes {dimension_semantics = [#tpu.dimension_semantics<parallel>], iteration_bounds = array<i64: 2>, scalar_prefetch = 0 : i64, scratch_operands = 0 : i64, tpu.core_type = #tpu.core_type<tc>, window_params = [{transform_indices = @transform_0, window_bounds = array<i64: 8, 512>}, {pipeline_mode = #tpu.pipeline_mode<synchronous>, transform_indices = @transform_1, window_bounds = array<i64: 512, 256>}, {pipeline_mode = #tpu.pipeline_mode<synchronous>, transform_indices = @transform_2, window_bounds = array<i64: 1, 256>}, {pipeline_mode = #tpu.pipeline_mode<synchronous>, transform_indices = @transform_3, window_bounds = array<i64: 256, 128>}, {pipeline_mode = #tpu.pipeline_mode<synchronous>, transform_indices = @transform_4, window_bounds = array<i64: 1, 128>}, {transform_indices = @transform_5, window_bounds = array<i64: 8, 128>}]} {
    %c0 = arith.constant 0 : index
    %c0_0 = arith.constant 0 : index
    %0 = vector.load %arg1[%c0, %c0_0] : memref<8x512xbf16, #tpu.memory_space<vmem>>, vector<8x512xbf16>
    %c0_1 = arith.constant 0 : index
    %c0_2 = arith.constant 0 : index
    %1 = vector.load %arg2[%c0_1, %c0_2] : memref<512x256xbf16, #tpu.memory_space<vmem>>, vector<512x256xbf16>
    %cst = arith.constant dense<0.000000e+00> : vector<8x256xf32>
    %2 = tpu.matmul %0, %1, %cst {dimension_numbers = #tpu.dot_dimension_numbers<[1], [0], [0], [1], [0, 0, 1, 1], [], []>} : vector<8x512xbf16>, vector<512x256xbf16>, vector<8x256xf32> -> vector<8x256xf32>
    %c0_3 = arith.constant 0 : index
    %c0_4 = arith.constant 0 : index
    %3 = vector.load %arg3[%c0_3, %c0_4] : memref<1x256xf32, #tpu.memory_space<vmem>>, vector<1x256xf32>
    %4 = vector.broadcast %3 : vector<1x256xf32> to vector<8x256xf32>
    %5 = arith.addf %2, %4 : vector<8x256xf32>
    %cst_5 = arith.constant 0.000000e+00 : f32
    %6 = vector.broadcast %cst_5 : f32 to vector<8x256xf32>
    %7 = arith.maximumf %5, %6 : vector<8x256xf32>
    %8 = arith.truncf %7 : vector<8x256xf32> to vector<8x256xbf16>
    %c0_6 = arith.constant 0 : index
    %c0_7 = arith.constant 0 : index
    %9 = vector.load %arg4[%c0_6, %c0_7] : memref<256x128xbf16, #tpu.memory_space<vmem>>, vector<256x128xbf16>
    %cst_8 = arith.constant dense<0.000000e+00> : vector<8x128xf32>
    %10 = tpu.matmul %8, %9, %cst_8 {dimension_numbers = #tpu.dot_dimension_numbers<[1], [0], [0], [1], [0, 0, 1, 1], [], []>} : vector<8x256xbf16>, vector<256x128xbf16>, vector<8x128xf32> -> vector<8x128xf32>
    %c0_9 = arith.constant 0 : index
    %c0_10 = arith.constant 0 : index
    %11 = vector.load %arg5[%c0_9, %c0_10] : memref<1x128xf32, #tpu.memory_space<vmem>>, vector<1x128xf32>
    %12 = vector.broadcast %11 : vector<1x128xf32> to vector<8x128xf32>
    %13 = arith.addf %10, %12 : vector<8x128xf32>
    %cst_11 = arith.constant 0.000000e+00 : f32
    %14 = vector.broadcast %cst_11 : f32 to vector<8x128xf32>
    %15 = arith.maximumf %13, %14 : vector<8x128xf32>
    %16 = arith.truncf %15 : vector<8x128xf32> to vector<8x128xbf16>
    %c0_12 = arith.constant 0 : index
    %c0_13 = arith.constant 0 : index
    %17 = vector.load %arg6[%c0_12, %c0_13] : memref<8x128xbf16, #tpu.memory_space<vmem>>, vector<8x128xbf16>
    tpu.vector_store %arg6[%c0_12, %c0_13], %16 {strides = array<i32>} : memref<8x128xbf16, #tpu.memory_space<vmem>>, vector<8x128xbf16>,
    return
  }
  func.func @transform_0(%arg0: i32) -> (i32, i32) {
    %c0_i32 = arith.constant 0 : i32
    %c0_i32_0 = arith.constant 0 : i32
    return %arg0, %c0_i32 : i32, i32
  }
  func.func @transform_1(%arg0: i32) -> (i32, i32) {
    %c0_i32 = arith.constant 0 : i32
    %c0_i32_0 = arith.constant 0 : i32
    %c0_i32_1 = arith.constant 0 : i32
    return %c0_i32, %c0_i32_0 : i32, i32
  }
  func.func @transform_2(%arg0: i32) -> (i32, i32) {
    %c0_i32 = arith.constant 0 : i32
    %c0_i32_0 = arith.constant 0 : i32
    %c0_i32_1 = arith.constant 0 : i32
    return %c0_i32, %c0_i32_0 : i32, i32
  }
  func.func @transform_3(%arg0: i32) -> (i32, i32) {
    %c0_i32 = arith.constant 0 : i32
    %c0_i32_0 = arith.constant 0 : i32
    %c0_i32_1 = arith.constant 0 : i32
    return %c0_i32, %c0_i32_0 : i32, i32
  }
  func.func @transform_4(%arg0: i32) -> (i32, i32) {
    %c0_i32 = arith.constant 0 : i32
    %c0_i32_0 = arith.constant 0 : i32
    %c0_i32_1 = arith.constant 0 : i32
    return %c0_i32, %c0_i32_0 : i32, i32
  }
  func.func @transform_5(%arg0: i32) -> (i32, i32) {
    %c0_i32 = arith.constant 0 : i32
    %c0_i32_0 = arith.constant 0 : i32
    return %arg0, %c0_i32 : i32, i32
  }
}

module attributes {stable_mosaic.version = 11 : i64} {
  func.func @_decoder_kernel(%arg0: i32, %arg1: i32, %arg2: memref<1x8x3xbf16, #tpu.memory_space<vmem>>, %arg3: memref<8x128xbf16, #tpu.memory_space<vmem>>, %arg4: memref<3x64xbf16, #tpu.memory_space<vmem>>, %arg5: memref<1x64xf32, #tpu.memory_space<vmem>>, %arg6: memref<64x64xbf16, #tpu.memory_space<vmem>>, %arg7: memref<1x64xf32, #tpu.memory_space<vmem>>, %arg8: memref<3x128xbf16, #tpu.memory_space<vmem>>, %arg9: memref<64x128xbf16, #tpu.memory_space<vmem>>, %arg10: memref<1x128xf32, #tpu.memory_space<vmem>>, %arg11: memref<128x1792xbf16, #tpu.memory_space<vmem>>, %arg12: memref<1x1792xf32, #tpu.memory_space<vmem>>, %arg13: memref<6x128x128xbf16, #tpu.memory_space<vmem>>, %arg14: memref<6x1x128xf32, #tpu.memory_space<vmem>>, %arg15: memref<128x128xbf16, #tpu.memory_space<vmem>>, %arg16: memref<1x128xf32, #tpu.memory_space<vmem>>, %arg17: memref<128x128xbf16, #tpu.memory_space<vmem>>, %arg18: memref<1x128xf32, #tpu.memory_space<vmem>>, %arg19: memref<8x128xf32, #tpu.memory_space<vmem>>, %arg20: memref<8x1792xf32, #tpu.memory_space<vmem>>, %arg21: memref<8x128xf32, #tpu.memory_space<vmem>>) attributes {dimension_semantics = [#tpu.dimension_semantics<parallel>, #tpu.dimension_semantics<arbitrary>], iteration_bounds = array<i64: 2, 8>, scalar_prefetch = 0 : i64, scratch_operands = 2 : i64, tpu.core_type = #tpu.core_type<tc>, window_params = [{transform_indices = @transform_0, window_bounds = array<i64: 1, 8, 3>}, {transform_indices = @transform_1, window_bounds = array<i64: 8, 128>}, {pipeline_mode = #tpu.pipeline_mode<synchronous>, transform_indices = @transform_2, window_bounds = array<i64: 3, 64>}, {pipeline_mode = #tpu.pipeline_mode<synchronous>, transform_indices = @transform_3, window_bounds = array<i64: 1, 64>}, {pipeline_mode = #tpu.pipeline_mode<synchronous>, transform_indices = @transform_4, window_bounds = array<i64: 64, 64>}, {pipeline_mode = #tpu.pipeline_mode<synchronous>, transform_indices = @transform_5, window_bounds = array<i64: 1, 64>}, {pipeline_mode = #tpu.pipeline_mode<synchronous>, transform_indices = @transform_6, window_bounds = array<i64: 3, 128>}, {pipeline_mode = #tpu.pipeline_mode<synchronous>, transform_indices = @transform_7, window_bounds = array<i64: 64, 128>}, {pipeline_mode = #tpu.pipeline_mode<synchronous>, transform_indices = @transform_8, window_bounds = array<i64: 1, 128>}, {pipeline_mode = #tpu.pipeline_mode<synchronous>, transform_indices = @transform_9, window_bounds = array<i64: 128, 1792>}, {pipeline_mode = #tpu.pipeline_mode<synchronous>, transform_indices = @transform_10, window_bounds = array<i64: 1, 1792>}, {pipeline_mode = #tpu.pipeline_mode<synchronous>, transform_indices = @transform_11, window_bounds = array<i64: 6, 128, 128>}, {pipeline_mode = #tpu.pipeline_mode<synchronous>, transform_indices = @transform_12, window_bounds = array<i64: 6, 1, 128>}, {pipeline_mode = #tpu.pipeline_mode<synchronous>, transform_indices = @transform_13, window_bounds = array<i64: 128, 128>}, {pipeline_mode = #tpu.pipeline_mode<synchronous>, transform_indices = @transform_14, window_bounds = array<i64: 1, 128>}, {pipeline_mode = #tpu.pipeline_mode<synchronous>, transform_indices = @transform_15, window_bounds = array<i64: 128, 128>}, {pipeline_mode = #tpu.pipeline_mode<synchronous>, transform_indices = @transform_16, window_bounds = array<i64: 1, 128>}, {transform_indices = @transform_17, window_bounds = array<i64: 8, 128>}]} {
    %c0_i32 = arith.constant 0 : i32
    %0 = arith.cmpi eq, %arg1, %c0_i32 : i32
    %1 = arith.extui %0 : i1 to i32
    %c0_i32_0 = arith.constant 0 : i32
    %2 = arith.cmpi ne, %1, %c0_i32_0 : i32
    scf.if %2 {
      %c0_90 = arith.constant 0 : index
      %c0_91 = arith.constant 0 : index
      %132 = vector.load %arg3[%c0_90, %c0_91] : memref<8x128xbf16, #tpu.memory_space<vmem>>, vector<8x128xbf16>
      %c0_92 = arith.constant 0 : index
      %c0_93 = arith.constant 0 : index
      %133 = vector.load %arg11[%c0_92, %c0_93] : memref<128x1792xbf16, #tpu.memory_space<vmem>>, vector<128x1792xbf16>
      %cst_94 = arith.constant dense<0.000000e+00> : vector<8x1792xf32>
      %134 = tpu.matmul %132, %133, %cst_94 {dimension_numbers = #tpu.dot_dimension_numbers<[1], [0], [0], [1], [0, 0, 1, 1], [], []>} : vector<8x128xbf16>, vector<128x1792xbf16>, vector<8x1792xf32> -> vector<8x1792xf32>
      %c0_95 = arith.constant 0 : index
      %c0_96 = arith.constant 0 : index
      %135 = vector.load %arg12[%c0_95, %c0_96] : memref<1x1792xf32, #tpu.memory_space<vmem>>, vector<1x1792xf32>
      %136 = vector.broadcast %135 : vector<1x1792xf32> to vector<8x1792xf32>
      %137 = arith.addf %134, %136 : vector<8x1792xf32>
      %c0_97 = arith.constant 0 : index
      %c0_98 = arith.constant 0 : index
      %138 = vector.load %arg20[%c0_97, %c0_98] : memref<8x1792xf32, #tpu.memory_space<vmem>>, vector<8x1792xf32>
      tpu.vector_store %arg20[%c0_97, %c0_98], %137 {strides = array<i32>} : memref<8x1792xf32, #tpu.memory_space<vmem>>, vector<8x1792xf32>,
      %cst_99 = arith.constant 0xFF800000 : f32
      %139 = vector.broadcast %cst_99 : f32 to vector<8x128xf32>
      %c0_100 = arith.constant 0 : index
      %c0_101 = arith.constant 0 : index
      %140 = vector.load %arg21[%c0_100, %c0_101] : memref<8x128xf32, #tpu.memory_space<vmem>>, vector<8x128xf32>
      tpu.vector_store %arg21[%c0_100, %c0_101], %139 {strides = array<i32>} : memref<8x128xf32, #tpu.memory_space<vmem>>, vector<8x128xf32>,
    } else {
    }
    %c0 = arith.constant 0 : index
    %c0_1 = arith.constant 0 : index
    %c0_2 = arith.constant 0 : index
    %3 = vector.load %arg2[%c0, %c0_1, %c0_2] : memref<1x8x3xbf16, #tpu.memory_space<vmem>>, vector<1x8x3xbf16>
    %4 = vector.shape_cast %3 : vector<1x8x3xbf16> to vector<8x3xbf16>
    %c0_3 = arith.constant 0 : index
    %c0_4 = arith.constant 0 : index
    %5 = vector.load %arg4[%c0_3, %c0_4] : memref<3x64xbf16, #tpu.memory_space<vmem>>, vector<3x64xbf16>
    %cst = arith.constant dense<0.000000e+00> : vector<8x64xf32>
    %6 = tpu.matmul %4, %5, %cst {dimension_numbers = #tpu.dot_dimension_numbers<[1], [0], [0], [1], [0, 0, 1, 1], [], []>} : vector<8x3xbf16>, vector<3x64xbf16>, vector<8x64xf32> -> vector<8x64xf32>
    %c0_5 = arith.constant 0 : index
    %c0_6 = arith.constant 0 : index
    %7 = vector.load %arg5[%c0_5, %c0_6] : memref<1x64xf32, #tpu.memory_space<vmem>>, vector<1x64xf32>
    %8 = vector.broadcast %7 : vector<1x64xf32> to vector<8x64xf32>
    %9 = arith.addf %6, %8 : vector<8x64xf32>
    %cst_7 = arith.constant 0.000000e+00 : f32
    %10 = vector.broadcast %cst_7 : f32 to vector<8x64xf32>
    %11 = arith.maximumf %9, %10 : vector<8x64xf32>
    %12 = arith.truncf %11 : vector<8x64xf32> to vector<8x64xbf16>
    %c0_8 = arith.constant 0 : index
    %c0_9 = arith.constant 0 : index
    %13 = vector.load %arg6[%c0_8, %c0_9] : memref<64x64xbf16, #tpu.memory_space<vmem>>, vector<64x64xbf16>
    %cst_10 = arith.constant dense<0.000000e+00> : vector<8x64xf32>
    %14 = tpu.matmul %12, %13, %cst_10 {dimension_numbers = #tpu.dot_dimension_numbers<[1], [0], [0], [1], [0, 0, 1, 1], [], []>} : vector<8x64xbf16>, vector<64x64xbf16>, vector<8x64xf32> -> vector<8x64xf32>
    %c0_11 = arith.constant 0 : index
    %c0_12 = arith.constant 0 : index
    %15 = vector.load %arg7[%c0_11, %c0_12] : memref<1x64xf32, #tpu.memory_space<vmem>>, vector<1x64xf32>
    %16 = vector.broadcast %15 : vector<1x64xf32> to vector<8x64xf32>
    %17 = arith.addf %14, %16 : vector<8x64xf32>
    %c0_13 = arith.constant 0 : index
    %c0_14 = arith.constant 0 : index
    %18 = vector.load %arg8[%c0_13, %c0_14] : memref<3x128xbf16, #tpu.memory_space<vmem>>, vector<3x128xbf16>
    %cst_15 = arith.constant dense<0.000000e+00> : vector<8x128xf32>
    %19 = tpu.matmul %4, %18, %cst_15 {dimension_numbers = #tpu.dot_dimension_numbers<[1], [0], [0], [1], [0, 0, 1, 1], [], []>} : vector<8x3xbf16>, vector<3x128xbf16>, vector<8x128xf32> -> vector<8x128xf32>
    %20 = arith.truncf %17 : vector<8x64xf32> to vector<8x64xbf16>
    %c0_16 = arith.constant 0 : index
    %c0_17 = arith.constant 0 : index
    %21 = vector.load %arg9[%c0_16, %c0_17] : memref<64x128xbf16, #tpu.memory_space<vmem>>, vector<64x128xbf16>
    %cst_18 = arith.constant dense<0.000000e+00> : vector<8x128xf32>
    %22 = tpu.matmul %20, %21, %cst_18 {dimension_numbers = #tpu.dot_dimension_numbers<[1], [0], [0], [1], [0, 0, 1, 1], [], []>} : vector<8x64xbf16>, vector<64x128xbf16>, vector<8x128xf32> -> vector<8x128xf32>
    %23 = arith.addf %19, %22 : vector<8x128xf32>
    %c0_19 = arith.constant 0 : index
    %c0_20 = arith.constant 0 : index
    %24 = vector.load %arg10[%c0_19, %c0_20] : memref<1x128xf32, #tpu.memory_space<vmem>>, vector<1x128xf32>
    %25 = vector.broadcast %24 : vector<1x128xf32> to vector<8x128xf32>
    %26 = arith.addf %23, %25 : vector<8x128xf32>
    %c0_21 = arith.constant 0 : index
    %c0_22 = arith.constant 0 : index
    %27 = vector.load %arg20[%c0_21, %c0_22] : memref<8x1792xf32, #tpu.memory_space<vmem>>, vector<8x128xf32>
    %28 = arith.mulf %27, %26 : vector<8x128xf32>
    %c0_23 = arith.constant 0 : index
    %c128 = arith.constant 128 : index
    %29 = vector.load %arg20[%c0_23, %c128] : memref<8x1792xf32, #tpu.memory_space<vmem>>, vector<8x128xf32>
    %30 = arith.addf %28, %29 : vector<8x128xf32>
    %cst_24 = arith.constant 0.000000e+00 : f32
    %31 = vector.broadcast %cst_24 : f32 to vector<8x128xf32>
    %32 = arith.maximumf %30, %31 : vector<8x128xf32>
    %33 = arith.truncf %32 : vector<8x128xf32> to vector<8x128xbf16>
    %c0_25 = arith.constant 0 : index
    %c0_26 = arith.constant 0 : index
    %c0_27 = arith.constant 0 : index
    %34 = vector.load %arg13[%c0_25, %c0_26, %c0_27] : memref<6x128x128xbf16, #tpu.memory_space<vmem>>, vector<1x128x128xbf16>
    %35 = vector.shape_cast %34 : vector<1x128x128xbf16> to vector<128x128xbf16>
    %cst_28 = arith.constant dense<0.000000e+00> : vector<8x128xf32>
    %36 = tpu.matmul %33, %35, %cst_28 {dimension_numbers = #tpu.dot_dimension_numbers<[1], [0], [0], [1], [0, 0, 1, 1], [], []>} : vector<8x128xbf16>, vector<128x128xbf16>, vector<8x128xf32> -> vector<8x128xf32>
    %c0_29 = arith.constant 0 : index
    %c0_30 = arith.constant 0 : index
    %c0_31 = arith.constant 0 : index
    %37 = vector.load %arg14[%c0_29, %c0_30, %c0_31] : memref<6x1x128xf32, #tpu.memory_space<vmem>>, vector<1x1x128xf32>
    %38 = vector.shape_cast %37 : vector<1x1x128xf32> to vector<1x128xf32>
    %39 = vector.broadcast %38 : vector<1x128xf32> to vector<8x128xf32>
    %40 = arith.addf %36, %39 : vector<8x128xf32>
    %c0_32 = arith.constant 0 : index
    %c256 = arith.constant 256 : index
    %41 = vector.load %arg20[%c0_32, %c256] : memref<8x1792xf32, #tpu.memory_space<vmem>>, vector<8x128xf32>
    %42 = arith.mulf %41, %40 : vector<8x128xf32>
    %c0_33 = arith.constant 0 : index
    %c384 = arith.constant 384 : index
    %43 = vector.load %arg20[%c0_33, %c384] : memref<8x1792xf32, #tpu.memory_space<vmem>>, vector<8x128xf32>
    %44 = arith.addf %42, %43 : vector<8x128xf32>
    %cst_34 = arith.constant 0.000000e+00 : f32
    %45 = vector.broadcast %cst_34 : f32 to vector<8x128xf32>
    %46 = arith.maximumf %44, %45 : vector<8x128xf32>
    %47 = arith.truncf %46 : vector<8x128xf32> to vector<8x128xbf16>
    %c1 = arith.constant 1 : index
    %c0_35 = arith.constant 0 : index
    %c0_36 = arith.constant 0 : index
    %48 = vector.load %arg13[%c1, %c0_35, %c0_36] : memref<6x128x128xbf16, #tpu.memory_space<vmem>>, vector<1x128x128xbf16>
    %49 = vector.shape_cast %48 : vector<1x128x128xbf16> to vector<128x128xbf16>
    %cst_37 = arith.constant dense<0.000000e+00> : vector<8x128xf32>
    %50 = tpu.matmul %47, %49, %cst_37 {dimension_numbers = #tpu.dot_dimension_numbers<[1], [0], [0], [1], [0, 0, 1, 1], [], []>} : vector<8x128xbf16>, vector<128x128xbf16>, vector<8x128xf32> -> vector<8x128xf32>
    %c1_38 = arith.constant 1 : index
    %c0_39 = arith.constant 0 : index
    %c0_40 = arith.constant 0 : index
    %51 = vector.load %arg14[%c1_38, %c0_39, %c0_40] : memref<6x1x128xf32, #tpu.memory_space<vmem>>, vector<1x1x128xf32>
    %52 = vector.shape_cast %51 : vector<1x1x128xf32> to vector<1x128xf32>
    %53 = vector.broadcast %52 : vector<1x128xf32> to vector<8x128xf32>
    %54 = arith.addf %50, %53 : vector<8x128xf32>
    %55 = arith.addf %26, %54 : vector<8x128xf32>
    %c0_41 = arith.constant 0 : index
    %c512 = arith.constant 512 : index
    %56 = vector.load %arg20[%c0_41, %c512] : memref<8x1792xf32, #tpu.memory_space<vmem>>, vector<8x128xf32>
    %57 = arith.mulf %56, %55 : vector<8x128xf32>
    %c0_42 = arith.constant 0 : index
    %c640 = arith.constant 640 : index
    %58 = vector.load %arg20[%c0_42, %c640] : memref<8x1792xf32, #tpu.memory_space<vmem>>, vector<8x128xf32>
    %59 = arith.addf %57, %58 : vector<8x128xf32>
    %cst_43 = arith.constant 0.000000e+00 : f32
    %60 = vector.broadcast %cst_43 : f32 to vector<8x128xf32>
    %61 = arith.maximumf %59, %60 : vector<8x128xf32>
    %62 = arith.truncf %61 : vector<8x128xf32> to vector<8x128xbf16>
    %c2 = arith.constant 2 : index
    %c0_44 = arith.constant 0 : index
    %c0_45 = arith.constant 0 : index
    %63 = vector.load %arg13[%c2, %c0_44, %c0_45] : memref<6x128x128xbf16, #tpu.memory_space<vmem>>, vector<1x128x128xbf16>
    %64 = vector.shape_cast %63 : vector<1x128x128xbf16> to vector<128x128xbf16>
    %cst_46 = arith.constant dense<0.000000e+00> : vector<8x128xf32>
    %65 = tpu.matmul %62, %64, %cst_46 {dimension_numbers = #tpu.dot_dimension_numbers<[1], [0], [0], [1], [0, 0, 1, 1], [], []>} : vector<8x128xbf16>, vector<128x128xbf16>, vector<8x128xf32> -> vector<8x128xf32>
    %c2_47 = arith.constant 2 : index
    %c0_48 = arith.constant 0 : index
    %c0_49 = arith.constant 0 : index
    %66 = vector.load %arg14[%c2_47, %c0_48, %c0_49] : memref<6x1x128xf32, #tpu.memory_space<vmem>>, vector<1x1x128xf32>
    %67 = vector.shape_cast %66 : vector<1x1x128xf32> to vector<1x128xf32>
    %68 = vector.broadcast %67 : vector<1x128xf32> to vector<8x128xf32>
    %69 = arith.addf %65, %68 : vector<8x128xf32>
    %c0_50 = arith.constant 0 : index
    %c768 = arith.constant 768 : index
    %70 = vector.load %arg20[%c0_50, %c768] : memref<8x1792xf32, #tpu.memory_space<vmem>>, vector<8x128xf32>
    %71 = arith.mulf %70, %69 : vector<8x128xf32>
    %c0_51 = arith.constant 0 : index
    %c896 = arith.constant 896 : index
    %72 = vector.load %arg20[%c0_51, %c896] : memref<8x1792xf32, #tpu.memory_space<vmem>>, vector<8x128xf32>
    %73 = arith.addf %71, %72 : vector<8x128xf32>
    %cst_52 = arith.constant 0.000000e+00 : f32
    %74 = vector.broadcast %cst_52 : f32 to vector<8x128xf32>
    %75 = arith.maximumf %73, %74 : vector<8x128xf32>
    %76 = arith.truncf %75 : vector<8x128xf32> to vector<8x128xbf16>
    %c3 = arith.constant 3 : index
    %c0_53 = arith.constant 0 : index
    %c0_54 = arith.constant 0 : index
    %77 = vector.load %arg13[%c3, %c0_53, %c0_54] : memref<6x128x128xbf16, #tpu.memory_space<vmem>>, vector<1x128x128xbf16>
    %78 = vector.shape_cast %77 : vector<1x128x128xbf16> to vector<128x128xbf16>
    %cst_55 = arith.constant dense<0.000000e+00> : vector<8x128xf32>
    %79 = tpu.matmul %76, %78, %cst_55 {dimension_numbers = #tpu.dot_dimension_numbers<[1], [0], [0], [1], [0, 0, 1, 1], [], []>} : vector<8x128xbf16>, vector<128x128xbf16>, vector<8x128xf32> -> vector<8x128xf32>
    %c3_56 = arith.constant 3 : index
    %c0_57 = arith.constant 0 : index
    %c0_58 = arith.constant 0 : index
    %80 = vector.load %arg14[%c3_56, %c0_57, %c0_58] : memref<6x1x128xf32, #tpu.memory_space<vmem>>, vector<1x1x128xf32>
    %81 = vector.shape_cast %80 : vector<1x1x128xf32> to vector<1x128xf32>
    %82 = vector.broadcast %81 : vector<1x128xf32> to vector<8x128xf32>
    %83 = arith.addf %79, %82 : vector<8x128xf32>
    %84 = arith.addf %55, %83 : vector<8x128xf32>
    %c0_59 = arith.constant 0 : index
    %c1024 = arith.constant 1024 : index
    %85 = vector.load %arg20[%c0_59, %c1024] : memref<8x1792xf32, #tpu.memory_space<vmem>>, vector<8x128xf32>
    %86 = arith.mulf %85, %84 : vector<8x128xf32>
    %c0_60 = arith.constant 0 : index
    %c1152 = arith.constant 1152 : index
    %87 = vector.load %arg20[%c0_60, %c1152] : memref<8x1792xf32, #tpu.memory_space<vmem>>, vector<8x128xf32>
    %88 = arith.addf %86, %87 : vector<8x128xf32>
    %cst_61 = arith.constant 0.000000e+00 : f32
    %89 = vector.broadcast %cst_61 : f32 to vector<8x128xf32>
    %90 = arith.maximumf %88, %89 : vector<8x128xf32>
    %91 = arith.truncf %90 : vector<8x128xf32> to vector<8x128xbf16>
    %c4 = arith.constant 4 : index
    %c0_62 = arith.constant 0 : index
    %c0_63 = arith.constant 0 : index
    %92 = vector.load %arg13[%c4, %c0_62, %c0_63] : memref<6x128x128xbf16, #tpu.memory_space<vmem>>, vector<1x128x128xbf16>
    %93 = vector.shape_cast %92 : vector<1x128x128xbf16> to vector<128x128xbf16>
    %cst_64 = arith.constant dense<0.000000e+00> : vector<8x128xf32>
    %94 = tpu.matmul %91, %93, %cst_64 {dimension_numbers = #tpu.dot_dimension_numbers<[1], [0], [0], [1], [0, 0, 1, 1], [], []>} : vector<8x128xbf16>, vector<128x128xbf16>, vector<8x128xf32> -> vector<8x128xf32>
    %c4_65 = arith.constant 4 : index
    %c0_66 = arith.constant 0 : index
    %c0_67 = arith.constant 0 : index
    %95 = vector.load %arg14[%c4_65, %c0_66, %c0_67] : memref<6x1x128xf32, #tpu.memory_space<vmem>>, vector<1x1x128xf32>
    %96 = vector.shape_cast %95 : vector<1x1x128xf32> to vector<1x128xf32>
    %97 = vector.broadcast %96 : vector<1x128xf32> to vector<8x128xf32>
    %98 = arith.addf %94, %97 : vector<8x128xf32>
    %c0_68 = arith.constant 0 : index
    %c1280 = arith.constant 1280 : index
    %99 = vector.load %arg20[%c0_68, %c1280] : memref<8x1792xf32, #tpu.memory_space<vmem>>, vector<8x128xf32>
    %100 = arith.mulf %99, %98 : vector<8x128xf32>
    %c0_69 = arith.constant 0 : index
    %c1408 = arith.constant 1408 : index
    %101 = vector.load %arg20[%c0_69, %c1408] : memref<8x1792xf32, #tpu.memory_space<vmem>>, vector<8x128xf32>
    %102 = arith.addf %100, %101 : vector<8x128xf32>
    %cst_70 = arith.constant 0.000000e+00 : f32
    %103 = vector.broadcast %cst_70 : f32 to vector<8x128xf32>
    %104 = arith.maximumf %102, %103 : vector<8x128xf32>
    %105 = arith.truncf %104 : vector<8x128xf32> to vector<8x128xbf16>
    %c5 = arith.constant 5 : index
    %c0_71 = arith.constant 0 : index
    %c0_72 = arith.constant 0 : index
    %106 = vector.load %arg13[%c5, %c0_71, %c0_72] : memref<6x128x128xbf16, #tpu.memory_space<vmem>>, vector<1x128x128xbf16>
    %107 = vector.shape_cast %106 : vector<1x128x128xbf16> to vector<128x128xbf16>
    %cst_73 = arith.constant dense<0.000000e+00> : vector<8x128xf32>
    %108 = tpu.matmul %105, %107, %cst_73 {dimension_numbers = #tpu.dot_dimension_numbers<[1], [0], [0], [1], [0, 0, 1, 1], [], []>} : vector<8x128xbf16>, vector<128x128xbf16>, vector<8x128xf32> -> vector<8x128xf32>
    %c5_74 = arith.constant 5 : index
    %c0_75 = arith.constant 0 : index
    %c0_76 = arith.constant 0 : index
    %109 = vector.load %arg14[%c5_74, %c0_75, %c0_76] : memref<6x1x128xf32, #tpu.memory_space<vmem>>, vector<1x1x128xf32>
    %110 = vector.shape_cast %109 : vector<1x1x128xf32> to vector<1x128xf32>
    %111 = vector.broadcast %110 : vector<1x128xf32> to vector<8x128xf32>
    %112 = arith.addf %108, %111 : vector<8x128xf32>
    %113 = arith.addf %84, %112 : vector<8x128xf32>
    %c0_77 = arith.constant 0 : index
    %c1536 = arith.constant 1536 : index
    %114 = vector.load %arg20[%c0_77, %c1536] : memref<8x1792xf32, #tpu.memory_space<vmem>>, vector<8x128xf32>
    %115 = arith.mulf %114, %113 : vector<8x128xf32>
    %c0_78 = arith.constant 0 : index
    %c1664 = arith.constant 1664 : index
    %116 = vector.load %arg20[%c0_78, %c1664] : memref<8x1792xf32, #tpu.memory_space<vmem>>, vector<8x128xf32>
    %117 = arith.addf %115, %116 : vector<8x128xf32>
    %cst_79 = arith.constant 0.000000e+00 : f32
    %118 = vector.broadcast %cst_79 : f32 to vector<8x128xf32>
    %119 = arith.maximumf %117, %118 : vector<8x128xf32>
    %120 = arith.truncf %119 : vector<8x128xf32> to vector<8x128xbf16>
    %c0_80 = arith.constant 0 : index
    %c0_81 = arith.constant 0 : index
    %121 = vector.load %arg15[%c0_80, %c0_81] : memref<128x128xbf16, #tpu.memory_space<vmem>>, vector<128x128xbf16>
    %cst_82 = arith.constant dense<0.000000e+00> : vector<8x128xf32>
    %122 = tpu.matmul %120, %121, %cst_82 {dimension_numbers = #tpu.dot_dimension_numbers<[1], [0], [0], [1], [0, 0, 1, 1], [], []>} : vector<8x128xbf16>, vector<128x128xbf16>, vector<8x128xf32> -> vector<8x128xf32>
    %c0_83 = arith.constant 0 : index
    %c0_84 = arith.constant 0 : index
    %123 = vector.load %arg16[%c0_83, %c0_84] : memref<1x128xf32, #tpu.memory_space<vmem>>, vector<1x128xf32>
    %124 = vector.broadcast %123 : vector<1x128xf32> to vector<8x128xf32>
    %125 = arith.addf %122, %124 : vector<8x128xf32>
    %c0_85 = arith.constant 0 : index
    %c0_86 = arith.constant 0 : index
    %126 = vector.load %arg21[%c0_85, %c0_86] : memref<8x128xf32, #tpu.memory_space<vmem>>, vector<8x128xf32>
    %127 = arith.maximumf %126, %125 : vector<8x128xf32>
    %c0_87 = arith.constant 0 : index
    %c0_88 = arith.constant 0 : index
    %128 = vector.load %arg21[%c0_87, %c0_88] : memref<8x128xf32, #tpu.memory_space<vmem>>, vector<8x128xf32>
    tpu.vector_store %arg21[%c0_87, %c0_88], %127 {strides = array<i32>} : memref<8x128xf32, #tpu.memory_space<vmem>>, vector<8x128xf32>,
    %c7_i32 = arith.constant 7 : i32
    %129 = arith.cmpi eq, %arg1, %c7_i32 : i32
    %130 = arith.extui %129 : i1 to i32
    %c0_i32_89 = arith.constant 0 : i32
    %131 = arith.cmpi ne, %130, %c0_i32_89 : i32
    scf.if %131 {
      %c0_90 = arith.constant 0 : index
      %c0_91 = arith.constant 0 : index
      %132 = vector.load %arg21[%c0_90, %c0_91] : memref<8x128xf32, #tpu.memory_space<vmem>>, vector<8x128xf32>
      %133 = arith.truncf %132 : vector<8x128xf32> to vector<8x128xbf16>
      %c0_92 = arith.constant 0 : index
      %c0_93 = arith.constant 0 : index
      %134 = vector.load %arg17[%c0_92, %c0_93] : memref<128x128xbf16, #tpu.memory_space<vmem>>, vector<128x128xbf16>
      %cst_94 = arith.constant dense<0.000000e+00> : vector<8x128xf32>
      %135 = tpu.matmul %133, %134, %cst_94 {dimension_numbers = #tpu.dot_dimension_numbers<[1], [0], [0], [1], [0, 0, 1, 1], [], []>} : vector<8x128xbf16>, vector<128x128xbf16>, vector<8x128xf32> -> vector<8x128xf32>
      %c0_95 = arith.constant 0 : index
      %c0_96 = arith.constant 0 : index
      %136 = vector.load %arg18[%c0_95, %c0_96] : memref<1x128xf32, #tpu.memory_space<vmem>>, vector<1x128xf32>
      %137 = vector.broadcast %136 : vector<1x128xf32> to vector<8x128xf32>
      %138 = arith.addf %135, %137 : vector<8x128xf32>
      %cst_97 = arith.constant 0.000000e+00 : f32
      %139 = vector.broadcast %cst_97 : f32 to vector<8x128xf32>
      %140 = arith.maximumf %138, %139 : vector<8x128xf32>
      %c0_98 = arith.constant 0 : index
      %c0_99 = arith.constant 0 : index
      %141 = vector.load %arg19[%c0_98, %c0_99] : memref<8x128xf32, #tpu.memory_space<vmem>>, vector<8x128xf32>
      tpu.vector_store %arg19[%c0_98, %c0_99], %140 {strides = array<i32>} : memref<8x128xf32, #tpu.memory_space<vmem>>, vector<8x128xf32>,
    } else {
    }
    return
  }
  func.func @transform_0(%arg0: i32, %arg1: i32) -> (i32, i32, i32) {
    %c0_i32 = arith.constant 0 : i32
    %c0_i32_0 = arith.constant 0 : i32
    return %arg1, %arg0, %c0_i32 : i32, i32, i32
  }
  func.func @transform_1(%arg0: i32, %arg1: i32) -> (i32, i32) {
    %c0_i32 = arith.constant 0 : i32
    %c0_i32_0 = arith.constant 0 : i32
    return %arg0, %c0_i32 : i32, i32
  }
  func.func @transform_2(%arg0: i32, %arg1: i32) -> (i32, i32) {
    %c0_i32 = arith.constant 0 : i32
    %c0_i32_0 = arith.constant 0 : i32
    %c0_i32_1 = arith.constant 0 : i32
    return %c0_i32, %c0_i32_0 : i32, i32
  }
  func.func @transform_3(%arg0: i32, %arg1: i32) -> (i32, i32) {
    %c0_i32 = arith.constant 0 : i32
    %c0_i32_0 = arith.constant 0 : i32
    %c0_i32_1 = arith.constant 0 : i32
    return %c0_i32, %c0_i32_0 : i32, i32
  }
  func.func @transform_4(%arg0: i32, %arg1: i32) -> (i32, i32) {
    %c0_i32 = arith.constant 0 : i32
    %c0_i32_0 = arith.constant 0 : i32
    %c0_i32_1 = arith.constant 0 : i32
    return %c0_i32, %c0_i32_0 : i32, i32
  }
  func.func @transform_5(%arg0: i32, %arg1: i32) -> (i32, i32) {
    %c0_i32 = arith.constant 0 : i32
    %c0_i32_0 = arith.constant 0 : i32
    %c0_i32_1 = arith.constant 0 : i32
    return %c0_i32, %c0_i32_0 : i32, i32
  }
  func.func @transform_6(%arg0: i32, %arg1: i32) -> (i32, i32) {
    %c0_i32 = arith.constant 0 : i32
    %c0_i32_0 = arith.constant 0 : i32
    %c0_i32_1 = arith.constant 0 : i32
    return %c0_i32, %c0_i32_0 : i32, i32
  }
  func.func @transform_7(%arg0: i32, %arg1: i32) -> (i32, i32) {
    %c0_i32 = arith.constant 0 : i32
    %c0_i32_0 = arith.constant 0 : i32
    %c0_i32_1 = arith.constant 0 : i32
    return %c0_i32, %c0_i32_0 : i32, i32
  }
  func.func @transform_8(%arg0: i32, %arg1: i32) -> (i32, i32) {
    %c0_i32 = arith.constant 0 : i32
    %c0_i32_0 = arith.constant 0 : i32
    %c0_i32_1 = arith.constant 0 : i32
    return %c0_i32, %c0_i32_0 : i32, i32
  }
  func.func @transform_9(%arg0: i32, %arg1: i32) -> (i32, i32) {
    %c0_i32 = arith.constant 0 : i32
    %c0_i32_0 = arith.constant 0 : i32
    %c0_i32_1 = arith.constant 0 : i32
    return %c0_i32, %c0_i32_0 : i32, i32
  }
  func.func @transform_10(%arg0: i32, %arg1: i32) -> (i32, i32) {
    %c0_i32 = arith.constant 0 : i32
    %c0_i32_0 = arith.constant 0 : i32
    %c0_i32_1 = arith.constant 0 : i32
    return %c0_i32, %c0_i32_0 : i32, i32
  }
  func.func @transform_11(%arg0: i32, %arg1: i32) -> (i32, i32, i32) {
    %c0_i32 = arith.constant 0 : i32
    %c0_i32_0 = arith.constant 0 : i32
    %c0_i32_1 = arith.constant 0 : i32
    %c0_i32_2 = arith.constant 0 : i32
    return %c0_i32, %c0_i32_0, %c0_i32_1 : i32, i32, i32
  }
  func.func @transform_12(%arg0: i32, %arg1: i32) -> (i32, i32, i32) {
    %c0_i32 = arith.constant 0 : i32
    %c0_i32_0 = arith.constant 0 : i32
    %c0_i32_1 = arith.constant 0 : i32
    %c0_i32_2 = arith.constant 0 : i32
    return %c0_i32, %c0_i32_0, %c0_i32_1 : i32, i32, i32
  }
  func.func @transform_13(%arg0: i32, %arg1: i32) -> (i32, i32) {
    %c0_i32 = arith.constant 0 : i32
    %c0_i32_0 = arith.constant 0 : i32
    %c0_i32_1 = arith.constant 0 : i32
    return %c0_i32, %c0_i32_0 : i32, i32
  }
  func.func @transform_14(%arg0: i32, %arg1: i32) -> (i32, i32) {
    %c0_i32 = arith.constant 0 : i32
    %c0_i32_0 = arith.constant 0 : i32
    %c0_i32_1 = arith.constant 0 : i32
    return %c0_i32, %c0_i32_0 : i32, i32
  }
  func.func @transform_15(%arg0: i32, %arg1: i32) -> (i32, i32) {
    %c0_i32 = arith.constant 0 : i32
    %c0_i32_0 = arith.constant 0 : i32
    %c0_i32_1 = arith.constant 0 : i32
    return %c0_i32, %c0_i32_0 : i32, i32
  }
  func.func @transform_16(%arg0: i32, %arg1: i32) -> (i32, i32) {
    %c0_i32 = arith.constant 0 : i32
    %c0_i32_0 = arith.constant 0 : i32
    %c0_i32_1 = arith.constant 0 : i32
    return %c0_i32, %c0_i32_0 : i32, i32
  }
  func.func @transform_17(%arg0: i32, %arg1: i32) -> (i32, i32) {
    %c0_i32 = arith.constant 0 : i32
    %c0_i32_0 = arith.constant 0 : i32
    return %arg0, %c0_i32 : i32, i32
  }
}

module attributes {stable_mosaic.version = 11 : i64} {
  func.func @_head_kernel(%arg0: i32, %arg1: memref<1x8x128xf32, #tpu.memory_space<vmem>>, %arg2: memref<1x128xf32, #tpu.memory_space<vmem>>, %arg3: memref<1x1xf32, #tpu.memory_space<vmem>>, %arg4: memref<128x128xbf16, #tpu.memory_space<vmem>>, %arg5: memref<1x128xf32, #tpu.memory_space<vmem>>, %arg6: memref<128x3xf32, #tpu.memory_space<vmem>>, %arg7: memref<1x3xf32, #tpu.memory_space<vmem>>, %arg8: memref<1x8x1xf32, #tpu.memory_space<vmem>>, %arg9: memref<1x1x3xf32, #tpu.memory_space<vmem>>) attributes {dimension_semantics = [#tpu.dimension_semantics<parallel>], iteration_bounds = array<i64: 2>, scalar_prefetch = 0 : i64, scratch_operands = 0 : i64, tpu.core_type = #tpu.core_type<tc>, window_params = [{transform_indices = @transform_0, window_bounds = array<i64: 1, 8, 128>}, {pipeline_mode = #tpu.pipeline_mode<synchronous>, transform_indices = @transform_1, window_bounds = array<i64: 1, 128>}, {pipeline_mode = #tpu.pipeline_mode<synchronous>, transform_indices = @transform_2, window_bounds = array<i64: 1, 1>}, {pipeline_mode = #tpu.pipeline_mode<synchronous>, transform_indices = @transform_3, window_bounds = array<i64: 128, 128>}, {pipeline_mode = #tpu.pipeline_mode<synchronous>, transform_indices = @transform_4, window_bounds = array<i64: 1, 128>}, {pipeline_mode = #tpu.pipeline_mode<synchronous>, transform_indices = @transform_5, window_bounds = array<i64: 128, 3>}, {pipeline_mode = #tpu.pipeline_mode<synchronous>, transform_indices = @transform_6, window_bounds = array<i64: 1, 3>}, {transform_indices = @transform_7, window_bounds = array<i64: 1, 8, 1>}, {transform_indices = @transform_8, window_bounds = array<i64: 1, 1, 3>}]} {
    %c0 = arith.constant 0 : index
    %c0_0 = arith.constant 0 : index
    %c0_1 = arith.constant 0 : index
    %0 = vector.load %arg1[%c0, %c0_0, %c0_1] : memref<1x8x128xf32, #tpu.memory_space<vmem>>, vector<1x8x128xf32>
    %1 = vector.shape_cast %0 : vector<1x8x128xf32> to vector<8x128xf32>
    %c0_2 = arith.constant 0 : index
    %c0_3 = arith.constant 0 : index
    %2 = vector.load %arg2[%c0_2, %c0_3] : memref<1x128xf32, #tpu.memory_space<vmem>>, vector<1x128xf32>
    %3 = vector.broadcast %2 : vector<1x128xf32> to vector<8x128xf32>
    %4 = arith.mulf %1, %3 : vector<8x128xf32>
    %cst = arith.constant dense<0.000000e+00> : vector<8xf32>
    %5 = vector.multi_reduction <add>, %4, %cst [1] : vector<8x128xf32> to vector<8xf32>
    %6 = vector.shape_cast %5 : vector<8xf32> to vector<8x1xf32>
    %c0_4 = arith.constant 0 : index
    %c0_5 = arith.constant 0 : index
    %7 = vector.load %arg3[%c0_4, %c0_5] : memref<1x1xf32, #tpu.memory_space<vmem>>, vector<1x1xf32>
    %8 = vector.broadcast %7 : vector<1x1xf32> to vector<8x1xf32>
    %9 = arith.addf %6, %8 : vector<8x1xf32>
    %10 = arith.negf %9 : vector<8x1xf32>
    %11 = math.exp %10 : vector<8x1xf32>
    %cst_6 = arith.constant 1.000000e+00 : f32
    %12 = vector.broadcast %cst_6 : f32 to vector<8x1xf32>
    %13 = arith.addf %12, %11 : vector<8x1xf32>
    %14 = arith.divf %12, %13 : vector<8x1xf32>
    %cst_7 = arith.constant 0.00999999977 : f32
    %15 = vector.broadcast %cst_7 : f32 to vector<8x1xf32>
    %16 = arith.addf %15, %14 : vector<8x1xf32>
    %c0_8 = arith.constant 0 : index
    %c0_9 = arith.constant 0 : index
    %c0_10 = arith.constant 0 : index
    %17 = vector.load %arg8[%c0_8, %c0_9, %c0_10] : memref<1x8x1xf32, #tpu.memory_space<vmem>>, vector<1x8x1xf32>
    %18 = vector.shape_cast %17 : vector<1x8x1xf32> to vector<8x1xf32>
    %19 = vector.shape_cast %16 : vector<8x1xf32> to vector<1x8x1xf32>
    tpu.vector_store %arg8[%c0_8, %c0_9, %c0_10], %19 {strides = array<i32>} : memref<1x8x1xf32, #tpu.memory_space<vmem>>, vector<1x8x1xf32>,
    %20 = vector.broadcast %16 : vector<8x1xf32> to vector<8x128xf32>
    %21 = arith.mulf %1, %20 : vector<8x128xf32>
    %22 = arith.truncf %21 : vector<8x128xf32> to vector<8x128xbf16>
    %c0_11 = arith.constant 0 : index
    %c0_12 = arith.constant 0 : index
    %23 = vector.load %arg4[%c0_11, %c0_12] : memref<128x128xbf16, #tpu.memory_space<vmem>>, vector<128x128xbf16>
    %cst_13 = arith.constant dense<0.000000e+00> : vector<8x128xf32>
    %24 = tpu.matmul %22, %23, %cst_13 {dimension_numbers = #tpu.dot_dimension_numbers<[1], [0], [0], [1], [0, 0, 1, 1], [], []>} : vector<8x128xbf16>, vector<128x128xbf16>, vector<8x128xf32> -> vector<8x128xf32>
    %c0_14 = arith.constant 0 : index
    %c0_15 = arith.constant 0 : index
    %25 = vector.load %arg5[%c0_14, %c0_15] : memref<1x128xf32, #tpu.memory_space<vmem>>, vector<1x128xf32>
    %26 = vector.broadcast %25 : vector<1x128xf32> to vector<8x128xf32>
    %27 = arith.addf %24, %26 : vector<8x128xf32>
    %cst_16 = arith.constant 0.000000e+00 : f32
    %28 = vector.broadcast %cst_16 : f32 to vector<8x128xf32>
    %29 = arith.maximumf %27, %28 : vector<8x128xf32>
    %cst_17 = arith.constant dense<0xFF800000> : vector<128xf32>
    %30 = vector.multi_reduction <maximumf>, %29, %cst_17 [0] : vector<8x128xf32> to vector<128xf32>
    %31 = vector.shape_cast %30 : vector<128xf32> to vector<1x128xf32>
    %c0_18 = arith.constant 0 : index
    %c0_19 = arith.constant 0 : index
    %32 = vector.load %arg6[%c0_18, %c0_19] : memref<128x3xf32, #tpu.memory_space<vmem>>, vector<128x3xf32>
    %cst_20 = arith.constant dense<0.000000e+00> : vector<1x3xf32>
    %33 = tpu.matmul %31, %32, %cst_20 {dimension_numbers = #tpu.dot_dimension_numbers<[1], [0], [0], [1], [0, 0, 1, 1], [], []>} : vector<1x128xf32>, vector<128x3xf32>, vector<1x3xf32> -> vector<1x3xf32>
    %c0_21 = arith.constant 0 : index
    %c0_22 = arith.constant 0 : index
    %34 = vector.load %arg7[%c0_21, %c0_22] : memref<1x3xf32, #tpu.memory_space<vmem>>, vector<1x3xf32>
    %35 = arith.addf %33, %34 : vector<1x3xf32>
    %36 = arith.mulf %35, %35 : vector<1x3xf32>
    %cst_23 = arith.constant dense<0.000000e+00> : vector<1xf32>
    %37 = vector.multi_reduction <add>, %36, %cst_23 [1] : vector<1x3xf32> to vector<1xf32>
    %38 = vector.shape_cast %37 : vector<1xf32> to vector<1x1xf32>
    %cst_24 = arith.constant 1.000000e-24 : f32
    %39 = vector.broadcast %cst_24 : f32 to vector<1x1xf32>
    %40 = arith.maximumf %38, %39 : vector<1x1xf32>
    %41 = math.rsqrt %40 : vector<1x1xf32>
    %42 = vector.broadcast %41 : vector<1x1xf32> to vector<1x3xf32>
    %43 = arith.mulf %35, %42 : vector<1x3xf32>
    %c0_25 = arith.constant 0 : index
    %c0_26 = arith.constant 0 : index
    %c0_27 = arith.constant 0 : index
    %44 = vector.load %arg9[%c0_25, %c0_26, %c0_27] : memref<1x1x3xf32, #tpu.memory_space<vmem>>, vector<1x1x3xf32>
    %45 = vector.shape_cast %44 : vector<1x1x3xf32> to vector<1x3xf32>
    %46 = vector.shape_cast %43 : vector<1x3xf32> to vector<1x1x3xf32>
    tpu.vector_store %arg9[%c0_25, %c0_26, %c0_27], %46 {strides = array<i32>} : memref<1x1x3xf32, #tpu.memory_space<vmem>>, vector<1x1x3xf32>,
    return
  }
  func.func @transform_0(%arg0: i32) -> (i32, i32, i32) {
    %c0_i32 = arith.constant 0 : i32
    %c0_i32_0 = arith.constant 0 : i32
    %c0_i32_1 = arith.constant 0 : i32
    return %arg0, %c0_i32, %c0_i32_0 : i32, i32, i32
  }
  func.func @transform_1(%arg0: i32) -> (i32, i32) {
    %c0_i32 = arith.constant 0 : i32
    %c0_i32_0 = arith.constant 0 : i32
    %c0_i32_1 = arith.constant 0 : i32
    return %c0_i32, %c0_i32_0 : i32, i32
  }
  func.func @transform_2(%arg0: i32) -> (i32, i32) {
    %c0_i32 = arith.constant 0 : i32
    %c0_i32_0 = arith.constant 0 : i32
    %c0_i32_1 = arith.constant 0 : i32
    return %c0_i32, %c0_i32_0 : i32, i32
  }
  func.func @transform_3(%arg0: i32) -> (i32, i32) {
    %c0_i32 = arith.constant 0 : i32
    %c0_i32_0 = arith.constant 0 : i32
    %c0_i32_1 = arith.constant 0 : i32
    return %c0_i32, %c0_i32_0 : i32, i32
  }
  func.func @transform_4(%arg0: i32) -> (i32, i32) {
    %c0_i32 = arith.constant 0 : i32
    %c0_i32_0 = arith.constant 0 : i32
    %c0_i32_1 = arith.constant 0 : i32
    return %c0_i32, %c0_i32_0 : i32, i32
  }
  func.func @transform_5(%arg0: i32) -> (i32, i32) {
    %c0_i32 = arith.constant 0 : i32
    %c0_i32_0 = arith.constant 0 : i32
    %c0_i32_1 = arith.constant 0 : i32
    return %c0_i32, %c0_i32_0 : i32, i32
  }
  func.func @transform_6(%arg0: i32) -> (i32, i32) {
    %c0_i32 = arith.constant 0 : i32
    %c0_i32_0 = arith.constant 0 : i32
    %c0_i32_1 = arith.constant 0 : i32
    return %c0_i32, %c0_i32_0 : i32, i32
  }
  func.func @transform_7(%arg0: i32) -> (i32, i32, i32) {
    %c0_i32 = arith.constant 0 : i32
    %c0_i32_0 = arith.constant 0 : i32
    %c0_i32_1 = arith.constant 0 : i32
    return %arg0, %c0_i32, %c0_i32_0 : i32, i32, i32
  }
  func.func @transform_8(%arg0: i32) -> (i32, i32, i32) {
    %c0_i32 = arith.constant 0 : i32
    %c0_i32_0 = arith.constant 0 : i32
    %c0_i32_1 = arith.constant 0 : i32
    return %arg0, %c0_i32, %c0_i32_0 : i32, i32, i32
  }
}

</mosaic_0001>

<bundles_post_ra>
// kernel: _lambda_.11
= control target key start
LH: loop header
LB: loop body
LE: loop exit
PB: predicated region body
PF: predicated region fallthrough
CT: control target
= control target key end

     0   :  { %s1053_s18 = smov 0   ;;  %s1055_s19 = smov 0   ;;  %s1252_s0 = inlined_call_operand.vmem [shape: bf16[2,32,3], index: 0, kind: input, shape index: {}]   ;;  %s1253_s1 = inlined_call_operand.vmem [shape: bf16[2,8,32,3], index: 1, kind: input, shape index: {}]   ;;  %s1254_s2 = inlined_call_operand.vmem [shape: bf16[3,24], index: 2, kind: input, shape index: {}]   ;;  %s1255_s3 = inlined_call_operand.vmem [shape: bf16[3,24], index: 3, kind: input, shape index: {}]   ;;  %s1256_s4 = inlined_call_operand.vmem [shape: f32[1,24], index: 4, kind: input, shape index: {}]   ;;  %s1257_s5 = inlined_call_operand.vmem [shape: bf16[2,32,24], index: 5, kind: output, shape index: {}]  }
   0x1   :  { %s1057_s20 = smov 0  }
   0x2 LB: > { %s27_s21 = sadd.s32 1, %s1016_s19  ;;  %p849_p0 = scmp.ge.s32.totalorder %s1020_s20, 1  ;;  %s1020_s20 = sphi %s1057_s20, %s15_s20   ;;  %s1016_s19 = sphi %s1055_s19, %s1259_s19   ;;  %s1012_s18 = sphi %s1053_s18, %s1258_s18  }
   0x3   : > { %p29_p1 = scmp.ge.s32.totalorder %s27_s21, 2  ;;  %p225_p2 = scmp.lt.s32.totalorder %s1020_s20, 3 }
   0x5   : > { %s1261_s21 = smov (%p29_p1, %s27_s21), 0  ;;  %p226_p3 = pnand %p849_p0, %p225_p2 }
   0x6   : > { %p271_p4 = scmp.lt.s32.totalorder (!%p226_p3), %s1012_s18, 1 }
   0x7   : > { %229 = sbr.rel (%p226_p3) target bundleno = 239 (0xef), region = 40 }
   0xc   : > { %v305_v0 = vld [vmem:[%s1254_s2] sm:$0x3]  ;;  %vm327_vm0 = vcmask 1040384   ;;  %vm328_vm1 = vcmask 1041408   ;;  %v1022_v1 = vmov 65535   ;;  %s1263_s18 = smov (!%p271_p4, %s1012_s18), 1 }
   0xd   : > { %v329_v2 = vsel %vm327_vm0, 4294967295, %v1022_v1  ;;  %v385_v3 = vld [vmem:[%s1255_s3] sm:$0x3]  ;;  %s948_s26 = sshll.u32 %s1263_s18, 4  ;;  %s949_s27 = sshll.u32 %s1263_s18, 7  ;;  %vm320_vm2 = vcmask 23552  }
   0xe   : > { %v330_v4 = vsel %vm328_vm1, %v329_v2, 0  ;;  %s278_s30 = scalar_lea.vmem %s1252_s0, %s948_s26  ;;  %s1089_s8 = scalar_lea.vmem %s1253_s1, %s949_s27  ;;  %v997_v45 = vld [vmem:[%s1256_s4] ss:$0 sm:$0xff]  ;;  %vm670_vm3 = vcmask 195584   ;;  %vm735_vm4 = vcmask 191488  }
   0xf   : > { %v332_v5 = vand.u32 %v330_v4, %v305_v0  ;;  %v515_v6 = vand.u32 %v385_v3, %v330_v4  ;;  %v951_v7 = vld [vmem:[%s278_s30] sm:$0xff]  ;;  %v954_v8 = vld [vmem:[%s1089_s8 + $0x8] sm:$0xff]  ;;  %v959_v9 = vld [vmem:[%s1089_s8 + $0x30] sm:$0xff]  ;;  %s298_s13 = scalar_lea.vmem %s1257_s5, %s948_s26 }
  0x10   : > { %v964_v10 = vld [vmem:[%s1089_s8 + $0x58] sm:$0xff]  ;;  %v952_v11 = vld [vmem:[%s278_s30 + $0x8] sm:$0xff]  ;;  %v955_v12 = vld [vmem:[%s1089_s8 + $0x10] sm:$0xff] }
  0x11   : > { %341 = vmatpush.bf16.msra.mxu0 %v332_v5  ;;  %969 = vmatpush.bf16.msra.mxu1 %v515_v6  ;;  %v960_v13 = vld [vmem:[%s1089_s8 + $0x38] sm:$0xff]  ;;  %v965_v14 = vld [vmem:[%s1089_s8 + $0x60] sm:$0xff]  ;;  %v966_v18 = vld [vmem:[%s1089_s8 + $0x68] sm:$0xff] }
  0x12   : > { %970 = vmatpush.bf16.msra.mxu2 %v515_v6  ;;  %971 = vmatpush.bf16.msra.mxu3 %v515_v6  ;;  %v953_v15 = vld [vmem:[%s1089_s8] sm:$0xff]  ;;  %v956_v16 = vld [vmem:[%s1089_s8 + $0x18] sm:$0xff]  ;;  %v962_v20 = vld [vmem:[%s1089_s8 + $0x48] sm:$0xff] }
  0x13   : > { %v961_v17 = vld [vmem:[%s1089_s8 + $0x40] sm:$0xff]  ;;  %v967_v21 = vld [vmem:[%s1089_s8 + $0x70] sm:$0xff]  ;;  %v958_v22 = vld [vmem:[%s1089_s8 + $0x28] sm:$0xff] }
  0x14   : > { %864 = vmatmul.msk.bf16.vlgmr.msra.gmra.mxu0 %vm320_vm2, %v951_v7  ;;  %931 = vmatmul.msk.bf16.vlgmr.msra.gmra.mxu1 %vm320_vm2, %v954_v8  ;;  %v957_v19 = vld [vmem:[%s1089_s8 + $0x20] sm:$0xff]  ;;  %v963_v23 = vld [vmem:[%s1089_s8 + $0x50] sm:$0xff]  ;;  %v968_v24 = vld [vmem:[%s1089_s8 + $0x78] sm:$0xff] }
  0x15   : > { %524 = vmatpush.bf16.msrb.mxu0 %v515_v6  ;;  %936 = vmatmul.msk.bf16.vlgmr.msra.gmra.mxu2 %vm320_vm2, %v959_v9 }
  0x16   : > { %941 = vmatmul.msk.bf16.vlgmr.msra.gmra.mxu3 %vm320_vm2, %v964_v10 }
  0x24   : > { %865 = vmatmul.msk.bf16.gmra.mxu0 %vm320_vm2, %v952_v11  ;;  %932 = vmatmul.msk.bf16.gmra.mxu1 %vm320_vm2, %v955_v12 }
  0x25   : > { %937 = vmatmul.msk.bf16.gmra.mxu2 %vm320_vm2, %v960_v13 }
  0x26   : > { %942 = vmatmul.msk.bf16.gmra.mxu3 %vm320_vm2, %v965_v14 }
  0x34   : > { %930 = vmatmul.msk.bf16.vlgmr.msrb.gmra.mxu0 %vm320_vm2, %v953_v15  ;;  %933 = vmatmul.msk.bf16.gmra.mxu1 %vm320_vm2, %v956_v16 }
  0x35   : > { %938 = vmatmul.msk.bf16.gmra.mxu2 %vm320_vm2, %v961_v17 }
  0x36   : > { %943 = vmatmul.msk.bf16.gmra.mxu3 %vm320_vm2, %v966_v18 }
  0x44   : > { %934 = vmatmul.msk.bf16.gmra.mxu1 %vm320_vm2, %v957_v19 }
  0x45   : > { %939 = vmatmul.msk.bf16.gmra.mxu2 %vm320_vm2, %v962_v20 }
  0x46   : > { %944 = vmatmul.msk.bf16.gmra.mxu3 %vm320_vm2, %v967_v21 }
  0x54   : > { %935 = vmatmul.msk.bf16.gmra.mxu1 %vm320_vm2, %v958_v22 }
  0x55   : > { %940 = vmatmul.msk.bf16.gmra.mxu2 %vm320_vm2, %v963_v23 }
  0x56   : > { %945 = vmatmul.msk.bf16.gmra.mxu3 %vm320_vm2, %v968_v24 }
  0x91   : > { %v531_v25 = vpop.f32.mrf.mxu1  ;;  %v343_v28 = vpop.f32.mrf.mxu0 }
  0x92   : > { %v1132_v46 = vadd.f32 %v997_v45, %v343_v28 }
  0x98   : > { %v556_v26 = vpop.f32.mrf.mxu2 }
  0x99   : > { %v581_v27 = vpop.f32.mrf.mxu3  ;;  %v533_v29 = vpop.f32.mrf.mxu1  ;;  %v618_v53 = vadd.f32 %v556_v26, %v1132_v46 }
  0x9a   : > { %v345_v33 = vpop.f32.mrf.mxu0 }
  0x9b   : > { %v1138_v49 = vadd.f32 %v997_v45, %v345_v33  ;;  %v650_v59 = vmax.f32 %v618_v53, 0.0 }
  0x9d   : > { %v1156_v10 = vsel %vm670_vm3, %v650_v59, -inf }
  0xa0   : > { %v558_v30 = vpop.f32.mrf.mxu2 }
  0xa1   : > { %v1125_v31 = vpop.f32.mrf.mxu3  ;;  %v536_v32 = vpop.f32.mrf.mxu1  ;;  %v619_v54 = vadd.f32 %v558_v30, %v1138_v49 }
  0xa2   : > { %v348_v37 = vpop.f32.mrf.mxu0  ;;  %v610_v55 = vadd.f32 %v536_v32, %v1132_v46 }
  0xa3   : > { %v1140_v51 = vadd.f32 %v997_v45, %v348_v37  ;;  %v651_v63 = vmax.f32 %v619_v54, 0.0 }
  0xa4   : > { %v642_v0 = vmax.f32 %v610_v55, 0.0 }
  0xa5   : > { %v608_v56 = vadd.f32 %v531_v25, %v1140_v51  ;;  %v628_v57 = vadd.f32 %v581_v27, %v1140_v51  ;;  %v1159_v13 = vsel %vm670_vm3, %v651_v63, -inf }
  0xa6   : > { %v672_v14 = vsel %vm670_vm3, %v642_v0, -inf }
  0xa7   : > { %v640_v6 = vmax.f32 %v608_v56, 0.0  ;;  %v660_v7 = vmax.f32 %v628_v57, 0.0 }
  0xa8   : > { %v561_v34 = vpop.f32.mrf.mxu2 }
  0xa9   : > { %v586_v35 = vpop.f32.mrf.mxu3  ;;  %v538_v36 = vpop.f32.mrf.mxu1  ;;  %v620_v60 = vadd.f32 %v561_v34, %v1140_v51  ;;  %v701_v19 = vsel %vm670_vm3, %v640_v6, -inf  ;;  %v1165_v20 = vsel %vm670_vm3, %v660_v7, -inf }
  0xaa   : > { %v350_v41 = vpop.f32.mrf.mxu0  ;;  %v630_v4 = vadd.f32 %v586_v35, %v1132_v46  ;;  %v611_v8 = vadd.f32 %v538_v36, %v1138_v49 }
  0xab   : > { %v1149_v1 = vadd.f32 %v997_v45, %v350_v41  ;;  %v652_v11 = vmax.f32 %v620_v60, 0.0 }
  0xac   : > { %v662_v17 = vmax.f32 %v630_v4, 0.0  ;;  %v643_v21 = vmax.f32 %v611_v8, 0.0 }
  0xad   : > { %v609_v15 = vadd.f32 %v533_v29, %v1149_v1  ;;  %v706_v25 = vsel %vm670_vm3, %v652_v11, -inf  ;;  %v1177_v30 = vadd.f32 %v1125_v31, %v1149_v1 }
  0xae   : > { %v687_v54 = vsel %vm670_vm3, %v643_v21, -inf }
  0xaf   : > { %v641_v33 = vmax.f32 %v609_v15, 0.0  ;;  %v661_v57 = vmax.f32 %v1177_v30, 0.0 }
  0xb0   : > { %v563_v38 = vpop.f32.mrf.mxu2 }
  0xb1   : > { %v588_v39 = vpop.f32.mrf.mxu3  ;;  %v541_v40 = vpop.f32.mrf.mxu1  ;;  %v621_v22 = vadd.f32 %v563_v38, %v1149_v1  ;;  %v716_v59 = vsel %vm670_vm3, %v641_v33, -inf }
  0xb2   : > { %v526_v52 = vpop.f32.mrf.mxu0  ;;  %v612_v5 = vadd.f32 %v541_v40, %v1140_v51  ;;  %v1180_v32 = vadd.f32 %v588_v39, %v1138_v49 }
  0xb3   : > { %v606_v58 = vadd.f32 %v526_v52, %v1132_v46  ;;  %v653_v31 = vmax.f32 %v621_v22, 0.0 }
  0xb4   : > { %v644_v18 = vmax.f32 %v612_v5, 0.0 }
  0xb5   : > { %v638_v9 = vmax.f32 %v606_v58, 0.0  ;;  %v663_v58 = vmax.f32 %v1180_v32, 0.0 }
  0xb6   : > { %v702_v38 = vsel %vm670_vm3, %v644_v18, -inf }
  0xb7   : > { %v671_v23 = vsel %vm670_vm3, %v638_v9, -inf  ;;  %v703_v55 = vmax.f32 %v701_v19, %v702_v38 }
  0xb8   : > { %v566_v42 = vpop.f32.mrf.mxu2  ;;  %v673_v37 = vmax.f32 %v671_v23, %v672_v14 }
  0xb9   : > { %v1127_v43 = vpop.f32.mrf.mxu3  ;;  %v543_v44 = vpop.f32.mrf.mxu1  ;;  %v622_v26 = vadd.f32 %v566_v42, %v1132_v46  ;;  %v682_v42 = vsel %vm670_vm3, %v662_v17, -inf }
  0xba   : > { %v528_v12 = vpop.f32.mrf.mxu0  ;;  %v613_v27 = vadd.f32 %v543_v44, %v1149_v1  ;;  %v632_v39 = vadd.f32 %v1127_v43, %v1140_v51  ;;  %v721_v43 = vsel %vm670_vm3, %v653_v31, -inf }
  0xbb   : > { %v607_v24 = vadd.f32 %v528_v12, %v1138_v49  ;;  %v654_v45 = vmax.f32 %v622_v26, 0.0 }
  0xbc   : > { %v664_v4 = vmax.f32 %v632_v39, 0.0 }
  0xbd   : > { %v639_v44 = vmax.f32 %v607_v24, 0.0 }
  0xbf   : > { %v686_v63 = vsel %vm670_vm3, %v639_v44, -inf }
  0xc0   : > { %v1134_v47 = vpop.f32.mrf.mxu2 }
  0xc1   : > { %v1136_v48 = vpop.f32.mrf.mxu3  ;;  %v546_v50 = vpop.f32.mrf.mxu1 }
  0xc2   : > { %v614_v2 = vadd.f32 %v546_v50, %v1132_v46  ;;  %v645_v50 = vmax.f32 %v613_v27, 0.0 }
  0xc4   : > { %v646_v16 = vmax.f32 %v614_v2, 0.0  ;;  %v717_v5 = vsel %vm670_vm3, %v645_v50, -inf }
  0xc5   : > { %v718_v26 = vmax.f32 %v716_v59, %v717_v5 }
  0xc6   : > { %v674_v34 = vsel %vm670_vm3, %v646_v16, -inf  ;;  %v688_v16 = vmax.f32 %v686_v63, %v687_v54 }
  0xc7   : > { %v675_v52 = vmax.f32 %v673_v37, %v674_v34 }
  0xc8   : > { %v571_v61 = vpop.f32.mrf.mxu2 }
  0xc9   : > { %v596_v62 = vpop.f32.mrf.mxu3  ;;  %v548_v3 = vpop.f32.mrf.mxu1  ;;  %v624_v40 = vadd.f32 %v571_v61, %v1140_v51  ;;  %v677_v6 = vmax.f32 %v675_v52, %v1156_v10  ;;  %v623_v10 = vadd.f32 %v1134_v47, %v1138_v49 }
  0xca   : > { %v615_v35 = vadd.f32 %v548_v3, %v1138_v49  ;;  %v634_v0 = vadd.f32 %v596_v62, %v1132_v46  ;;  %v678_v3 = vsel %vm670_vm3, %v654_v45, -inf }
  0xcb   : > { %v656_v60 = vmax.f32 %v624_v40, 0.0  ;;  %v679_v24 = vmax.f32 %v677_v6, %v678_v3 }
  0xcc   : > { %v647_v56 = vmax.f32 %v615_v35, 0.0  ;;  %v666_v19 = vmax.f32 %v634_v0, 0.0 }
  0xcd   : > { %v708_v62 = vsel %vm670_vm3, %v656_v60, -inf }
  0xce   : > { %v689_v9 = vsel %vm670_vm3, %v647_v56, -inf  ;;  %v684_v37 = vsel %vm670_vm3, %v666_v19, -inf }
  0xcf   : > { %v690_v23 = vmax.f32 %v688_v16, %v689_v9 }
  0xd0   : > { %v573_v28 = vpop.f32.mrf.mxu2 }
  0xd1   : > { %v1173_v29 = vpop.f32.mrf.mxu3  ;;  %v551_v36 = vpop.f32.mrf.mxu1  ;;  %v625_v17 = vadd.f32 %v573_v28, %v1149_v1  ;;  %v633_v28 = vadd.f32 %v1136_v48, %v1149_v1 }
  0xd2   : > { %v616_v41 = vadd.f32 %v551_v36, %v1140_v51  ;;  %v655_v36 = vmax.f32 %v623_v10, 0.0  ;;  %v635_v31 = vadd.f32 %v1173_v29, %v1138_v49 }
  0xd3   : > { %v657_v34 = vmax.f32 %v625_v17, 0.0 }
  0xd4   : > { %v648_v53 = vmax.f32 %v616_v41, 0.0  ;;  %v692_v41 = vmax.f32 %v690_v23, %v1159_v13  ;;  %v665_v13 = vmax.f32 %v633_v28, 0.0 }
  0xd5   : > { %v723_v54 = vsel %vm670_vm3, %v657_v34, -inf }
  0xd6   : > { %v704_v61 = vsel %vm670_vm3, %v648_v53, -inf }
  0xd7   : > { %v705_v2 = vmax.f32 %v703_v55, %v704_v61 }
  0xd8   : > { %v576_v7 = vpop.f32.mrf.mxu2 }
  0xd9   : > { %v601_v8 = vpop.f32.mrf.mxu3  ;;  %v707_v11 = vmax.f32 %v705_v2, %v706_v25  ;;  %v626_v12 = vadd.f32 %v576_v7, %v1132_v46  ;;  %v553_v15 = vpop.f32.mrf.mxu1  ;;  %v727_v2 = vsel %vm670_vm3, %v665_v13, -inf }
  0xda   : > { %v636_v14 = vadd.f32 %v601_v8, %v1140_v51  ;;  %v617_v18 = vadd.f32 %v553_v15, %v1149_v1  ;;  %v712_v51 = vsel %vm670_vm3, %v664_v4, -inf  ;;  %v697_v4 = vsel %vm670_vm3, %v663_v58, -inf }
  0xdb   : > { %v709_v21 = vmax.f32 %v707_v11, %v708_v62  ;;  %v658_v22 = vmax.f32 %v626_v12, 0.0 }
  0xdc   : > { %v668_v25 = vmax.f32 %v636_v14, 0.0  ;;  %v649_v46 = vmax.f32 %v617_v18, 0.0 }
  0xdd   : > { %v680_v27 = vsel %vm670_vm3, %v658_v22, -inf  ;;  %v711_v33 = vmax.f32 %v709_v21, %v1165_v20 }
  0xde   : > { %v681_v35 = vmax.f32 %v679_v24, %v680_v27  ;;  %v719_v47 = vsel %vm670_vm3, %v649_v46, -inf  ;;  %v714_v20 = vsel %vm670_vm3, %v668_v25, -inf }
  0xdf   : > { %v713_v38 = vmax.f32 %v711_v33, %v712_v51  ;;  %v720_v40 = vmax.f32 %v718_v26, %v719_v47 }
  0xe0   : > { %v683_v39 = vmax.f32 %v681_v35, %v682_v42  ;;  %v578_v44 = vpop.f32.mrf.mxu2  ;;  %v693_v42 = vsel %vm670_vm3, %v655_v36, -inf }
  0xe1   : > { %v603_v48 = vpop.f32.mrf.mxu3  ;;  %v715_v45 = vmax.f32 %v713_v38, %v714_v20  ;;  %v722_v50 = vmax.f32 %v720_v40, %v721_v43  ;;  %v627_v52 = vadd.f32 %v578_v44, %v1138_v49  ;;  %v694_v61 = vmax.f32 %v692_v41, %v693_v42 }
  0xe2   : > { %v637_v53 = vadd.f32 %v603_v48, %v1149_v1  ;;  %v685_v29 = vmax.f32 %v683_v39, %v684_v37  ;;  %v725_v1 = vsel %vm670_vm3, %v661_v57, -inf  ;;  %v667_v43 = vmax.f32 %v635_v31, 0.0 }
  0xe3   : > { %v733_v55 = vpack.c.bf16 %v715_v45, %v715_v45  ;;  %v724_v56 = vmax.f32 %v722_v50, %v723_v54  ;;  %v659_v59 = vmax.f32 %v627_v52, 0.0 }
  0xe4   : > { %v731_v60 = vpack.c.bf16 %v685_v29, %v685_v29  ;;  %v669_v49 = vmax.f32 %v637_v53, 0.0  ;;  %v699_v57 = vsel %vm670_vm3, %v667_v43, -inf }
  0xe5   : > { %738 = vst.msk [vmem:[%s298_s13 + $0x8] sm:$0xf] %vm735_vm4, %v733_v55  ;;  %v695_v63 = vsel %vm670_vm3, %v659_v59, -inf  ;;  %v726_v0 = vmax.f32 %v724_v56, %v725_v1 }
  0xe6   : > { %736 = vst.msk [vmem:[%s298_s13] sm:$0xf] %vm735_vm4, %v731_v60  ;;  %v696_v3 = vmax.f32 %v694_v61, %v695_v63  ;;  %v729_v30 = vsel %vm670_vm3, %v669_v49, -inf }
  0xe7   : > { %v728_v5 = vmax.f32 %v726_v0, %v727_v2 }
  0xe8   : > { %v698_v6 = vmax.f32 %v696_v3, %v697_v4 }
  0xe9   : > { %v730_v7 = vmax.f32 %v728_v5, %v729_v30 }
  0xea   : > { %v700_v8 = vmax.f32 %v698_v6, %v699_v57 }
  0xeb   : > { %v734_v9 = vpack.c.bf16 %v730_v7, %v730_v7 }
  0xec   : > { %v732_v11 = vpack.c.bf16 %v700_v8, %v700_v8 }
  0xed   : > { %739 = vst.msk [vmem:[%s298_s13 + $0xc] sm:$0xf] %vm735_vm4, %v734_v9 }
  0xee   : > { %737 = vst.msk [vmem:[%s298_s13 + $0x4] sm:$0xf] %vm735_vm4, %v732_v11 }
  0xef PF: > { %s15_s20 = sadd.s32 1, %s1020_s20   ;;  %s1258_s18 = smov %s1016_s19 }
  0xf0   : > { %p12_p5 = scmp.ge.s32.totalorder %s15_s20, 4   ;;  %s1259_s19 = smov %s1261_s21 }
  0xf2   :  { %14 = sbr.rel (!%p12_p5) target bundleno = 2 (0x2), region = 73 }

// kernel: _lambda_.12
= control target key start
LH: loop header
LB: loop body
LE: loop exit
PB: predicated region body
PF: predicated region fallthrough
CT: control target
= control target key end

     0   :  { %s1082_s18 = smov 0   ;;  %s1084_s19 = smov 0   ;;  %s1287_s0 = inlined_call_operand.vmem [shape: bf16[2,32,24], index: 0, kind: input, shape index: {}]   ;;  %s1288_s1 = inlined_call_operand.vmem [shape: bf16[2,8,32,24], index: 1, kind: input, shape index: {}]   ;;  %s1289_s2 = inlined_call_operand.vmem [shape: bf16[24,24], index: 2, kind: input, shape index: {}]   ;;  %s1290_s3 = inlined_call_operand.vmem [shape: bf16[24,24], index: 3, kind: input, shape index: {}]   ;;  %s1291_s4 = inlined_call_operand.vmem [shape: f32[1,24], index: 4, kind: input, shape index: {}]   ;;  %s1292_s5 = inlined_call_operand.vmem [shape: bf16[2,32,24], index: 5, kind: output, shape index: {}]  }
   0x1   :  { %s1086_s20 = smov 0  }
   0x2 LB: > { %s27_s21 = sadd.s32 1, %s1046_s19  ;;  %p867_p0 = scmp.ge.s32.totalorder %s1050_s20, 1  ;;  %s1050_s20 = sphi %s1086_s20, %s15_s20   ;;  %s1046_s19 = sphi %s1084_s19, %s1294_s19   ;;  %s1042_s18 = sphi %s1082_s18, %s1293_s18  }
   0x3   : > { %p29_p1 = scmp.ge.s32.totalorder %s27_s21, 2  ;;  %p225_p2 = scmp.lt.s32.totalorder %s1050_s20, 3 }
   0x5   : > { %s1296_s21 = smov (%p29_p1, %s27_s21), 0  ;;  %p226_p3 = pnand %p867_p0, %p225_p2 }
   0x6   : > { %p271_p4 = scmp.lt.s32.totalorder (!%p226_p3), %s1042_s18, 1 }
   0x7   : > { %229 = sbr.rel (%p226_p3) target bundleno = 245 (0xf5), region = 40 }
   0xc   : > { %v307_v0 = vld [vmem:[%s1289_s2 + $0x8] sm:$0xf]  ;;  %vm338_vm0 = vcmask 1043456   ;;  %s1298_s18 = smov (!%p271_p4, %s1042_s18), 1  ;;  %v979_v8 = vld [vmem:[%s1289_s2] sm:$0xff]  ;;  %vm331_vm1 = vcmask 195584  }
   0xd   : > { %v395_v1 = vld [vmem:[%s1290_s3 + $0x8] sm:$0xf]  ;;  %v327_v2 = vunpack.c.l.b16 %v307_v0  ;;  %s974_s26 = sshll.u32 %s1298_s18, 4  ;;  %s975_s27 = sshll.u32 %s1298_s18, 7  ;;  %v996_v9 = vld [vmem:[%s1290_s3] sm:$0xff]  ;;  %vm753_vm2 = vcmask 191488  }
   0xe   : > { %v481_v3 = vunpack.c.l.b16 %v395_v1  ;;  %s278_s9 = scalar_lea.vmem %s1287_s0, %s974_s26  ;;  %s1124_s12 = scalar_lea.vmem %s1288_s1, %s975_s27  ;;  %v1027_v48 = vld [vmem:[%s1291_s4] ss:$0 sm:$0xff] }
   0xf   : > { %v329_v4 = vpack.c.b16 %v327_v2, %v327_v2  ;;  %v977_v10 = vld [vmem:[%s278_s9] sm:$0xff]  ;;  %v981_v11 = vld [vmem:[%s1124_s12 + $0x8] sm:$0xff]  ;;  %v986_v12 = vld [vmem:[%s1124_s12 + $0x30] sm:$0xff]  ;;  %s298_s17 = scalar_lea.vmem %s1292_s5, %s974_s26 }
  0x10   : > { %v483_v5 = vpack.c.b16 %v481_v3, %v481_v3  ;;  %v991_v13 = vld [vmem:[%s1124_s12 + $0x58] sm:$0xff]  ;;  %v978_v14 = vld [vmem:[%s278_s9 + $0x8] sm:$0xff]  ;;  %v982_v15 = vld [vmem:[%s1124_s12 + $0x10] sm:$0xff] }
  0x11   : > { %v340_v6 = vsel %vm338_vm0, %v329_v4, 0  ;;  %v987_v16 = vld [vmem:[%s1124_s12 + $0x38] sm:$0xff]  ;;  %v992_v17 = vld [vmem:[%s1124_s12 + $0x60] sm:$0xff]  ;;  %v993_v21 = vld [vmem:[%s1124_s12 + $0x68] sm:$0xff] }
  0x12   : > { %v534_v7 = vsel %vm338_vm0, %v483_v5, 0  ;;  %348 = vmatpush.bf16.msra.mxu0 %v340_v6  ;;  %v980_v18 = vld [vmem:[%s1124_s12] sm:$0xff]  ;;  %v983_v19 = vld [vmem:[%s1124_s12 + $0x18] sm:$0xff]  ;;  %v989_v23 = vld [vmem:[%s1124_s12 + $0x48] sm:$0xff] }
  0x13   : > { %997 = vmatpush.bf16.msra.mxu1 %v534_v7  ;;  %998 = vmatpush.bf16.msra.mxu2 %v534_v7  ;;  %v988_v20 = vld [vmem:[%s1124_s12 + $0x40] sm:$0xff]  ;;  %v994_v24 = vld [vmem:[%s1124_s12 + $0x70] sm:$0xff]  ;;  %v985_v25 = vld [vmem:[%s1124_s12 + $0x28] sm:$0xff] }
  0x14   : > { %999 = vmatpush.bf16.msra.mxu3 %v534_v7  ;;  %v984_v22 = vld [vmem:[%s1124_s12 + $0x20] sm:$0xff]  ;;  %v990_v26 = vld [vmem:[%s1124_s12 + $0x50] sm:$0xff]  ;;  %v995_v27 = vld [vmem:[%s1124_s12 + $0x78] sm:$0xff] }
  0x16   : > { %349 = vmatpush.bf16.msra.mxu0 %v979_v8 }
  0x17   : > { %1000 = vmatpush.bf16.msra.mxu1 %v996_v9  ;;  %1001 = vmatpush.bf16.msra.mxu2 %v996_v9 }
  0x18   : > { %1002 = vmatpush.bf16.msra.mxu3 %v996_v9 }
  0x19   : > { %886 = vmatmul.msk.bf16.vlgmr.msra.gmra.mxu0 %vm331_vm1, %v977_v10 }
  0x1a   : > { %542 = vmatpush.bf16.msrb.mxu0 %v534_v7  ;;  %957 = vmatmul.msk.bf16.vlgmr.msra.gmra.mxu1 %vm331_vm1, %v981_v11 }
  0x1b   : > { %962 = vmatmul.msk.bf16.vlgmr.msra.gmra.mxu2 %vm331_vm1, %v986_v12  ;;  %967 = vmatmul.msk.bf16.vlgmr.msra.gmra.mxu3 %vm331_vm1, %v991_v13 }
  0x1e   : > { %543 = vmatpush.bf16.msrb.mxu0 %v996_v9 }
  0x29   : > { %887 = vmatmul.msk.bf16.gmra.mxu0 %vm331_vm1, %v978_v14 }
  0x2a   : > { %958 = vmatmul.msk.bf16.gmra.mxu1 %vm331_vm1, %v982_v15 }
  0x2b   : > { %963 = vmatmul.msk.bf16.gmra.mxu2 %vm331_vm1, %v987_v16  ;;  %968 = vmatmul.msk.bf16.gmra.mxu3 %vm331_vm1, %v992_v17 }
  0x39   : > { %956 = vmatmul.msk.bf16.vlgmr.msrb.gmra.mxu0 %vm331_vm1, %v980_v18 }
  0x3a   : > { %959 = vmatmul.msk.bf16.gmra.mxu1 %vm331_vm1, %v983_v19 }
  0x3b   : > { %964 = vmatmul.msk.bf16.gmra.mxu2 %vm331_vm1, %v988_v20  ;;  %969 = vmatmul.msk.bf16.gmra.mxu3 %vm331_vm1, %v993_v21 }
  0x4a   : > { %960 = vmatmul.msk.bf16.gmra.mxu1 %vm331_vm1, %v984_v22 }
  0x4b   : > { %965 = vmatmul.msk.bf16.gmra.mxu2 %vm331_vm1, %v989_v23  ;;  %970 = vmatmul.msk.bf16.gmra.mxu3 %vm331_vm1, %v994_v24 }
  0x5a   : > { %961 = vmatmul.msk.bf16.gmra.mxu1 %vm331_vm1, %v985_v25 }
  0x5b   : > { %966 = vmatmul.msk.bf16.gmra.mxu2 %vm331_vm1, %v990_v26  ;;  %971 = vmatmul.msk.bf16.gmra.mxu3 %vm331_vm1, %v995_v27 }
  0x96   : > { %v351_v31 = vpop.f32.mrf.mxu0 }
  0x97   : > { %v550_v28 = vpop.f32.mrf.mxu1  ;;  %v1167_v49 = vadd.f32 %v1027_v48, %v351_v31 }
  0x9e   : > { %v575_v29 = vpop.f32.mrf.mxu2  ;;  %v600_v30 = vpop.f32.mrf.mxu3 }
  0x9f   : > { %v552_v32 = vpop.f32.mrf.mxu1  ;;  %v353_v36 = vpop.f32.mrf.mxu0  ;;  %v637_v56 = vadd.f32 %v575_v29, %v1167_v49 }
  0xa0   : > { %v1173_v52 = vadd.f32 %v1027_v48, %v353_v36 }
  0xa1   : > { %v669_v62 = vmax.f32 %v637_v56, 0.0 }
  0xa3   : > { %v1191_v13 = vsel %vm331_vm1, %v669_v62, -inf }
  0xa6   : > { %v577_v33 = vpop.f32.mrf.mxu2  ;;  %v1160_v34 = vpop.f32.mrf.mxu3 }
  0xa7   : > { %v555_v35 = vpop.f32.mrf.mxu1  ;;  %v356_v40 = vpop.f32.mrf.mxu0  ;;  %v638_v57 = vadd.f32 %v577_v33, %v1173_v52 }
  0xa8   : > { %v1175_v54 = vadd.f32 %v1027_v48, %v356_v40  ;;  %v629_v58 = vadd.f32 %v555_v35, %v1167_v49 }
  0xa9   : > { %v670_v2 = vmax.f32 %v638_v57, 0.0 }
  0xaa   : > { %v627_v59 = vadd.f32 %v550_v28, %v1175_v54  ;;  %v647_v60 = vadd.f32 %v600_v30, %v1175_v54  ;;  %v661_v3 = vmax.f32 %v629_v58, 0.0 }
  0xab   : > { %v1194_v16 = vsel %vm331_vm1, %v670_v2, -inf }
  0xac   : > { %v659_v9 = vmax.f32 %v627_v59, 0.0  ;;  %v679_v10 = vmax.f32 %v647_v60, 0.0  ;;  %v690_v17 = vsel %vm331_vm1, %v661_v3, -inf }
  0xae   : > { %v580_v37 = vpop.f32.mrf.mxu2  ;;  %v605_v38 = vpop.f32.mrf.mxu3  ;;  %v719_v22 = vsel %vm331_vm1, %v659_v9, -inf  ;;  %v1200_v23 = vsel %vm331_vm1, %v679_v10, -inf }
  0xaf   : > { %v557_v39 = vpop.f32.mrf.mxu1  ;;  %v358_v44 = vpop.f32.mrf.mxu0  ;;  %v639_v63 = vadd.f32 %v580_v37, %v1175_v54  ;;  %v649_v7 = vadd.f32 %v605_v38, %v1167_v49 }
  0xb0   : > { %v1184_v4 = vadd.f32 %v1027_v48, %v358_v44  ;;  %v630_v11 = vadd.f32 %v557_v39, %v1173_v52 }
  0xb1   : > { %v671_v14 = vmax.f32 %v639_v63, 0.0  ;;  %v681_v20 = vmax.f32 %v649_v7, 0.0 }
  0xb2   : > { %v628_v18 = vadd.f32 %v552_v32, %v1184_v4  ;;  %v662_v24 = vmax.f32 %v630_v11, 0.0  ;;  %v1212_v33 = vadd.f32 %v1160_v34, %v1184_v4 }
  0xb3   : > { %v724_v28 = vsel %vm331_vm1, %v671_v14, -inf }
  0xb4   : > { %v660_v36 = vmax.f32 %v628_v18, 0.0  ;;  %v705_v57 = vsel %vm331_vm1, %v662_v24, -inf  ;;  %v680_v60 = vmax.f32 %v1212_v33, 0.0 }
  0xb6   : > { %v582_v41 = vpop.f32.mrf.mxu2  ;;  %v607_v42 = vpop.f32.mrf.mxu3  ;;  %v734_v62 = vsel %vm331_vm1, %v660_v36, -inf }
  0xb7   : > { %v560_v43 = vpop.f32.mrf.mxu1  ;;  %v545_v55 = vpop.f32.mrf.mxu0  ;;  %v640_v25 = vadd.f32 %v582_v41, %v1184_v4  ;;  %v1215_v35 = vadd.f32 %v607_v42, %v1173_v52 }
  0xb8   : > { %v625_v61 = vadd.f32 %v545_v55, %v1167_v49  ;;  %v631_v8 = vadd.f32 %v560_v43, %v1175_v54 }
  0xb9   : > { %v672_v34 = vmax.f32 %v640_v25, 0.0 }
  0xba   : > { %v657_v12 = vmax.f32 %v625_v61, 0.0  ;;  %v663_v21 = vmax.f32 %v631_v8, 0.0  ;;  %v682_v61 = vmax.f32 %v1215_v35, 0.0 }
  0xbc   : > { %v689_v26 = vsel %vm331_vm1, %v657_v12, -inf  ;;  %v720_v41 = vsel %vm331_vm1, %v663_v21, -inf }
  0xbd   : > { %v691_v40 = vmax.f32 %v689_v26, %v690_v17  ;;  %v721_v58 = vmax.f32 %v719_v22, %v720_v41 }
  0xbe   : > { %v585_v45 = vpop.f32.mrf.mxu2  ;;  %v1162_v46 = vpop.f32.mrf.mxu3 }
  0xbf   : > { %v562_v47 = vpop.f32.mrf.mxu1  ;;  %v547_v15 = vpop.f32.mrf.mxu0  ;;  %v641_v29 = vadd.f32 %v585_v45, %v1167_v49  ;;  %v700_v45 = vsel %vm331_vm1, %v681_v20, -inf  ;;  %v651_v42 = vadd.f32 %v1162_v46, %v1175_v54  ;;  %v739_v46 = vsel %vm331_vm1, %v672_v34, -inf }
  0xc0   : > { %v626_v27 = vadd.f32 %v547_v15, %v1173_v52  ;;  %v632_v30 = vadd.f32 %v562_v47, %v1184_v4 }
  0xc1   : > { %v673_v48 = vmax.f32 %v641_v29, 0.0  ;;  %v683_v7 = vmax.f32 %v651_v42, 0.0 }
  0xc2   : > { %v658_v47 = vmax.f32 %v626_v27, 0.0 }
  0xc4   : > { %v704_v2 = vsel %vm331_vm1, %v658_v47, -inf }
  0xc6   : > { %v1169_v50 = vpop.f32.mrf.mxu2  ;;  %v1171_v51 = vpop.f32.mrf.mxu3 }
  0xc7   : > { %v565_v53 = vpop.f32.mrf.mxu1 }
  0xc8   : > { %v633_v5 = vadd.f32 %v565_v53, %v1167_v49  ;;  %v664_v53 = vmax.f32 %v632_v30, 0.0 }
  0xca   : > { %v665_v19 = vmax.f32 %v633_v5, 0.0  ;;  %v735_v8 = vsel %vm331_vm1, %v664_v53, -inf }
  0xcb   : > { %v736_v29 = vmax.f32 %v734_v62, %v735_v8 }
  0xcc   : > { %v692_v37 = vsel %vm331_vm1, %v665_v19, -inf  ;;  %v706_v19 = vmax.f32 %v704_v2, %v705_v57 }
  0xcd   : > { %v693_v55 = vmax.f32 %v691_v40, %v692_v37 }
  0xce   : > { %v590_v0 = vpop.f32.mrf.mxu2  ;;  %v615_v1 = vpop.f32.mrf.mxu3 }
  0xcf   : > { %v567_v6 = vpop.f32.mrf.mxu1  ;;  %v643_v43 = vadd.f32 %v590_v0, %v1175_v54  ;;  %v653_v3 = vadd.f32 %v615_v1, %v1167_v49  ;;  %v695_v9 = vmax.f32 %v693_v55, %v1191_v13  ;;  %v642_v13 = vadd.f32 %v1169_v50, %v1173_v52 }
  0xd0   : > { %v634_v38 = vadd.f32 %v567_v6, %v1173_v52  ;;  %v696_v6 = vsel %vm331_vm1, %v673_v48, -inf }
  0xd1   : > { %v675_v63 = vmax.f32 %v643_v43, 0.0  ;;  %v685_v22 = vmax.f32 %v653_v3, 0.0  ;;  %v697_v27 = vmax.f32 %v695_v9, %v696_v6 }
  0xd2   : > { %v666_v59 = vmax.f32 %v634_v38, 0.0 }
  0xd3   : > { %v726_v1 = vsel %vm331_vm1, %v675_v63, -inf  ;;  %v702_v40 = vsel %vm331_vm1, %v685_v22, -inf }
  0xd4   : > { %v707_v12 = vsel %vm331_vm1, %v666_v59, -inf }
  0xd5   : > { %v708_v26 = vmax.f32 %v706_v19, %v707_v12 }
  0xd6   : > { %v592_v31 = vpop.f32.mrf.mxu2  ;;  %v1208_v32 = vpop.f32.mrf.mxu3 }
  0xd7   : > { %v570_v39 = vpop.f32.mrf.mxu1  ;;  %v644_v20 = vadd.f32 %v592_v31, %v1184_v4  ;;  %v652_v31 = vadd.f32 %v1171_v51, %v1184_v4  ;;  %v654_v34 = vadd.f32 %v1208_v32, %v1173_v52 }
  0xd8   : > { %v635_v44 = vadd.f32 %v570_v39, %v1175_v54  ;;  %v674_v39 = vmax.f32 %v642_v13, 0.0 }
  0xd9   : > { %v676_v37 = vmax.f32 %v644_v20, 0.0 }
  0xda   : > { %v667_v56 = vmax.f32 %v635_v44, 0.0  ;;  %v710_v44 = vmax.f32 %v708_v26, %v1194_v16  ;;  %v684_v16 = vmax.f32 %v652_v31, 0.0 }
  0xdb   : > { %v741_v57 = vsel %vm331_vm1, %v676_v37, -inf }
  0xdc   : > { %v722_v0 = vsel %vm331_vm1, %v667_v56, -inf }
  0xdd   : > { %v723_v5 = vmax.f32 %v721_v58, %v722_v0 }
  0xde   : > { %v595_v10 = vpop.f32.mrf.mxu2  ;;  %v620_v11 = vpop.f32.mrf.mxu3 }
  0xdf   : > { %v725_v14 = vmax.f32 %v723_v5, %v724_v28  ;;  %v645_v15 = vadd.f32 %v595_v10, %v1167_v49  ;;  %v655_v17 = vadd.f32 %v620_v11, %v1175_v54  ;;  %v572_v18 = vpop.f32.mrf.mxu1  ;;  %v730_v54 = vsel %vm331_vm1, %v683_v7, -inf }
  0xe0   : > { %v636_v21 = vadd.f32 %v572_v18, %v1184_v4  ;;  %v745_v5 = vsel %vm331_vm1, %v684_v16, -inf  ;;  %v715_v7 = vsel %vm331_vm1, %v682_v61, -inf }
  0xe1   : > { %v727_v24 = vmax.f32 %v725_v14, %v726_v1  ;;  %v677_v25 = vmax.f32 %v645_v15, 0.0  ;;  %v687_v28 = vmax.f32 %v655_v17, 0.0 }
  0xe2   : > { %v668_v49 = vmax.f32 %v636_v21, 0.0 }
  0xe3   : > { %v698_v30 = vsel %vm331_vm1, %v677_v25, -inf  ;;  %v729_v36 = vmax.f32 %v727_v24, %v1200_v23  ;;  %v732_v23 = vsel %vm331_vm1, %v687_v28, -inf }
  0xe4   : > { %v699_v38 = vmax.f32 %v697_v27, %v698_v30  ;;  %v737_v50 = vsel %vm331_vm1, %v668_v49, -inf }
  0xe5   : > { %v731_v41 = vmax.f32 %v729_v36, %v730_v54  ;;  %v738_v43 = vmax.f32 %v736_v29, %v737_v50 }
  0xe6   : > { %v701_v42 = vmax.f32 %v699_v38, %v700_v45  ;;  %v597_v47 = vpop.f32.mrf.mxu2  ;;  %v622_v51 = vpop.f32.mrf.mxu3  ;;  %v711_v45 = vsel %vm331_vm1, %v674_v39, -inf }
  0xe7   : > { %v733_v48 = vmax.f32 %v731_v41, %v732_v23  ;;  %v740_v53 = vmax.f32 %v738_v43, %v739_v46  ;;  %v646_v55 = vadd.f32 %v597_v47, %v1173_v52  ;;  %v656_v56 = vadd.f32 %v622_v51, %v1184_v4 }
  0xe8   : > { %v703_v32 = vmax.f32 %v701_v42, %v702_v40  ;;  %v712_v0 = vmax.f32 %v710_v44, %v711_v45  ;;  %v743_v4 = vsel %vm331_vm1, %v680_v60, -inf  ;;  %v686_v46 = vmax.f32 %v654_v34, 0.0 }
  0xe9   : > { %v751_v58 = vpack.c.bf16 %v733_v48, %v733_v48  ;;  %v742_v59 = vmax.f32 %v740_v53, %v741_v57  ;;  %v678_v62 = vmax.f32 %v646_v55, 0.0  ;;  %v688_v52 = vmax.f32 %v656_v56, 0.0 }
  0xea   : > { %v749_v63 = vpack.c.bf16 %v703_v32, %v703_v32  ;;  %v717_v60 = vsel %vm331_vm1, %v686_v46, -inf }
  0xeb   : > { %756 = vst.msk [vmem:[%s298_s17 + $0x8] sm:$0xf] %vm753_vm2, %v751_v58  ;;  %v713_v2 = vsel %vm331_vm1, %v678_v62, -inf  ;;  %v744_v3 = vmax.f32 %v742_v59, %v743_v4  ;;  %v747_v33 = vsel %vm331_vm1, %v688_v52, -inf }
  0xec   : > { %754 = vst.msk [vmem:[%s298_s17] sm:$0xf] %vm753_vm2, %v749_v63  ;;  %v714_v6 = vmax.f32 %v712_v0, %v713_v2 }
  0xed   : > { %v746_v8 = vmax.f32 %v744_v3, %v745_v5 }
  0xee   : > { %v716_v9 = vmax.f32 %v714_v6, %v715_v7 }
  0xef   : > { %v748_v10 = vmax.f32 %v746_v8, %v747_v33 }
  0xf0   : > { %v718_v11 = vmax.f32 %v716_v9, %v717_v60 }
  0xf1   : > { %v752_v12 = vpack.c.bf16 %v748_v10, %v748_v10 }
  0xf2   : > { %v750_v14 = vpack.c.bf16 %v718_v11, %v718_v11 }
  0xf3   : > { %757 = vst.msk [vmem:[%s298_s17 + $0xc] sm:$0xf] %vm753_vm2, %v752_v12 }
  0xf4   : > { %755 = vst.msk [vmem:[%s298_s17 + $0x4] sm:$0xf] %vm753_vm2, %v750_v14 }
  0xf5 PF: > { %s15_s20 = sadd.s32 1, %s1050_s20   ;;  %s1293_s18 = smov %s1046_s19 }
  0xf6   : > { %p12_p5 = scmp.ge.s32.totalorder %s15_s20, 4   ;;  %s1294_s19 = smov %s1296_s21 }
  0xf8   :  { %14 = sbr.rel (!%p12_p5) target bundleno = 2 (0x2), region = 73 }

// kernel: _lambda_.15
= control target key start
LH: loop header
LB: loop body
LE: loop exit
PB: predicated region body
PF: predicated region fallthrough
CT: control target
= control target key end

     0   :  { %s442_s12 = smov 0   ;;  %s483_s0 = inlined_call_operand.vmem [shape: bf16[64,96], index: 0, kind: input, shape index: {}]   ;;  %s484_s1 = inlined_call_operand.vmem [shape: bf16[96,128], index: 1, kind: input, shape index: {}]   ;;  %s485_s2 = inlined_call_operand.vmem [shape: f32[1,128], index: 2, kind: input, shape index: {}]   ;;  %s486_s3 = inlined_call_operand.vmem [shape: bf16[64,128], index: 3, kind: output, shape index: {}]  }
   0x1 LB: > { %s335_s13 = sadd.s32 4294967295, %s420_s12   ;;  %p339_p0 = scmp.ge.s32.totalorder %s420_s12, 1  ;;  %s420_s12 = sphi %s442_s12, %s13_s12  }
   0x2   : > { %p138_p1 = scmp.lt.s32.totalorder %s420_s12, 3 }
   0x4   : > { %p139_p2 = pnand %p339_p0, %p138_p1 }
   0x5   : > { %s340_s18 = sshll.u32 (!%p139_p2), %s335_s13, 2 }
   0x6   : > { %142 = sbr.rel (%p139_p2) target bundleno = 177 (0xb1), region = 32  ;;  %p163_p3 = scmp.lt.s32.totalorder (!%p139_p2), %s340_s18, 7 }
   0xb   : > { %v387_v0 = vld [vmem:[%s484_s1 + $0x28] sm:$0xff]  ;;  %v386_v1 = vld [vmem:[%s484_s1 + $0x20] sm:$0xff]  ;;  %v385_v2 = vld [vmem:[%s484_s1 + $0x18] sm:$0xff]  ;;  %s488_s18 = smov (!%p163_p3, %s340_s18), 7  ;;  %vm241_vm0 = vcmask 785408  }
   0xc   : > { %250 = vmatpush.bf16.msra.mxu0 %v387_v0  ;;  %399 = vmatpush.bf16.msra.mxu1 %v387_v0  ;;  %v384_v3 = vld [vmem:[%s484_s1 + $0x10] sm:$0xff]  ;;  %v383_v4 = vld [vmem:[%s484_s1 + $0x8] sm:$0xff]  ;;  %s341_s25 = sshll.u32 %s488_s18, 2  ;;  %v382_v5 = vld [vmem:[%s484_s1] sm:$0xff] }
   0xd   : > { %s166_s30 = scalar_lea.vmem %s483_s0, %s341_s25  ;;  %v413_v10 = vld [vmem:[%s485_s2] ss:$0 sm:$0xff]  ;;  %s172_s8 = scalar_lea.vmem %s486_s3, %s341_s25 }
   0xe   : > { %v380_v6 = vld [vmem:[%s166_s30] sm:$0xff]  ;;  %v381_v7 = vld [vmem:[%s166_s30 + $0x8] sm:$0xff] }
  0x10   : > { %251 = vmatpush.bf16.msra.mxu0 %v386_v1  ;;  %400 = vmatpush.bf16.msra.mxu1 %v386_v1 }
  0x14   : > { %252 = vmatpush.bf16.msra.mxu0 %v385_v2  ;;  %401 = vmatpush.bf16.msra.mxu1 %v385_v2 }
  0x18   : > { %253 = vmatpush.bf16.msra.mxu0 %v384_v3  ;;  %402 = vmatpush.bf16.msra.mxu1 %v384_v3 }
  0x1c   : > { %254 = vmatpush.bf16.msra.mxu0 %v383_v4  ;;  %403 = vmatpush.bf16.msra.mxu1 %v383_v4 }
  0x20   : > { %255 = vmatpush.bf16.msra.mxu0 %v382_v5  ;;  %404 = vmatpush.bf16.msra.mxu1 %v382_v5 }
  0x23   : > { %376 = vmatmul.msk.bf16.vlgmr.msra.gmra.mxu0 %vm241_vm0, %v380_v6  ;;  %377 = vmatmul.msk.bf16.vlgmr.msra.gmra.mxu1 %vm241_vm0, %v381_v7 }
  0xa0   : > { %v257_v8 = vpop.f32.mrf.mxu0  ;;  %v262_v9 = vpop.f32.mrf.mxu1 }
  0xa1   : > { %v258_v11 = vadd.f32 %v413_v10, %v257_v8  ;;  %v263_v12 = vadd.f32 %v413_v10, %v262_v9 }
  0xa3   : > { %v267_v17 = vmax.f32 %v258_v11, 0.0  ;;  %v269_v18 = vmax.f32 %v263_v12, 0.0 }
  0xa8   : > { %v259_v13 = vpop.f32.mrf.mxu0  ;;  %v264_v14 = vpop.f32.mrf.mxu1 }
  0xa9   : > { %v260_v15 = vadd.f32 %v413_v10, %v259_v13  ;;  %v265_v16 = vadd.f32 %v413_v10, %v264_v14 }
  0xab   : > { %v268_v19 = vmax.f32 %v260_v15, 0.0  ;;  %v270_v20 = vmax.f32 %v265_v16, 0.0 }
  0xad   : > { %v391_v21 = vpack.c.bf16 %v268_v19, %v267_v17  ;;  %v396_v22 = vpack.c.bf16 %v270_v20, %v269_v18 }
  0xaf   : > { %392 = vst [vmem:[%s172_s8] sm:$0xff] %v391_v21  }
  0xb0   : > { %398 = vst [vmem:[%s172_s8 + $0x8] sm:$0xff] %v396_v22  }
  0xb1 PF: > { %s13_s12 = sadd.s32 1, %s420_s12  }
  0xb2   : > { %p10_p4 = scmp.ge.s32.totalorder %s13_s12, 4  }
  0xb4   :  { %12 = sbr.rel (!%p10_p4) target bundleno = 1 (0x1), region = 62 }

// kernel: _lambda_.16
= control target key start
LH: loop header
LB: loop body
LE: loop exit
PB: predicated region body
PF: predicated region fallthrough
CT: control target
= control target key end

     0   :  { %s1216_s18 = smov 0   ;;  %s1632_s0 = inlined_call_operand.vmem [shape: bf16[32,256], index: 0, kind: input, shape index: {}]   ;;  %s1633_s1 = inlined_call_operand.vmem [shape: bf16[256,256], index: 1, kind: input, shape index: {}]   ;;  %s1634_s2 = inlined_call_operand.vmem [shape: f32[1,256], index: 2, kind: input, shape index: {}]   ;;  %s1635_s3 = inlined_call_operand.vmem [shape: bf16[256,256], index: 3, kind: input, shape index: {}]   ;;  %s1636_s4 = inlined_call_operand.vmem [shape: f32[1,256], index: 4, kind: input, shape index: {}]   ;;  %s1637_s5 = inlined_call_operand.vmem [shape: bf16[32,256], index: 5, kind: output, shape index: {}]  }
   0x1 LB: > { %s825_s19 = sadd.s32 4294967295, %s1184_s18   ;;  %p829_p0 = scmp.ge.s32.totalorder %s1184_s18, 1  ;;  %s1184_s18 = sphi %s1216_s18, %s15_s18  }
   0x2   : > { %p189_p1 = scmp.lt.s32.totalorder %s1184_s18, 3 }
   0x4   : > { %p190_p2 = pnand %p829_p0, %p189_p1 }
   0x5   : > { %s830_s11 = sshll.u32 (!%p190_p2), %s825_s19, 1 }
   0x6   : > { %193 = sbr.rel (%p190_p2) target bundleno = 343 (0x157), region = 40  ;;  %p220_p3 = scmp.lt.s32.totalorder (!%p190_p2), %s830_s11, 3 }
   0xb   : > { %v902_v0 = vld [vmem:[%s1633_s1 + $0x70] sm:$0xf]  ;;  %v1121_v1 = vld [vmem:[%s1633_s1 + $0x74] sm:$0xf0]  ;;  %v1120_v5 = vld [vmem:[%s1633_s1 + $0x74] sm:$0xf] }
   0xc   : > { %v966_v2 = vld [vmem:[%s1633_s1 + $0xf0] sm:$0xf]  ;;  %v903_v3 = vor.u32 %v1121_v1, %v902_v0  ;;  %v1137_v4 = vld [vmem:[%s1633_s1 + $0xf4] sm:$0xf0]  ;;  %v904_v6 = vld [vmem:[%s1633_s1 + $0x78] sm:$0xf0] }
   0xd   : > { %v967_v7 = vor.u32 %v1137_v4, %v966_v2  ;;  %v907_v8 = vor.u32 %v1120_v5, %v904_v6  ;;  %v1136_v9 = vld [vmem:[%s1633_s1 + $0xf4] sm:$0xf]  ;;  %v968_v10 = vld [vmem:[%s1633_s1 + $0xf8] sm:$0xf0]  ;;  %v894_v11 = vld [vmem:[%s1633_s1 + $0x60] sm:$0xf] }
   0xe   : > { %443 = vmatpush.bf16.msra.mxu0 %v903_v3  ;;  %v971_v12 = vor.u32 %v1136_v9, %v968_v10  ;;  %v1119_v13 = vld [vmem:[%s1633_s1 + $0x64] sm:$0xf0]  ;;  %v958_v14 = vld [vmem:[%s1633_s1 + $0xe0] sm:$0xf]  ;;  %v1118_v18 = vld [vmem:[%s1633_s1 + $0x64] sm:$0xf] }
   0xf   : > { %v1135_v15 = vld [vmem:[%s1633_s1 + $0xe4] sm:$0xf0]  ;;  %457 = vmatpush.bf16.msra.mxu1 %v967_v7  ;;  %471 = vmatpush.bf16.msra.mxu2 %v907_v8  ;;  %v895_v16 = vor.u32 %v1119_v13, %v894_v11  ;;  %v896_v19 = vld [vmem:[%s1633_s1 + $0x68] sm:$0xf0]  ;;  %v1134_v20 = vld [vmem:[%s1633_s1 + $0xe4] sm:$0xf] }
  0x10   : > { %v959_v17 = vor.u32 %v1135_v15, %v958_v14  ;;  %485 = vmatpush.bf16.msra.mxu3 %v971_v12  ;;  %v899_v21 = vor.u32 %v1118_v18, %v896_v19  ;;  %v960_v22 = vld [vmem:[%s1633_s1 + $0xe8] sm:$0xf0]  ;;  %v886_v23 = vld [vmem:[%s1633_s1 + $0x50] sm:$0xf]  ;;  %v1117_v24 = vld [vmem:[%s1633_s1 + $0x54] sm:$0xf0] }
  0x11   : > { %v963_v25 = vor.u32 %v1134_v20, %v960_v22  ;;  %v950_v26 = vld [vmem:[%s1633_s1 + $0xd0] sm:$0xf]  ;;  %v1133_v27 = vld [vmem:[%s1633_s1 + $0xd4] sm:$0xf0]  ;;  %v1116_v28 = vld [vmem:[%s1633_s1 + $0x54] sm:$0xf]  ;;  %v887_v29 = vor.u32 %v1117_v24, %v886_v23 }
  0x12   : > { %444 = vmatpush.bf16.msra.mxu0 %v895_v16  ;;  %v888_v30 = vld [vmem:[%s1633_s1 + $0x58] sm:$0xf0]  ;;  %v1132_v31 = vld [vmem:[%s1633_s1 + $0xd4] sm:$0xf]  ;;  %v951_v33 = vor.u32 %v1133_v27, %v950_v26  ;;  %v878_v35 = vld [vmem:[%s1633_s1 + $0x40] sm:$0xf] }
  0x13   : > { %v952_v32 = vld [vmem:[%s1633_s1 + $0xd8] sm:$0xf0]  ;;  %458 = vmatpush.bf16.msra.mxu1 %v959_v17  ;;  %472 = vmatpush.bf16.msra.mxu2 %v899_v21  ;;  %v891_v34 = vor.u32 %v1116_v28, %v888_v30  ;;  %v1115_v36 = vld [vmem:[%s1633_s1 + $0x44] sm:$0xf0]  ;;  %v942_v37 = vld [vmem:[%s1633_s1 + $0xc0] sm:$0xf] }
  0x14   : > { %486 = vmatpush.bf16.msra.mxu3 %v963_v25  ;;  %v955_v38 = vor.u32 %v1132_v31, %v952_v32  ;;  %v1131_v39 = vld [vmem:[%s1633_s1 + $0xc4] sm:$0xf0]  ;;  %v1114_v40 = vld [vmem:[%s1633_s1 + $0x44] sm:$0xf]  ;;  %v880_v41 = vld [vmem:[%s1633_s1 + $0x48] sm:$0xf0]  ;;  %v879_v44 = vor.u32 %v1115_v36, %v878_v35 }
  0x15   : > { %v1130_v42 = vld [vmem:[%s1633_s1 + $0xc4] sm:$0xf]  ;;  %v944_v43 = vld [vmem:[%s1633_s1 + $0xc8] sm:$0xf0]  ;;  %v943_v45 = vor.u32 %v1131_v39, %v942_v37  ;;  %v883_v46 = vor.u32 %v1114_v40, %v880_v41  ;;  %v870_v47 = vld [vmem:[%s1633_s1 + $0x30] sm:$0xf] }
  0x16   : > { %445 = vmatpush.bf16.msra.mxu0 %v887_v29  ;;  %v1113_v48 = vld [vmem:[%s1633_s1 + $0x34] sm:$0xf0]  ;;  %v934_v49 = vld [vmem:[%s1633_s1 + $0xb0] sm:$0xf]  ;;  %v947_v50 = vor.u32 %v1130_v42, %v944_v43  ;;  %v1112_v52 = vld [vmem:[%s1633_s1 + $0x34] sm:$0xf] }
  0x17   : > { %459 = vmatpush.bf16.msra.mxu1 %v951_v33  ;;  %473 = vmatpush.bf16.msra.mxu2 %v891_v34  ;;  %v1129_v51 = vld [vmem:[%s1633_s1 + $0xb4] sm:$0xf0]  ;;  %v872_v53 = vld [vmem:[%s1633_s1 + $0x38] sm:$0xf0]  ;;  %v1128_v54 = vld [vmem:[%s1633_s1 + $0xb4] sm:$0xf]  ;;  %v871_v56 = vor.u32 %v1113_v48, %v870_v47 }
  0x18   : > { %487 = vmatpush.bf16.msra.mxu3 %v955_v38  ;;  %v936_v55 = vld [vmem:[%s1633_s1 + $0xb8] sm:$0xf0]  ;;  %v935_v57 = vor.u32 %v1129_v51, %v934_v49  ;;  %v875_v58 = vor.u32 %v1112_v52, %v872_v53  ;;  %v862_v59 = vld [vmem:[%s1633_s1 + $0x20] sm:$0xf]  ;;  %v1111_v60 = vld [vmem:[%s1633_s1 + $0x24] sm:$0xf0] }
  0x19   : > { %v926_v61 = vld [vmem:[%s1633_s1 + $0xa0] sm:$0xf]  ;;  %v939_v62 = vor.u32 %v1128_v54, %v936_v55  ;;  %v1127_v63 = vld [vmem:[%s1633_s1 + $0xa4] sm:$0xf0]  ;;  %v1110_v0 = vld [vmem:[%s1633_s1 + $0x24] sm:$0xf]  ;;  %v863_v4 = vor.u32 %v1111_v60, %v862_v59 }
  0x1a   : > { %446 = vmatpush.bf16.msra.mxu0 %v879_v44  ;;  %v864_v1 = vld [vmem:[%s1633_s1 + $0x28] sm:$0xf0]  ;;  %v1126_v2 = vld [vmem:[%s1633_s1 + $0xa4] sm:$0xf]  ;;  %v854_v5 = vld [vmem:[%s1633_s1 + $0x10] sm:$0xf]  ;;  %v927_v6 = vor.u32 %v1127_v63, %v926_v61 }
  0x1b   : > { %460 = vmatpush.bf16.msra.mxu1 %v943_v45  ;;  %474 = vmatpush.bf16.msra.mxu2 %v883_v46  ;;  %v928_v3 = vld [vmem:[%s1633_s1 + $0xa8] sm:$0xf0]  ;;  %v867_v7 = vor.u32 %v1110_v0, %v864_v1  ;;  %v1109_v8 = vld [vmem:[%s1633_s1 + $0x14] sm:$0xf0]  ;;  %v918_v9 = vld [vmem:[%s1633_s1 + $0x90] sm:$0xf] }
  0x1c   : > { %488 = vmatpush.bf16.msra.mxu3 %v947_v50  ;;  %v1125_v10 = vld [vmem:[%s1633_s1 + $0x94] sm:$0xf0]  ;;  %v931_v11 = vor.u32 %v1126_v2, %v928_v3  ;;  %v1108_v12 = vld [vmem:[%s1633_s1 + $0x14] sm:$0xf]  ;;  %v856_v13 = vld [vmem:[%s1633_s1 + $0x18] sm:$0xf0]  ;;  %v855_v16 = vor.u32 %v1109_v8, %v854_v5 }
  0x1d   : > { %v1124_v14 = vld [vmem:[%s1633_s1 + $0x94] sm:$0xf]  ;;  %v920_v15 = vld [vmem:[%s1633_s1 + $0x98] sm:$0xf0]  ;;  %v846_v17 = vld [vmem:[%s1633_s1] sm:$0xf]  ;;  %v919_v20 = vor.u32 %v1125_v10, %v918_v9  ;;  %v859_v21 = vor.u32 %v1108_v12, %v856_v13 }
  0x1e   : > { %447 = vmatpush.bf16.msra.mxu0 %v871_v56  ;;  %v1107_v18 = vld [vmem:[%s1633_s1 + $0x4] sm:$0xf0]  ;;  %v910_v19 = vld [vmem:[%s1633_s1 + $0x80] sm:$0xf]  ;;  %v1106_v23 = vld [vmem:[%s1633_s1 + $0x4] sm:$0xf]  ;;  %v923_v24 = vor.u32 %v1124_v14, %v920_v15 }
  0x1f   : > { %461 = vmatpush.bf16.msra.mxu1 %v935_v57  ;;  %475 = vmatpush.bf16.msra.mxu2 %v875_v58  ;;  %v1123_v22 = vld [vmem:[%s1633_s1 + $0x84] sm:$0xf0]  ;;  %s1639_s11 = smov (!%p220_p3, %s830_s11), 3  ;;  %v848_v25 = vld [vmem:[%s1633_s1 + $0x8] sm:$0xf0]  ;;  %v847_v30 = vor.u32 %v1107_v18, %v846_v17 }
  0x20   : > { %489 = vmatpush.bf16.msra.mxu3 %v939_v62  ;;  %v1122_v26 = vld [vmem:[%s1633_s1 + $0x84] sm:$0xf]  ;;  %v912_v27 = vld [vmem:[%s1633_s1 + $0x88] sm:$0xf0]  ;;  %s1102_s8 = sshll.u32 %s1639_s11, 3  ;;  %v911_v33 = vor.u32 %v1123_v22, %v910_v19  ;;  %v851_v34 = vor.u32 %v1106_v23, %v848_v25 }
  0x21   : > { %v1030_v28 = vld [vmem:[%s1635_s3 + $0x70] sm:$0xf]  ;;  %v1153_v29 = vld [vmem:[%s1635_s3 + $0x74] sm:$0xf0]  ;;  %s224_s16 = scalar_lea.vmem %s1632_s0, %s1102_s8  ;;  %v1152_v31 = vld [vmem:[%s1635_s3 + $0x74] sm:$0xf]  ;;  %v915_v39 = vor.u32 %v1122_v26, %v912_v27  ;;  %s231_s15 = scalar_lea.vmem %s1637_s5, %s1102_s8 }
  0x22   : > { %448 = vmatpush.bf16.msra.mxu0 %v863_v4  ;;  %v1032_v32 = vld [vmem:[%s1635_s3 + $0x78] sm:$0xf0]  ;;  %v838_v35 = vld [vmem:[%s224_s16] sm:$0xf]  ;;  %v1105_v36 = vld [vmem:[%s224_s16 + $0x4] sm:$0xf0]  ;;  %v1031_v41 = vor.u32 %v1153_v29, %v1030_v28 }
  0x23   : > { %462 = vmatpush.bf16.msra.mxu1 %v927_v6  ;;  %476 = vmatpush.bf16.msra.mxu2 %v867_v7  ;;  %v1104_v37 = vld [vmem:[%s224_s16 + $0x4] sm:$0xf]  ;;  %v1022_v38 = vld [vmem:[%s1635_s3 + $0x60] sm:$0xf]  ;;  %v840_v40 = vld [vmem:[%s224_s16 + $0x8] sm:$0xf0]  ;;  %v839_v44 = vor.u32 %v1105_v36, %v838_v35  ;;  %v1035_v45 = vor.u32 %v1152_v31, %v1032_v32 }
  0x24   : > { %490 = vmatpush.bf16.msra.mxu3 %v931_v11  ;;  %v1094_v42 = vld [vmem:[%s1635_s3 + $0xf0] sm:$0xf]  ;;  %v1169_v43 = vld [vmem:[%s1635_s3 + $0xf4] sm:$0xf0]  ;;  %v1151_v46 = vld [vmem:[%s1635_s3 + $0x64] sm:$0xf0]  ;;  %v843_v49 = vor.u32 %v1104_v37, %v840_v40 }
  0x25   : > { %v1168_v47 = vld [vmem:[%s1635_s3 + $0xf4] sm:$0xf]  ;;  %v1096_v48 = vld [vmem:[%s1635_s3 + $0xf8] sm:$0xf0]  ;;  %v1150_v50 = vld [vmem:[%s1635_s3 + $0x64] sm:$0xf]  ;;  %v1095_v52 = vor.u32 %v1169_v43, %v1094_v42  ;;  %v1023_v53 = vor.u32 %v1151_v46, %v1022_v38 }
  0x26   : > { %449 = vmatpush.bf16.msra.mxu0 %v855_v16  ;;  %v1024_v51 = vld [vmem:[%s1635_s3 + $0x68] sm:$0xf0]  ;;  %v1099_v54 = vor.u32 %v1168_v47, %v1096_v48  ;;  %v1014_v55 = vld [vmem:[%s1635_s3 + $0x50] sm:$0xf]  ;;  %v1086_v56 = vld [vmem:[%s1635_s3 + $0xe0] sm:$0xf] }
  0x27   : > { %463 = vmatpush.bf16.msra.mxu1 %v919_v20  ;;  %477 = vmatpush.bf16.msra.mxu2 %v859_v21  ;;  %v1167_v57 = vld [vmem:[%s1635_s3 + $0xe4] sm:$0xf0]  ;;  %v1027_v58 = vor.u32 %v1150_v50, %v1024_v51  ;;  %v1149_v59 = vld [vmem:[%s1635_s3 + $0x54] sm:$0xf0]  ;;  %v1166_v60 = vld [vmem:[%s1635_s3 + $0xe4] sm:$0xf] }
  0x28   : > { %491 = vmatpush.bf16.msra.mxu3 %v923_v24  ;;  %v1088_v61 = vld [vmem:[%s1635_s3 + $0xe8] sm:$0xf0]  ;;  %v1148_v62 = vld [vmem:[%s1635_s3 + $0x54] sm:$0xf]  ;;  %v1016_v63 = vld [vmem:[%s1635_s3 + $0x58] sm:$0xf0]  ;;  %v1087_v0 = vor.u32 %v1167_v57, %v1086_v56  ;;  %v1015_v1 = vor.u32 %v1149_v59, %v1014_v55 }
  0x29   : > { %v1091_v2 = vor.u32 %v1166_v60, %v1088_v61  ;;  %v1019_v3 = vor.u32 %v1148_v62, %v1016_v63  ;;  %v1006_v4 = vld [vmem:[%s1635_s3 + $0x40] sm:$0xf]  ;;  %v1147_v5 = vld [vmem:[%s1635_s3 + $0x44] sm:$0xf0]  ;;  %v1146_v6 = vld [vmem:[%s1635_s3 + $0x44] sm:$0xf] }
  0x2a   : > { %450 = vmatpush.bf16.msra.mxu0 %v847_v30  ;;  %v1008_v7 = vld [vmem:[%s1635_s3 + $0x48] sm:$0xf0]  ;;  %v1007_v8 = vor.u32 %v1147_v5, %v1006_v4  ;;  %v1078_v10 = vld [vmem:[%s1635_s3 + $0xd0] sm:$0xf]  ;;  %v1165_v11 = vld [vmem:[%s1635_s3 + $0xd4] sm:$0xf0] }
  0x2b   : > { %464 = vmatpush.bf16.msra.mxu1 %v911_v33  ;;  %478 = vmatpush.bf16.msra.mxu2 %v851_v34  ;;  %v1011_v9 = vor.u32 %v1146_v6, %v1008_v7  ;;  %v1164_v12 = vld [vmem:[%s1635_s3 + $0xd4] sm:$0xf]  ;;  %v1079_v13 = vor.u32 %v1165_v11, %v1078_v10  ;;  %v1080_v14 = vld [vmem:[%s1635_s3 + $0xd8] sm:$0xf0]  ;;  %v998_v16 = vld [vmem:[%s1635_s3 + $0x30] sm:$0xf] }
  0x2c   : > { %492 = vmatpush.bf16.msra.mxu3 %v915_v39  ;;  %v1083_v15 = vor.u32 %v1164_v12, %v1080_v14  ;;  %v1145_v17 = vld [vmem:[%s1635_s3 + $0x34] sm:$0xf0]  ;;  %v1144_v18 = vld [vmem:[%s1635_s3 + $0x34] sm:$0xf]  ;;  %v1000_v20 = vld [vmem:[%s1635_s3 + $0x38] sm:$0xf0] }
  0x2d   : > { %451 = vmatmul.bf16.vlgmr.msra.gmra.mxu0 %v839_v44  ;;  %v999_v19 = vor.u32 %v1145_v17, %v998_v16  ;;  %v1003_v21 = vor.u32 %v1144_v18, %v1000_v20  ;;  %v1070_v22 = vld [vmem:[%s1635_s3 + $0xc0] sm:$0xf]  ;;  %v1163_v23 = vld [vmem:[%s1635_s3 + $0xc4] sm:$0xf0]  ;;  %v1162_v24 = vld [vmem:[%s1635_s3 + $0xc4] sm:$0xf] }
  0x2e   : > { %703 = vmatpush.bf16.msrb.mxu0 %v1031_v41  ;;  %465 = vmatmul.bf16.vlgmr.msra.gmra.mxu1 %v843_v49  ;;  %v1071_v25 = vor.u32 %v1163_v23, %v1070_v22  ;;  %v1072_v26 = vld [vmem:[%s1635_s3 + $0xc8] sm:$0xf0]  ;;  %v990_v28 = vld [vmem:[%s1635_s3 + $0x20] sm:$0xf]  ;;  %v1143_v29 = vld [vmem:[%s1635_s3 + $0x24] sm:$0xf0] }
  0x2f   : > { %731 = vmatpush.bf16.msrb.mxu2 %v1035_v45  ;;  %493 = vmatmul.bf16.vlgmr.msra.gmra.mxu3 %v843_v49  ;;  %v1075_v27 = vor.u32 %v1162_v24, %v1072_v26  ;;  %v991_v30 = vor.u32 %v1143_v29, %v990_v28  ;;  %v1142_v31 = vld [vmem:[%s1635_s3 + $0x24] sm:$0xf]  ;;  %v992_v32 = vld [vmem:[%s1635_s3 + $0x28] sm:$0xf0]  ;;  %v1062_v34 = vld [vmem:[%s1635_s3 + $0xb0] sm:$0xf] }
  0x30   : > { %479 = vmatmul.bf16.vlgmr.msra.gmra.mxu2 %v839_v44  ;;  %717 = vmatpush.bf16.msrb.mxu1 %v1095_v52  ;;  %v995_v33 = vor.u32 %v1142_v31, %v992_v32  ;;  %v1161_v35 = vld [vmem:[%s1635_s3 + $0xb4] sm:$0xf0]  ;;  %v1160_v36 = vld [vmem:[%s1635_s3 + $0xb4] sm:$0xf]  ;;  %v1064_v38 = vld [vmem:[%s1635_s3 + $0xb8] sm:$0xf0] }
  0x31   : > { %745 = vmatpush.bf16.msrb.mxu3 %v1099_v54  ;;  %v1063_v37 = vor.u32 %v1161_v35, %v1062_v34  ;;  %v1067_v39 = vor.u32 %v1160_v36, %v1064_v38  ;;  %v982_v40 = vld [vmem:[%s1635_s3 + $0x10] sm:$0xf]  ;;  %v1141_v41 = vld [vmem:[%s1635_s3 + $0x14] sm:$0xf0]  ;;  %v1140_v42 = vld [vmem:[%s1635_s3 + $0x14] sm:$0xf] }
  0x32   : > { %704 = vmatpush.bf16.msrb.mxu0 %v1023_v53  ;;  %v983_v43 = vor.u32 %v1141_v41, %v982_v40  ;;  %v984_v44 = vld [vmem:[%s1635_s3 + $0x18] sm:$0xf0]  ;;  %v1054_v46 = vld [vmem:[%s1635_s3 + $0xa0] sm:$0xf]  ;;  %v1159_v47 = vld [vmem:[%s1635_s3 + $0xa4] sm:$0xf0] }
  0x33   : > { %732 = vmatpush.bf16.msrb.mxu2 %v1027_v58  ;;  %v987_v45 = vor.u32 %v1140_v42, %v984_v44  ;;  %v1158_v48 = vld [vmem:[%s1635_s3 + $0xa4] sm:$0xf]  ;;  %v1055_v49 = vor.u32 %v1159_v47, %v1054_v46  ;;  %v1056_v50 = vld [vmem:[%s1635_s3 + $0xa8] sm:$0xf0]  ;;  %v974_v52 = vld [vmem:[%s1635_s3] sm:$0xf] }
  0x34   : > { %718 = vmatpush.bf16.msrb.mxu1 %v1087_v0  ;;  %v1059_v51 = vor.u32 %v1158_v48, %v1056_v50  ;;  %v1139_v53 = vld [vmem:[%s1635_s3 + $0x4] sm:$0xf0]  ;;  %v1138_v54 = vld [vmem:[%s1635_s3 + $0x4] sm:$0xf]  ;;  %v976_v56 = vld [vmem:[%s1635_s3 + $0x8] sm:$0xf0] }
  0x35   : > { %746 = vmatpush.bf16.msrb.mxu3 %v1091_v2  ;;  %v975_v55 = vor.u32 %v1139_v53, %v974_v52  ;;  %v979_v57 = vor.u32 %v1138_v54, %v976_v56  ;;  %v1046_v58 = vld [vmem:[%s1635_s3 + $0x90] sm:$0xf]  ;;  %v1157_v59 = vld [vmem:[%s1635_s3 + $0x94] sm:$0xf0]  ;;  %v1156_v60 = vld [vmem:[%s1635_s3 + $0x94] sm:$0xf] }
  0x36   : > { %705 = vmatpush.bf16.msrb.mxu0 %v1015_v1  ;;  %v1047_v61 = vor.u32 %v1157_v59, %v1046_v58  ;;  %v1048_v62 = vld [vmem:[%s1635_s3 + $0x98] sm:$0xf0]  ;;  %v1038_v0 = vld [vmem:[%s1635_s3 + $0x80] sm:$0xf]  ;;  %v1155_v1 = vld [vmem:[%s1635_s3 + $0x84] sm:$0xf0] }
  0x37   : > { %733 = vmatpush.bf16.msrb.mxu2 %v1019_v3  ;;  %v1051_v63 = vor.u32 %v1156_v60, %v1048_v62  ;;  %v1154_v2 = vld [vmem:[%s1635_s3 + $0x84] sm:$0xf]  ;;  %v1039_v3 = vor.u32 %v1155_v1, %v1038_v0  ;;  %v1040_v4 = vld [vmem:[%s1635_s3 + $0x88] sm:$0xf0]  ;;  %v267_v6 = vld [vmem:[%s1634_s2] sm:$0x3] }
  0x38   : > { %719 = vmatpush.bf16.msrb.mxu1 %v1079_v13  ;;  %v1043_v5 = vor.u32 %v1154_v2, %v1040_v4  ;;  %v270_v12 = vperm.slane %v267_v6, 1  ;;  %v537_v31 = vld [vmem:[%s1636_s4] sm:$0x3] }
  0x39   : > { %747 = vmatpush.bf16.msrb.mxu3 %v1083_v15  ;;  %v540_v36 = vperm.slane %v537_v31, 1 }
  0x3a   : > { %706 = vmatpush.bf16.msrb.mxu0 %v1007_v8  ;;  %v269_v8 = vperm.slane %v267_v6, 0 }
  0x3b   : > { %734 = vmatpush.bf16.msrb.mxu2 %v1011_v9 }
  0x3c   : > { %720 = vmatpush.bf16.msrb.mxu1 %v1071_v25 }
  0x3d   : > { %748 = vmatpush.bf16.msrb.mxu3 %v1075_v27 }
  0x3e   : > { %707 = vmatpush.bf16.msrb.mxu0 %v999_v19 }
  0x3f   : > { %735 = vmatpush.bf16.msrb.mxu2 %v1003_v21 }
  0x40   : > { %721 = vmatpush.bf16.msrb.mxu1 %v1063_v37 }
  0x41   : > { %749 = vmatpush.bf16.msrb.mxu3 %v1067_v39 }
  0x42   : > { %708 = vmatpush.bf16.msrb.mxu0 %v991_v30 }
  0x43   : > { %736 = vmatpush.bf16.msrb.mxu2 %v995_v33  ;;  %v539_v33 = vperm.slane %v537_v31, 0 }
  0x44   : > { %722 = vmatpush.bf16.msrb.mxu1 %v1055_v49 }
  0x45   : > { %750 = vmatpush.bf16.msrb.mxu3 %v1059_v51 }
  0x46   : > { %709 = vmatpush.bf16.msrb.mxu0 %v983_v43 }
  0x47   : > { %737 = vmatpush.bf16.msrb.mxu2 %v987_v45 }
  0x48   : > { %723 = vmatpush.bf16.msrb.mxu1 %v1047_v61 }
  0x49   : > { %751 = vmatpush.bf16.msrb.mxu3 %v1051_v63 }
  0x4a   : > { %710 = vmatpush.bf16.msrb.mxu0 %v975_v55 }
  0x4b   : > { %738 = vmatpush.bf16.msrb.mxu2 %v979_v57 }
  0x4c   : > { %724 = vmatpush.bf16.msrb.mxu1 %v1039_v3 }
  0x4d   : > { %752 = vmatpush.bf16.msrb.mxu3 %v1043_v5 }
  0xaa   : > { %v452_v7 = vpop.f32.mrf.mxu0 }
  0xab   : > { %v466_v9 = vpop.f32.mrf.mxu1  ;;  %v453_v10 = vadd.f32 %v452_v7, %v269_v8 }
  0xad   : > { %v467_v15 = vadd.f32 %v466_v9, %v453_v10 }
  0xaf   : > { %v499_v20 = vmax.f32 %v467_v15, 0.0 }
  0xb2   : > { %v494_v13 = vpop.f32.mrf.mxu3  ;;  %v454_v14 = vpop.f32.mrf.mxu0 }
  0xb3   : > { %v480_v11 = vpop.f32.mrf.mxu2  ;;  %v455_v16 = vadd.f32 %v454_v14, %v269_v8  ;;  %v468_v17 = vpop.f32.mrf.mxu1 }
  0xb4   : > { %v481_v19 = vadd.f32 %v480_v11, %v270_v12 }
  0xb5   : > { %v469_v18 = vadd.f32 %v468_v17, %v455_v16 }
  0xb6   : > { %v495_v24 = vadd.f32 %v494_v13, %v481_v19 }
  0xb7   : > { %v501_v21 = vmax.f32 %v469_v18, 0.0 }
  0xb8   : > { %v500_v28 = vmax.f32 %v495_v24, 0.0 }
  0xb9   : > { %v503_v22 = vpack.c.bf16 %v501_v21, %v499_v20 }
  0xba   : > { %v496_v26 = vpop.f32.mrf.mxu3 }
  0xbb   : > { %v482_v23 = vpop.f32.mrf.mxu2  ;;  %711 = vmatmul.bf16.vlgmr.msrb.gmra.mxu0 %v503_v22  ;;  %739 = vmatmul.bf16.vlgmr.msrb.gmra.mxu2 %v503_v22 }
  0xbc   : > { %v483_v25 = vadd.f32 %v482_v23, %v270_v12 }
  0xbe   : > { %v497_v27 = vadd.f32 %v496_v26, %v483_v25 }
  0xc0   : > { %v502_v29 = vmax.f32 %v497_v27, 0.0 }
  0xc2   : > { %v504_v30 = vpack.c.bf16 %v502_v29, %v500_v28 }
  0xc4   : > { %725 = vmatmul.bf16.vlgmr.msrb.gmra.mxu1 %v504_v30  ;;  %753 = vmatmul.bf16.vlgmr.msrb.gmra.mxu3 %v504_v30 }
 0x138   : > { %v712_v32 = vpop.f32.mrf.mxu0 }
 0x139   : > { %v713_v37 = vadd.f32 %v712_v32, %v539_v33 }
 0x13e   : > { %v740_v35 = vpop.f32.mrf.mxu2 }
 0x13f   : > { %v741_v39 = vadd.f32 %v740_v35, %v540_v36 }
 0x140   : > { %v714_v42 = vpop.f32.mrf.mxu0 }
 0x141   : > { %v726_v34 = vpop.f32.mrf.mxu1  ;;  %v715_v47 = vadd.f32 %v714_v42, %v539_v33 }
 0x142   : > { %v727_v38 = vadd.f32 %v726_v34, %v713_v37 }
 0x144   : > { %v759_v43 = vmax.f32 %v727_v38, 0.0 }
 0x146   : > { %v742_v46 = vpop.f32.mrf.mxu2 }
 0x147   : > { %v754_v40 = vpop.f32.mrf.mxu3  ;;  %v743_v50 = vadd.f32 %v742_v46, %v540_v36 }
 0x148   : > { %v755_v41 = vadd.f32 %v754_v40, %v741_v39 }
 0x149   : > { %v728_v45 = vpop.f32.mrf.mxu1 }
 0x14a   : > { %v760_v44 = vmax.f32 %v755_v41, 0.0  ;;  %v729_v49 = vadd.f32 %v728_v45, %v715_v47 }
 0x14c   : > { %v763_v48 = vpack.c.bf16 %v760_v44, %v759_v43  ;;  %v761_v53 = vmax.f32 %v729_v49, 0.0 }
 0x14e   : > { %765 = vst [vmem:[%s231_s15] sm:$0xff] %v763_v48 }
 0x14f   : > { %v756_v51 = vpop.f32.mrf.mxu3 }
 0x150   : > { %v757_v52 = vadd.f32 %v756_v51, %v743_v50 }
 0x152   : > { %v762_v54 = vmax.f32 %v757_v52, 0.0 }
 0x154   : > { %v764_v55 = vpack.c.bf16 %v762_v54, %v761_v53 }
 0x156   : > { %766 = vst [vmem:[%s231_s15 + $0x8] sm:$0xff] %v764_v55 }
 0x157 PF: > { %s15_s18 = sadd.s32 1, %s1184_s18  }
 0x158   : > { %p12_p4 = scmp.ge.s32.totalorder %s15_s18, 4  }
 0x15a   :  { %14 = sbr.rel (!%p12_p4) target bundleno = 1 (0x1), region = 70 }

// kernel: _lambda_.17
= control target key start
LH: loop header
LB: loop body
LE: loop exit
PB: predicated region body
PF: predicated region fallthrough
CT: control target
= control target key end

     0   :  { %s3623_s18 = smov 0   ;;  %s5247_s0 = inlined_call_operand.vmem [shape: bf16[16,512], index: 0, kind: input, shape index: {}]   ;;  %s5248_s1 = inlined_call_operand.vmem [shape: bf16[512,512], index: 1, kind: input, shape index: {}]   ;;  %s5249_s2 = inlined_call_operand.vmem [shape: f32[1,512], index: 2, kind: input, shape index: {}]   ;;  %s5250_s3 = inlined_call_operand.vmem [shape: bf16[512,512], index: 3, kind: input, shape index: {}]   ;;  %s5251_s4 = inlined_call_operand.vmem [shape: f32[1,512], index: 4, kind: input, shape index: {}]   ;;  %s5252_s5 = inlined_call_operand.vmem [shape: bf16[16,512], index: 5, kind: output, shape index: {}]  }
   0x1 LB: > { %s2284_s19 = sadd.s32 4294967295, %s3591_s18   ;;  %p2288_p0 = scmp.ge.s32.totalorder %s3591_s18, 1  ;;  %s3591_s18 = sphi %s3623_s18, %s15_s18  }
   0x2   : > { %p187_p1 = scmp.lt.s32.totalorder %s3591_s18, 3 }
   0x4   : > { %p188_p2 = pnand %p2288_p0, %p187_p1 }
   0x5   : > { %p215_p3 = scmp.lt.s32.totalorder (!%p188_p2), %s2284_s19, 1 }
   0x6   : > { %191 = sbr.rel (%p188_p2) target bundleno = 488 (0x1e8), region = 40 }
   0xb   : > { %v2407_v0 = vld [vmem:[%s5248_s1 + $0xe0] sm:$0xf]  ;;  %v3351_v1 = vld [vmem:[%s5248_s1 + $0xec] sm:$0xf0]  ;;  %s5254_s19 = smov (!%p215_p3, %s2284_s19), 1 }
   0xc   : > { %v2535_v2 = vld [vmem:[%s5248_s1 + $0x1e0] sm:$0xf]  ;;  %v2408_v3 = vor.u32 %v3351_v1, %v2407_v0  ;;  %v3383_v4 = vld [vmem:[%s5248_s1 + $0x1ec] sm:$0xf0]  ;;  %s3319_s26 = sshll.u32 %s5254_s19, 4 }
   0xd   : > { %v2663_v5 = vld [vmem:[%s5248_s1 + $0x2e0] sm:$0xf]  ;;  %v3415_v6 = vld [vmem:[%s5248_s1 + $0x2ec] sm:$0xf0]  ;;  %v2536_v7 = vor.u32 %v3383_v4, %v2535_v2  ;;  %s219_s29 = scalar_lea.vmem %s5247_s0, %s3319_s26  ;;  %s224_s11 = scalar_lea.vmem %s5252_s5, %s3319_s26 }
   0xe   : > { %v2664_v8 = vor.u32 %v3415_v6, %v2663_v5  ;;  %v2791_v9 = vld [vmem:[%s5248_s1 + $0x3e0] sm:$0xf]  ;;  %v3447_v10 = vld [vmem:[%s5248_s1 + $0x3ec] sm:$0xf0]  ;;  %1019 = vmatpush.bf16.msra.mxu0 %v2408_v3 }
   0xf   : > { %v2391_v11 = vld [vmem:[%s5248_s1 + $0xc0] sm:$0xf]  ;;  %v2792_v12 = vor.u32 %v3447_v10, %v2791_v9  ;;  %v3347_v13 = vld [vmem:[%s5248_s1 + $0xcc] sm:$0xf0]  ;;  %1032 = vmatpush.bf16.msra.mxu1 %v2536_v7 }
  0x10   : > { %v2519_v14 = vld [vmem:[%s5248_s1 + $0x1c0] sm:$0xf]  ;;  %v3379_v15 = vld [vmem:[%s5248_s1 + $0x1cc] sm:$0xf0]  ;;  %1045 = vmatpush.bf16.msra.mxu2 %v2664_v8  ;;  %v2392_v16 = vor.u32 %v3347_v13, %v2391_v11 }
  0x11   : > { %v2520_v17 = vor.u32 %v3379_v15, %v2519_v14  ;;  %v2647_v18 = vld [vmem:[%s5248_s1 + $0x2c0] sm:$0xf]  ;;  %v3411_v19 = vld [vmem:[%s5248_s1 + $0x2cc] sm:$0xf0]  ;;  %1058 = vmatpush.bf16.msra.mxu3 %v2792_v12 }
  0x12   : > { %v2775_v20 = vld [vmem:[%s5248_s1 + $0x3c0] sm:$0xf]  ;;  %v2648_v21 = vor.u32 %v3411_v19, %v2647_v18  ;;  %v3443_v22 = vld [vmem:[%s5248_s1 + $0x3cc] sm:$0xf0]  ;;  %1020 = vmatpush.bf16.msra.mxu0 %v2392_v16 }
  0x13   : > { %v2375_v23 = vld [vmem:[%s5248_s1 + $0xa0] sm:$0xf]  ;;  %v3343_v24 = vld [vmem:[%s5248_s1 + $0xac] sm:$0xf0]  ;;  %v2776_v25 = vor.u32 %v3443_v22, %v2775_v20  ;;  %1033 = vmatpush.bf16.msra.mxu1 %v2520_v17 }
  0x14   : > { %v2503_v26 = vld [vmem:[%s5248_s1 + $0x1a0] sm:$0xf]  ;;  %v3375_v27 = vld [vmem:[%s5248_s1 + $0x1ac] sm:$0xf0]  ;;  %v2376_v29 = vor.u32 %v3343_v24, %v2375_v23  ;;  %1046 = vmatpush.bf16.msra.mxu2 %v2648_v21 }
  0x15   : > { %v2631_v28 = vld [vmem:[%s5248_s1 + $0x2a0] sm:$0xf]  ;;  %v3407_v30 = vld [vmem:[%s5248_s1 + $0x2ac] sm:$0xf0]  ;;  %v2504_v33 = vor.u32 %v3375_v27, %v2503_v26  ;;  %1059 = vmatpush.bf16.msra.mxu3 %v2776_v25 }
  0x16   : > { %v2759_v31 = vld [vmem:[%s5248_s1 + $0x3a0] sm:$0xf]  ;;  %v3439_v32 = vld [vmem:[%s5248_s1 + $0x3ac] sm:$0xf0]  ;;  %v2632_v34 = vor.u32 %v3407_v30, %v2631_v28  ;;  %1021 = vmatpush.bf16.msra.mxu0 %v2376_v29  ;;  %v3349_v28 = vld [vmem:[%s5248_s1 + $0xe4] sm:$0xf] }
  0x17   : > { %v2359_v35 = vld [vmem:[%s5248_s1 + $0x80] sm:$0xf]  ;;  %v3339_v36 = vld [vmem:[%s5248_s1 + $0x8c] sm:$0xf0]  ;;  %v2760_v38 = vor.u32 %v3439_v32, %v2759_v31  ;;  %1034 = vmatpush.bf16.msra.mxu1 %v2504_v33  ;;  %v2409_v29 = vld [vmem:[%s5248_s1 + $0xf0] sm:$0xf0] }
  0x18   : > { %v2487_v37 = vld [vmem:[%s5248_s1 + $0x180] sm:$0xf]  ;;  %v3371_v39 = vld [vmem:[%s5248_s1 + $0x18c] sm:$0xf0]  ;;  %v2360_v44 = vor.u32 %v3339_v36, %v2359_v35  ;;  %1047 = vmatpush.bf16.msra.mxu2 %v2632_v34  ;;  %v3381_v30 = vld [vmem:[%s5248_s1 + $0x1e4] sm:$0xf] }
  0x19   : > { %v2615_v40 = vld [vmem:[%s5248_s1 + $0x280] sm:$0xf]  ;;  %v3403_v41 = vld [vmem:[%s5248_s1 + $0x28c] sm:$0xf0]  ;;  %v2488_v45 = vor.u32 %v3371_v39, %v2487_v37  ;;  %1060 = vmatpush.bf16.msra.mxu3 %v2760_v38  ;;  %v2537_v31 = vld [vmem:[%s5248_s1 + $0x1f0] sm:$0xf0] }
  0x1a   : > { %v2743_v42 = vld [vmem:[%s5248_s1 + $0x380] sm:$0xf]  ;;  %v3435_v43 = vld [vmem:[%s5248_s1 + $0x38c] sm:$0xf0]  ;;  %v2616_v46 = vor.u32 %v3403_v41, %v2615_v40  ;;  %1022 = vmatpush.bf16.msra.mxu0 %v2360_v44  ;;  %v3413_v32 = vld [vmem:[%s5248_s1 + $0x2e4] sm:$0xf]  ;;  %v2412_v40 = vor.u32 %v3349_v28, %v2409_v29 }
  0x1b   : > { %v2343_v47 = vld [vmem:[%s5248_s1 + $0x60] sm:$0xf]  ;;  %v3335_v48 = vld [vmem:[%s5248_s1 + $0x6c] sm:$0xf0]  ;;  %v2744_v50 = vor.u32 %v3435_v43, %v2743_v42  ;;  %1035 = vmatpush.bf16.msra.mxu1 %v2488_v45  ;;  %v2665_v34 = vld [vmem:[%s5248_s1 + $0x2f0] sm:$0xf0]  ;;  %v2540_v43 = vor.u32 %v3381_v30, %v2537_v31 }
  0x1c   : > { %v2471_v49 = vld [vmem:[%s5248_s1 + $0x160] sm:$0xf]  ;;  %v3367_v51 = vld [vmem:[%s5248_s1 + $0x16c] sm:$0xf0]  ;;  %v2344_v56 = vor.u32 %v3335_v48, %v2343_v47  ;;  %1048 = vmatpush.bf16.msra.mxu2 %v2616_v46  ;;  %v3445_v35 = vld [vmem:[%s5248_s1 + $0x3e4] sm:$0xf]  ;;  %v2668_v44 = vor.u32 %v3413_v32, %v2665_v34 }
  0x1d   : > { %v2599_v52 = vld [vmem:[%s5248_s1 + $0x260] sm:$0xf]  ;;  %v3399_v53 = vld [vmem:[%s5248_s1 + $0x26c] sm:$0xf0]  ;;  %v2472_v57 = vor.u32 %v3367_v51, %v2471_v49  ;;  %1061 = vmatpush.bf16.msra.mxu3 %v2744_v50  ;;  %v2793_v36 = vld [vmem:[%s5248_s1 + $0x3f0] sm:$0xf0] }
  0x1e   : > { %v2727_v54 = vld [vmem:[%s5248_s1 + $0x360] sm:$0xf]  ;;  %v3431_v55 = vld [vmem:[%s5248_s1 + $0x36c] sm:$0xf0]  ;;  %v2600_v58 = vor.u32 %v3399_v53, %v2599_v52  ;;  %1023 = vmatpush.bf16.msra.mxu0 %v2344_v56  ;;  %v3345_v41 = vld [vmem:[%s5248_s1 + $0xc4] sm:$0xf]  ;;  %v2796_v45 = vor.u32 %v3445_v35, %v2793_v36 }
  0x1f   : > { %v2327_v59 = vld [vmem:[%s5248_s1 + $0x40] sm:$0xf]  ;;  %v3331_v60 = vld [vmem:[%s5248_s1 + $0x4c] sm:$0xf0]  ;;  %v2728_v62 = vor.u32 %v3431_v55, %v2727_v54  ;;  %1036 = vmatpush.bf16.msra.mxu1 %v2472_v57  ;;  %v2393_v42 = vld [vmem:[%s5248_s1 + $0xd0] sm:$0xf0] }
  0x20   : > { %v2455_v61 = vld [vmem:[%s5248_s1 + $0x140] sm:$0xf]  ;;  %v3363_v63 = vld [vmem:[%s5248_s1 + $0x14c] sm:$0xf0]  ;;  %v2328_v4 = vor.u32 %v3331_v60, %v2327_v59  ;;  %1049 = vmatpush.bf16.msra.mxu2 %v2600_v58  ;;  %v226_v46 = vld [vmem:[%s219_s29 + $0x8] sm:$0xff]  ;;  %v2396_v56 = vor.u32 %v3345_v41, %v2393_v42 }
  0x21   : > { %v2583_v0 = vld [vmem:[%s5248_s1 + $0x240] sm:$0xf]  ;;  %v3395_v1 = vld [vmem:[%s5248_s1 + $0x24c] sm:$0xf0]  ;;  %v2456_v6 = vor.u32 %v3363_v63, %v2455_v61  ;;  %1062 = vmatpush.bf16.msra.mxu3 %v2728_v62  ;;  %v3377_v47 = vld [vmem:[%s5248_s1 + $0x1c4] sm:$0xf]  ;;  %v369_v49 = vunpack.c.l.b16 %v226_v46  ;;  %v370_v54 = vunpack.c.h.b16 %v226_v46 }
  0x22   : > { %v2711_v2 = vld [vmem:[%s5248_s1 + $0x340] sm:$0xf]  ;;  %v3427_v3 = vld [vmem:[%s5248_s1 + $0x34c] sm:$0xf0]  ;;  %v2584_v7 = vor.u32 %v3395_v1, %v2583_v0  ;;  %1024 = vmatpush.bf16.msra.mxu0 %v2328_v4  ;;  %v2521_v50 = vld [vmem:[%s5248_s1 + $0x1d0] sm:$0xf0] }
  0x23   : > { %v2311_v5 = vld [vmem:[%s5248_s1 + $0x20] sm:$0xf]  ;;  %v3327_v8 = vld [vmem:[%s5248_s1 + $0x2c] sm:$0xf0]  ;;  %v2712_v11 = vor.u32 %v3427_v3, %v2711_v2  ;;  %1037 = vmatpush.bf16.msra.mxu1 %v2456_v6  ;;  %v3409_v51 = vld [vmem:[%s5248_s1 + $0x2c4] sm:$0xf]  ;;  %v3883_v59 = vpack.c.b16 %v369_v49, %v369_v49  ;;  %v3887_v61 = vpack.c.b16 %v370_v54, %v370_v54  ;;  %v2524_v62 = vor.u32 %v3377_v47, %v2521_v50 }
  0x24   : > { %v2439_v9 = vld [vmem:[%s5248_s1 + $0x120] sm:$0xf]  ;;  %v3359_v10 = vld [vmem:[%s5248_s1 + $0x12c] sm:$0xf0]  ;;  %v2312_v18 = vor.u32 %v3327_v8, %v2311_v5  ;;  %1050 = vmatpush.bf16.msra.mxu2 %v2584_v7  ;;  %v2649_v52 = vld [vmem:[%s5248_s1 + $0x2d0] sm:$0xf0] }
  0x25   : > { %v2567_v12 = vld [vmem:[%s5248_s1 + $0x220] sm:$0xf]  ;;  %v3391_v13 = vld [vmem:[%s5248_s1 + $0x22c] sm:$0xf0]  ;;  %v2440_v23 = vor.u32 %v3359_v10, %v2439_v9  ;;  %1063 = vmatpush.bf16.msra.mxu3 %v2712_v11  ;;  %v3441_v57 = vld [vmem:[%s5248_s1 + $0x3c4] sm:$0xf]  ;;  %v2652_v63 = vor.u32 %v3409_v51, %v2649_v52 }
  0x26   : > { %v2695_v14 = vld [vmem:[%s5248_s1 + $0x320] sm:$0xf]  ;;  %v3423_v15 = vld [vmem:[%s5248_s1 + $0x32c] sm:$0xf0]  ;;  %v2568_v24 = vor.u32 %v3391_v13, %v2567_v12  ;;  %1025 = vmatpush.bf16.msra.mxu0 %v2312_v18  ;;  %v2777_v58 = vld [vmem:[%s5248_s1 + $0x3d0] sm:$0xf0] }
  0x27   : > { %v2295_v16 = vld [vmem:[%s5248_s1] sm:$0xf]  ;;  %v3323_v17 = vld [vmem:[%s5248_s1 + $0xc] sm:$0xf0]  ;;  %v2696_v27 = vor.u32 %v3423_v15, %v2695_v14  ;;  %1038 = vmatpush.bf16.msra.mxu1 %v2440_v23  ;;  %v3341_v1 = vld [vmem:[%s5248_s1 + $0xa4] sm:$0xf]  ;;  %v2780_v4 = vor.u32 %v3441_v57, %v2777_v58 }
  0x28   : > { %v2423_v19 = vld [vmem:[%s5248_s1 + $0x100] sm:$0xf]  ;;  %v3355_v20 = vld [vmem:[%s5248_s1 + $0x10c] sm:$0xf0]  ;;  %v2296_v33 = vor.u32 %v3323_v17, %v2295_v16  ;;  %1051 = vmatpush.bf16.msra.mxu2 %v2568_v24  ;;  %v2377_v2 = vld [vmem:[%s5248_s1 + $0xb0] sm:$0xf0] }
  0x29   : > { %v2551_v21 = vld [vmem:[%s5248_s1 + $0x200] sm:$0xf]  ;;  %v3387_v22 = vld [vmem:[%s5248_s1 + $0x20c] sm:$0xf0]  ;;  %v2424_v37 = vor.u32 %v3355_v20, %v2423_v19  ;;  %1064 = vmatpush.bf16.msra.mxu3 %v2696_v27  ;;  %v3373_v3 = vld [vmem:[%s5248_s1 + $0x1a4] sm:$0xf]  ;;  %v2380_v10 = vor.u32 %v3341_v1, %v2377_v2 }
  0x2a   : > { %v2679_v25 = vld [vmem:[%s5248_s1 + $0x300] sm:$0xf]  ;;  %v3419_v26 = vld [vmem:[%s5248_s1 + $0x30c] sm:$0xf0]  ;;  %v2552_v38 = vor.u32 %v3387_v22, %v2551_v21  ;;  %1026 = vmatpush.bf16.msra.mxu0 %v2296_v33  ;;  %v2505_v5 = vld [vmem:[%s5248_s1 + $0x1b0] sm:$0xf0] }
  0x2b   : > { %v2680_v39 = vor.u32 %v3419_v26, %v2679_v25  ;;  %v225_v48 = vld [vmem:[%s219_s29] sm:$0xff]  ;;  %1039 = vmatpush.bf16.msra.mxu1 %v2424_v37  ;;  %v2633_v7 = vld [vmem:[%s5248_s1 + $0x2b0] sm:$0xf0]  ;;  %v2508_v11 = vor.u32 %v3373_v3, %v2505_v5 }
  0x2c   : > { %v367_v53 = vunpack.c.l.b16 %v225_v48  ;;  %v368_v55 = vunpack.c.h.b16 %v225_v48  ;;  %1052 = vmatpush.bf16.msra.mxu2 %v2552_v38  ;;  %v3405_v6 = vld [vmem:[%s5248_s1 + $0x2a4] sm:$0xf]  ;;  %v2761_v9 = vld [vmem:[%s5248_s1 + $0x3b0] sm:$0xf0] }
  0x2d   : > { %1065 = vmatpush.bf16.msra.mxu3 %v2680_v39  ;;  %v3437_v8 = vld [vmem:[%s5248_s1 + $0x3a4] sm:$0xf]  ;;  %v2636_v12 = vor.u32 %v3405_v6, %v2633_v7  ;;  %v2361_v14 = vld [vmem:[%s5248_s1 + $0x90] sm:$0xf0] }
  0x2e   : > { %1071 = vmatpush.bf16.msrb.mxu0 %v2412_v40  ;;  %v3885_v60 = vpack.c.b16 %v367_v53, %v367_v53  ;;  %v3889_v0 = vpack.c.b16 %v368_v55, %v368_v55  ;;  %v3337_v13 = vld [vmem:[%s5248_s1 + $0x84] sm:$0xf]  ;;  %v2764_v16 = vor.u32 %v3437_v8, %v2761_v9  ;;  %v2489_v17 = vld [vmem:[%s5248_s1 + $0x190] sm:$0xf0] }
  0x2f   : > { %1084 = vmatpush.bf16.msrb.mxu1 %v2540_v43  ;;  %1053 = vmatmul.bf16.vlgmr.msra.gmra.mxu2 %v3883_v59  ;;  %v3369_v15 = vld [vmem:[%s5248_s1 + $0x184] sm:$0xf]  ;;  %v2617_v19 = vld [vmem:[%s5248_s1 + $0x290] sm:$0xf0]  ;;  %v2364_v22 = vor.u32 %v3337_v13, %v2361_v14  ;;  %v3384_v14 = vld [vmem:[%s5248_s1 + $0x1f4] sm:$0xf0] }
  0x30   : > { %1097 = vmatpush.bf16.msrb.mxu2 %v2668_v44  ;;  %1027 = vmatmul.bf16.vlgmr.msra.gmra.mxu0 %v3885_v60  ;;  %v3401_v18 = vld [vmem:[%s5248_s1 + $0x284] sm:$0xf]  ;;  %v2745_v21 = vld [vmem:[%s5248_s1 + $0x390] sm:$0xf0]  ;;  %v2492_v23 = vor.u32 %v3369_v15, %v2489_v17  ;;  %v2671_v15 = vld [vmem:[%s5248_s1 + $0x2e8] sm:$0xf] }
  0x31   : > { %1110 = vmatpush.bf16.msrb.mxu3 %v2796_v45  ;;  %1040 = vmatmul.bf16.vlgmr.msra.gmra.mxu1 %v3889_v0  ;;  %v3433_v20 = vld [vmem:[%s5248_s1 + $0x384] sm:$0xf]  ;;  %v2620_v24 = vor.u32 %v3401_v18, %v2617_v19  ;;  %v2345_v26 = vld [vmem:[%s5248_s1 + $0x70] sm:$0xf0]  ;;  %v2799_v19 = vld [vmem:[%s5248_s1 + $0x3e8] sm:$0xf] }
  0x32   : > { %1066 = vmatmul.bf16.vlgmr.msra.gmra.mxu3 %v3887_v61  ;;  %1072 = vmatpush.bf16.msrb.mxu0 %v2396_v56  ;;  %v3333_v25 = vld [vmem:[%s5248_s1 + $0x64] sm:$0xf]  ;;  %v2748_v28 = vor.u32 %v3433_v20, %v2745_v21  ;;  %v2473_v29 = vld [vmem:[%s5248_s1 + $0x170] sm:$0xf0]  ;;  %v3448_v20 = vld [vmem:[%s5248_s1 + $0x3f4] sm:$0xf0] }
  0x33   : > { %1085 = vmatpush.bf16.msrb.mxu1 %v2524_v62  ;;  %v3365_v27 = vld [vmem:[%s5248_s1 + $0x164] sm:$0xf]  ;;  %v2601_v31 = vld [vmem:[%s5248_s1 + $0x270] sm:$0xf0]  ;;  %v2348_v34 = vor.u32 %v3333_v25, %v2345_v26  ;;  %v2399_v25 = vld [vmem:[%s5248_s1 + $0xc8] sm:$0xf] }
  0x34   : > { %1098 = vmatpush.bf16.msrb.mxu2 %v2652_v63  ;;  %v3397_v30 = vld [vmem:[%s5248_s1 + $0x264] sm:$0xf]  ;;  %v2729_v33 = vld [vmem:[%s5248_s1 + $0x370] sm:$0xf0]  ;;  %v2476_v35 = vor.u32 %v3365_v27, %v2473_v29  ;;  %v3348_v26 = vld [vmem:[%s5248_s1 + $0xd4] sm:$0xf0] }
  0x35   : > { %1111 = vmatpush.bf16.msrb.mxu3 %v2780_v4  ;;  %v3429_v32 = vld [vmem:[%s5248_s1 + $0x364] sm:$0xf]  ;;  %v2604_v36 = vor.u32 %v3397_v30, %v2601_v31  ;;  %v2329_v38 = vld [vmem:[%s5248_s1 + $0x50] sm:$0xf0]  ;;  %v2527_v27 = vld [vmem:[%s5248_s1 + $0x1c8] sm:$0xf] }
  0x36   : > { %1073 = vmatpush.bf16.msrb.mxu0 %v2380_v10  ;;  %v3329_v37 = vld [vmem:[%s5248_s1 + $0x44] sm:$0xf]  ;;  %v2732_v40 = vor.u32 %v3429_v32, %v2729_v33  ;;  %v2457_v41 = vld [vmem:[%s5248_s1 + $0x150] sm:$0xf0]  ;;  %v2415_v10 = vld [vmem:[%s5248_s1 + $0xe8] sm:$0xf] }
  0x37   : > { %1086 = vmatpush.bf16.msrb.mxu1 %v2508_v11  ;;  %v3361_v39 = vld [vmem:[%s5248_s1 + $0x144] sm:$0xf]  ;;  %v2585_v43 = vld [vmem:[%s5248_s1 + $0x250] sm:$0xf0]  ;;  %v2332_v46 = vor.u32 %v3329_v37, %v2329_v38  ;;  %v3352_v11 = vld [vmem:[%s5248_s1 + $0xf4] sm:$0xf0] }
  0x38   : > { %1099 = vmatpush.bf16.msrb.mxu2 %v2636_v12  ;;  %v3393_v42 = vld [vmem:[%s5248_s1 + $0x244] sm:$0xf]  ;;  %v2713_v45 = vld [vmem:[%s5248_s1 + $0x350] sm:$0xf0]  ;;  %v2460_v47 = vor.u32 %v3361_v39, %v2457_v41  ;;  %v2543_v12 = vld [vmem:[%s5248_s1 + $0x1e8] sm:$0xf] }
  0x39   : > { %1112 = vmatpush.bf16.msrb.mxu3 %v2764_v16  ;;  %v3425_v44 = vld [vmem:[%s5248_s1 + $0x344] sm:$0xf]  ;;  %v2588_v48 = vor.u32 %v3393_v42, %v2585_v43  ;;  %v2313_v50 = vld [vmem:[%s5248_s1 + $0x30] sm:$0xf0]  ;;  %v3416_v16 = vld [vmem:[%s5248_s1 + $0x2f4] sm:$0xf0] }
  0x3a   : > { %1074 = vmatpush.bf16.msrb.mxu0 %v2364_v22  ;;  %v3325_v49 = vld [vmem:[%s5248_s1 + $0x24] sm:$0xf]  ;;  %v2716_v52 = vor.u32 %v3425_v44, %v2713_v45  ;;  %v2441_v53 = vld [vmem:[%s5248_s1 + $0x130] sm:$0xf0]  ;;  %v2416_v22 = vor.u32 %v3352_v11, %v2415_v10  ;;  %v3380_v29 = vld [vmem:[%s5248_s1 + $0x1d4] sm:$0xf0] }
  0x3b   : > { %1087 = vmatpush.bf16.msrb.mxu1 %v2492_v23  ;;  %v3357_v51 = vld [vmem:[%s5248_s1 + $0x124] sm:$0xf]  ;;  %v2569_v55 = vld [vmem:[%s5248_s1 + $0x230] sm:$0xf0]  ;;  %v2316_v58 = vor.u32 %v3325_v49, %v2313_v50  ;;  %v2544_v23 = vor.u32 %v3384_v14, %v2543_v12  ;;  %v2655_v30 = vld [vmem:[%s5248_s1 + $0x2c8] sm:$0xf] }
  0x3c   : > { %1100 = vmatpush.bf16.msrb.mxu2 %v2620_v24  ;;  %v3389_v54 = vld [vmem:[%s5248_s1 + $0x224] sm:$0xf]  ;;  %v2697_v57 = vld [vmem:[%s5248_s1 + $0x330] sm:$0xf0]  ;;  %v2444_v1 = vor.u32 %v3357_v51, %v2441_v53  ;;  %v2672_v24 = vor.u32 %v3416_v16, %v2671_v15  ;;  %v3412_v31 = vld [vmem:[%s5248_s1 + $0x2d4] sm:$0xf0] }
  0x3d   : > { %1113 = vmatpush.bf16.msrb.mxu3 %v2748_v28  ;;  %v3421_v56 = vld [vmem:[%s5248_s1 + $0x324] sm:$0xf]  ;;  %v2297_v63 = vld [vmem:[%s5248_s1 + $0x10] sm:$0xf0]  ;;  %v2572_v2 = vor.u32 %v3389_v54, %v2569_v55  ;;  %v2800_v28 = vor.u32 %v3448_v20, %v2799_v19  ;;  %v2783_v32 = vld [vmem:[%s5248_s1 + $0x3c8] sm:$0xf] }
  0x3e   : > { %1075 = vmatpush.bf16.msrb.mxu0 %v2348_v34  ;;  %v3321_v62 = vld [vmem:[%s5248_s1 + $0x4] sm:$0xf]  ;;  %v2425_v4 = vld [vmem:[%s5248_s1 + $0x110] sm:$0xf0]  ;;  %v2700_v6 = vor.u32 %v3421_v56, %v2697_v57  ;;  %v3444_v33 = vld [vmem:[%s5248_s1 + $0x3d4] sm:$0xf0]  ;;  %v2400_v34 = vor.u32 %v3348_v26, %v2399_v25 }
  0x3f   : > { %1088 = vmatpush.bf16.msrb.mxu1 %v2476_v35  ;;  %v3353_v3 = vld [vmem:[%s5248_s1 + $0x104] sm:$0xf]  ;;  %v2553_v7 = vld [vmem:[%s5248_s1 + $0x210] sm:$0xf0]  ;;  %v2300_v13 = vor.u32 %v3321_v62, %v2297_v63  ;;  %v2528_v35 = vor.u32 %v3380_v29, %v2527_v27  ;;  %v2383_v37 = vld [vmem:[%s5248_s1 + $0xa8] sm:$0xf] }
  0x40   : > { %1101 = vmatpush.bf16.msrb.mxu2 %v2604_v36  ;;  %v3385_v5 = vld [vmem:[%s5248_s1 + $0x204] sm:$0xf]  ;;  %v2681_v9 = vld [vmem:[%s5248_s1 + $0x310] sm:$0xf0]  ;;  %v2428_v17 = vor.u32 %v3353_v3, %v2425_v4  ;;  %v2656_v36 = vor.u32 %v3412_v31, %v2655_v30  ;;  %v3344_v38 = vld [vmem:[%s5248_s1 + $0xb4] sm:$0xf0] }
  0x41   : > { %1114 = vmatpush.bf16.msrb.mxu3 %v2732_v40  ;;  %v3417_v8 = vld [vmem:[%s5248_s1 + $0x304] sm:$0xf]  ;;  %v2556_v18 = vor.u32 %v3385_v5, %v2553_v7  ;;  %v2511_v39 = vld [vmem:[%s5248_s1 + $0x1a8] sm:$0xf]  ;;  %v2784_v40 = vor.u32 %v3444_v33, %v2783_v32  ;;  %v3376_v41 = vld [vmem:[%s5248_s1 + $0x1b4] sm:$0xf0] }
  0x42   : > { %1076 = vmatpush.bf16.msrb.mxu0 %v2332_v46  ;;  %v2684_v21 = vor.u32 %v3417_v8, %v2681_v9  ;;  %v2639_v42 = vld [vmem:[%s5248_s1 + $0x2a8] sm:$0xf]  ;;  %v3408_v43 = vld [vmem:[%s5248_s1 + $0x2b4] sm:$0xf0]  ;;  %v2384_v46 = vor.u32 %v3344_v38, %v2383_v37 }
  0x43   : > { %1089 = vmatpush.bf16.msrb.mxu1 %v2460_v47  ;;  %v2767_v44 = vld [vmem:[%s5248_s1 + $0x3a8] sm:$0xf]  ;;  %v3440_v45 = vld [vmem:[%s5248_s1 + $0x3b4] sm:$0xf0]  ;;  %v2512_v47 = vor.u32 %v3376_v41, %v2511_v39 }
  0x44   : > { %1102 = vmatpush.bf16.msrb.mxu2 %v2588_v48  ;;  %v2640_v48 = vor.u32 %v3408_v43, %v2639_v42  ;;  %v2367_v49 = vld [vmem:[%s5248_s1 + $0x88] sm:$0xf]  ;;  %v3340_v50 = vld [vmem:[%s5248_s1 + $0x94] sm:$0xf0] }
  0x45   : > { %1115 = vmatpush.bf16.msrb.mxu3 %v2716_v52  ;;  %v2495_v51 = vld [vmem:[%s5248_s1 + $0x188] sm:$0xf]  ;;  %v2768_v52 = vor.u32 %v3440_v45, %v2767_v44  ;;  %v3372_v53 = vld [vmem:[%s5248_s1 + $0x194] sm:$0xf0] }
  0x46   : > { %1077 = vmatpush.bf16.msrb.mxu0 %v2316_v58  ;;  %v2623_v54 = vld [vmem:[%s5248_s1 + $0x288] sm:$0xf]  ;;  %v3404_v55 = vld [vmem:[%s5248_s1 + $0x294] sm:$0xf0]  ;;  %v2368_v58 = vor.u32 %v3340_v50, %v2367_v49  ;;  %v2496_v62 = vor.u32 %v3372_v53, %v2495_v51  ;;  %v2545_v50 = vld [vmem:[%s5248_s1 + $0x1f8] sm:$0xf0] }
  0x47   : > { %1090 = vmatpush.bf16.msrb.mxu1 %v2444_v1  ;;  %v2751_v56 = vld [vmem:[%s5248_s1 + $0x388] sm:$0xf]  ;;  %v3436_v57 = vld [vmem:[%s5248_s1 + $0x394] sm:$0xf0]  ;;  %v2624_v63 = vor.u32 %v3404_v55, %v2623_v54  ;;  %v3414_v51 = vld [vmem:[%s5248_s1 + $0x2ec] sm:$0xf] }
  0x48   : > { %1103 = vmatpush.bf16.msrb.mxu2 %v2572_v2  ;;  %v2351_v1 = vld [vmem:[%s5248_s1 + $0x68] sm:$0xf]  ;;  %v3336_v2 = vld [vmem:[%s5248_s1 + $0x74] sm:$0xf0]  ;;  %v2752_v4 = vor.u32 %v3436_v57, %v2751_v56  ;;  %v3446_v55 = vld [vmem:[%s5248_s1 + $0x3ec] sm:$0xf] }
  0x49   : > { %1116 = vmatpush.bf16.msrb.mxu3 %v2700_v6  ;;  %v2479_v3 = vld [vmem:[%s5248_s1 + $0x168] sm:$0xf]  ;;  %v3368_v5 = vld [vmem:[%s5248_s1 + $0x174] sm:$0xf0]  ;;  %v2352_v10 = vor.u32 %v3336_v2, %v2351_v1  ;;  %v2801_v56 = vld [vmem:[%s5248_s1 + $0x3f8] sm:$0xf0] }
  0x4a   : > { %1078 = vmatpush.bf16.msrb.mxu0 %v2300_v13  ;;  %v2607_v6 = vld [vmem:[%s5248_s1 + $0x268] sm:$0xf]  ;;  %v3400_v7 = vld [vmem:[%s5248_s1 + $0x274] sm:$0xf0]  ;;  %v2480_v11 = vor.u32 %v3368_v5, %v2479_v3  ;;  %v3346_v1 = vld [vmem:[%s5248_s1 + $0xcc] sm:$0xf] }
  0x4b   : > { %1091 = vmatpush.bf16.msrb.mxu1 %v2428_v17  ;;  %v2735_v8 = vld [vmem:[%s5248_s1 + $0x368] sm:$0xf]  ;;  %v3432_v9 = vld [vmem:[%s5248_s1 + $0x374] sm:$0xf0]  ;;  %v2608_v12 = vor.u32 %v3400_v7, %v2607_v6  ;;  %v2401_v2 = vld [vmem:[%s5248_s1 + $0xd8] sm:$0xf0] }
  0x4c   : > { %1104 = vmatpush.bf16.msrb.mxu2 %v2556_v18  ;;  %v2335_v13 = vld [vmem:[%s5248_s1 + $0x48] sm:$0xf]  ;;  %v3332_v14 = vld [vmem:[%s5248_s1 + $0x54] sm:$0xf0]  ;;  %v2736_v16 = vor.u32 %v3432_v9, %v2735_v8  ;;  %v3378_v3 = vld [vmem:[%s5248_s1 + $0x1cc] sm:$0xf] }
  0x4d   : > { %1117 = vmatpush.bf16.msrb.mxu3 %v2684_v21  ;;  %1079 = vmatmul.bf16.vlgmr.msrb.gmra.mxu0 %v3885_v60  ;;  %v2463_v15 = vld [vmem:[%s5248_s1 + $0x148] sm:$0xf]  ;;  %v3364_v17 = vld [vmem:[%s5248_s1 + $0x154] sm:$0xf0]  ;;  %v2529_v5 = vld [vmem:[%s5248_s1 + $0x1d8] sm:$0xf0] }
  0x4e   : > { %1123 = vmatpush.bf16.msra.mxu0 %v2416_v22  ;;  %1092 = vmatmul.bf16.vlgmr.msrb.gmra.mxu1 %v3889_v0  ;;  %v2591_v18 = vld [vmem:[%s5248_s1 + $0x248] sm:$0xf]  ;;  %v3396_v19 = vld [vmem:[%s5248_s1 + $0x254] sm:$0xf0]  ;;  %v2336_v22 = vor.u32 %v3332_v14, %v2335_v13  ;;  %v3410_v6 = vld [vmem:[%s5248_s1 + $0x2cc] sm:$0xf] }
  0x4f   : > { %1136 = vmatpush.bf16.msra.mxu1 %v2544_v23  ;;  %1105 = vmatmul.bf16.vlgmr.msrb.gmra.mxu2 %v3883_v59  ;;  %v2719_v20 = vld [vmem:[%s5248_s1 + $0x348] sm:$0xf]  ;;  %v3428_v21 = vld [vmem:[%s5248_s1 + $0x354] sm:$0xf0]  ;;  %v2464_v23 = vor.u32 %v3364_v17, %v2463_v15  ;;  %v2657_v7 = vld [vmem:[%s5248_s1 + $0x2d8] sm:$0xf0] }
  0x50   : > { %1149 = vmatpush.bf16.msra.mxu2 %v2672_v24  ;;  %1118 = vmatmul.bf16.vlgmr.msrb.gmra.mxu3 %v3887_v61  ;;  %v2592_v24 = vor.u32 %v3396_v19, %v2591_v18  ;;  %v2319_v25 = vld [vmem:[%s5248_s1 + $0x28] sm:$0xf]  ;;  %v3328_v26 = vld [vmem:[%s5248_s1 + $0x34] sm:$0xf0]  ;;  %v3442_v8 = vld [vmem:[%s5248_s1 + $0x3cc] sm:$0xf] }
  0x51   : > { %1162 = vmatpush.bf16.msra.mxu3 %v2800_v28  ;;  %v2447_v27 = vld [vmem:[%s5248_s1 + $0x128] sm:$0xf]  ;;  %v2720_v28 = vor.u32 %v3428_v21, %v2719_v20  ;;  %v3360_v29 = vld [vmem:[%s5248_s1 + $0x134] sm:$0xf0]  ;;  %v2785_v9 = vld [vmem:[%s5248_s1 + $0x3d8] sm:$0xf0] }
  0x52   : > { %1124 = vmatpush.bf16.msra.mxu0 %v2400_v34  ;;  %v2575_v30 = vld [vmem:[%s5248_s1 + $0x228] sm:$0xf]  ;;  %v3392_v31 = vld [vmem:[%s5248_s1 + $0x234] sm:$0xf0]  ;;  %v2320_v34 = vor.u32 %v3328_v26, %v2319_v25  ;;  %v2448_v37 = vor.u32 %v3360_v29, %v2447_v27  ;;  %v3342_v13 = vld [vmem:[%s5248_s1 + $0xac] sm:$0xf] }
  0x53   : > { %1137 = vmatpush.bf16.msra.mxu1 %v2528_v35  ;;  %v2703_v32 = vld [vmem:[%s5248_s1 + $0x328] sm:$0xf]  ;;  %v3424_v33 = vld [vmem:[%s5248_s1 + $0x334] sm:$0xf0]  ;;  %v2576_v38 = vor.u32 %v3392_v31, %v2575_v30  ;;  %v2385_v14 = vld [vmem:[%s5248_s1 + $0xb8] sm:$0xf0] }
  0x54   : > { %1150 = vmatpush.bf16.msra.mxu2 %v2656_v36  ;;  %v2303_v35 = vld [vmem:[%s5248_s1 + $0x8] sm:$0xf]  ;;  %v3324_v36 = vld [vmem:[%s5248_s1 + $0x14] sm:$0xf0]  ;;  %v2704_v42 = vor.u32 %v3424_v33, %v2703_v32  ;;  %v3374_v15 = vld [vmem:[%s5248_s1 + $0x1ac] sm:$0xf] }
  0x55   : > { %1163 = vmatpush.bf16.msra.mxu3 %v2784_v40  ;;  %v2431_v39 = vld [vmem:[%s5248_s1 + $0x108] sm:$0xf]  ;;  %v3356_v40 = vld [vmem:[%s5248_s1 + $0x114] sm:$0xf0]  ;;  %v2304_v49 = vor.u32 %v3324_v36, %v2303_v35  ;;  %v2513_v17 = vld [vmem:[%s5248_s1 + $0x1b8] sm:$0xf0] }
  0x56   : > { %1125 = vmatpush.bf16.msra.mxu0 %v2384_v46  ;;  %v2559_v41 = vld [vmem:[%s5248_s1 + $0x208] sm:$0xf]  ;;  %v3388_v43 = vld [vmem:[%s5248_s1 + $0x214] sm:$0xf0]  ;;  %v3350_v46 = vld [vmem:[%s5248_s1 + $0xec] sm:$0xf]  ;;  %v2432_v53 = vor.u32 %v3356_v40, %v2431_v39 }
  0x57   : > { %1138 = vmatpush.bf16.msra.mxu1 %v2512_v47  ;;  %v2687_v44 = vld [vmem:[%s5248_s1 + $0x308] sm:$0xf]  ;;  %v3420_v45 = vld [vmem:[%s5248_s1 + $0x314] sm:$0xf0]  ;;  %v2417_v47 = vld [vmem:[%s5248_s1 + $0xf8] sm:$0xf0]  ;;  %v2560_v54 = vor.u32 %v3388_v43, %v2559_v41 }
  0x58   : > { %1151 = vmatpush.bf16.msra.mxu2 %v2640_v48  ;;  %v3382_v48 = vld [vmem:[%s5248_s1 + $0x1ec] sm:$0xf]  ;;  %v2688_v57 = vor.u32 %v3420_v45, %v2687_v44  ;;  %v2641_v19 = vld [vmem:[%s5248_s1 + $0x2b8] sm:$0xf0] }
  0x59   : > { %1164 = vmatpush.bf16.msra.mxu3 %v2768_v52  ;;  %v2673_v52 = vld [vmem:[%s5248_s1 + $0x2f8] sm:$0xf0]  ;;  %v3406_v18 = vld [vmem:[%s5248_s1 + $0x2ac] sm:$0xf] }
  0x5a   : > { %1126 = vmatpush.bf16.msra.mxu0 %v2368_v58  ;;  %v2420_v58 = vor.u32 %v3350_v46, %v2417_v47  ;;  %v3438_v20 = vld [vmem:[%s5248_s1 + $0x3ac] sm:$0xf]  ;;  %v2769_v21 = vld [vmem:[%s5248_s1 + $0x3b8] sm:$0xf0] }
  0x5b   : > { %1139 = vmatpush.bf16.msra.mxu1 %v2496_v62  ;;  %v2548_v62 = vor.u32 %v3382_v48, %v2545_v50  ;;  %v3338_v25 = vld [vmem:[%s5248_s1 + $0x8c] sm:$0xf]  ;;  %v2369_v26 = vld [vmem:[%s5248_s1 + $0x98] sm:$0xf0] }
  0x5c   : > { %1152 = vmatpush.bf16.msra.mxu2 %v2624_v63  ;;  %v2676_v63 = vor.u32 %v3414_v51, %v2673_v52  ;;  %v3370_v27 = vld [vmem:[%s5248_s1 + $0x18c] sm:$0xf]  ;;  %v2497_v29 = vld [vmem:[%s5248_s1 + $0x198] sm:$0xf0] }
  0x5d   : > { %1165 = vmatpush.bf16.msra.mxu3 %v2752_v4  ;;  %v2804_v4 = vor.u32 %v3446_v55, %v2801_v56  ;;  %v3402_v30 = vld [vmem:[%s5248_s1 + $0x28c] sm:$0xf]  ;;  %v2625_v31 = vld [vmem:[%s5248_s1 + $0x298] sm:$0xf0]  ;;  %v2500_v35 = vor.u32 %v3370_v27, %v2497_v29 }
  0x5e   : > { %1127 = vmatpush.bf16.msra.mxu0 %v2352_v10  ;;  %v2404_v10 = vor.u32 %v3346_v1, %v2401_v2  ;;  %v3434_v32 = vld [vmem:[%s5248_s1 + $0x38c] sm:$0xf]  ;;  %v2753_v33 = vld [vmem:[%s5248_s1 + $0x398] sm:$0xf0]  ;;  %v2628_v36 = vor.u32 %v3402_v30, %v2625_v31  ;;  %v2903_v31 = vld [vmem:[%s5250_s3 + $0xc0] sm:$0xf] }
  0x5f   : > { %1140 = vmatpush.bf16.msra.mxu1 %v2480_v11  ;;  %v2532_v11 = vor.u32 %v3378_v3, %v2529_v5  ;;  %v3366_v39 = vld [vmem:[%s5248_s1 + $0x16c] sm:$0xf]  ;;  %v2756_v40 = vor.u32 %v3434_v32, %v2753_v33  ;;  %v2481_v41 = vld [vmem:[%s5248_s1 + $0x178] sm:$0xf0]  ;;  %v3475_v32 = vld [vmem:[%s5250_s3 + $0xcc] sm:$0xf0] }
  0x60   : > { %1153 = vmatpush.bf16.msra.mxu2 %v2608_v12  ;;  %v2660_v12 = vor.u32 %v3410_v6, %v2657_v7  ;;  %v2609_v43 = vld [vmem:[%s5248_s1 + $0x278] sm:$0xf0]  ;;  %v3430_v44 = vld [vmem:[%s5248_s1 + $0x36c] sm:$0xf]  ;;  %v2484_v47 = vor.u32 %v3366_v39, %v2481_v41 }
  0x61   : > { %1166 = vmatpush.bf16.msra.mxu3 %v2736_v16  ;;  %v2788_v16 = vor.u32 %v3442_v8, %v2785_v9  ;;  %v2737_v45 = vld [vmem:[%s5248_s1 + $0x378] sm:$0xf0]  ;;  %v3362_v51 = vld [vmem:[%s5248_s1 + $0x14c] sm:$0xf] }
  0x62   : > { %1128 = vmatpush.bf16.msra.mxu0 %v2336_v22  ;;  %v2388_v22 = vor.u32 %v3342_v13, %v2385_v14  ;;  %v2337_v50 = vld [vmem:[%s5248_s1 + $0x58] sm:$0xf0]  ;;  %v2740_v52 = vor.u32 %v3430_v44, %v2737_v45  ;;  %v3426_v56 = vld [vmem:[%s5248_s1 + $0x34c] sm:$0xf]  ;;  %v2855_v45 = vld [vmem:[%s5250_s3 + $0x60] sm:$0xf] }
  0x63   : > { %1141 = vmatpush.bf16.msra.mxu1 %v2464_v23  ;;  %v2516_v23 = vor.u32 %v3374_v15, %v2513_v17  ;;  %v2593_v55 = vld [vmem:[%s5248_s1 + $0x258] sm:$0xf0]  ;;  %v3326_v1 = vld [vmem:[%s5248_s1 + $0x2c] sm:$0xf] }
  0x64   : > { %1154 = vmatpush.bf16.msra.mxu2 %v2592_v24  ;;  %v2644_v24 = vor.u32 %v3406_v18, %v2641_v19  ;;  %v2321_v2 = vld [vmem:[%s5248_s1 + $0x38] sm:$0xf0]  ;;  %v3358_v3 = vld [vmem:[%s5248_s1 + $0x12c] sm:$0xf] }
  0x65   : > { %1167 = vmatpush.bf16.msra.mxu3 %v2720_v28  ;;  %v2772_v28 = vor.u32 %v3438_v20, %v2769_v21  ;;  %v2449_v5 = vld [vmem:[%s5248_s1 + $0x138] sm:$0xf0]  ;;  %v3390_v6 = vld [vmem:[%s5248_s1 + $0x22c] sm:$0xf] }
  0x66   : > { %1129 = vmatpush.bf16.msra.mxu0 %v2320_v34  ;;  %v2372_v34 = vor.u32 %v3338_v25, %v2369_v26  ;;  %v2577_v7 = vld [vmem:[%s5248_s1 + $0x238] sm:$0xf0]  ;;  %v3422_v8 = vld [vmem:[%s5248_s1 + $0x32c] sm:$0xf]  ;;  %v3047_v25 = vld [vmem:[%s5250_s3 + $0x1e0] sm:$0xf] }
  0x67   : > { %1142 = vmatpush.bf16.msra.mxu1 %v2448_v37  ;;  %v3334_v37 = vld [vmem:[%s5248_s1 + $0x6c] sm:$0xf]  ;;  %v2705_v9 = vld [vmem:[%s5248_s1 + $0x338] sm:$0xf0]  ;;  %v2580_v13 = vor.u32 %v3390_v6, %v2577_v7  ;;  %v3511_v26 = vld [vmem:[%s5250_s3 + $0x1ec] sm:$0xf0] }
  0x68   : > { %1155 = vmatpush.bf16.msra.mxu2 %v2576_v38  ;;  %v2353_v38 = vld [vmem:[%s5248_s1 + $0x78] sm:$0xf0]  ;;  %v3354_v15 = vld [vmem:[%s5248_s1 + $0x10c] sm:$0xf]  ;;  %v2708_v17 = vor.u32 %v3422_v8, %v2705_v9  ;;  %v3048_v33 = vor.u32 %v3511_v26, %v3047_v25  ;;  %v3175_v7 = vld [vmem:[%s5250_s3 + $0x2e0] sm:$0xf] }
  0x69   : > { %1168 = vmatpush.bf16.msra.mxu3 %v2704_v42  ;;  %v3398_v42 = vld [vmem:[%s5248_s1 + $0x26c] sm:$0xf]  ;;  %v2356_v46 = vor.u32 %v3334_v37, %v2353_v38  ;;  %v2305_v14 = vld [vmem:[%s5248_s1 + $0x18] sm:$0xf0]  ;;  %v2887_v37 = vld [vmem:[%s5250_s3 + $0xa0] sm:$0xf] }
  0x6a   : > { %1130 = vmatpush.bf16.msra.mxu0 %v2304_v49  ;;  %v2612_v48 = vor.u32 %v3398_v42, %v2609_v43  ;;  %v3330_v49 = vld [vmem:[%s5248_s1 + $0x4c] sm:$0xf]  ;;  %v2561_v19 = vld [vmem:[%s5248_s1 + $0x218] sm:$0xf0]  ;;  %v3471_v38 = vld [vmem:[%s5250_s3 + $0xac] sm:$0xf0] }
  0x6b   : > { %1143 = vmatpush.bf16.msra.mxu1 %v2432_v53  ;;  %v2465_v53 = vld [vmem:[%s5248_s1 + $0x158] sm:$0xf0]  ;;  %v3386_v18 = vld [vmem:[%s5248_s1 + $0x20c] sm:$0xf]  ;;  %v2888_v41 = vor.u32 %v3471_v38, %v2887_v37  ;;  %v2871_v42 = vld [vmem:[%s5250_s3 + $0x80] sm:$0xf] }
  0x6c   : > { %1156 = vmatpush.bf16.msra.mxu2 %v2560_v54  ;;  %v3394_v54 = vld [vmem:[%s5248_s1 + $0x24c] sm:$0xf]  ;;  %v2689_v21 = vld [vmem:[%s5248_s1 + $0x318] sm:$0xf0]  ;;  %v2999_v43 = vld [vmem:[%s5250_s3 + $0x180] sm:$0xf] }
  0x6d   : > { %1169 = vmatpush.bf16.msra.mxu3 %v2688_v57  ;;  %1131 = vmatmul.bf16.vlgmr.msra.gmra.mxu0 %v3885_v60  ;;  %v2721_v57 = vld [vmem:[%s5248_s1 + $0x358] sm:$0xf0]  ;;  %v3418_v20 = vld [vmem:[%s5248_s1 + $0x30c] sm:$0xf]  ;;  %v3543_v8 = vld [vmem:[%s5250_s3 + $0x2ec] sm:$0xf0] }
  0x6e   : > { %1175 = vmatpush.bf16.msrb.mxu0 %v2420_v58  ;;  %1144 = vmatmul.bf16.vlgmr.msra.gmra.mxu1 %v3889_v0  ;;  %v2340_v58 = vor.u32 %v3330_v49, %v2337_v50  ;;  %v2692_v29 = vor.u32 %v3418_v20, %v2689_v21  ;;  %v3495_v49 = vld [vmem:[%s5250_s3 + $0x16c] sm:$0xf0]  ;;  %v2921_v9 = vld [vmem:[%s5250_s3 + $0xf0] sm:$0xf0]  ;;  %v3473_v20 = vld [vmem:[%s5250_s3 + $0xc4] sm:$0xf] }
  0x6f   : > { %1188 = vmatpush.bf16.msrb.mxu1 %v2548_v62  ;;  %1157 = vmatmul.bf16.vlgmr.msra.gmra.mxu2 %v3883_v59  ;;  %v2468_v62 = vor.u32 %v3362_v51, %v2465_v53  ;;  %v2839_v51 = vld [vmem:[%s5250_s3 + $0x40] sm:$0xf]  ;;  %v2905_v21 = vld [vmem:[%s5250_s3 + $0xd0] sm:$0xf0]  ;;  %v3531_v38 = vld [vmem:[%s5250_s3 + $0x28c] sm:$0xf0] }
  0x70   : > { %1201 = vmatpush.bf16.msrb.mxu2 %v2676_v63  ;;  %1170 = vmatmul.bf16.vlgmr.msra.gmra.mxu3 %v3887_v61  ;;  %v2596_v63 = vor.u32 %v3394_v54, %v2593_v55  ;;  %v2967_v54 = vld [vmem:[%s5250_s3 + $0x140] sm:$0xf]  ;;  %v3491_v55 = vld [vmem:[%s5250_s3 + $0x14c] sm:$0xf0]  ;;  %v3033_v25 = vld [vmem:[%s5250_s3 + $0x1d0] sm:$0xf0]  ;;  %v2908_v26 = vor.u32 %v3473_v20, %v2905_v21 }
  0x71   : > { %1214 = vmatpush.bf16.msrb.mxu3 %v2804_v4  ;;  %v2724_v4 = vor.u32 %v3426_v56, %v2721_v57  ;;  %v2823_v57 = vld [vmem:[%s5250_s3 + $0x20] sm:$0xf]  ;;  %v3449_v20 = vld [vmem:[%s5250_s3 + $0x4] sm:$0xf]  ;;  %v2809_v21 = vld [vmem:[%s5250_s3 + $0x10] sm:$0xf0] }
  0x72   : > { %1176 = vmatpush.bf16.msrb.mxu0 %v2404_v10  ;;  %v2324_v10 = vor.u32 %v3326_v1, %v2321_v2  ;;  %v3487_v1 = vld [vmem:[%s5250_s3 + $0x12c] sm:$0xf0]  ;;  %v3127_v37 = vld [vmem:[%s5250_s3 + $0x280] sm:$0xf] }
  0x73   : > { %1189 = vmatpush.bf16.msrb.mxu1 %v2532_v11  ;;  %v3322_v11 = vld [vmem:[%s5248_s1 + $0xc] sm:$0xf] }
  0x74   : > { %1202 = vmatpush.bf16.msrb.mxu2 %v2660_v12  ;;  %v2452_v12 = vor.u32 %v3358_v3, %v2449_v5  ;;  %v2807_v3 = vld [vmem:[%s5250_s3] sm:$0xf]  ;;  %v3477_v5 = vld [vmem:[%s5250_s3 + $0xe4] sm:$0xf] }
  0x75   : > { %1215 = vmatpush.bf16.msrb.mxu3 %v2788_v16  ;;  %v2433_v16 = vld [vmem:[%s5248_s1 + $0x118] sm:$0xf0] }
  0x76   : > { %1177 = vmatpush.bf16.msrb.mxu0 %v2388_v22  ;;  %v2919_v22 = vld [vmem:[%s5250_s3 + $0xe0] sm:$0xf]  ;;  %v2436_v27 = vor.u32 %v3354_v15, %v2433_v16  ;;  %v2924_v16 = vor.u32 %v3477_v5, %v2921_v9  ;;  %v3519_v9 = vld [vmem:[%s5250_s3 + $0x22c] sm:$0xf0] }
  0x77   : > { %1190 = vmatpush.bf16.msrb.mxu1 %v2516_v23  ;;  %v3479_v23 = vld [vmem:[%s5250_s3 + $0xec] sm:$0xf0] }
  0x78   : > { %1203 = vmatpush.bf16.msrb.mxu2 %v2644_v24  ;;  %v2308_v24 = vor.u32 %v3322_v11, %v2305_v14  ;;  %v2920_v30 = vor.u32 %v3479_v23, %v2919_v22  ;;  %v3483_v11 = vld [vmem:[%s5250_s3 + $0x10c] sm:$0xf0]  ;;  %v3049_v14 = vld [vmem:[%s5250_s3 + $0x1f0] sm:$0xf0] }
  0x79   : > { %1216 = vmatpush.bf16.msrb.mxu3 %v2772_v28  ;;  %v2564_v28 = vor.u32 %v3386_v18, %v2561_v19  ;;  %v3159_v18 = vld [vmem:[%s5250_s3 + $0x2c0] sm:$0xf]  ;;  %v3539_v19 = vld [vmem:[%s5250_s3 + $0x2cc] sm:$0xf0] }
  0x7a   : > { %1178 = vmatpush.bf16.msrb.mxu0 %v2372_v34  ;;  %v3031_v34 = vld [vmem:[%s5250_s3 + $0x1c0] sm:$0xf]  ;;  %v3160_v23 = vor.u32 %v3539_v19, %v3159_v18  ;;  %v2953_v18 = vld [vmem:[%s5250_s3 + $0x130] sm:$0xf0] }
  0x7b   : > { %1191 = vmatpush.bf16.msrb.mxu1 %v2500_v35  ;;  %v3507_v35 = vld [vmem:[%s5250_s3 + $0x1cc] sm:$0xf0] }
  0x7c   : > { %1204 = vmatpush.bf16.msrb.mxu2 %v2628_v36  ;;  %v2904_v36 = vor.u32 %v3475_v32, %v2903_v31  ;;  %v3032_v39 = vor.u32 %v3507_v35, %v3031_v34  ;;  %v3017_v34 = vld [vmem:[%s5250_s3 + $0x1b0] sm:$0xf0]  ;;  %v4588_v35 = vld [vmem:[%s5249_s2] sm:$0xf] }
  0x7d   : > { %1217 = vmatpush.bf16.msrb.mxu3 %v2756_v40  ;;  %v3015_v40 = vld [vmem:[%s5250_s3 + $0x1a0] sm:$0xf] }
  0x7e   : > { %1179 = vmatpush.bf16.msrb.mxu0 %v2356_v46  ;;  %v3463_v46 = vld [vmem:[%s5250_s3 + $0x6c] sm:$0xf0] }
  0x7f   : > { %1192 = vmatpush.bf16.msrb.mxu1 %v2484_v47  ;;  %v2856_v50 = vor.u32 %v3463_v46, %v2855_v45  ;;  %v3461_v46 = vld [vmem:[%s5250_s3 + $0x64] sm:$0xf] }
  0x80   : > { %1205 = vmatpush.bf16.msrb.mxu2 %v2612_v48  ;;  %v2983_v48 = vld [vmem:[%s5250_s3 + $0x160] sm:$0xf] }
  0x81   : > { %1218 = vmatpush.bf16.msrb.mxu3 %v2740_v52  ;;  %v3459_v52 = vld [vmem:[%s5250_s3 + $0x4c] sm:$0xf0]  ;;  %v2984_v53 = vor.u32 %v3495_v49, %v2983_v48 }
  0x82   : > { %1180 = vmatpush.bf16.msrb.mxu0 %v2340_v58  ;;  %v2840_v56 = vor.u32 %v3459_v52, %v2839_v51  ;;  %v3455_v58 = vld [vmem:[%s5250_s3 + $0x2c] sm:$0xf0]  ;;  %v3493_v52 = vld [vmem:[%s5250_s3 + $0x164] sm:$0xf] }
  0x83   : > { %1193 = vmatpush.bf16.msrb.mxu1 %v2468_v62  ;;  %v2968_v62 = vor.u32 %v3491_v55, %v2967_v54  ;;  %v2824_v2 = vor.u32 %v3455_v58, %v2823_v57  ;;  %v3523_v57 = vld [vmem:[%s5250_s3 + $0x24c] sm:$0xf0]  ;;  %v3457_v58 = vld [vmem:[%s5250_s3 + $0x44] sm:$0xf] }
  0x84   : > { %1206 = vmatpush.bf16.msrb.mxu2 %v2596_v63  ;;  %v2951_v63 = vld [vmem:[%s5250_s3 + $0x120] sm:$0xf] }
  0x85   : > { %1219 = vmatpush.bf16.msrb.mxu3 %v2724_v4  ;;  %v3451_v4 = vld [vmem:[%s5250_s3 + $0xc] sm:$0xf0]  ;;  %v2952_v6 = vor.u32 %v3487_v1, %v2951_v63 }
  0x86   : > { %1181 = vmatpush.bf16.msrb.mxu0 %v2324_v10  ;;  %v2935_v10 = vld [vmem:[%s5250_s3 + $0x100] sm:$0xf]  ;;  %v2808_v15 = vor.u32 %v3451_v4, %v2807_v3  ;;  %v3489_v3 = vld [vmem:[%s5250_s3 + $0x144] sm:$0xf]  ;;  %v2969_v4 = vld [vmem:[%s5250_s3 + $0x150] sm:$0xf0] }
  0x87   : > { %1194 = vmatpush.bf16.msrb.mxu1 %v2452_v12  ;;  %v3176_v12 = vor.u32 %v3543_v8, %v3175_v7  ;;  %v3079_v8 = vld [vmem:[%s5250_s3 + $0x220] sm:$0xf] }
  0x88   : > { %1207 = vmatpush.bf16.msrb.mxu2 %v2580_v13  ;;  %v3509_v13 = vld [vmem:[%s5250_s3 + $0x1e4] sm:$0xf] }
  0x89   : > { %1220 = vmatpush.bf16.msrb.mxu3 %v2708_v17  ;;  %v2936_v17 = vor.u32 %v3483_v11, %v2935_v10  ;;  %v3052_v22 = vor.u32 %v3509_v13, %v3049_v14  ;;  %v3453_v11 = vld [vmem:[%s5250_s3 + $0x24] sm:$0xf]  ;;  %v2972_v14 = vor.u32 %v3489_v3, %v2969_v4  ;;  %v3129_v4 = vld [vmem:[%s5250_s3 + $0x290] sm:$0xf0] }
  0x8a   : > { %1182 = vmatpush.bf16.msrb.mxu0 %v2308_v24  ;;  %v3505_v24 = vld [vmem:[%s5250_s3 + $0x1c4] sm:$0xf] }
  0x8b   : > { %1195 = vmatpush.bf16.msrb.mxu1 %v2436_v27  ;;  %v3143_v27 = vld [vmem:[%s5250_s3 + $0x2a0] sm:$0xf]  ;;  %v3036_v31 = vor.u32 %v3505_v24, %v3033_v25  ;;  %v3480_v24 = vld [vmem:[%s5250_s3 + $0xf4] sm:$0xf0] }
  0x8c   : > { %1208 = vmatpush.bf16.msrb.mxu2 %v2564_v28  ;;  %v3535_v28 = vld [vmem:[%s5250_s3 + $0x2ac] sm:$0xf0]  ;;  %v3063_v25 = vld [vmem:[%s5250_s3 + $0x200] sm:$0xf] }
  0x8d   : > { %1221 = vmatpush.bf16.msrb.mxu3 %v2692_v29  ;;  %1183 = vmatmul.bf16.vlgmr.msrb.gmra.mxu0 %v3885_v60  ;;  %v3503_v60 = vld [vmem:[%s5250_s3 + $0x1ac] sm:$0xf0]  ;;  %v3469_v29 = vld [vmem:[%s5250_s3 + $0xa4] sm:$0xf]  ;;  %v3144_v32 = vor.u32 %v3535_v28, %v3143_v27 }
  0x8e   : > { %2013 = vmatpush.bf16.msra.mxu0 %v2920_v30  ;;  %1196 = vmatmul.bf16.vlgmr.msrb.gmra.mxu1 %v3889_v0  ;;  %v3016_v0 = vor.u32 %v3503_v60, %v3015_v40  ;;  %v2889_v30 = vld [vmem:[%s5250_s3 + $0xb0] sm:$0xf0] }
  0x8f   : > { %2026 = vmatpush.bf16.msra.mxu1 %v3048_v33  ;;  %1209 = vmatmul.bf16.vlgmr.msrb.gmra.mxu2 %v3883_v59  ;;  %v3467_v59 = vld [vmem:[%s5250_s3 + $0x8c] sm:$0xf0]  ;;  %v3501_v33 = vld [vmem:[%s5250_s3 + $0x1a4] sm:$0xf]  ;;  %v2873_v40 = vld [vmem:[%s5250_s3 + $0x90] sm:$0xf0] }
  0x90   : > { %1222 = vmatmul.bf16.vlgmr.msrb.gmra.mxu3 %v3887_v61  ;;  %v3499_v61 = vld [vmem:[%s5250_s3 + $0x18c] sm:$0xf0]  ;;  %v2872_v44 = vor.u32 %v3467_v59, %v2871_v42  ;;  %2039 = vmatpush.bf16.msra.mxu2 %v3176_v12  ;;  %v3020_v60 = vor.u32 %v3501_v33, %v3017_v34  ;;  %v357_v42 = vperm.slane %v4588_v35, 0  ;;  %v3497_v59 = vld [vmem:[%s5250_s3 + $0x184] sm:$0xf] }
  0x91   : > { %v3000_v47 = vor.u32 %v3499_v61, %v2999_v43  ;;  %v3111_v61 = vld [vmem:[%s5250_s3 + $0x260] sm:$0xf]  ;;  %v2825_v12 = vld [vmem:[%s5250_s3 + $0x30] sm:$0xf0] }
  0x92   : > { %2014 = vmatpush.bf16.msra.mxu0 %v2904_v36  ;;  %v2892_v36 = vor.u32 %v3469_v29, %v2889_v30  ;;  %v3481_v30 = vld [vmem:[%s5250_s3 + $0x104] sm:$0xf]  ;;  %v2937_v34 = vld [vmem:[%s5250_s3 + $0x110] sm:$0xf0] }
  0x93   : > { %2027 = vmatpush.bf16.msra.mxu1 %v3032_v39  ;;  %v3465_v39 = vld [vmem:[%s5250_s3 + $0x84] sm:$0xf] }
  0x94   : > { %2040 = vmatpush.bf16.msra.mxu2 %v3160_v23  ;;  %v2876_v43 = vor.u32 %v3465_v39, %v2873_v40  ;;  %v2927_v23 = vld [vmem:[%s5250_s3 + $0xe8] sm:$0xf] }
  0x96   : > { %2015 = vmatpush.bf16.msra.mxu0 %v2888_v41  ;;  %v3128_v41 = vor.u32 %v3531_v38, %v3127_v37  ;;  %v3541_v37 = vld [vmem:[%s5250_s3 + $0x2e4] sm:$0xf]  ;;  %v3177_v38 = vld [vmem:[%s5250_s3 + $0x2f0] sm:$0xf0] }
  0x97   : > { %2028 = vmatpush.bf16.msra.mxu1 %v3016_v0  ;;  %v3001_v0 = vld [vmem:[%s5250_s3 + $0x190] sm:$0xf0]  ;;  %v3180_v40 = vor.u32 %v3541_v37, %v3177_v38  ;;  %v3517_v37 = vld [vmem:[%s5250_s3 + $0x224] sm:$0xf]  ;;  %v2831_v38 = vld [vmem:[%s5250_s3 + $0x28] sm:$0xf] }
  0x98   : > { %2041 = vmatpush.bf16.msra.mxu2 %v3144_v32  ;;  %v3004_v48 = vor.u32 %v3497_v59, %v3001_v0  ;;  %v3575_v32 = vld [vmem:[%s5250_s3 + $0x3ec] sm:$0xf0]  ;;  %v3287_v59 = vld [vmem:[%s5250_s3 + $0x3c0] sm:$0xf] }
  0x99   : > { %v3571_v0 = vld [vmem:[%s5250_s3 + $0x3cc] sm:$0xf0] }
  0x9a   : > { %2016 = vmatpush.bf16.msra.mxu0 %v2872_v44  ;;  %v3527_v44 = vld [vmem:[%s5250_s3 + $0x26c] sm:$0xf0] }
  0x9b   : > { %2029 = vmatpush.bf16.msra.mxu1 %v3000_v47  ;;  %v2857_v47 = vld [vmem:[%s5250_s3 + $0x70] sm:$0xf0]  ;;  %v3112_v49 = vor.u32 %v3527_v44, %v3111_v61  ;;  %v2911_v61 = vld [vmem:[%s5250_s3 + $0xc8] sm:$0xf]  ;;  %v3476_v44 = vld [vmem:[%s5250_s3 + $0xd4] sm:$0xf0] }
  0x9c   : > { %2042 = vmatpush.bf16.msra.mxu2 %v3128_v41  ;;  %v2860_v54 = vor.u32 %v3461_v46, %v2857_v47  ;;  %v2928_v41 = vor.u32 %v3480_v24, %v2927_v23  ;;  %v3161_v46 = vld [vmem:[%s5250_s3 + $0x2d0] sm:$0xf0]  ;;  %v2847_v24 = vld [vmem:[%s5250_s3 + $0x48] sm:$0xf] }
  0x9e   : > { %2017 = vmatpush.bf16.msra.mxu0 %v2856_v50 }
  0x9f   : > { %2030 = vmatpush.bf16.msra.mxu1 %v2984_v53  ;;  %v2985_v53 = vld [vmem:[%s5250_s3 + $0x170] sm:$0xf0] }
  0xa0   : > { %2043 = vmatpush.bf16.msra.mxu2 %v3112_v49  ;;  %v2988_v63 = vor.u32 %v3493_v52, %v2985_v53  ;;  %v3271_v49 = vld [vmem:[%s5250_s3 + $0x3a0] sm:$0xf]  ;;  %v2895_v52 = vld [vmem:[%s5250_s3 + $0xa8] sm:$0xf]  ;;  %v3472_v53 = vld [vmem:[%s5250_s3 + $0xb4] sm:$0xf0] }
  0xa2   : > { %2018 = vmatpush.bf16.msra.mxu0 %v2840_v56  ;;  %v3095_v56 = vld [vmem:[%s5250_s3 + $0x240] sm:$0xf] }
  0xa3   : > { %2031 = vmatpush.bf16.msra.mxu1 %v2968_v62  ;;  %v2841_v62 = vld [vmem:[%s5250_s3 + $0x50] sm:$0xf0]  ;;  %v3096_v1 = vor.u32 %v3523_v57, %v3095_v56  ;;  %v2896_v57 = vor.u32 %v3472_v53, %v2895_v52  ;;  %v3039_v53 = vld [vmem:[%s5250_s3 + $0x1c8] sm:$0xf] }
  0xa4   : > { %v2844_v7 = vor.u32 %v3457_v58, %v2841_v62  ;;  %v3255_v58 = vld [vmem:[%s5250_s3 + $0x380] sm:$0xf]  ;;  %v3563_v62 = vld [vmem:[%s5250_s3 + $0x38c] sm:$0xf0] }
  0xa5   : > { %2044 = vmatpush.bf16.msra.mxu2 %v3096_v1  ;;  %v2879_v1 = vld [vmem:[%s5250_s3 + $0x88] sm:$0xf]  ;;  %v3256_v3 = vor.u32 %v3563_v62, %v3255_v58  ;;  %v3508_v58 = vld [vmem:[%s5250_s3 + $0x1d4] sm:$0xf0] }
  0xa6   : > { %2019 = vmatpush.bf16.msra.mxu0 %v2824_v2 }
  0xa7   : > { %2032 = vmatpush.bf16.msra.mxu1 %v2952_v6 }
  0xaa   : > { %2020 = vmatpush.bf16.msra.mxu0 %v2808_v15  ;;  %v3080_v15 = vor.u32 %v3519_v9, %v3079_v8  ;;  %v3239_v8 = vld [vmem:[%s5250_s3 + $0x360] sm:$0xf]  ;;  %v3559_v9 = vld [vmem:[%s5250_s3 + $0x36c] sm:$0xf0] }
  0xab   : > { %2033 = vmatpush.bf16.msra.mxu1 %v2936_v17  ;;  %v3485_v17 = vld [vmem:[%s5250_s3 + $0x124] sm:$0xf] }
  0xac   : > { %2045 = vmatpush.bf16.msra.mxu2 %v3080_v15  ;;  %v2956_v28 = vor.u32 %v3485_v17, %v2953_v18 }
  0xad   : > { %v1028_v45 = vpop.f32.mrf.mxu0 }
  0xae   : > { %2065 = vmatpush.bf16.msrb.mxu0 %v2924_v16  ;;  %v1029_v50 = vadd.f32 %v1028_v45, %v357_v42  ;;  %v1041_v51 = vpop.f32.mrf.mxu1  ;;  %v2940_v42 = vor.u32 %v3481_v30, %v2937_v34  ;;  %v3288_v45 = vor.u32 %v3571_v0, %v3287_v59  ;;  %v3207_v34 = vld [vmem:[%s5250_s3 + $0x320] sm:$0xf]  ;;  %v3512_v59 = vld [vmem:[%s5250_s3 + $0x1f4] sm:$0xf0] }
  0xaf   : > { %2078 = vmatpush.bf16.msrb.mxu1 %v3052_v22  ;;  %v2828_v22 = vor.u32 %v3453_v11, %v2825_v12  ;;  %v2863_v11 = vld [vmem:[%s5250_s3 + $0x68] sm:$0xf]  ;;  %v3464_v12 = vld [vmem:[%s5250_s3 + $0x74] sm:$0xf0] }
  0xb0   : > { %v1042_v55 = vadd.f32 %v1041_v51, %v1029_v50  ;;  %v3567_v50 = vld [vmem:[%s5250_s3 + $0x3ac] sm:$0xf0]  ;;  %v3533_v51 = vld [vmem:[%s5250_s3 + $0x2a4] sm:$0xf] }
  0xb2   : > { %2066 = vmatpush.bf16.msrb.mxu0 %v2908_v26  ;;  %v1054_v2 = vpop.f32.mrf.mxu2  ;;  %v3515_v26 = vld [vmem:[%s5250_s3 + $0x20c] sm:$0xf0] }
  0xb3   : > { %2079 = vmatpush.bf16.msrb.mxu1 %v3036_v31  ;;  %v1055_v5 = vadd.f32 %v1054_v2, %v1042_v55  ;;  %v3064_v29 = vor.u32 %v3515_v26, %v3063_v25  ;;  %v3303_v31 = vld [vmem:[%s5250_s3 + $0x3e0] sm:$0xf]  ;;  %v3145_v55 = vld [vmem:[%s5250_s3 + $0x2b0] sm:$0xf0]  ;;  %v3468_v2 = vld [vmem:[%s5250_s3 + $0x94] sm:$0xf0] }
  0xb4   : > { %v3148_v56 = vor.u32 %v3533_v51, %v3145_v55  ;;  %v3460_v25 = vld [vmem:[%s5250_s3 + $0x54] sm:$0xf0]  ;;  %v3547_v51 = vld [vmem:[%s5250_s3 + $0x30c] sm:$0xf0]  ;;  %v3513_v55 = vld [vmem:[%s5250_s3 + $0x204] sm:$0xf] }
  0xb5   : > { %v1067_v6 = vpop.f32.mrf.mxu3  ;;  %v1030_v13 = vpop.f32.mrf.mxu0  ;;  %2046 = vmatpush.bf16.msra.mxu2 %v3064_v29 }
  0xb6   : > { %2067 = vmatpush.bf16.msrb.mxu0 %v2892_v36  ;;  %v1068_v10 = vadd.f32 %v1067_v6, %v1055_v5  ;;  %v1043_v16 = vpop.f32.mrf.mxu1  ;;  %v3304_v36 = vor.u32 %v3575_v32, %v3303_v31  ;;  %v358_v6 = vperm.slane %v4588_v35, 1  ;;  %v3240_v13 = vor.u32 %v3559_v9, %v3239_v8  ;;  %v3474_v8 = vld [vmem:[%s5250_s3 + $0xcc] sm:$0xf]  ;;  %v3569_v9 = vld [vmem:[%s5250_s3 + $0x3c4] sm:$0xf] }
  0xb7   : > { %2080 = vmatpush.bf16.msrb.mxu1 %v3020_v60  ;;  %v2812_v60 = vor.u32 %v3449_v20, %v2809_v21  ;;  %v3223_v20 = vld [vmem:[%s5250_s3 + $0x340] sm:$0xf]  ;;  %v3555_v21 = vld [vmem:[%s5250_s3 + $0x34c] sm:$0xf0] }
  0xb8   : > { %v1227_v19 = vmax.f32 %v1068_v10, 0.0  ;;  %2052 = vmatpush.bf16.msra.mxu3 %v3304_v36  ;;  %v3525_v10 = vld [vmem:[%s5250_s3 + $0x264] sm:$0xf]  ;;  %v3224_v26 = vor.u32 %v3555_v21, %v3223_v20  ;;  %v3551_v36 = vld [vmem:[%s5250_s3 + $0x32c] sm:$0xf0] }
  0xb9   : > { %2091 = vmatpush.bf16.msrb.mxu2 %v3180_v40  ;;  %v3208_v40 = vor.u32 %v3551_v36, %v3207_v34  ;;  %v2897_v20 = vld [vmem:[%s5250_s3 + $0xb8] sm:$0xf0]  ;;  %v3007_v21 = vld [vmem:[%s5250_s3 + $0x188] sm:$0xf]  ;;  %v359_v34 = vperm.slane %v4588_v35, 2 }
  0xba   : > { %2068 = vmatpush.bf16.msrb.mxu0 %v2876_v43  ;;  %v4681_v27 = vpack.c.bf16 %v1227_v19, %v1227_v19  ;;  %v1056_v33 = vpop.f32.mrf.mxu2  ;;  %v3537_v43 = vld [vmem:[%s5250_s3 + $0x2c4] sm:$0xf]  ;;  %v2864_v19 = vor.u32 %v3464_v12, %v2863_v11  ;;  %v2913_v11 = vld [vmem:[%s5250_s3 + $0xd8] sm:$0xf0]  ;;  %v3023_v12 = vld [vmem:[%s5250_s3 + $0x1a8] sm:$0xf] }
  0xbb   : > { %2081 = vmatpush.bf16.msrb.mxu1 %v3004_v48  ;;  %v3164_v47 = vor.u32 %v3537_v43, %v3161_v46  ;;  %v2912_v48 = vor.u32 %v3476_v44, %v2911_v61  ;;  %v2848_v33 = vor.u32 %v3460_v25, %v2847_v24  ;;  %v2815_v61 = vld [vmem:[%s5250_s3 + $0x8] sm:$0xf]  ;;  %v3452_v44 = vld [vmem:[%s5250_s3 + $0x14] sm:$0xf0]  ;;  %v3561_v24 = vld [vmem:[%s5250_s3 + $0x384] sm:$0xf] }
  0xbc   : > { %2021 = vmatmul.bf16.vlgmr.msra.gmra.mxu0 %v4681_v27  ;;  %2053 = vmatpush.bf16.msra.mxu3 %v3288_v45  ;;  %v3257_v25 = vld [vmem:[%s5250_s3 + $0x390] sm:$0xf0] }
  0xbd   : > { %v1069_v39 = vpop.f32.mrf.mxu3  ;;  %2092 = vmatpush.bf16.msrb.mxu2 %v3164_v47 }
  0xbe   : > { %2069 = vmatpush.bf16.msrb.mxu0 %v2860_v54  ;;  %v3272_v54 = vor.u32 %v3567_v50, %v3271_v49  ;;  %v3456_v39 = vld [vmem:[%s5250_s3 + $0x34] sm:$0xf0]  ;;  %v2929_v49 = vld [vmem:[%s5250_s3 + $0xf8] sm:$0xf0]  ;;  %v3191_v50 = vld [vmem:[%s5250_s3 + $0x300] sm:$0xf] }
  0xbf   : > { %2082 = vmatpush.bf16.msrb.mxu1 %v2988_v63  ;;  %v3529_v63 = vld [vmem:[%s5250_s3 + $0x284] sm:$0xf]  ;;  %v2832_v47 = vor.u32 %v3456_v39, %v2831_v38  ;;  %v3462_v38 = vld [vmem:[%s5250_s3 + $0x6c] sm:$0xf] }
  0xc0   : > { %2054 = vmatpush.bf16.msra.mxu3 %v3272_v54  ;;  %v3132_v5 = vor.u32 %v3529_v63, %v3129_v4  ;;  %v3192_v54 = vor.u32 %v3547_v51, %v3191_v50  ;;  %v3573_v63 = vld [vmem:[%s5250_s3 + $0x3e4] sm:$0xf]  ;;  %v2816_v4 = vor.u32 %v3452_v44, %v2815_v61  ;;  %v2959_v50 = vld [vmem:[%s5250_s3 + $0x128] sm:$0xf]  ;;  %v3488_v51 = vld [vmem:[%s5250_s3 + $0x134] sm:$0xf0] }
  0xc1   : > { %2093 = vmatpush.bf16.msrb.mxu2 %v3148_v56  ;;  %v3065_v56 = vld [vmem:[%s5250_s3 + $0x210] sm:$0xf0]  ;;  %v3557_v39 = vld [vmem:[%s5250_s3 + $0x364] sm:$0xf] }
  0xc2   : > { %2070 = vmatpush.bf16.msrb.mxu0 %v2844_v7  ;;  %v2880_v7 = vor.u32 %v3468_v2, %v2879_v1  ;;  %v3068_v62 = vor.u32 %v3513_v55, %v3065_v56  ;;  %v3305_v1 = vld [vmem:[%s5250_s3 + $0x3f0] sm:$0xf0]  ;;  %v2960_v56 = vor.u32 %v3488_v51, %v2959_v50  ;;  %v3490_v50 = vld [vmem:[%s5250_s3 + $0x14c] sm:$0xf]  ;;  %v2977_v51 = vld [vmem:[%s5250_s3 + $0x158] sm:$0xf0] }
  0xc3   : > { %2083 = vmatpush.bf16.msrb.mxu1 %v2972_v14  ;;  %v3113_v14 = vld [vmem:[%s5250_s3 + $0x270] sm:$0xf0] }
  0xc4   : > { %2055 = vmatpush.bf16.msra.mxu3 %v3256_v3  ;;  %v3116_v16 = vor.u32 %v3525_v10, %v3113_v14  ;;  %v3308_v3 = vor.u32 %v3573_v63, %v3305_v1  ;;  %v3289_v10 = vld [vmem:[%s5250_s3 + $0x3d0] sm:$0xf0] }
  0xc5   : > { %2094 = vmatpush.bf16.msrb.mxu2 %v3132_v5  ;;  %v3292_v14 = vor.u32 %v3569_v9, %v3289_v10  ;;  %v3209_v63 = vld [vmem:[%s5250_s3 + $0x330] sm:$0xf0] }
  0xc6   : > { %2071 = vmatpush.bf16.msrb.mxu0 %v2828_v22  ;;  %v3521_v22 = vld [vmem:[%s5250_s3 + $0x244] sm:$0xf] }
  0xc7   : > { %2084 = vmatpush.bf16.msrb.mxu1 %v2956_v28  ;;  %v3097_v28 = vld [vmem:[%s5250_s3 + $0x250] sm:$0xf0] }
  0xc8   : > { %2056 = vmatpush.bf16.msra.mxu3 %v3240_v13  ;;  %v3100_v29 = vor.u32 %v3521_v22, %v3097_v28  ;;  %v3504_v13 = vld [vmem:[%s5250_s3 + $0x1b4] sm:$0xf0] }
  0xc9   : > { %2095 = vmatpush.bf16.msrb.mxu2 %v3116_v16  ;;  %v3273_v16 = vld [vmem:[%s5250_s3 + $0x3b0] sm:$0xf0]  ;;  %v3500_v22 = vld [vmem:[%s5250_s3 + $0x194] sm:$0xf0] }
  0xca   : > { %2072 = vmatpush.bf16.msrb.mxu0 %v2812_v60  ;;  %v1080_v15 = vpop.f32.mrf.mxu0  ;;  %v3081_v60 = vld [vmem:[%s5250_s3 + $0x230] sm:$0xf0]  ;;  %v3008_v28 = vor.u32 %v3500_v22, %v3007_v21  ;;  %v2817_v21 = vld [vmem:[%s5250_s3 + $0x18] sm:$0xf0] }
  0xcb   : > { %2085 = vmatpush.bf16.msrb.mxu1 %v2940_v42  ;;  %v1081_v17 = vadd.f32 %v1080_v15, %v358_v6  ;;  %v1093_v18 = vpop.f32.mrf.mxu1  ;;  %v3055_v42 = vld [vmem:[%s5250_s3 + $0x1e8] sm:$0xf]  ;;  %v3084_v43 = vor.u32 %v3517_v37, %v3081_v60  ;;  %v3565_v15 = vld [vmem:[%s5250_s3 + $0x3a4] sm:$0xf]  ;;  %v2865_v60 = vld [vmem:[%s5250_s3 + $0x78] sm:$0xf0] }
  0xcc   : > { %2057 = vmatpush.bf16.msra.mxu3 %v3224_v26  ;;  %v3056_v52 = vor.u32 %v3512_v59, %v3055_v42  ;;  %v3492_v42 = vld [vmem:[%s5250_s3 + $0x154] sm:$0xf0]  ;;  %v2868_v44 = vor.u32 %v3462_v38, %v2865_v60  ;;  %v3151_v38 = vld [vmem:[%s5250_s3 + $0x2a8] sm:$0xf] }
  0xcd   : > { %2073 = vmatmul.bf16.vlgmr.msrb.gmra.mxu0 %v4681_v27  ;;  %v1094_v23 = vadd.f32 %v1093_v18, %v1081_v17  ;;  %2096 = vmatpush.bf16.msrb.mxu2 %v3100_v29  ;;  %v2916_v17 = vor.u32 %v3474_v8, %v2913_v11  ;;  %v3024_v18 = vor.u32 %v3504_v13, %v3023_v12  ;;  %v3466_v29 = vld [vmem:[%s5250_s3 + $0x8c] sm:$0xf]  ;;  %v3057_v8 = vld [vmem:[%s5250_s3 + $0x1f8] sm:$0xf0]  ;;  %v3183_v11 = vld [vmem:[%s5250_s3 + $0x2e8] sm:$0xf] }
  0xce   : > { %2117 = vmatpush.bf16.msra.mxu0 %v2928_v41  ;;  %v3544_v12 = vld [vmem:[%s5250_s3 + $0x2f4] sm:$0xf0] }
  0xcf   : > { %v3184_v22 = vor.u32 %v3544_v12, %v3183_v11  ;;  %v3071_v12 = vld [vmem:[%s5250_s3 + $0x208] sm:$0xf] }
  0xd0   : > { %2058 = vmatpush.bf16.msra.mxu3 %v3208_v40  ;;  %v3241_v40 = vld [vmem:[%s5250_s3 + $0x370] sm:$0xf0] }
  0xd1   : > { %2097 = vmatpush.bf16.msrb.mxu2 %v3084_v43  ;;  %v3244_v59 = vor.u32 %v3557_v39, %v3241_v40  ;;  %v3536_v39 = vld [vmem:[%s5250_s3 + $0x2b4] sm:$0xf0] }
  0xd2   : > { %2118 = vmatpush.bf16.msra.mxu0 %v2912_v48  ;;  %v1106_v30 = vpop.f32.mrf.mxu2  ;;  %v1082_v0 = vpop.f32.mrf.mxu0  ;;  %v3478_v48 = vld [vmem:[%s5250_s3 + $0xec] sm:$0xf]  ;;  %v3152_v60 = vor.u32 %v3536_v39, %v3151_v38  ;;  %v3153_v38 = vld [vmem:[%s5250_s3 + $0x2b8] sm:$0xf0]  ;;  %v3279_v39 = vld [vmem:[%s5250_s3 + $0x3a8] sm:$0xf] }
  0xd3   : > { %v1107_v31 = vadd.f32 %v1106_v30, %v1094_v23  ;;  %v1119_v32 = vpop.f32.mrf.mxu3  ;;  %v1095_v45 = vpop.f32.mrf.mxu1  ;;  %v2932_v6 = vor.u32 %v3478_v48, %v2929_v49  ;;  %v3276_v23 = vor.u32 %v3565_v15, %v3273_v16  ;;  %v2881_v30 = vld [vmem:[%s5250_s3 + $0x98] sm:$0xf0]  ;;  %v3225_v48 = vld [vmem:[%s5250_s3 + $0x350] sm:$0xf0]  ;;  %v3545_v16 = vld [vmem:[%s5250_s3 + $0x304] sm:$0xf] }
  0xd4   : > { %2059 = vmatpush.bf16.msra.mxu3 %v3192_v54  ;;  %v2884_v36 = vor.u32 %v3466_v29, %v2881_v30  ;;  %v2849_v49 = vld [vmem:[%s5250_s3 + $0x58] sm:$0xf0]  ;;  %v3540_v29 = vld [vmem:[%s5250_s3 + $0x2d4] sm:$0xf0] }
  0xd5   : > { %v1120_v41 = vadd.f32 %v1119_v32, %v1107_v31  ;;  %2098 = vmatpush.bf16.msrb.mxu2 %v3068_v62  ;;  %v2991_v31 = vld [vmem:[%s5250_s3 + $0x168] sm:$0xf]  ;;  %v3496_v32 = vld [vmem:[%s5250_s3 + $0x174] sm:$0xf0]  ;;  %v3549_v62 = vld [vmem:[%s5250_s3 + $0x324] sm:$0xf] }
  0xd6   : > { %2119 = vmatpush.bf16.msra.mxu0 %v2896_v57  ;;  %v2992_v37 = vor.u32 %v3496_v32, %v2991_v31 }
  0xd7   : > { %v1228_v46 = vmax.f32 %v1120_v41, 0.0  ;;  %v2975_v41 = vld [vmem:[%s5250_s3 + $0x148] sm:$0xf] }
  0xd8   : > { %2104 = vmatpush.bf16.msrb.mxu3 %v3308_v3  ;;  %v2976_v45 = vor.u32 %v3492_v42, %v2975_v41  ;;  %v2833_v3 = vld [vmem:[%s5250_s3 + $0x38] sm:$0xf0]  ;;  %v3498_v41 = vld [vmem:[%s5250_s3 + $0x18c] sm:$0xf] }
  0xd9   : > { %v4845_v57 = vpack.c.bf16 %v1228_v46, %v1228_v46  ;;  %v3458_v46 = vld [vmem:[%s5250_s3 + $0x4c] sm:$0xf]  ;;  %v3009_v42 = vld [vmem:[%s5250_s3 + $0x198] sm:$0xf0] }
  0xda   : > { %2120 = vmatpush.bf16.msra.mxu0 %v2880_v7  ;;  %v1108_v2 = vpop.f32.mrf.mxu2  ;;  %v3040_v7 = vor.u32 %v3508_v58, %v3039_v53  ;;  %v2852_v55 = vor.u32 %v3458_v46, %v2849_v49  ;;  %v3454_v58 = vld [vmem:[%s5250_s3 + $0x2c] sm:$0xf]  ;;  %v3528_v46 = vld [vmem:[%s5250_s3 + $0x274] sm:$0xf0] }
  0xdb   : > { %2034 = vmatmul.bf16.vlgmr.msra.gmra.mxu1 %v4845_v57  ;;  %v1121_v5 = vpop.f32.mrf.mxu3  ;;  %v2836_v13 = vor.u32 %v3454_v58, %v2833_v3  ;;  %v3520_v3 = vld [vmem:[%s5250_s3 + $0x234] sm:$0xf0] }
  0xdc   : > { %2130 = vmatpush.bf16.msra.mxu1 %v3056_v52  ;;  %2105 = vmatpush.bf16.msrb.mxu3 %v3292_v14  ;;  %v3484_v5 = vld [vmem:[%s5250_s3 + $0x114] sm:$0xf0] }
  0xde   : > { %2121 = vmatpush.bf16.msra.mxu0 %v2864_v19  ;;  %v3470_v19 = vld [vmem:[%s5250_s3 + $0xac] sm:$0xf] }
  0xdf   : > { %v2900_v26 = vor.u32 %v3470_v19, %v2897_v20  ;;  %v3450_v20 = vld [vmem:[%s5250_s3 + $0xc] sm:$0xf] }
  0xe0   : > { %2131 = vmatpush.bf16.msra.mxu1 %v3040_v7  ;;  %2106 = vmatpush.bf16.msrb.mxu3 %v3276_v23  ;;  %v3510_v7 = vld [vmem:[%s5250_s3 + $0x1ec] sm:$0xf]  ;;  %v2820_v30 = vor.u32 %v3450_v20, %v2817_v21  ;;  %v3576_v20 = vld [vmem:[%s5250_s3 + $0x3f4] sm:$0xf0] }
  0xe1   : > { %v3060_v19 = vor.u32 %v3510_v7, %v3057_v8  ;;  %v3506_v23 = vld [vmem:[%s5250_s3 + $0x1cc] sm:$0xf]  ;;  %v2945_v8 = vld [vmem:[%s5250_s3 + $0x118] sm:$0xf0] }
  0xe2   : > { %2122 = vmatpush.bf16.msra.mxu0 %v2848_v33  ;;  %v3260_v33 = vor.u32 %v3561_v24, %v3257_v25  ;;  %v3041_v24 = vld [vmem:[%s5250_s3 + $0x1d8] sm:$0xf0]  ;;  %v3482_v7 = vld [vmem:[%s5250_s3 + $0x10c] sm:$0xf] }
  0xe3   : > { %v3044_v32 = vor.u32 %v3506_v23, %v3041_v24 }
  0xe4   : > { %2132 = vmatpush.bf16.msra.mxu1 %v3024_v18  ;;  %2107 = vmatpush.bf16.msrb.mxu3 %v3260_v33 }
  0xe6   : > { %2123 = vmatpush.bf16.msra.mxu0 %v2832_v47  ;;  %v3553_v47 = vld [vmem:[%s5250_s3 + $0x344] sm:$0xf] }
  0xe7   : > { %v3228_v52 = vor.u32 %v3553_v47, %v3225_v48  ;;  %v360_v47 = vperm.slane %v4588_v35, 3  ;;  %v3524_v35 = vld [vmem:[%s5250_s3 + $0x254] sm:$0xf0] }
  0xe8   : > { %2133 = vmatpush.bf16.msra.mxu1 %v3008_v28  ;;  %2108 = vmatpush.bf16.msrb.mxu3 %v3244_v59  ;;  %v3167_v28 = vld [vmem:[%s5250_s3 + $0x2c8] sm:$0xf] }
  0xe9   : > { %v3135_v59 = vld [vmem:[%s5250_s3 + $0x288] sm:$0xf] }
  0xea   : > { %2124 = vmatpush.bf16.msra.mxu0 %v2816_v4  ;;  %v1132_v0 = vpop.f32.mrf.mxu0  ;;  %v2943_v4 = vld [vmem:[%s5250_s3 + $0x108] sm:$0xf] }
  0xeb   : > { %2086 = vmatmul.bf16.vlgmr.msrb.gmra.mxu1 %v4845_v57  ;;  %v1133_v43 = vadd.f32 %v1132_v0, %v359_v34  ;;  %v1145_v61 = vpop.f32.mrf.mxu1  ;;  %v2944_v14 = vor.u32 %v3484_v5, %v2943_v4  ;;  %v3168_v34 = vor.u32 %v3540_v29, %v3167_v28  ;;  %v3532_v0 = vld [vmem:[%s5250_s3 + $0x294] sm:$0xf0]  ;;  %v3169_v28 = vld [vmem:[%s5250_s3 + $0x2d8] sm:$0xf0] }
  0xec   : > { %2134 = vmatpush.bf16.msra.mxu1 %v2992_v37  ;;  %2109 = vmatpush.bf16.msrb.mxu3 %v3228_v52  ;;  %v3025_v37 = vld [vmem:[%s5250_s3 + $0x1b8] sm:$0xf0] }
  0xed   : > { %2125 = vmatmul.bf16.vlgmr.msra.gmra.mxu0 %v4681_v27  ;;  %v1146_v53 = vadd.f32 %v1145_v61, %v1133_v43  ;;  %v3012_v43 = vor.u32 %v3498_v41, %v3009_v42  ;;  %v3136_v61 = vor.u32 %v3532_v0, %v3135_v59  ;;  %v3530_v41 = vld [vmem:[%s5250_s3 + $0x28c] sm:$0xf]  ;;  %v3137_v42 = vld [vmem:[%s5250_s3 + $0x298] sm:$0xf0]  ;;  %v3263_v59 = vld [vmem:[%s5250_s3 + $0x388] sm:$0xf] }
  0xee   : > { %2169 = vmatpush.bf16.msrb.mxu0 %v2932_v6  ;;  %v3212_v6 = vor.u32 %v3549_v62, %v3209_v63  ;;  %v3486_v62 = vld [vmem:[%s5250_s3 + $0x12c] sm:$0xf]  ;;  %v2961_v63 = vld [vmem:[%s5250_s3 + $0x138] sm:$0xf0]  ;;  %v3564_v0 = vld [vmem:[%s5250_s3 + $0x394] sm:$0xf0] }
  0xef   : > { %v2964_v4 = vor.u32 %v3486_v62, %v2961_v63 }
  0xf0   : > { %2135 = vmatpush.bf16.msra.mxu1 %v2976_v45  ;;  %2110 = vmatpush.bf16.msrb.mxu3 %v3212_v6  ;;  %v3119_v45 = vld [vmem:[%s5250_s3 + $0x268] sm:$0xf] }
  0xf1   : > { %v3120_v49 = vor.u32 %v3528_v46, %v3119_v45  ;;  %v3247_v45 = vld [vmem:[%s5250_s3 + $0x368] sm:$0xf]  ;;  %v3560_v46 = vld [vmem:[%s5250_s3 + $0x374] sm:$0xf0] }
  0xf2   : > { %2170 = vmatpush.bf16.msrb.mxu0 %v2916_v17  ;;  %v1158_v54 = vpop.f32.mrf.mxu2  ;;  %v1134_v10 = vpop.f32.mrf.mxu0  ;;  %v3193_v17 = vld [vmem:[%s5250_s3 + $0x310] sm:$0xf0] }
  0xf3   : > { %v1159_v1 = vadd.f32 %v1158_v54, %v1146_v53  ;;  %v1171_v2 = vpop.f32.mrf.mxu3  ;;  %v1147_v15 = vpop.f32.mrf.mxu1  ;;  %v3196_v25 = vor.u32 %v3545_v16, %v3193_v17  ;;  %v3103_v53 = vld [vmem:[%s5250_s3 + $0x248] sm:$0xf]  ;;  %v3185_v16 = vld [vmem:[%s5250_s3 + $0x2f8] sm:$0xf0] }
  0xf4   : > { %2136 = vmatpush.bf16.msra.mxu1 %v2960_v56  ;;  %v2980_v56 = vor.u32 %v3490_v50, %v2977_v51  ;;  %v3104_v58 = vor.u32 %v3524_v35, %v3103_v53  ;;  %v3542_v15 = vld [vmem:[%s5250_s3 + $0x2ec] sm:$0xf]  ;;  %v3105_v50 = vld [vmem:[%s5250_s3 + $0x258] sm:$0xf0]  ;;  %v3231_v51 = vld [vmem:[%s5250_s3 + $0x348] sm:$0xf] }
  0xf5   : > { %v1172_v9 = vadd.f32 %v1171_v2, %v1159_v1  ;;  %2111 = vmatpush.bf16.msrb.mxu3 %v3196_v25  ;;  %v3087_v2 = vld [vmem:[%s5250_s3 + $0x228] sm:$0xf]  ;;  %v3188_v23 = vor.u32 %v3542_v15, %v3185_v16  ;;  %v3538_v25 = vld [vmem:[%s5250_s3 + $0x2cc] sm:$0xf] }
  0xf6   : > { %2171 = vmatpush.bf16.msrb.mxu0 %v2900_v26  ;;  %v3088_v6 = vor.u32 %v3520_v3, %v3087_v2  ;;  %v3073_v2 = vld [vmem:[%s5250_s3 + $0x218] sm:$0xf0]  ;;  %v3199_v3 = vld [vmem:[%s5250_s3 + $0x308] sm:$0xf] }
  0xf7   : > { %v1229_v18 = vmax.f32 %v1172_v9, 0.0 }
  0xf8   : > { %2137 = vmatpush.bf16.msra.mxu1 %v2944_v14 }
  0xf9   : > { %v4998_v26 = vpack.c.bf16 %v1229_v18, %v1229_v18  ;;  %v2948_v18 = vor.u32 %v3482_v7, %v2945_v8 }
  0xfa   : > { %2172 = vmatpush.bf16.msrb.mxu0 %v2884_v36  ;;  %v1160_v31 = vpop.f32.mrf.mxu2  ;;  %v3502_v36 = vld [vmem:[%s5250_s3 + $0x1ac] sm:$0xf] }
  0xfb   : > { %2047 = vmatmul.bf16.vlgmr.msra.gmra.mxu2 %v4998_v26  ;;  %v1173_v33 = vpop.f32.mrf.mxu3  ;;  %2138 = vmatmul.bf16.vlgmr.msra.gmra.mxu1 %v4845_v57  ;;  %v3028_v40 = vor.u32 %v3502_v36, %v3025_v37  ;;  %v3572_v31 = vld [vmem:[%s5250_s3 + $0x3d4] sm:$0xf0]  ;;  %v3534_v37 = vld [vmem:[%s5250_s3 + $0x2ac] sm:$0xf] }
  0xfc   : > { %2182 = vmatpush.bf16.msrb.mxu1 %v3060_v19  ;;  %2143 = vmatpush.bf16.msra.mxu2 %v3184_v22  ;;  %v3311_v19 = vld [vmem:[%s5250_s3 + $0x3e8] sm:$0xf] }
  0xfd   : > { %v3312_v24 = vor.u32 %v3576_v20, %v3311_v19  ;;  %v3558_v19 = vld [vmem:[%s5250_s3 + $0x36c] sm:$0xf]  ;;  %v3249_v20 = vld [vmem:[%s5250_s3 + $0x378] sm:$0xf0] }
  0xfe   : > { %2173 = vmatpush.bf16.msrb.mxu0 %v2868_v44  ;;  %v3494_v44 = vld [vmem:[%s5250_s3 + $0x16c] sm:$0xf] }
 0x100   : > { %2183 = vmatpush.bf16.msrb.mxu1 %v3044_v32  ;;  %2144 = vmatpush.bf16.msra.mxu2 %v3168_v34  ;;  %v3172_v34 = vor.u32 %v3538_v25, %v3169_v28  ;;  %v3550_v28 = vld [vmem:[%s5250_s3 + $0x32c] sm:$0xf] }
 0x102   : > { %2174 = vmatpush.bf16.msrb.mxu0 %v2852_v55 }
 0x104   : > { %2184 = vmatpush.bf16.msrb.mxu1 %v3028_v40  ;;  %2145 = vmatpush.bf16.msra.mxu2 %v3152_v60  ;;  %v3568_v40 = vld [vmem:[%s5250_s3 + $0x3b4] sm:$0xf0] }
 0x105   : > { %v3280_v60 = vor.u32 %v3568_v40, %v3279_v39 }
 0x106   : > { %2175 = vmatpush.bf16.msrb.mxu0 %v2836_v13  ;;  %v3516_v13 = vld [vmem:[%s5250_s3 + $0x214] sm:$0xf0] }
 0x107   : > { %v3072_v21 = vor.u32 %v3516_v13, %v3071_v12  ;;  %v3566_v13 = vld [vmem:[%s5250_s3 + $0x3ac] sm:$0xf] }
 0x108   : > { %2185 = vmatpush.bf16.msrb.mxu1 %v3012_v43  ;;  %2146 = vmatpush.bf16.msra.mxu2 %v3136_v61  ;;  %v3140_v43 = vor.u32 %v3530_v41, %v3137_v42  ;;  %v3264_v61 = vor.u32 %v3564_v0, %v3263_v59 }
 0x10a   : > { %2176 = vmatpush.bf16.msrb.mxu0 %v2820_v30  ;;  %v1184_v52 = vpop.f32.mrf.mxu0  ;;  %v3295_v30 = vld [vmem:[%s5250_s3 + $0x3c8] sm:$0xf] }
 0x10b   : > { %v1185_v54 = vadd.f32 %v1184_v52, %v360_v47  ;;  %v1197_v55 = vpop.f32.mrf.mxu1  ;;  %2099 = vmatmul.bf16.vlgmr.msrb.gmra.mxu2 %v4998_v26  ;;  %v3296_v36 = vor.u32 %v3572_v31, %v3295_v30  ;;  %v3556_v52 = vld [vmem:[%s5250_s3 + $0x354] sm:$0xf0]  ;;  %v3217_v30 = vld [vmem:[%s5250_s3 + $0x338] sm:$0xf0] }
 0x10c   : > { %2147 = vmatpush.bf16.msra.mxu2 %v3120_v49  ;;  %v3522_v49 = vld [vmem:[%s5250_s3 + $0x24c] sm:$0xf]  ;;  %v3232_v35 = vor.u32 %v3556_v52, %v3231_v51  ;;  %v3220_v31 = vor.u32 %v3550_v28, %v3217_v30 }
 0x10d   : > { %2177 = vmatmul.bf16.vlgmr.msrb.gmra.mxu0 %v4681_v27  ;;  %v2993_v27 = vld [vmem:[%s5250_s3 + $0x178] sm:$0xf0]  ;;  %v1198_v1 = vadd.f32 %v1197_v55, %v1185_v54  ;;  %v3108_v53 = vor.u32 %v3522_v49, %v3105_v50  ;;  %v3518_v54 = vld [vmem:[%s5250_s3 + $0x22c] sm:$0xf] }
 0x10e   : > { %v2996_v48 = vor.u32 %v3494_v44, %v2993_v27  ;;  %v3526_v44 = vld [vmem:[%s5250_s3 + $0x26c] sm:$0xf]  ;;  %v3121_v27 = vld [vmem:[%s5250_s3 + $0x278] sm:$0xf0] }
 0x10f   : > { %v3124_v47 = vor.u32 %v3526_v44, %v3121_v27  ;;  %v3089_v55 = vld [vmem:[%s5250_s3 + $0x238] sm:$0xf0] }
 0x110   : > { %2186 = vmatpush.bf16.msrb.mxu1 %v2996_v48  ;;  %2148 = vmatpush.bf16.msra.mxu2 %v3104_v58  ;;  %v3248_v48 = vor.u32 %v3560_v46, %v3247_v45  ;;  %v3552_v58 = vld [vmem:[%s5250_s3 + $0x334] sm:$0xf0]  ;;  %v3092_v62 = vor.u32 %v3518_v54, %v3089_v55 }
 0x112   : > { %v1210_v5 = vpop.f32.mrf.mxu2  ;;  %v1186_v11 = vpop.f32.mrf.mxu0 }
 0x113   : > { %v1211_v9 = vadd.f32 %v1210_v5, %v1198_v1  ;;  %v1223_v10 = vpop.f32.mrf.mxu3  ;;  %v1199_v14 = vpop.f32.mrf.mxu1  ;;  %v3514_v1 = vld [vmem:[%s5250_s3 + $0x20c] sm:$0xf]  ;;  %v3297_v11 = vld [vmem:[%s5250_s3 + $0x3d8] sm:$0xf0] }
 0x114   : > { %2187 = vmatpush.bf16.msrb.mxu1 %v2980_v56  ;;  %2149 = vmatpush.bf16.msra.mxu2 %v3088_v6  ;;  %v3215_v56 = vld [vmem:[%s5250_s3 + $0x328] sm:$0xf]  ;;  %v3574_v5 = vld [vmem:[%s5250_s3 + $0x3ec] sm:$0xf]  ;;  %v3313_v6 = vld [vmem:[%s5250_s3 + $0x3f8] sm:$0xf0]  ;;  %v3076_v7 = vor.u32 %v3514_v1, %v3073_v2 }
 0x115   : > { %v1224_v17 = vadd.f32 %v1223_v10, %v1211_v9  ;;  %v3216_v63 = vor.u32 %v3552_v58, %v3215_v56  ;;  %v3316_v9 = vor.u32 %v3574_v5, %v3313_v6  ;;  %v3570_v10 = vld [vmem:[%s5250_s3 + $0x3cc] sm:$0xf]  ;;  %v3281_v14 = vld [vmem:[%s5250_s3 + $0x3b8] sm:$0xf0] }
 0x116   : > { %v3300_v12 = vor.u32 %v3570_v10, %v3297_v11  ;;  %v3284_v15 = vor.u32 %v3566_v13, %v3281_v14 }
 0x117   : > { %v1230_v22 = vmax.f32 %v1224_v17, 0.0  ;;  %v3562_v17 = vld [vmem:[%s5250_s3 + $0x38c] sm:$0xf] }
 0x118   : > { %2188 = vmatpush.bf16.msrb.mxu1 %v2964_v4  ;;  %2150 = vmatpush.bf16.msra.mxu2 %v3072_v21  ;;  %v3548_v4 = vld [vmem:[%s5250_s3 + $0x314] sm:$0xf0]  ;;  %v3252_v21 = vor.u32 %v3558_v19, %v3249_v20 }
 0x119   : > { %v5101_v29 = vpack.c.bf16 %v1230_v22, %v1230_v22  ;;  %v3200_v8 = vor.u32 %v3548_v4, %v3199_v3 }
 0x11a   : > { %v1212_v32 = vpop.f32.mrf.mxu2 }
 0x11b   : > { %v1225_v33 = vpop.f32.mrf.mxu3  ;;  %2060 = vmatmul.bf16.vlgmr.msra.gmra.mxu3 %v5101_v29  ;;  %2151 = vmatmul.bf16.vlgmr.msra.gmra.mxu2 %v4998_v26 }
 0x11c   : > { %2189 = vmatpush.bf16.msrb.mxu1 %v2948_v18  ;;  %2195 = vmatpush.bf16.msrb.mxu2 %v3188_v23  ;;  %v3554_v23 = vld [vmem:[%s5250_s3 + $0x34c] sm:$0xf] }
 0x11d   : > { %2156 = vmatpush.bf16.msra.mxu3 %v3312_v24  ;;  %v3233_v24 = vld [vmem:[%s5250_s3 + $0x358] sm:$0xf0]  ;;  %v3546_v33 = vld [vmem:[%s5250_s3 + $0x30c] sm:$0xf] }
 0x11e   : > { %v3236_v25 = vor.u32 %v3554_v23, %v3233_v24 }
 0x11f   : > { %2190 = vmatmul.bf16.vlgmr.msrb.gmra.mxu1 %v4845_v57  ;;  %v3156_v57 = vor.u32 %v3534_v37, %v3153_v38  ;;  %v1363_v37 = vld [vmem:[%s5251_s4] sm:$0xf] }
 0x120   : > { %2196 = vmatpush.bf16.msrb.mxu2 %v3172_v34  ;;  %v3201_v34 = vld [vmem:[%s5250_s3 + $0x318] sm:$0xf0]  ;;  %v1365_v38 = vperm.slane %v1363_v37, 0  ;;  %v1366_v55 = vperm.slane %v1363_v37, 1  ;;  %v1368_v14 = vperm.slane %v1363_v37, 3 }
 0x121   : > { %2157 = vmatpush.bf16.msra.mxu3 %v3296_v36  ;;  %v3204_v36 = vor.u32 %v3546_v33, %v3201_v34 }
 0x124   : > { %2197 = vmatpush.bf16.msrb.mxu2 %v3156_v57 }
 0x125   : > { %2158 = vmatpush.bf16.msra.mxu3 %v3280_v60 }
 0x128   : > { %2198 = vmatpush.bf16.msrb.mxu2 %v3140_v43 }
 0x129   : > { %2159 = vmatpush.bf16.msra.mxu3 %v3264_v61  ;;  %v1367_v61 = vperm.slane %v1363_v37, 2 }
 0x12b   : > { %2112 = vmatmul.bf16.vlgmr.msrb.gmra.mxu3 %v5101_v29 }
 0x12c   : > { %2199 = vmatpush.bf16.msrb.mxu2 %v3124_v47 }
 0x12d   : > { %2160 = vmatpush.bf16.msra.mxu3 %v3248_v48 }
 0x130   : > { %2200 = vmatpush.bf16.msrb.mxu2 %v3108_v53 }
 0x131   : > { %2161 = vmatpush.bf16.msra.mxu3 %v3232_v35 }
 0x134   : > { %2201 = vmatpush.bf16.msrb.mxu2 %v3092_v62 }
 0x135   : > { %2162 = vmatpush.bf16.msra.mxu3 %v3216_v63 }
 0x138   : > { %2202 = vmatpush.bf16.msrb.mxu2 %v3076_v7 }
 0x139   : > { %2163 = vmatpush.bf16.msra.mxu3 %v3200_v8  ;;  %v2022_v16 = vpop.f32.mrf.mxu0 }
 0x13a   : > { %v2023_v40 = vadd.f32 %v2022_v16, %v1365_v38 }
 0x13b   : > { %2203 = vmatmul.bf16.vlgmr.msrb.gmra.mxu2 %v4998_v26  ;;  %v3265_v26 = vld [vmem:[%s5250_s3 + $0x398] sm:$0xf0] }
 0x13c   : > { %2164 = vmatmul.bf16.vlgmr.msra.gmra.mxu3 %v5101_v29  ;;  %v3268_v18 = vor.u32 %v3562_v17, %v3265_v26 }
 0x13d   : > { %2208 = vmatpush.bf16.msrb.mxu3 %v3316_v9 }
 0x141   : > { %2209 = vmatpush.bf16.msrb.mxu3 %v3300_v12  ;;  %v2024_v22 = vpop.f32.mrf.mxu0 }
 0x145   : > { %2210 = vmatpush.bf16.msrb.mxu3 %v3284_v15 }
 0x149   : > { %2211 = vmatpush.bf16.msrb.mxu3 %v3268_v18 }
 0x14a   : > { %v2074_v32 = vpop.f32.mrf.mxu0 }
 0x14b   : > { %v2075_v62 = vadd.f32 %v2074_v32, %v1366_v55 }
 0x14d   : > { %2212 = vmatpush.bf16.msrb.mxu3 %v3252_v21 }
 0x151   : > { %2213 = vmatpush.bf16.msrb.mxu3 %v3236_v25 }
 0x152   : > { %v2076_v39 = vpop.f32.mrf.mxu0 }
 0x155   : > { %2214 = vmatpush.bf16.msrb.mxu3 %v3220_v31 }
 0x158   : > { %v2035_v57 = vpop.f32.mrf.mxu1 }
 0x159   : > { %2215 = vmatpush.bf16.msrb.mxu3 %v3204_v36  ;;  %v2036_v60 = vadd.f32 %v2035_v57, %v2023_v40 }
 0x15c   : > { %2216 = vmatmul.bf16.vlgmr.msrb.gmra.mxu3 %v5101_v29 }
 0x160   : > { %v2037_v42 = vpop.f32.mrf.mxu1 }
 0x168   : > { %v2087_v0 = vpop.f32.mrf.mxu1 }
 0x169   : > { %v2088_v63 = vadd.f32 %v2087_v0, %v2075_v62 }
 0x16a   : > { %v2126_v41 = vpop.f32.mrf.mxu0 }
 0x16b   : > { %v2127_v44 = vadd.f32 %v2126_v41, %v1367_v61 }
 0x170   : > { %v2089_v43 = vpop.f32.mrf.mxu1 }
 0x172   : > { %v2128_v59 = vpop.f32.mrf.mxu0 }
 0x178   : > { %v2139_v27 = vpop.f32.mrf.mxu1 }
 0x179   : > { %v2140_v45 = vadd.f32 %v2139_v27, %v2127_v44 }
 0x17e   : > { %v2048_v47 = vpop.f32.mrf.mxu2 }
 0x17f   : > { %v2049_v1 = vadd.f32 %v2048_v47, %v2036_v60 }
 0x180   : > { %v2141_v48 = vpop.f32.mrf.mxu1 }
 0x186   : > { %v2050_v50 = vpop.f32.mrf.mxu2 }
 0x18a   : > { %v2178_v46 = vpop.f32.mrf.mxu0 }
 0x18b   : > { %v2179_v15 = vadd.f32 %v2178_v46, %v1368_v14 }
 0x18e   : > { %v2100_v51 = vpop.f32.mrf.mxu2 }
 0x18f   : > { %v2101_v2 = vadd.f32 %v2100_v51, %v2088_v63 }
 0x192   : > { %v2180_v49 = vpop.f32.mrf.mxu0 }
 0x196   : > { %v2102_v52 = vpop.f32.mrf.mxu2 }
 0x19c   : > { %v2191_v29 = vpop.f32.mrf.mxu1 }
 0x19d   : > { %v2192_v16 = vadd.f32 %v2191_v29, %v2179_v15 }
 0x19e   : > { %v2061_v53 = vpop.f32.mrf.mxu3  ;;  %v2152_v35 = vpop.f32.mrf.mxu2 }
 0x19f   : > { %v2062_v3 = vadd.f32 %v2061_v53, %v2049_v1  ;;  %v2153_v17 = vadd.f32 %v2152_v35, %v2140_v45 }
 0x1a1   : > { %v2221_v6 = vmax.f32 %v2062_v3, 0.0 }
 0x1a4   : > { %v2193_v54 = vpop.f32.mrf.mxu1 }
 0x1a6   : > { %v2063_v56 = vpop.f32.mrf.mxu3  ;;  %v2154_v58 = vpop.f32.mrf.mxu2 }
 0x1ae   : > { %v2113_v4 = vpop.f32.mrf.mxu3 }
 0x1af   : > { %v2114_v5 = vadd.f32 %v2113_v4, %v2101_v2 }
 0x1b1   : > { %v2222_v7 = vmax.f32 %v2114_v5, 0.0 }
 0x1b3   : > { %v2225_v8 = vpack.c.bf16 %v2222_v7, %v2221_v6 }
 0x1b5   : > { %2227 = vst [vmem:[%s224_s11] sm:$0xff] %v2225_v8 }
 0x1b6   : > { %v2115_v9 = vpop.f32.mrf.mxu3 }
 0x1be   : > { %v2204_v10 = vpop.f32.mrf.mxu2 }
 0x1bf   : > { %v2165_v11 = vpop.f32.mrf.mxu3  ;;  %v2205_v26 = vadd.f32 %v2204_v10, %v2192_v16 }
 0x1c0   : > { %v2166_v18 = vadd.f32 %v2165_v11, %v2153_v17 }
 0x1c2   : > { %v2223_v21 = vmax.f32 %v2166_v18, 0.0 }
 0x1c6   : > { %v2206_v12 = vpop.f32.mrf.mxu2 }
 0x1c7   : > { %v2167_v13 = vpop.f32.mrf.mxu3 }
 0x1df   : > { %v2217_v19 = vpop.f32.mrf.mxu3 }
 0x1e0   : > { %v2218_v20 = vadd.f32 %v2217_v19, %v2205_v26 }
 0x1e2   : > { %v2224_v22 = vmax.f32 %v2218_v20, 0.0 }
 0x1e4   : > { %v2226_v23 = vpack.c.bf16 %v2224_v22, %v2223_v21 }
 0x1e6   : > { %2228 = vst [vmem:[%s224_s11 + $0x8] sm:$0xff] %v2226_v23 }
 0x1e7   : > { %v2219_v24 = vpop.f32.mrf.mxu3 }
 0x1e8 PF: > { %s15_s18 = sadd.s32 1, %s3591_s18  }
 0x1e9   : > { %p12_p4 = scmp.ge.s32.totalorder %s15_s18, 4  }
 0x1eb   :  { %14 = sbr.rel (!%p12_p4) target bundleno = 1 (0x1), region = 70 }

// kernel: _lambda_.19
= control target key start
LH: loop header
LB: loop body
LE: loop exit
PB: predicated region body
PF: predicated region fallthrough
CT: control target
= control target key end

     0   :  { %10 = vsyncpa [#allocation3], 0  ;;  %s2060_s0 = inlined_call_operand.vmem [shape: bf16[16,512], index: 0, kind: input, shape index: {}]   ;;  %s2061_s1 = inlined_call_operand.vmem [shape: bf16[512,256], index: 1, kind: input, shape index: {}]   ;;  %s2062_s2 = inlined_call_operand.hbm [shape: f32[1,256], index: 2, kind: input, shape index: {}]   ;;  %s2063_s3 = inlined_call_operand.vmem [shape: bf16[256,128], index: 3, kind: input, shape index: {}]   ;;  %s2064_s4 = inlined_call_operand.hbm [shape: f32[1,128], index: 4, kind: input, shape index: {}]   ;;  %s2065_s5 = inlined_call_operand.vmem [shape: bf16[16,128], index: 5, kind: output, shape index: {}]  }
   0x1   :  { %11 = vsyncpa [#allocation5], 0  ;;  %s1556_s18 = smov 0  }
   0x2 LB: > { %s173_s21 = sshll.u32 %s2062_s2, 4  ;;  %s1565_s22 = sadd.s32 4294967295, %s1522_s18   ;;  %s1522_s18 = sphi %s1556_s18, %s17_s18   ;;  %s174_s21 = int_to_ptr.hbm [resolvable:$true] %s173_s21 }
   0x3   : > { %p1005_p0 = scmp.ge.s32.totalorder %s1522_s18, 1  ;;  %p158_p1 = scmp.lt.s32.totalorder %s1522_s18, 3 }
   0x4   : > { %p1433_p2 = scmp.eq.s32.totalorder %s1565_s22, 0  ;;  %s1524_s24 = smov [#allocation2]  }
   0x5   : > { %p1570_p3 = pnand %p1005_p0, %p158_p1  ;;  %s175_s25 = sshll.u32 %s1524_s24, 4  ;;  %s176_s25 = int_to_ptr.vmem [resolvable:$true] %s175_s25 }
   0x6   : > { %s188_s28 = sshll.u32 %s2064_s4, 4  ;;  %s1525_s29 = smov [#allocation4]   ;;  %s189_s28 = int_to_ptr.hbm [resolvable:$true] %s188_s28 }
   0x7   : > { %p1426_p4 = pneg %p1570_p3  ;;  %s190_s30 = sshll.u32 %s1525_s29, 4  ;;  %s191_s30 = int_to_ptr.vmem [resolvable:$true] %s190_s30 }
   0x8   : > { %211 = sbr.rel (%p1570_p3) target bundleno = 358 (0x166), region = 40 }
   0x9   : > { %p1427_p5 = pnand %p1433_p2, %p1426_p4 }
   0xb   : > { %1429 = dma.hbm_to_vmem [thread:$0]  (!%p1427_p5), %s174_s21, 32, %s176_s25, [#allocation3]  }
   0xc   : > { %1432 = dma.hbm_to_vmem [thread:$0]  (!%p1427_p5), %s189_s28, 16, %s191_s30, [#allocation5]  }
   0xd   : > { %1513 = dma.done.wait (%p1433_p2), [#allocation3], 32  }
   0xe   : > { %1515 = vsyncadd (%p1433_p2), [#allocation3], 4294967264 }
   0xf   : > { %1517 = dma.done.wait (%p1433_p2), [#allocation5], 16  }
  0x10   : > { %1519 = vsyncadd (%p1433_p2), [#allocation5], 4294967280  ;;  %v1073_v0 = vld [vmem:[%s2061_s1 + $0x70] sm:$0xf]  ;;  %v1353_v1 = vld [vmem:[%s2061_s1 + $0x74] sm:$0xf0] }
  0x11   : > { %v1137_v2 = vld [vmem:[%s2061_s1 + $0xf0] sm:$0xf]  ;;  %v1074_v3 = vor.u32 %v1353_v1, %v1073_v0  ;;  %v1369_v4 = vld [vmem:[%s2061_s1 + $0xf4] sm:$0xf0]  ;;  %v1065_v11 = vld [vmem:[%s2061_s1 + $0x60] sm:$0xf] }
  0x12   : > { %v1201_v5 = vld [vmem:[%s2061_s1 + $0x170] sm:$0xf]  ;;  %v1385_v6 = vld [vmem:[%s2061_s1 + $0x174] sm:$0xf0]  ;;  %v1138_v7 = vor.u32 %v1369_v4, %v1137_v2  ;;  %v1351_v13 = vld [vmem:[%s2061_s1 + $0x64] sm:$0xf0] }
  0x13   : > { %v1202_v8 = vor.u32 %v1385_v6, %v1201_v5  ;;  %v1265_v9 = vld [vmem:[%s2061_s1 + $0x1f0] sm:$0xf]  ;;  %v1401_v10 = vld [vmem:[%s2061_s1 + $0x1f4] sm:$0xf0]  ;;  %659 = vmatpush.bf16.msra.mxu0 %v1074_v3  ;;  %v1129_v14 = vld [vmem:[%s2061_s1 + $0xe0] sm:$0xf]  ;;  %v1066_v16 = vor.u32 %v1351_v13, %v1065_v11 }
  0x14   : > { %v1266_v12 = vor.u32 %v1401_v10, %v1265_v9  ;;  %v1367_v15 = vld [vmem:[%s2061_s1 + $0xe4] sm:$0xf0]  ;;  %672 = vmatpush.bf16.msra.mxu1 %v1138_v7  ;;  %v1193_v18 = vld [vmem:[%s2061_s1 + $0x160] sm:$0xf]  ;;  %v1057_v23 = vld [vmem:[%s2061_s1 + $0x50] sm:$0xf] }
  0x15   : > { %685 = vmatpush.bf16.msra.mxu2 %v1202_v8  ;;  %v1130_v17 = vor.u32 %v1367_v15, %v1129_v14  ;;  %v1383_v19 = vld [vmem:[%s2061_s1 + $0x164] sm:$0xf0]  ;;  %v1257_v20 = vld [vmem:[%s2061_s1 + $0x1e0] sm:$0xf]  ;;  %v1349_v24 = vld [vmem:[%s2061_s1 + $0x54] sm:$0xf0] }
  0x16   : > { %698 = vmatpush.bf16.msra.mxu3 %v1266_v12  ;;  %v1194_v21 = vor.u32 %v1383_v19, %v1193_v18  ;;  %v1399_v22 = vld [vmem:[%s2061_s1 + $0x1e4] sm:$0xf0]  ;;  %v1121_v26 = vld [vmem:[%s2061_s1 + $0xd0] sm:$0xf]  ;;  %v1365_v27 = vld [vmem:[%s2061_s1 + $0xd4] sm:$0xf0]  ;;  %v1058_v29 = vor.u32 %v1349_v24, %v1057_v23 }
  0x17   : > { %v1258_v25 = vor.u32 %v1399_v22, %v1257_v20  ;;  %v1185_v28 = vld [vmem:[%s2061_s1 + $0x150] sm:$0xf]  ;;  %660 = vmatpush.bf16.msra.mxu0 %v1066_v16  ;;  %v1381_v30 = vld [vmem:[%s2061_s1 + $0x154] sm:$0xf0]  ;;  %v1122_v33 = vor.u32 %v1365_v27, %v1121_v26  ;;  %v1049_v35 = vld [vmem:[%s2061_s1 + $0x40] sm:$0xf] }
  0x18   : > { %v1249_v31 = vld [vmem:[%s2061_s1 + $0x1d0] sm:$0xf]  ;;  %v1397_v32 = vld [vmem:[%s2061_s1 + $0x1d4] sm:$0xf0]  ;;  %673 = vmatpush.bf16.msra.mxu1 %v1130_v17  ;;  %v1186_v34 = vor.u32 %v1381_v30, %v1185_v28  ;;  %v1347_v36 = vld [vmem:[%s2061_s1 + $0x44] sm:$0xf0] }
  0x19   : > { %686 = vmatpush.bf16.msra.mxu2 %v1194_v21  ;;  %v1113_v37 = vld [vmem:[%s2061_s1 + $0xc0] sm:$0xf]  ;;  %v1250_v38 = vor.u32 %v1397_v32, %v1249_v31  ;;  %v1363_v39 = vld [vmem:[%s2061_s1 + $0xc4] sm:$0xf0]  ;;  %v1050_v44 = vor.u32 %v1347_v36, %v1049_v35  ;;  %p244_p6 = scmp.lt.s32.totalorder %s1565_s22, 1 }
  0x1a   : > { %699 = vmatpush.bf16.msra.mxu3 %v1258_v25  ;;  %v1177_v40 = vld [vmem:[%s2061_s1 + $0x140] sm:$0xf]  ;;  %v1379_v41 = vld [vmem:[%s2061_s1 + $0x144] sm:$0xf0]  ;;  %v1114_v45 = vor.u32 %v1363_v39, %v1113_v37  ;;  %v1041_v47 = vld [vmem:[%s2061_s1 + $0x30] sm:$0xf] }
  0x1b   : > { %v1241_v42 = vld [vmem:[%s2061_s1 + $0x1c0] sm:$0xf]  ;;  %v1395_v43 = vld [vmem:[%s2061_s1 + $0x1c4] sm:$0xf0]  ;;  %661 = vmatpush.bf16.msra.mxu0 %v1058_v29  ;;  %v1178_v46 = vor.u32 %v1379_v41, %v1177_v40  ;;  %v1345_v48 = vld [vmem:[%s2061_s1 + $0x34] sm:$0xf0] }
  0x1c   : > { %674 = vmatpush.bf16.msra.mxu1 %v1122_v33  ;;  %v1105_v49 = vld [vmem:[%s2061_s1 + $0xb0] sm:$0xf]  ;;  %v1242_v50 = vor.u32 %v1395_v43, %v1241_v42  ;;  %v1361_v51 = vld [vmem:[%s2061_s1 + $0xb4] sm:$0xf0]  ;;  %v1042_v56 = vor.u32 %v1345_v48, %v1041_v47  ;;  %s2068_s22 = smov (!%p244_p6, %s1565_s22), 1 }
  0x1d   : > { %687 = vmatpush.bf16.msra.mxu2 %v1186_v34  ;;  %v1169_v52 = vld [vmem:[%s2061_s1 + $0x130] sm:$0xf]  ;;  %v1377_v53 = vld [vmem:[%s2061_s1 + $0x134] sm:$0xf0]  ;;  %v1106_v57 = vor.u32 %v1361_v51, %v1105_v49  ;;  %v1033_v59 = vld [vmem:[%s2061_s1 + $0x20] sm:$0xf] }
  0x1e   : > { %700 = vmatpush.bf16.msra.mxu3 %v1250_v38  ;;  %v1233_v54 = vld [vmem:[%s2061_s1 + $0x1b0] sm:$0xf]  ;;  %v1393_v55 = vld [vmem:[%s2061_s1 + $0x1b4] sm:$0xf0]  ;;  %v1170_v58 = vor.u32 %v1377_v53, %v1169_v52  ;;  %v1343_v60 = vld [vmem:[%s2061_s1 + $0x24] sm:$0xf0] }
  0x1f   : > { %662 = vmatpush.bf16.msra.mxu0 %v1050_v44  ;;  %v1097_v61 = vld [vmem:[%s2061_s1 + $0xa0] sm:$0xf]  ;;  %v1234_v62 = vor.u32 %v1393_v55, %v1233_v54  ;;  %v1359_v63 = vld [vmem:[%s2061_s1 + $0xa4] sm:$0xf0]  ;;  %v1034_v4 = vor.u32 %v1343_v60, %v1033_v59  ;;  %s1337_s10 = sshll.u32 %s2068_s22, 4  ;;  %s1014_s25 = sshll.u32 %s2068_s22, 2 }
  0x20   : > { %675 = vmatpush.bf16.msra.mxu1 %v1114_v45  ;;  %v1161_v0 = vld [vmem:[%s2061_s1 + $0x120] sm:$0xf]  ;;  %v1375_v1 = vld [vmem:[%s2061_s1 + $0x124] sm:$0xf0]  ;;  %v1098_v5 = vor.u32 %v1359_v63, %v1097_v61  ;;  %v1025_v7 = vld [vmem:[%s2061_s1 + $0x10] sm:$0xf]  ;;  %s1778_s13 = scalar_lea.vmem %s2060_s0, %s1337_s10  ;;  %s252_s27 = scalar_lea.vmem %s2065_s5, %s1014_s25 }
  0x21   : > { %688 = vmatpush.bf16.msra.mxu2 %v1178_v46  ;;  %v1225_v2 = vld [vmem:[%s2061_s1 + $0x1a0] sm:$0xf]  ;;  %v1391_v3 = vld [vmem:[%s2061_s1 + $0x1a4] sm:$0xf0]  ;;  %v1162_v6 = vor.u32 %v1375_v1, %v1161_v0  ;;  %v1341_v8 = vld [vmem:[%s2061_s1 + $0x14] sm:$0xf0] }
  0x22   : > { %701 = vmatpush.bf16.msra.mxu3 %v1242_v50  ;;  %v1089_v9 = vld [vmem:[%s2061_s1 + $0x90] sm:$0xf]  ;;  %v1226_v10 = vor.u32 %v1391_v3, %v1225_v2  ;;  %v1357_v11 = vld [vmem:[%s2061_s1 + $0x94] sm:$0xf0]  ;;  %v1026_v16 = vor.u32 %v1341_v8, %v1025_v7  ;;  %v1017_v17 = vld [vmem:[%s2061_s1] sm:$0xf] }
  0x23   : > { %663 = vmatpush.bf16.msra.mxu0 %v1042_v56  ;;  %v1153_v12 = vld [vmem:[%s2061_s1 + $0x110] sm:$0xf]  ;;  %v1373_v13 = vld [vmem:[%s2061_s1 + $0x114] sm:$0xf0]  ;;  %v1339_v18 = vld [vmem:[%s2061_s1 + $0x4] sm:$0xf0]  ;;  %v1090_v20 = vor.u32 %v1357_v11, %v1089_v9 }
  0x24   : > { %676 = vmatpush.bf16.msra.mxu1 %v1106_v57  ;;  %v1217_v14 = vld [vmem:[%s2061_s1 + $0x190] sm:$0xf]  ;;  %v1389_v15 = vld [vmem:[%s2061_s1 + $0x194] sm:$0xf0]  ;;  %v1081_v19 = vld [vmem:[%s2061_s1 + $0x80] sm:$0xf]  ;;  %v1154_v21 = vor.u32 %v1373_v13, %v1153_v12  ;;  %v1018_v32 = vor.u32 %v1339_v18, %v1017_v17 }
  0x25   : > { %689 = vmatpush.bf16.msra.mxu2 %v1170_v58  ;;  %v1355_v22 = vld [vmem:[%s2061_s1 + $0x84] sm:$0xf0]  ;;  %v1145_v23 = vld [vmem:[%s2061_s1 + $0x100] sm:$0xf]  ;;  %v1218_v25 = vor.u32 %v1389_v15, %v1217_v14  ;;  %v1352_v28 = vld [vmem:[%s2061_s1 + $0x74] sm:$0xf] }
  0x26   : > { %702 = vmatpush.bf16.msra.mxu3 %v1234_v62  ;;  %v1371_v24 = vld [vmem:[%s2061_s1 + $0x104] sm:$0xf0]  ;;  %v1209_v26 = vld [vmem:[%s2061_s1 + $0x180] sm:$0xf]  ;;  %v1075_v29 = vld [vmem:[%s2061_s1 + $0x78] sm:$0xf0]  ;;  %v1082_v37 = vor.u32 %v1355_v22, %v1081_v19 }
  0x27   : > { %664 = vmatpush.bf16.msra.mxu0 %v1034_v4  ;;  %v1387_v27 = vld [vmem:[%s2061_s1 + $0x184] sm:$0xf0]  ;;  %v1368_v30 = vld [vmem:[%s2061_s1 + $0xf4] sm:$0xf]  ;;  %v1139_v33 = vld [vmem:[%s2061_s1 + $0xf8] sm:$0xf0]  ;;  %v1146_v38 = vor.u32 %v1371_v24, %v1145_v23  ;;  %v1078_v43 = vor.u32 %v1352_v28, %v1075_v29 }
  0x28   : > { %677 = vmatpush.bf16.msra.mxu1 %v1098_v5  ;;  %v254_v31 = vld [vmem:[%s1778_s13 + $0x8] sm:$0xff]  ;;  %v1384_v34 = vld [vmem:[%s2061_s1 + $0x174] sm:$0xf]  ;;  %v1203_v35 = vld [vmem:[%s2061_s1 + $0x178] sm:$0xf0]  ;;  %v1210_v42 = vor.u32 %v1387_v27, %v1209_v26  ;;  %v1142_v45 = vor.u32 %v1368_v30, %v1139_v33 }
  0x29   : > { %690 = vmatpush.bf16.msra.mxu2 %v1162_v6  ;;  %v329_v36 = vunpack.c.l.b16 %v254_v31  ;;  %v1400_v39 = vld [vmem:[%s2061_s1 + $0x1f4] sm:$0xf]  ;;  %v1267_v40 = vld [vmem:[%s2061_s1 + $0x1f8] sm:$0xf0]  ;;  %v330_v41 = vunpack.c.h.b16 %v254_v31  ;;  %v253_v44 = vld [vmem:[%s1778_s13] sm:$0xff]  ;;  %v1206_v46 = vor.u32 %v1384_v34, %v1203_v35 }
  0x2a   : > { %703 = vmatpush.bf16.msra.mxu3 %v1226_v10  ;;  %v1350_v47 = vld [vmem:[%s2061_s1 + $0x64] sm:$0xf]  ;;  %v1067_v48 = vld [vmem:[%s2061_s1 + $0x68] sm:$0xf0]  ;;  %v327_v50 = vunpack.c.l.b16 %v253_v44  ;;  %v328_v51 = vunpack.c.h.b16 %v253_v44  ;;  %v1270_v52 = vor.u32 %v1400_v39, %v1267_v40  ;;  %v1348_v1 = vld [vmem:[%s2061_s1 + $0x54] sm:$0xf] }
  0x2b   : > { %665 = vmatpush.bf16.msra.mxu0 %v1026_v16  ;;  %v1366_v49 = vld [vmem:[%s2061_s1 + $0xe4] sm:$0xf]  ;;  %v1131_v53 = vld [vmem:[%s2061_s1 + $0xe8] sm:$0xf0]  ;;  %v1839_v56 = vpack.c.b16 %v329_v36, %v329_v36  ;;  %v1849_v60 = vpack.c.b16 %v330_v41, %v330_v41  ;;  %v1070_v61 = vor.u32 %v1350_v47, %v1067_v48  ;;  %v1059_v2 = vld [vmem:[%s2061_s1 + $0x58] sm:$0xf0] }
  0x2c   : > { %678 = vmatpush.bf16.msra.mxu1 %v1090_v20  ;;  %v1382_v54 = vld [vmem:[%s2061_s1 + $0x164] sm:$0xf]  ;;  %v1195_v55 = vld [vmem:[%s2061_s1 + $0x168] sm:$0xf0]  ;;  %v1847_v59 = vpack.c.b16 %v327_v50, %v327_v50  ;;  %v1851_v62 = vpack.c.b16 %v328_v51, %v328_v51  ;;  %v1134_v63 = vor.u32 %v1366_v49, %v1131_v53  ;;  %v1364_v3 = vld [vmem:[%s2061_s1 + $0xd4] sm:$0xf]  ;;  %v1062_v10 = vor.u32 %v1348_v1, %v1059_v2 }
  0x2d   : > { %691 = vmatpush.bf16.msra.mxu2 %v1154_v21  ;;  %v1398_v57 = vld [vmem:[%s2061_s1 + $0x1e4] sm:$0xf]  ;;  %v1259_v58 = vld [vmem:[%s2061_s1 + $0x1e8] sm:$0xf0]  ;;  %v1198_v0 = vor.u32 %v1382_v54, %v1195_v55  ;;  %v1123_v5 = vld [vmem:[%s2061_s1 + $0xd8] sm:$0xf0] }
  0x2e   : > { %704 = vmatpush.bf16.msra.mxu3 %v1218_v25  ;;  %v1262_v4 = vor.u32 %v1398_v57, %v1259_v58  ;;  %v1380_v6 = vld [vmem:[%s2061_s1 + $0x154] sm:$0xf]  ;;  %v1187_v7 = vld [vmem:[%s2061_s1 + $0x158] sm:$0xf0]  ;;  %v1126_v11 = vor.u32 %v1364_v3, %v1123_v5  ;;  %v1346_v13 = vld [vmem:[%s2061_s1 + $0x44] sm:$0xf] }
  0x2f   : > { %666 = vmatpush.bf16.msra.mxu0 %v1018_v32  ;;  %v1396_v8 = vld [vmem:[%s2061_s1 + $0x1d4] sm:$0xf]  ;;  %v1251_v9 = vld [vmem:[%s2061_s1 + $0x1d8] sm:$0xf0]  ;;  %v1190_v12 = vor.u32 %v1380_v6, %v1187_v7  ;;  %v1051_v14 = vld [vmem:[%s2061_s1 + $0x48] sm:$0xf0] }
  0x30   : > { %679 = vmatpush.bf16.msra.mxu1 %v1082_v37  ;;  %v1362_v15 = vld [vmem:[%s2061_s1 + $0xc4] sm:$0xf]  ;;  %v1254_v16 = vor.u32 %v1396_v8, %v1251_v9  ;;  %v1115_v17 = vld [vmem:[%s2061_s1 + $0xc8] sm:$0xf0]  ;;  %v1054_v22 = vor.u32 %v1346_v13, %v1051_v14  ;;  %v1344_v25 = vld [vmem:[%s2061_s1 + $0x34] sm:$0xf] }
  0x31   : > { %692 = vmatpush.bf16.msra.mxu2 %v1146_v38  ;;  %v1378_v18 = vld [vmem:[%s2061_s1 + $0x144] sm:$0xf]  ;;  %v1179_v19 = vld [vmem:[%s2061_s1 + $0x148] sm:$0xf0]  ;;  %v1118_v23 = vor.u32 %v1362_v15, %v1115_v17  ;;  %v1043_v26 = vld [vmem:[%s2061_s1 + $0x38] sm:$0xf0] }
  0x32   : > { %705 = vmatpush.bf16.msra.mxu3 %v1210_v42  ;;  %667 = vmatmul.bf16.vlgmr.msra.gmra.mxu0 %v1847_v59  ;;  %v1394_v20 = vld [vmem:[%s2061_s1 + $0x1c4] sm:$0xf]  ;;  %v1243_v21 = vld [vmem:[%s2061_s1 + $0x1c8] sm:$0xf0]  ;;  %v1182_v24 = vor.u32 %v1378_v18, %v1179_v19  ;;  %v1360_v27 = vld [vmem:[%s2061_s1 + $0xb4] sm:$0xf]  ;;  %v1046_v34 = vor.u32 %v1344_v25, %v1043_v26 }
  0x33   : > { %711 = vmatpush.bf16.msrb.mxu0 %v1078_v43  ;;  %680 = vmatmul.bf16.vlgmr.msra.gmra.mxu1 %v1851_v62  ;;  %v1246_v28 = vor.u32 %v1394_v20, %v1243_v21  ;;  %v1107_v29 = vld [vmem:[%s2061_s1 + $0xb8] sm:$0xf0]  ;;  %v1376_v30 = vld [vmem:[%s2061_s1 + $0x134] sm:$0xf]  ;;  %v1342_v37 = vld [vmem:[%s2061_s1 + $0x24] sm:$0xf] }
  0x34   : > { %724 = vmatpush.bf16.msrb.mxu1 %v1142_v45  ;;  %693 = vmatmul.bf16.vlgmr.msra.gmra.mxu2 %v1839_v56  ;;  %v1171_v31 = vld [vmem:[%s2061_s1 + $0x138] sm:$0xf0]  ;;  %v1392_v32 = vld [vmem:[%s2061_s1 + $0x1b4] sm:$0xf]  ;;  %v1110_v35 = vor.u32 %v1360_v27, %v1107_v29  ;;  %v1035_v38 = vld [vmem:[%s2061_s1 + $0x28] sm:$0xf0] }
  0x35   : > { %737 = vmatpush.bf16.msrb.mxu2 %v1206_v46  ;;  %706 = vmatmul.bf16.vlgmr.msra.gmra.mxu3 %v1849_v60  ;;  %v1235_v33 = vld [vmem:[%s2061_s1 + $0x1b8] sm:$0xf0]  ;;  %v1174_v36 = vor.u32 %v1376_v30, %v1171_v31  ;;  %v1358_v39 = vld [vmem:[%s2061_s1 + $0xa4] sm:$0xf]  ;;  %v1099_v41 = vld [vmem:[%s2061_s1 + $0xa8] sm:$0xf0]  ;;  %v1038_v46 = vor.u32 %v1342_v37, %v1035_v38 }
  0x36   : > { %750 = vmatpush.bf16.msrb.mxu3 %v1270_v52  ;;  %v1238_v40 = vor.u32 %v1392_v32, %v1235_v33  ;;  %v1374_v42 = vld [vmem:[%s2061_s1 + $0x124] sm:$0xf]  ;;  %v1163_v43 = vld [vmem:[%s2061_s1 + $0x128] sm:$0xf0]  ;;  %v1102_v47 = vor.u32 %v1358_v39, %v1099_v41  ;;  %v1340_v49 = vld [vmem:[%s2061_s1 + $0x14] sm:$0xf] }
  0x37   : > { %712 = vmatpush.bf16.msrb.mxu0 %v1070_v61  ;;  %v1390_v44 = vld [vmem:[%s2061_s1 + $0x1a4] sm:$0xf]  ;;  %v1227_v45 = vld [vmem:[%s2061_s1 + $0x1a8] sm:$0xf0]  ;;  %v1166_v48 = vor.u32 %v1374_v42, %v1163_v43  ;;  %v1027_v50 = vld [vmem:[%s2061_s1 + $0x18] sm:$0xf0] }
  0x38   : > { %725 = vmatpush.bf16.msrb.mxu1 %v1134_v63  ;;  %v1356_v51 = vld [vmem:[%s2061_s1 + $0x94] sm:$0xf]  ;;  %v1230_v52 = vor.u32 %v1390_v44, %v1227_v45  ;;  %v1091_v53 = vld [vmem:[%s2061_s1 + $0x98] sm:$0xf0]  ;;  %v1030_v61 = vor.u32 %v1340_v49, %v1027_v50  ;;  %v1338_v1 = vld [vmem:[%s2061_s1 + $0x4] sm:$0xf] }
  0x39   : > { %738 = vmatpush.bf16.msrb.mxu2 %v1198_v0  ;;  %v1372_v54 = vld [vmem:[%s2061_s1 + $0x114] sm:$0xf]  ;;  %v1155_v55 = vld [vmem:[%s2061_s1 + $0x118] sm:$0xf0]  ;;  %v1094_v63 = vor.u32 %v1356_v51, %v1091_v53  ;;  %v1019_v2 = vld [vmem:[%s2061_s1 + $0x8] sm:$0xf0] }
  0x3a   : > { %751 = vmatpush.bf16.msrb.mxu3 %v1262_v4  ;;  %v1388_v57 = vld [vmem:[%s2061_s1 + $0x194] sm:$0xf]  ;;  %v1219_v58 = vld [vmem:[%s2061_s1 + $0x198] sm:$0xf0]  ;;  %v1158_v0 = vor.u32 %v1372_v54, %v1155_v55  ;;  %v1354_v3 = vld [vmem:[%s2061_s1 + $0x84] sm:$0xf] }
  0x3b   : > { %713 = vmatpush.bf16.msrb.mxu0 %v1062_v10  ;;  %v1222_v4 = vor.u32 %v1388_v57, %v1219_v58  ;;  %v1083_v5 = vld [vmem:[%s2061_s1 + $0x88] sm:$0xf0]  ;;  %v1370_v6 = vld [vmem:[%s2061_s1 + $0x104] sm:$0xf]  ;;  %v1022_v10 = vor.u32 %v1338_v1, %v1019_v2  ;;  %v1409_v14 = vld [vmem:[%s2063_s3 + $0x38] sm:$0xff] }
  0x3c   : > { %726 = vmatpush.bf16.msrb.mxu1 %v1126_v11  ;;  %v1147_v7 = vld [vmem:[%s2061_s1 + $0x108] sm:$0xf0]  ;;  %v1386_v8 = vld [vmem:[%s2061_s1 + $0x184] sm:$0xf]  ;;  %v1086_v11 = vor.u32 %v1354_v3, %v1083_v5  ;;  %v1408_v15 = vld [vmem:[%s2063_s3 + $0x30] sm:$0xff] }
  0x3d   : > { %739 = vmatpush.bf16.msrb.mxu2 %v1190_v12  ;;  %v1211_v9 = vld [vmem:[%s2061_s1 + $0x188] sm:$0xf0]  ;;  %v1150_v12 = vor.u32 %v1370_v6, %v1147_v7  ;;  %v1406_v17 = vld [vmem:[%s2063_s3 + $0x20] sm:$0xff]  ;;  %v1416_v19 = vld [vmem:[%s2063_s3 + $0x70] sm:$0xff] }
  0x3e   : > { %752 = vmatpush.bf16.msrb.mxu3 %v1254_v16  ;;  %v1214_v13 = vor.u32 %v1386_v8, %v1211_v9  ;;  %v1407_v16 = vld [vmem:[%s2063_s3 + $0x28] sm:$0xff]  ;;  %v1402_v18 = vld [vmem:[%s2063_s3] sm:$0xff]  ;;  %v1412_v25 = vld [vmem:[%s2063_s3 + $0x50] sm:$0xff] }
  0x3f   : > { %714 = vmatpush.bf16.msrb.mxu0 %v1054_v22  ;;  %v1415_v20 = vld [vmem:[%s2063_s3 + $0x68] sm:$0xff]  ;;  %v1414_v21 = vld [vmem:[%s2063_s3 + $0x60] sm:$0xff] }
  0x40   : > { %727 = vmatpush.bf16.msrb.mxu1 %v1118_v23  ;;  %v319_v22 = vld [vmem:[#allocation2] sm:$0x3]  ;;  %v1413_v23 = vld [vmem:[%s2063_s3 + $0x58] sm:$0xff]  ;;  %v1411_v30 = vld [vmem:[%s2063_s3 + $0x48] sm:$0xff] }
  0x41   : > { %740 = vmatpush.bf16.msrb.mxu2 %v1182_v24  ;;  %v321_v24 = vperm.slane %v319_v22, 0  ;;  %v322_v42 = vperm.slane %v319_v22, 1 }
  0x42   : > { %753 = vmatpush.bf16.msrb.mxu3 %v1246_v28 }
  0x43   : > { %715 = vmatpush.bf16.msrb.mxu0 %v1046_v34 }
  0x44   : > { %728 = vmatpush.bf16.msrb.mxu1 %v1110_v35 }
  0x45   : > { %741 = vmatpush.bf16.msrb.mxu2 %v1174_v36  ;;  %v1410_v36 = vld [vmem:[%s2063_s3 + $0x40] sm:$0xff] }
  0x46   : > { %754 = vmatpush.bf16.msrb.mxu3 %v1238_v40 }
  0x47   : > { %716 = vmatpush.bf16.msrb.mxu0 %v1038_v46 }
  0x48   : > { %729 = vmatpush.bf16.msrb.mxu1 %v1102_v47 }
  0x49   : > { %742 = vmatpush.bf16.msrb.mxu2 %v1166_v48 }
  0x4a   : > { %755 = vmatpush.bf16.msrb.mxu3 %v1230_v52 }
  0x4b   : > { %717 = vmatpush.bf16.msrb.mxu0 %v1030_v61 }
  0x4c   : > { %730 = vmatpush.bf16.msrb.mxu1 %v1094_v63  ;;  %v1447_v63 = vld [vmem:[#allocation4] ss:$0 sm:$0xff] }
  0x4d   : > { %743 = vmatpush.bf16.msrb.mxu2 %v1158_v0 }
  0x4e   : > { %756 = vmatpush.bf16.msrb.mxu3 %v1222_v4 }
  0x4f   : > { %718 = vmatpush.bf16.msrb.mxu0 %v1022_v10 }
  0x50   : > { %731 = vmatpush.bf16.msrb.mxu1 %v1086_v11 }
  0x51   : > { %744 = vmatpush.bf16.msrb.mxu2 %v1150_v12 }
  0x52   : > { %757 = vmatpush.bf16.msrb.mxu3 %v1214_v13  ;;  %719 = vmatmul.bf16.vlgmr.msrb.gmra.mxu0 %v1847_v59  ;;  %v1405_v59 = vld [vmem:[%s2063_s3 + $0x18] sm:$0xff] }
  0x53   : > { %899 = vmatpush.bf16.msra.mxu0 %v1409_v14  ;;  %732 = vmatmul.bf16.vlgmr.msrb.gmra.mxu1 %v1851_v62  ;;  %v1417_v62 = vld [vmem:[%s2063_s3 + $0x78] sm:$0xff] }
  0x54   : > { %745 = vmatmul.bf16.vlgmr.msrb.gmra.mxu2 %v1839_v56  ;;  %v1404_v56 = vld [vmem:[%s2063_s3 + $0x10] sm:$0xff]  ;;  %912 = vmatpush.bf16.msra.mxu1 %v1417_v62 }
  0x55   : > { %758 = vmatmul.bf16.vlgmr.msrb.gmra.mxu3 %v1849_v60  ;;  %v1403_v60 = vld [vmem:[%s2063_s3 + $0x8] sm:$0xff] }
  0x57   : > { %900 = vmatpush.bf16.msra.mxu0 %v1408_v15 }
  0x58   : > { %913 = vmatpush.bf16.msra.mxu1 %v1416_v19 }
  0x5b   : > { %901 = vmatpush.bf16.msra.mxu0 %v1407_v16 }
  0x5c   : > { %914 = vmatpush.bf16.msra.mxu1 %v1415_v20 }
  0x5f   : > { %902 = vmatpush.bf16.msra.mxu0 %v1406_v17 }
  0x60   : > { %915 = vmatpush.bf16.msra.mxu1 %v1414_v21 }
  0x63   : > { %903 = vmatpush.bf16.msra.mxu0 %v1405_v59 }
  0x64   : > { %916 = vmatpush.bf16.msra.mxu1 %v1413_v23 }
  0x67   : > { %904 = vmatpush.bf16.msra.mxu0 %v1404_v56 }
  0x68   : > { %917 = vmatpush.bf16.msra.mxu1 %v1412_v25 }
  0x6b   : > { %905 = vmatpush.bf16.msra.mxu0 %v1403_v60 }
  0x6c   : > { %918 = vmatpush.bf16.msra.mxu1 %v1411_v30 }
  0x6f   : > { %906 = vmatpush.bf16.msra.mxu0 %v1402_v18 }
  0x70   : > { %919 = vmatpush.bf16.msra.mxu1 %v1410_v36 }
  0xaf   : > { %v668_v26 = vpop.f32.mrf.mxu0 }
  0xb0   : > { %v669_v27 = vadd.f32 %v668_v26, %v321_v24  ;;  %v681_v28 = vpop.f32.mrf.mxu1 }
  0xb2   : > { %v682_v29 = vadd.f32 %v681_v28, %v669_v27 }
  0xb7   : > { %v694_v31 = vpop.f32.mrf.mxu2  ;;  %v670_v35 = vpop.f32.mrf.mxu0 }
  0xb8   : > { %v695_v32 = vadd.f32 %v694_v31, %v682_v29  ;;  %v707_v33 = vpop.f32.mrf.mxu3  ;;  %v683_v37 = vpop.f32.mrf.mxu1 }
  0xba   : > { %v708_v34 = vadd.f32 %v707_v33, %v695_v32 }
  0xbc   : > { %v763_v38 = vmax.f32 %v708_v34, 0.0 }
  0xbe   : > { %v765_v39 = vpack.c.bf16 %v763_v38, %v763_v38 }
  0xbf   : > { %v696_v40 = vpop.f32.mrf.mxu2 }
  0xc0   : > { %907 = vmatmul.bf16.vlgmr.msra.gmra.mxu0 %v765_v39  ;;  %v709_v41 = vpop.f32.mrf.mxu3 }
  0xcf   : > { %v720_v43 = vpop.f32.mrf.mxu0 }
  0xd0   : > { %v721_v44 = vadd.f32 %v720_v43, %v322_v42  ;;  %v733_v45 = vpop.f32.mrf.mxu1 }
  0xd2   : > { %v734_v46 = vadd.f32 %v733_v45, %v721_v44 }
  0xd7   : > { %v746_v47 = vpop.f32.mrf.mxu2  ;;  %v722_v50 = vpop.f32.mrf.mxu0 }
  0xd8   : > { %v747_v48 = vadd.f32 %v746_v47, %v734_v46  ;;  %v759_v49 = vpop.f32.mrf.mxu3  ;;  %v735_v51 = vpop.f32.mrf.mxu1 }
  0xda   : > { %v760_v52 = vadd.f32 %v759_v49, %v747_v48 }
  0xdc   : > { %v764_v53 = vmax.f32 %v760_v52, 0.0 }
  0xde   : > { %v766_v54 = vpack.c.bf16 %v764_v53, %v764_v53 }
  0xdf   : > { %v748_v55 = vpop.f32.mrf.mxu2 }
  0xe0   : > { %v761_v57 = vpop.f32.mrf.mxu3  ;;  %920 = vmatmul.bf16.vlgmr.msra.gmra.mxu1 %v766_v54 }
 0x13d   : > { %v908_v58 = vpop.f32.mrf.mxu0 }
 0x13e   : > { %v909_v0 = vadd.f32 %v1447_v63, %v908_v58 }
 0x145   : > { %v910_v61 = vpop.f32.mrf.mxu0 }
 0x15d   : > { %v921_v1 = vpop.f32.mrf.mxu1 }
 0x15e   : > { %v922_v2 = vadd.f32 %v921_v1, %v909_v0 }
 0x160   : > { %v925_v3 = vmax.f32 %v922_v2, 0.0 }
 0x162   : > { %v926_v4 = vpack.c.bf16 %v925_v3, %v925_v3 }
 0x164   : > { %927 = vst [vmem:[%s252_s27] sm:$0xf] %v926_v4 }
 0x165   : > { %v923_v5 = vpop.f32.mrf.mxu1 }
 0x166 PF: > { %s17_s18 = sadd.s32 1, %s1522_s18  }
 0x167   : > { %p14_p7 = scmp.ge.s32.totalorder %s17_s18, 4  }
 0x169   :  { %16 = sbr.rel (!%p14_p7) target bundleno = 2 (0x2), region = 79 }
 0x16e   :  { %947 = vsyncpa [#allocation3], 1 }
 0x16f   :  { %949 = vsyncpa [#allocation3 + $0x1], 1 }
 0x170   :  { %950 = vsyncpa [#allocation5], 1 }

// kernel: _lambda_.18
= control target key start
LH: loop header
LB: loop body
LE: loop exit
PB: predicated region body
PF: predicated region fallthrough
CT: control target
= control target key end

     0   :  { %10 = vsyncpa [#allocation3], 0  ;;  %s7887_s0 = inlined_call_operand.vmem [shape: bf16[16,1024], index: 0, kind: input, shape index: {}]   ;;  %s7888_s1 = inlined_call_operand.vmem [shape: bf16[1024,512], index: 1, kind: input, shape index: {}]   ;;  %s7889_s2 = inlined_call_operand.hbm [shape: f32[1,512], index: 2, kind: input, shape index: {}]   ;;  %s7890_s3 = inlined_call_operand.vmem [shape: bf16[512,512], index: 3, kind: input, shape index: {}]   ;;  %s7891_s4 = inlined_call_operand.hbm [shape: f32[1,512], index: 4, kind: input, shape index: {}]   ;;  %s7892_s5 = inlined_call_operand.vmem [shape: bf16[16,512], index: 5, kind: output, shape index: {}]  }
   0x1   :  { %11 = vsyncpa [#allocation5], 0  ;;  %s5403_s18 = smov 0  }
   0x2 LB: > { %s173_s21 = sshll.u32 %s7889_s2, 4  ;;  %s5412_s22 = sadd.s32 4294967295, %s5369_s18   ;;  %s5369_s18 = sphi %s5403_s18, %s17_s18   ;;  %s174_s21 = int_to_ptr.hbm [resolvable:$true] %s173_s21 }
   0x3   : > { %p3330_p0 = scmp.ge.s32.totalorder %s5369_s18, 1  ;;  %p158_p1 = scmp.lt.s32.totalorder %s5369_s18, 3 }
   0x4   : > { %p5280_p2 = scmp.eq.s32.totalorder %s5412_s22, 0  ;;  %s5371_s24 = smov [#allocation2]  }
   0x5   : > { %p5417_p3 = pnand %p3330_p0, %p158_p1  ;;  %s175_s25 = sshll.u32 %s5371_s24, 4  ;;  %s176_s25 = int_to_ptr.vmem [resolvable:$true] %s175_s25 }
   0x6   : > { %s188_s28 = sshll.u32 %s7891_s4, 4  ;;  %s5372_s29 = smov [#allocation4]   ;;  %s189_s28 = int_to_ptr.hbm [resolvable:$true] %s188_s28 }
   0x7   : > { %p5273_p4 = pneg %p5417_p3  ;;  %s190_s30 = sshll.u32 %s5372_s29, 4  ;;  %s191_s30 = int_to_ptr.vmem [resolvable:$true] %s190_s30 }
   0x8   : > { %211 = sbr.rel (%p5417_p3) target bundleno = 621 (0x26d), region = 40 }
   0x9   : > { %p5274_p5 = pnand %p5280_p2, %p5273_p4 }
   0xb   : > { %5276 = dma.hbm_to_vmem [thread:$0]  (!%p5274_p5), %s174_s21, 64, %s176_s25, [#allocation3]  }
   0xc   : > { %5279 = dma.hbm_to_vmem [thread:$0]  (!%p5274_p5), %s189_s28, 64, %s191_s30, [#allocation5]  }
   0xd   : > { %5360 = dma.done.wait (%p5280_p2), [#allocation3], 64  }
   0xe   : > { %5362 = vsyncadd (%p5280_p2), [#allocation3], 4294967232 }
   0xf   : > { %5364 = dma.done.wait (%p5280_p2), [#allocation5], 64  }
  0x10   : > { %5366 = vsyncadd (%p5280_p2), [#allocation5], 4294967232  ;;  %v3455_v0 = vld [vmem:[%s7888_s1 + $0xe0] sm:$0xf]  ;;  %v4911_v1 = vld [vmem:[%s7888_s1 + $0xec] sm:$0xf0] }
  0x11   : > { %v3583_v2 = vld [vmem:[%s7888_s1 + $0x1e0] sm:$0xf]  ;;  %v3456_v3 = vor.u32 %v4911_v1, %v3455_v0  ;;  %v4943_v4 = vld [vmem:[%s7888_s1 + $0x1ec] sm:$0xf0]  ;;  %p245_p6 = scmp.lt.s32.totalorder %s5412_s22, 1 }
  0x12   : > { %v3711_v5 = vld [vmem:[%s7888_s1 + $0x2e0] sm:$0xf]  ;;  %v4975_v6 = vld [vmem:[%s7888_s1 + $0x2ec] sm:$0xf0]  ;;  %v3584_v7 = vor.u32 %v4943_v4, %v3583_v2 }
  0x13   : > { %v3712_v8 = vor.u32 %v4975_v6, %v3711_v5  ;;  %v3839_v9 = vld [vmem:[%s7888_s1 + $0x3e0] sm:$0xf]  ;;  %v5007_v10 = vld [vmem:[%s7888_s1 + $0x3ec] sm:$0xf0]  ;;  %1833 = vmatpush.bf16.msra.mxu0 %v3456_v3  ;;  %s7895_s22 = smov (!%p245_p6, %s5412_s22), 1 }
  0x14   : > { %v3439_v11 = vld [vmem:[%s7888_s1 + $0xc0] sm:$0xf]  ;;  %v3840_v12 = vor.u32 %v5007_v10, %v3839_v9  ;;  %v4907_v13 = vld [vmem:[%s7888_s1 + $0xcc] sm:$0xf0]  ;;  %1846 = vmatpush.bf16.msra.mxu1 %v3584_v7  ;;  %s4879_s12 = sshll.u32 %s7895_s22, 5  ;;  %s4880_s8 = sshll.u32 %s7895_s22, 4 }
  0x15   : > { %v3567_v14 = vld [vmem:[%s7888_s1 + $0x1c0] sm:$0xf]  ;;  %v4939_v15 = vld [vmem:[%s7888_s1 + $0x1cc] sm:$0xf0]  ;;  %1859 = vmatpush.bf16.msra.mxu2 %v3712_v8  ;;  %v3440_v16 = vor.u32 %v4907_v13, %v3439_v11  ;;  %s5700_s17 = scalar_lea.vmem %s7887_s0, %s4879_s12  ;;  %s254_s11 = scalar_lea.vmem %s7892_s5, %s4880_s8 }
  0x16   : > { %v3568_v17 = vor.u32 %v4939_v15, %v3567_v14  ;;  %v3695_v18 = vld [vmem:[%s7888_s1 + $0x2c0] sm:$0xf]  ;;  %v4971_v19 = vld [vmem:[%s7888_s1 + $0x2cc] sm:$0xf0]  ;;  %1872 = vmatpush.bf16.msra.mxu3 %v3840_v12 }
  0x17   : > { %v3823_v20 = vld [vmem:[%s7888_s1 + $0x3c0] sm:$0xf]  ;;  %v3696_v21 = vor.u32 %v4971_v19, %v3695_v18  ;;  %v5003_v22 = vld [vmem:[%s7888_s1 + $0x3cc] sm:$0xf0]  ;;  %1834 = vmatpush.bf16.msra.mxu0 %v3440_v16 }
  0x18   : > { %v3423_v23 = vld [vmem:[%s7888_s1 + $0xa0] sm:$0xf]  ;;  %v4903_v24 = vld [vmem:[%s7888_s1 + $0xac] sm:$0xf0]  ;;  %v3824_v25 = vor.u32 %v5003_v22, %v3823_v20  ;;  %1847 = vmatpush.bf16.msra.mxu1 %v3568_v17 }
  0x19   : > { %v3551_v26 = vld [vmem:[%s7888_s1 + $0x1a0] sm:$0xf]  ;;  %v4935_v27 = vld [vmem:[%s7888_s1 + $0x1ac] sm:$0xf0]  ;;  %v3424_v29 = vor.u32 %v4903_v24, %v3423_v23  ;;  %1860 = vmatpush.bf16.msra.mxu2 %v3696_v21 }
  0x1a   : > { %v3679_v28 = vld [vmem:[%s7888_s1 + $0x2a0] sm:$0xf]  ;;  %v4967_v30 = vld [vmem:[%s7888_s1 + $0x2ac] sm:$0xf0]  ;;  %v3552_v33 = vor.u32 %v4935_v27, %v3551_v26  ;;  %1873 = vmatpush.bf16.msra.mxu3 %v3824_v25 }
  0x1b   : > { %v3807_v31 = vld [vmem:[%s7888_s1 + $0x3a0] sm:$0xf]  ;;  %v4999_v32 = vld [vmem:[%s7888_s1 + $0x3ac] sm:$0xf0]  ;;  %v3680_v34 = vor.u32 %v4967_v30, %v3679_v28  ;;  %1835 = vmatpush.bf16.msra.mxu0 %v3424_v29 }
  0x1c   : > { %v3407_v35 = vld [vmem:[%s7888_s1 + $0x80] sm:$0xf]  ;;  %v4899_v36 = vld [vmem:[%s7888_s1 + $0x8c] sm:$0xf0]  ;;  %v3808_v38 = vor.u32 %v4999_v32, %v3807_v31  ;;  %1848 = vmatpush.bf16.msra.mxu1 %v3552_v33 }
  0x1d   : > { %v3535_v37 = vld [vmem:[%s7888_s1 + $0x180] sm:$0xf]  ;;  %v4931_v39 = vld [vmem:[%s7888_s1 + $0x18c] sm:$0xf0]  ;;  %v3408_v44 = vor.u32 %v4899_v36, %v3407_v35  ;;  %1861 = vmatpush.bf16.msra.mxu2 %v3680_v34 }
  0x1e   : > { %v3663_v40 = vld [vmem:[%s7888_s1 + $0x280] sm:$0xf]  ;;  %v4963_v41 = vld [vmem:[%s7888_s1 + $0x28c] sm:$0xf0]  ;;  %v3536_v45 = vor.u32 %v4931_v39, %v3535_v37  ;;  %1874 = vmatpush.bf16.msra.mxu3 %v3808_v38 }
  0x1f   : > { %v3791_v42 = vld [vmem:[%s7888_s1 + $0x380] sm:$0xf]  ;;  %v4995_v43 = vld [vmem:[%s7888_s1 + $0x38c] sm:$0xf0]  ;;  %v3664_v46 = vor.u32 %v4963_v41, %v3663_v40  ;;  %1836 = vmatpush.bf16.msra.mxu0 %v3408_v44 }
  0x20   : > { %v3391_v47 = vld [vmem:[%s7888_s1 + $0x60] sm:$0xf]  ;;  %v4895_v48 = vld [vmem:[%s7888_s1 + $0x6c] sm:$0xf0]  ;;  %v3792_v50 = vor.u32 %v4995_v43, %v3791_v42  ;;  %1849 = vmatpush.bf16.msra.mxu1 %v3536_v45 }
  0x21   : > { %v3519_v49 = vld [vmem:[%s7888_s1 + $0x160] sm:$0xf]  ;;  %v4927_v51 = vld [vmem:[%s7888_s1 + $0x16c] sm:$0xf0]  ;;  %v3392_v56 = vor.u32 %v4895_v48, %v3391_v47  ;;  %1862 = vmatpush.bf16.msra.mxu2 %v3664_v46 }
  0x22   : > { %v3647_v52 = vld [vmem:[%s7888_s1 + $0x260] sm:$0xf]  ;;  %v4959_v53 = vld [vmem:[%s7888_s1 + $0x26c] sm:$0xf0]  ;;  %v3520_v57 = vor.u32 %v4927_v51, %v3519_v49  ;;  %1875 = vmatpush.bf16.msra.mxu3 %v3792_v50 }
  0x23   : > { %v3775_v54 = vld [vmem:[%s7888_s1 + $0x360] sm:$0xf]  ;;  %v4991_v55 = vld [vmem:[%s7888_s1 + $0x36c] sm:$0xf0]  ;;  %v3648_v58 = vor.u32 %v4959_v53, %v3647_v52  ;;  %1837 = vmatpush.bf16.msra.mxu0 %v3392_v56 }
  0x24   : > { %v3375_v59 = vld [vmem:[%s7888_s1 + $0x40] sm:$0xf]  ;;  %v4891_v60 = vld [vmem:[%s7888_s1 + $0x4c] sm:$0xf0]  ;;  %v3776_v62 = vor.u32 %v4991_v55, %v3775_v54  ;;  %1850 = vmatpush.bf16.msra.mxu1 %v3520_v57 }
  0x25   : > { %v3503_v61 = vld [vmem:[%s7888_s1 + $0x140] sm:$0xf]  ;;  %v4923_v63 = vld [vmem:[%s7888_s1 + $0x14c] sm:$0xf0]  ;;  %v3376_v4 = vor.u32 %v4891_v60, %v3375_v59  ;;  %1863 = vmatpush.bf16.msra.mxu2 %v3648_v58 }
  0x26   : > { %v3631_v0 = vld [vmem:[%s7888_s1 + $0x240] sm:$0xf]  ;;  %v4955_v1 = vld [vmem:[%s7888_s1 + $0x24c] sm:$0xf0]  ;;  %v3504_v5 = vor.u32 %v4923_v63, %v3503_v61  ;;  %1876 = vmatpush.bf16.msra.mxu3 %v3776_v62 }
  0x27   : > { %v3759_v2 = vld [vmem:[%s7888_s1 + $0x340] sm:$0xf]  ;;  %v4987_v3 = vld [vmem:[%s7888_s1 + $0x34c] sm:$0xf0]  ;;  %v3632_v6 = vor.u32 %v4955_v1, %v3631_v0  ;;  %1838 = vmatpush.bf16.msra.mxu0 %v3376_v4 }
  0x28   : > { %v3359_v7 = vld [vmem:[%s7888_s1 + $0x20] sm:$0xf]  ;;  %v4887_v8 = vld [vmem:[%s7888_s1 + $0x2c] sm:$0xf0]  ;;  %v3760_v10 = vor.u32 %v4987_v3, %v3759_v2  ;;  %1851 = vmatpush.bf16.msra.mxu1 %v3504_v5  ;;  %v256_v2 = vld [vmem:[%s5700_s17 + $0x8] sm:$0xff] }
  0x29   : > { %v3487_v9 = vld [vmem:[%s7888_s1 + $0x120] sm:$0xf]  ;;  %v4919_v11 = vld [vmem:[%s7888_s1 + $0x12c] sm:$0xf0]  ;;  %v3360_v16 = vor.u32 %v4887_v8, %v3359_v7  ;;  %1864 = vmatpush.bf16.msra.mxu2 %v3632_v6  ;;  %v531_v8 = vunpack.c.l.b16 %v256_v2 }
  0x2a   : > { %v3615_v12 = vld [vmem:[%s7888_s1 + $0x220] sm:$0xf]  ;;  %v4951_v13 = vld [vmem:[%s7888_s1 + $0x22c] sm:$0xf0]  ;;  %v3488_v19 = vor.u32 %v4919_v11, %v3487_v9  ;;  %1877 = vmatpush.bf16.msra.mxu3 %v3760_v10  ;;  %v532_v10 = vunpack.c.h.b16 %v256_v2 }
  0x2b   : > { %v3743_v14 = vld [vmem:[%s7888_s1 + $0x320] sm:$0xf]  ;;  %v4983_v15 = vld [vmem:[%s7888_s1 + $0x32c] sm:$0xf0]  ;;  %v3616_v20 = vor.u32 %v4951_v13, %v3615_v12  ;;  %1839 = vmatpush.bf16.msra.mxu0 %v3360_v16 }
  0x2c   : > { %v3343_v17 = vld [vmem:[%s7888_s1] sm:$0xf]  ;;  %v4883_v18 = vld [vmem:[%s7888_s1 + $0xc] sm:$0xf0]  ;;  %v3744_v24 = vor.u32 %v4983_v15, %v3743_v14  ;;  %1852 = vmatpush.bf16.msra.mxu1 %v3488_v19 }
  0x2d   : > { %v3471_v21 = vld [vmem:[%s7888_s1 + $0x100] sm:$0xf]  ;;  %v4915_v22 = vld [vmem:[%s7888_s1 + $0x10c] sm:$0xf0]  ;;  %v3344_v31 = vor.u32 %v4883_v18, %v3343_v17  ;;  %1865 = vmatpush.bf16.msra.mxu2 %v3616_v20  ;;  %v5740_v18 = vpack.c.b16 %v531_v8, %v531_v8  ;;  %v5744_v20 = vpack.c.b16 %v532_v10, %v532_v10  ;;  %v4909_v8 = vld [vmem:[%s7888_s1 + $0xe4] sm:$0xf] }
  0x2e   : > { %v3599_v23 = vld [vmem:[%s7888_s1 + $0x200] sm:$0xf]  ;;  %v4947_v25 = vld [vmem:[%s7888_s1 + $0x20c] sm:$0xf0]  ;;  %v3472_v35 = vor.u32 %v4915_v22, %v3471_v21  ;;  %1878 = vmatpush.bf16.msra.mxu3 %v3744_v24  ;;  %v4941_v10 = vld [vmem:[%s7888_s1 + $0x1e4] sm:$0xf] }
  0x2f   : > { %v3727_v26 = vld [vmem:[%s7888_s1 + $0x300] sm:$0xf]  ;;  %v4979_v27 = vld [vmem:[%s7888_s1 + $0x30c] sm:$0xf0]  ;;  %v3600_v36 = vor.u32 %v4947_v25, %v3599_v23  ;;  %1840 = vmatpush.bf16.msra.mxu0 %v3344_v31 }
  0x30   : > { %v3967_v28 = vld [vmem:[%s7888_s1 + $0x4e0] sm:$0xf]  ;;  %v5039_v29 = vld [vmem:[%s7888_s1 + $0x4ec] sm:$0xf0]  ;;  %v3728_v39 = vor.u32 %v4979_v27, %v3727_v26  ;;  %1853 = vmatpush.bf16.msra.mxu1 %v3472_v35 }
  0x31   : > { %v4095_v30 = vld [vmem:[%s7888_s1 + $0x5e0] sm:$0xf]  ;;  %v5071_v32 = vld [vmem:[%s7888_s1 + $0x5ec] sm:$0xf0]  ;;  %v3968_v40 = vor.u32 %v5039_v29, %v3967_v28  ;;  %1866 = vmatpush.bf16.msra.mxu2 %v3600_v36 }
  0x32   : > { %v4223_v33 = vld [vmem:[%s7888_s1 + $0x6e0] sm:$0xf]  ;;  %v5103_v34 = vld [vmem:[%s7888_s1 + $0x6ec] sm:$0xf0]  ;;  %v4096_v41 = vor.u32 %v5071_v32, %v4095_v30  ;;  %1879 = vmatpush.bf16.msra.mxu3 %v3728_v39 }
  0x33   : > { %v4351_v37 = vld [vmem:[%s7888_s1 + $0x7e0] sm:$0xf]  ;;  %v5135_v38 = vld [vmem:[%s7888_s1 + $0x7ec] sm:$0xf0]  ;;  %v4224_v42 = vor.u32 %v5103_v34, %v4223_v33  ;;  %1885 = vmatpush.bf16.msrb.mxu0 %v3968_v40 }
  0x34   : > { %v3951_v43 = vld [vmem:[%s7888_s1 + $0x4c0] sm:$0xf]  ;;  %v5035_v44 = vld [vmem:[%s7888_s1 + $0x4cc] sm:$0xf0]  ;;  %v4352_v46 = vor.u32 %v5135_v38, %v4351_v37  ;;  %1898 = vmatpush.bf16.msrb.mxu1 %v4096_v41  ;;  %1867 = vmatmul.bf16.vlgmr.msra.gmra.mxu2 %v5740_v18 }
  0x35   : > { %v4079_v45 = vld [vmem:[%s7888_s1 + $0x5c0] sm:$0xf]  ;;  %v5067_v47 = vld [vmem:[%s7888_s1 + $0x5cc] sm:$0xf0]  ;;  %v3952_v52 = vor.u32 %v5035_v44, %v3951_v43  ;;  %1911 = vmatpush.bf16.msrb.mxu2 %v4224_v42  ;;  %1880 = vmatmul.bf16.vlgmr.msra.gmra.mxu3 %v5744_v20 }
  0x36   : > { %v4207_v48 = vld [vmem:[%s7888_s1 + $0x6c0] sm:$0xf]  ;;  %v5099_v49 = vld [vmem:[%s7888_s1 + $0x6cc] sm:$0xf0]  ;;  %v4080_v54 = vor.u32 %v5067_v47, %v4079_v45  ;;  %1924 = vmatpush.bf16.msrb.mxu3 %v4352_v46 }
  0x37   : > { %v4335_v50 = vld [vmem:[%s7888_s1 + $0x7c0] sm:$0xf]  ;;  %v5131_v51 = vld [vmem:[%s7888_s1 + $0x7cc] sm:$0xf0]  ;;  %v4208_v55 = vor.u32 %v5099_v49, %v4207_v48  ;;  %1886 = vmatpush.bf16.msrb.mxu0 %v3952_v52 }
  0x38   : > { %v3935_v53 = vld [vmem:[%s7888_s1 + $0x4a0] sm:$0xf]  ;;  %v5031_v56 = vld [vmem:[%s7888_s1 + $0x4ac] sm:$0xf0]  ;;  %v4336_v59 = vor.u32 %v5131_v51, %v4335_v50  ;;  %1899 = vmatpush.bf16.msrb.mxu1 %v4080_v54 }
  0x39   : > { %v4063_v57 = vld [vmem:[%s7888_s1 + $0x5a0] sm:$0xf]  ;;  %v5063_v58 = vld [vmem:[%s7888_s1 + $0x5ac] sm:$0xf0]  ;;  %v3936_v0 = vor.u32 %v5031_v56, %v3935_v53  ;;  %1912 = vmatpush.bf16.msrb.mxu2 %v4208_v55 }
  0x3a   : > { %v4191_v60 = vld [vmem:[%s7888_s1 + $0x6a0] sm:$0xf]  ;;  %v5095_v61 = vld [vmem:[%s7888_s1 + $0x6ac] sm:$0xf0]  ;;  %v4064_v1 = vor.u32 %v5063_v58, %v4063_v57  ;;  %1925 = vmatpush.bf16.msrb.mxu3 %v4336_v59 }
  0x3b   : > { %v4319_v62 = vld [vmem:[%s7888_s1 + $0x7a0] sm:$0xf]  ;;  %v5127_v63 = vld [vmem:[%s7888_s1 + $0x7ac] sm:$0xf0]  ;;  %v4192_v4 = vor.u32 %v5095_v61, %v4191_v60  ;;  %1887 = vmatpush.bf16.msrb.mxu0 %v3936_v0 }
  0x3c   : > { %v255_v3 = vld [vmem:[%s5700_s17] sm:$0xff]  ;;  %v5027_v6 = vld [vmem:[%s7888_s1 + $0x48c] sm:$0xf0]  ;;  %v4320_v11 = vor.u32 %v5127_v63, %v4319_v62  ;;  %1900 = vmatpush.bf16.msrb.mxu1 %v4064_v1 }
  0x3d   : > { %v3919_v5 = vld [vmem:[%s7888_s1 + $0x480] sm:$0xf]  ;;  %v529_v9 = vunpack.c.l.b16 %v255_v3  ;;  %v5059_v12 = vld [vmem:[%s7888_s1 + $0x58c] sm:$0xf0]  ;;  %v530_v15 = vunpack.c.h.b16 %v255_v3  ;;  %1913 = vmatpush.bf16.msrb.mxu2 %v4192_v4  ;;  %v258_v3 = vld [vmem:[%s5700_s17 + $0x18] sm:$0xff] }
  0x3e   : > { %v4047_v7 = vld [vmem:[%s7888_s1 + $0x580] sm:$0xf]  ;;  %v5091_v14 = vld [vmem:[%s7888_s1 + $0x68c] sm:$0xf0]  ;;  %v3920_v21 = vor.u32 %v5027_v6, %v3919_v5  ;;  %1926 = vmatpush.bf16.msrb.mxu3 %v4320_v11 }
  0x3f   : > { %v4175_v13 = vld [vmem:[%s7888_s1 + $0x680] sm:$0xf]  ;;  %v5123_v17 = vld [vmem:[%s7888_s1 + $0x78c] sm:$0xf0]  ;;  %v5742_v19 = vpack.c.b16 %v529_v9, %v529_v9  ;;  %v5746_v22 = vpack.c.b16 %v530_v15, %v530_v15  ;;  %v4048_v23 = vor.u32 %v5059_v12, %v4047_v7  ;;  %v3457_v9 = vld [vmem:[%s7888_s1 + $0xf0] sm:$0xf0]  ;;  %v535_v15 = vunpack.c.l.b16 %v258_v3 }
  0x40   : > { %v4303_v16 = vld [vmem:[%s7888_s1 + $0x780] sm:$0xf]  ;;  %v4176_v24 = vor.u32 %v5091_v14, %v4175_v13  ;;  %v5023_v26 = vld [vmem:[%s7888_s1 + $0x46c] sm:$0xf0]  ;;  %1888 = vmatpush.bf16.msrb.mxu0 %v3920_v21  ;;  %v3585_v12 = vld [vmem:[%s7888_s1 + $0x1f0] sm:$0xf0] }
  0x41   : > { %v3903_v25 = vld [vmem:[%s7888_s1 + $0x460] sm:$0xf]  ;;  %v4304_v28 = vor.u32 %v5123_v17, %v4303_v16  ;;  %v5055_v29 = vld [vmem:[%s7888_s1 + $0x56c] sm:$0xf0]  ;;  %1841 = vmatmul.bf16.vlgmr.msra.gmra.mxu0 %v5742_v19  ;;  %1854 = vmatmul.bf16.vlgmr.msra.gmra.mxu1 %v5746_v22  ;;  %v4973_v13 = vld [vmem:[%s7888_s1 + $0x2e4] sm:$0xf] }
  0x42   : > { %v4031_v27 = vld [vmem:[%s7888_s1 + $0x560] sm:$0xf]  ;;  %v5087_v31 = vld [vmem:[%s7888_s1 + $0x66c] sm:$0xf0]  ;;  %v3904_v34 = vor.u32 %v5023_v26, %v3903_v25  ;;  %1901 = vmatpush.bf16.msrb.mxu1 %v4048_v23  ;;  %1914 = vmatpush.bf16.msrb.mxu2 %v4176_v24  ;;  %v3713_v14 = vld [vmem:[%s7888_s1 + $0x2f0] sm:$0xf0]  ;;  %v536_v25 = vunpack.c.h.b16 %v258_v3 }
  0x43   : > { %v4159_v30 = vld [vmem:[%s7888_s1 + $0x660] sm:$0xf]  ;;  %v5119_v33 = vld [vmem:[%s7888_s1 + $0x76c] sm:$0xf0]  ;;  %v4032_v35 = vor.u32 %v5055_v29, %v4031_v27  ;;  %1927 = vmatpush.bf16.msrb.mxu3 %v4304_v28  ;;  %v5005_v21 = vld [vmem:[%s7888_s1 + $0x3e4] sm:$0xf]  ;;  %v3460_v27 = vor.u32 %v4909_v8, %v3457_v9  ;;  %v3588_v29 = vor.u32 %v4941_v10, %v3585_v12 }
  0x44   : > { %v4287_v32 = vld [vmem:[%s7888_s1 + $0x760] sm:$0xf]  ;;  %v4160_v36 = vor.u32 %v5087_v31, %v4159_v30  ;;  %v5019_v38 = vld [vmem:[%s7888_s1 + $0x44c] sm:$0xf0]  ;;  %1889 = vmatpush.bf16.msrb.mxu0 %v3904_v34  ;;  %v3841_v23 = vld [vmem:[%s7888_s1 + $0x3f0] sm:$0xf0]  ;;  %v3716_v30 = vor.u32 %v4973_v13, %v3713_v14 }
  0x45   : > { %v3887_v37 = vld [vmem:[%s7888_s1 + $0x440] sm:$0xf]  ;;  %v4288_v40 = vor.u32 %v5119_v33, %v4287_v32  ;;  %v5051_v41 = vld [vmem:[%s7888_s1 + $0x54c] sm:$0xf0]  ;;  %v4905_v31 = vld [vmem:[%s7888_s1 + $0xc4] sm:$0xf]  ;;  %v3844_v34 = vor.u32 %v5005_v21, %v3841_v23 }
  0x46   : > { %v4015_v39 = vld [vmem:[%s7888_s1 + $0x540] sm:$0xf]  ;;  %v5083_v43 = vld [vmem:[%s7888_s1 + $0x64c] sm:$0xf0]  ;;  %v3888_v46 = vor.u32 %v5019_v38, %v3887_v37  ;;  %1902 = vmatpush.bf16.msrb.mxu1 %v4032_v35  ;;  %1915 = vmatpush.bf16.msrb.mxu2 %v4160_v36  ;;  %v3441_v32 = vld [vmem:[%s7888_s1 + $0xd0] sm:$0xf0]  ;;  %v5892_v38 = vpack.c.b16 %v535_v15, %v535_v15 }
  0x47   : > { %v4143_v42 = vld [vmem:[%s7888_s1 + $0x640] sm:$0xf]  ;;  %v5115_v45 = vld [vmem:[%s7888_s1 + $0x74c] sm:$0xf0]  ;;  %v4016_v47 = vor.u32 %v5051_v41, %v4015_v39  ;;  %1928 = vmatpush.bf16.msrb.mxu3 %v4288_v40  ;;  %v4937_v33 = vld [vmem:[%s7888_s1 + $0x1c4] sm:$0xf] }
  0x48   : > { %v4271_v44 = vld [vmem:[%s7888_s1 + $0x740] sm:$0xf]  ;;  %v4144_v48 = vor.u32 %v5083_v43, %v4143_v42  ;;  %v5015_v50 = vld [vmem:[%s7888_s1 + $0x42c] sm:$0xf0]  ;;  %1890 = vmatpush.bf16.msrb.mxu0 %v3888_v46  ;;  %v3569_v35 = vld [vmem:[%s7888_s1 + $0x1d0] sm:$0xf0]  ;;  %v5902_v42 = vpack.c.b16 %v536_v25, %v536_v25  ;;  %v3444_v43 = vor.u32 %v4905_v31, %v3441_v32 }
  0x49   : > { %v3871_v49 = vld [vmem:[%s7888_s1 + $0x420] sm:$0xf]  ;;  %v4272_v52 = vor.u32 %v5115_v45, %v4271_v44  ;;  %v5047_v53 = vld [vmem:[%s7888_s1 + $0x52c] sm:$0xf0]  ;;  %v4969_v36 = vld [vmem:[%s7888_s1 + $0x2c4] sm:$0xf]  ;;  %v3572_v45 = vor.u32 %v4937_v33, %v3569_v35 }
  0x4a   : > { %v3999_v51 = vld [vmem:[%s7888_s1 + $0x520] sm:$0xf]  ;;  %v5079_v55 = vld [vmem:[%s7888_s1 + $0x62c] sm:$0xf0]  ;;  %v3872_v59 = vor.u32 %v5015_v50, %v3871_v49  ;;  %1903 = vmatpush.bf16.msrb.mxu1 %v4016_v47  ;;  %1916 = vmatpush.bf16.msrb.mxu2 %v4144_v48  ;;  %v3697_v37 = vld [vmem:[%s7888_s1 + $0x2d0] sm:$0xf0] }
  0x4b   : > { %v4127_v54 = vld [vmem:[%s7888_s1 + $0x620] sm:$0xf]  ;;  %v5111_v57 = vld [vmem:[%s7888_s1 + $0x72c] sm:$0xf0]  ;;  %v4000_v63 = vor.u32 %v5047_v53, %v3999_v51  ;;  %1929 = vmatpush.bf16.msrb.mxu3 %v4272_v52  ;;  %v5001_v39 = vld [vmem:[%s7888_s1 + $0x3c4] sm:$0xf]  ;;  %v3700_v46 = vor.u32 %v4969_v36, %v3697_v37 }
  0x4c   : > { %v4255_v56 = vld [vmem:[%s7888_s1 + $0x720] sm:$0xf]  ;;  %v5011_v60 = vld [vmem:[%s7888_s1 + $0x40c] sm:$0xf0]  ;;  %v4128_v0 = vor.u32 %v5079_v55, %v4127_v54  ;;  %1891 = vmatpush.bf16.msrb.mxu0 %v3872_v59  ;;  %v3825_v40 = vld [vmem:[%s7888_s1 + $0x3d0] sm:$0xf0] }
  0x4d   : > { %v3855_v58 = vld [vmem:[%s7888_s1 + $0x400] sm:$0xf]  ;;  %v5043_v62 = vld [vmem:[%s7888_s1 + $0x50c] sm:$0xf0]  ;;  %v4256_v4 = vor.u32 %v5111_v57, %v4255_v56  ;;  %v4901_v47 = vld [vmem:[%s7888_s1 + $0xa4] sm:$0xf]  ;;  %v3828_v50 = vor.u32 %v5001_v39, %v3825_v40 }
  0x4e   : > { %v3983_v61 = vld [vmem:[%s7888_s1 + $0x500] sm:$0xf]  ;;  %v5075_v2 = vld [vmem:[%s7888_s1 + $0x60c] sm:$0xf0]  ;;  %v3856_v11 = vor.u32 %v5011_v60, %v3855_v58  ;;  %1904 = vmatpush.bf16.msrb.mxu1 %v4000_v63  ;;  %1917 = vmatpush.bf16.msrb.mxu2 %v4128_v0  ;;  %v3425_v48 = vld [vmem:[%s7888_s1 + $0xb0] sm:$0xf0] }
  0x4f   : > { %v4111_v1 = vld [vmem:[%s7888_s1 + $0x600] sm:$0xf]  ;;  %v5107_v6 = vld [vmem:[%s7888_s1 + $0x70c] sm:$0xf0]  ;;  %v3984_v16 = vor.u32 %v5043_v62, %v3983_v61  ;;  %1930 = vmatpush.bf16.msrb.mxu3 %v4256_v4  ;;  %v4933_v49 = vld [vmem:[%s7888_s1 + $0x1a4] sm:$0xf]  ;;  %v3428_v56 = vor.u32 %v4901_v47, %v3425_v48 }
  0x50   : > { %v4239_v5 = vld [vmem:[%s7888_s1 + $0x700] sm:$0xf]  ;;  %v257_v7 = vld [vmem:[%s5700_s17 + $0x10] sm:$0xff]  ;;  %v4112_v17 = vor.u32 %v5075_v2, %v4111_v1  ;;  %1892 = vmatpush.bf16.msrb.mxu0 %v3856_v11  ;;  %v4965_v52 = vld [vmem:[%s7888_s1 + $0x2a4] sm:$0xf] }
  0x51   : > { %v533_v24 = vunpack.c.l.b16 %v257_v7  ;;  %v4240_v26 = vor.u32 %v5107_v6, %v4239_v5  ;;  %v534_v28 = vunpack.c.h.b16 %v257_v7  ;;  %v3553_v51 = vld [vmem:[%s7888_s1 + $0x1b0] sm:$0xf0]  ;;  %v4997_v54 = vld [vmem:[%s7888_s1 + $0x3a4] sm:$0xf] }
  0x52   : > { %1905 = vmatpush.bf16.msrb.mxu1 %v3984_v16  ;;  %1918 = vmatpush.bf16.msrb.mxu2 %v4112_v17  ;;  %v3681_v53 = vld [vmem:[%s7888_s1 + $0x2b0] sm:$0xf0]  ;;  %v3556_v57 = vor.u32 %v4933_v49, %v3553_v51  ;;  %v4897_v59 = vld [vmem:[%s7888_s1 + $0x84] sm:$0xf] }
  0x53   : > { %v5900_v41 = vpack.c.b16 %v533_v24, %v533_v24  ;;  %1931 = vmatpush.bf16.msrb.mxu3 %v4240_v26  ;;  %v5904_v44 = vpack.c.b16 %v534_v28, %v534_v28  ;;  %v3809_v55 = vld [vmem:[%s7888_s1 + $0x3b0] sm:$0xf0]  ;;  %v3684_v58 = vor.u32 %v4965_v52, %v3681_v53  ;;  %v4929_v61 = vld [vmem:[%s7888_s1 + $0x184] sm:$0xf] }
  0x54   : > { %1937 = vmatpush.bf16.msra.mxu0 %v3460_v27  ;;  %v3409_v60 = vld [vmem:[%s7888_s1 + $0x90] sm:$0xf0]  ;;  %v3812_v62 = vor.u32 %v4997_v54, %v3809_v55  ;;  %v4961_v0 = vld [vmem:[%s7888_s1 + $0x284] sm:$0xf] }
  0x55   : > { %1919 = vmatmul.bf16.vlgmr.msrb.gmra.mxu2 %v5892_v38  ;;  %1893 = vmatmul.bf16.vlgmr.msrb.gmra.mxu0 %v5900_v41  ;;  %v3537_v63 = vld [vmem:[%s7888_s1 + $0x190] sm:$0xf0]  ;;  %v4993_v2 = vld [vmem:[%s7888_s1 + $0x384] sm:$0xf]  ;;  %v3412_v4 = vor.u32 %v4897_v59, %v3409_v60 }
  0x56   : > { %1950 = vmatpush.bf16.msra.mxu1 %v3588_v29  ;;  %1963 = vmatpush.bf16.msra.mxu2 %v3716_v30  ;;  %v3665_v1 = vld [vmem:[%s7888_s1 + $0x290] sm:$0xf0]  ;;  %v3540_v5 = vor.u32 %v4929_v61, %v3537_v63  ;;  %v4893_v7 = vld [vmem:[%s7888_s1 + $0x64] sm:$0xf] }
  0x57   : > { %1976 = vmatpush.bf16.msra.mxu3 %v3844_v34  ;;  %1906 = vmatmul.bf16.vlgmr.msrb.gmra.mxu1 %v5904_v44  ;;  %v3793_v3 = vld [vmem:[%s7888_s1 + $0x390] sm:$0xf0]  ;;  %v3668_v6 = vor.u32 %v4961_v0, %v3665_v1  ;;  %v4925_v9 = vld [vmem:[%s7888_s1 + $0x164] sm:$0xf] }
  0x58   : > { %1932 = vmatmul.bf16.vlgmr.msrb.gmra.mxu3 %v5902_v42  ;;  %1938 = vmatpush.bf16.msra.mxu0 %v3444_v43  ;;  %v3393_v8 = vld [vmem:[%s7888_s1 + $0x70] sm:$0xf0]  ;;  %v3796_v10 = vor.u32 %v4993_v2, %v3793_v3  ;;  %v4957_v12 = vld [vmem:[%s7888_s1 + $0x264] sm:$0xf] }
  0x59   : > { %v3521_v11 = vld [vmem:[%s7888_s1 + $0x170] sm:$0xf0]  ;;  %v4989_v14 = vld [vmem:[%s7888_s1 + $0x364] sm:$0xf]  ;;  %v3396_v16 = vor.u32 %v4893_v7, %v3393_v8 }
  0x5a   : > { %1951 = vmatpush.bf16.msra.mxu1 %v3572_v45  ;;  %1964 = vmatpush.bf16.msra.mxu2 %v3700_v46  ;;  %v3649_v13 = vld [vmem:[%s7888_s1 + $0x270] sm:$0xf0]  ;;  %v3524_v17 = vor.u32 %v4925_v9, %v3521_v11  ;;  %v4889_v23 = vld [vmem:[%s7888_s1 + $0x44] sm:$0xf] }
  0x5b   : > { %1977 = vmatpush.bf16.msra.mxu3 %v3828_v50  ;;  %v3777_v15 = vld [vmem:[%s7888_s1 + $0x370] sm:$0xf0]  ;;  %v3652_v21 = vor.u32 %v4957_v12, %v3649_v13  ;;  %v4921_v25 = vld [vmem:[%s7888_s1 + $0x144] sm:$0xf] }
  0x5c   : > { %1939 = vmatpush.bf16.msra.mxu0 %v3428_v56  ;;  %v3377_v24 = vld [vmem:[%s7888_s1 + $0x50] sm:$0xf0]  ;;  %v3780_v26 = vor.u32 %v4989_v14, %v3777_v15  ;;  %v4953_v28 = vld [vmem:[%s7888_s1 + $0x244] sm:$0xf] }
  0x5d   : > { %v3505_v27 = vld [vmem:[%s7888_s1 + $0x150] sm:$0xf0]  ;;  %v4985_v30 = vld [vmem:[%s7888_s1 + $0x344] sm:$0xf]  ;;  %v3380_v32 = vor.u32 %v4889_v23, %v3377_v24 }
  0x5e   : > { %1952 = vmatpush.bf16.msra.mxu1 %v3556_v57  ;;  %1965 = vmatpush.bf16.msra.mxu2 %v3684_v58  ;;  %v3633_v29 = vld [vmem:[%s7888_s1 + $0x250] sm:$0xf0]  ;;  %v3508_v33 = vor.u32 %v4921_v25, %v3505_v27  ;;  %v4885_v35 = vld [vmem:[%s7888_s1 + $0x24] sm:$0xf] }
  0x5f   : > { %1978 = vmatpush.bf16.msra.mxu3 %v3812_v62  ;;  %v3761_v31 = vld [vmem:[%s7888_s1 + $0x350] sm:$0xf0]  ;;  %v3636_v34 = vor.u32 %v4953_v28, %v3633_v29  ;;  %v4917_v37 = vld [vmem:[%s7888_s1 + $0x124] sm:$0xf] }
  0x60   : > { %1940 = vmatpush.bf16.msra.mxu0 %v3412_v4  ;;  %v3361_v36 = vld [vmem:[%s7888_s1 + $0x30] sm:$0xf0]  ;;  %v3764_v39 = vor.u32 %v4985_v30, %v3761_v31  ;;  %v4949_v43 = vld [vmem:[%s7888_s1 + $0x224] sm:$0xf] }
  0x61   : > { %v3489_v40 = vld [vmem:[%s7888_s1 + $0x130] sm:$0xf0]  ;;  %v4981_v46 = vld [vmem:[%s7888_s1 + $0x324] sm:$0xf]  ;;  %v3364_v48 = vor.u32 %v4885_v35, %v3361_v36 }
  0x62   : > { %1953 = vmatpush.bf16.msra.mxu1 %v3540_v5  ;;  %1966 = vmatpush.bf16.msra.mxu2 %v3668_v6  ;;  %v3617_v45 = vld [vmem:[%s7888_s1 + $0x230] sm:$0xf0]  ;;  %v4881_v49 = vld [vmem:[%s7888_s1 + $0x4] sm:$0xf]  ;;  %v3492_v51 = vor.u32 %v4917_v37, %v3489_v40 }
  0x63   : > { %1979 = vmatpush.bf16.msra.mxu3 %v3796_v10  ;;  %v3745_v47 = vld [vmem:[%s7888_s1 + $0x330] sm:$0xf0]  ;;  %v3620_v52 = vor.u32 %v4949_v43, %v3617_v45  ;;  %v4913_v53 = vld [vmem:[%s7888_s1 + $0x104] sm:$0xf] }
  0x64   : > { %1941 = vmatpush.bf16.msra.mxu0 %v3396_v16  ;;  %v3345_v50 = vld [vmem:[%s7888_s1 + $0x10] sm:$0xf0]  ;;  %v4945_v55 = vld [vmem:[%s7888_s1 + $0x204] sm:$0xf]  ;;  %v3748_v56 = vor.u32 %v4981_v46, %v3745_v47 }
  0x65   : > { %v3473_v54 = vld [vmem:[%s7888_s1 + $0x110] sm:$0xf0]  ;;  %v4977_v58 = vld [vmem:[%s7888_s1 + $0x304] sm:$0xf]  ;;  %v3348_v63 = vor.u32 %v4881_v49, %v3345_v50 }
  0x66   : > { %1954 = vmatpush.bf16.msra.mxu1 %v3524_v17  ;;  %1967 = vmatpush.bf16.msra.mxu2 %v3652_v21  ;;  %v3601_v57 = vld [vmem:[%s7888_s1 + $0x210] sm:$0xf0]  ;;  %v5037_v60 = vld [vmem:[%s7888_s1 + $0x4e4] sm:$0xf]  ;;  %v3476_v3 = vor.u32 %v4913_v53, %v3473_v54 }
  0x67   : > { %1980 = vmatpush.bf16.msra.mxu3 %v3780_v26  ;;  %v3729_v59 = vld [vmem:[%s7888_s1 + $0x310] sm:$0xf0]  ;;  %v5069_v62 = vld [vmem:[%s7888_s1 + $0x5e4] sm:$0xf]  ;;  %v3604_v4 = vor.u32 %v4945_v55, %v3601_v57 }
  0x68   : > { %1942 = vmatpush.bf16.msra.mxu0 %v3380_v32  ;;  %v3969_v61 = vld [vmem:[%s7888_s1 + $0x4f0] sm:$0xf0]  ;;  %v5101_v1 = vld [vmem:[%s7888_s1 + $0x6e4] sm:$0xf]  ;;  %v3732_v7 = vor.u32 %v4977_v58, %v3729_v59 }
  0x69   : > { %v4097_v0 = vld [vmem:[%s7888_s1 + $0x5f0] sm:$0xf0]  ;;  %v5133_v5 = vld [vmem:[%s7888_s1 + $0x7e4] sm:$0xf]  ;;  %v3972_v8 = vor.u32 %v5037_v60, %v3969_v61 }
  0x6a   : > { %1955 = vmatpush.bf16.msra.mxu1 %v3508_v33  ;;  %1968 = vmatpush.bf16.msra.mxu2 %v3636_v34  ;;  %v4225_v2 = vld [vmem:[%s7888_s1 + $0x6f0] sm:$0xf0]  ;;  %v4100_v9 = vor.u32 %v5069_v62, %v4097_v0  ;;  %v5033_v11 = vld [vmem:[%s7888_s1 + $0x4c4] sm:$0xf] }
  0x6b   : > { %1981 = vmatpush.bf16.msra.mxu3 %v3764_v39  ;;  %v4353_v6 = vld [vmem:[%s7888_s1 + $0x7f0] sm:$0xf0]  ;;  %v4228_v10 = vor.u32 %v5101_v1, %v4225_v2  ;;  %v5065_v13 = vld [vmem:[%s7888_s1 + $0x5c4] sm:$0xf] }
  0x6c   : > { %1943 = vmatpush.bf16.msra.mxu0 %v3364_v48  ;;  %v3953_v12 = vld [vmem:[%s7888_s1 + $0x4d0] sm:$0xf0]  ;;  %v4356_v14 = vor.u32 %v5133_v5, %v4353_v6  ;;  %v5097_v16 = vld [vmem:[%s7888_s1 + $0x6c4] sm:$0xf] }
  0x6d   : > { %v4081_v15 = vld [vmem:[%s7888_s1 + $0x5d0] sm:$0xf0]  ;;  %v5129_v21 = vld [vmem:[%s7888_s1 + $0x7c4] sm:$0xf]  ;;  %v3956_v24 = vor.u32 %v5033_v11, %v3953_v12 }
  0x6e   : > { %1956 = vmatpush.bf16.msra.mxu1 %v3492_v51  ;;  %1969 = vmatpush.bf16.msra.mxu2 %v3620_v52  ;;  %v4209_v17 = vld [vmem:[%s7888_s1 + $0x6d0] sm:$0xf0]  ;;  %v4084_v25 = vor.u32 %v5065_v13, %v4081_v15  ;;  %v5029_v27 = vld [vmem:[%s7888_s1 + $0x4a4] sm:$0xf] }
  0x6f   : > { %1982 = vmatpush.bf16.msra.mxu3 %v3748_v56  ;;  %v4337_v23 = vld [vmem:[%s7888_s1 + $0x7d0] sm:$0xf0]  ;;  %v4212_v26 = vor.u32 %v5097_v16, %v4209_v17  ;;  %v5061_v29 = vld [vmem:[%s7888_s1 + $0x5a4] sm:$0xf] }
  0x70   : > { %1944 = vmatpush.bf16.msra.mxu0 %v3348_v63  ;;  %v3937_v28 = vld [vmem:[%s7888_s1 + $0x4b0] sm:$0xf0]  ;;  %v4340_v30 = vor.u32 %v5129_v21, %v4337_v23  ;;  %v5093_v32 = vld [vmem:[%s7888_s1 + $0x6a4] sm:$0xf] }
  0x71   : > { %v4065_v31 = vld [vmem:[%s7888_s1 + $0x5b0] sm:$0xf0]  ;;  %v5125_v34 = vld [vmem:[%s7888_s1 + $0x7a4] sm:$0xf]  ;;  %v3940_v36 = vor.u32 %v5029_v27, %v3937_v28 }
  0x72   : > { %1957 = vmatpush.bf16.msra.mxu1 %v3476_v3  ;;  %1970 = vmatpush.bf16.msra.mxu2 %v3604_v4  ;;  %v4193_v33 = vld [vmem:[%s7888_s1 + $0x6b0] sm:$0xf0]  ;;  %v4068_v37 = vor.u32 %v5061_v29, %v4065_v31  ;;  %v5025_v40 = vld [vmem:[%s7888_s1 + $0x484] sm:$0xf] }
  0x73   : > { %1983 = vmatpush.bf16.msra.mxu3 %v3732_v7  ;;  %v4321_v35 = vld [vmem:[%s7888_s1 + $0x7b0] sm:$0xf0]  ;;  %1945 = vmatmul.bf16.vlgmr.msra.gmra.mxu0 %v5742_v19  ;;  %v4196_v39 = vor.u32 %v5093_v32, %v4193_v33  ;;  %v5057_v45 = vld [vmem:[%s7888_s1 + $0x584] sm:$0xf] }
  0x74   : > { %1989 = vmatpush.bf16.msrb.mxu0 %v3972_v8  ;;  %v3921_v43 = vld [vmem:[%s7888_s1 + $0x490] sm:$0xf0]  ;;  %v4324_v46 = vor.u32 %v5125_v34, %v4321_v35  ;;  %v5089_v48 = vld [vmem:[%s7888_s1 + $0x684] sm:$0xf] }
  0x75   : > { %1971 = vmatmul.bf16.vlgmr.msra.gmra.mxu2 %v5740_v18  ;;  %1958 = vmatmul.bf16.vlgmr.msra.gmra.mxu1 %v5746_v22  ;;  %v4049_v47 = vld [vmem:[%s7888_s1 + $0x590] sm:$0xf0]  ;;  %v5121_v50 = vld [vmem:[%s7888_s1 + $0x784] sm:$0xf]  ;;  %v3924_v52 = vor.u32 %v5025_v40, %v3921_v43  ;;  %v3463_v43 = vld [vmem:[%s7888_s1 + $0xe8] sm:$0xf] }
  0x76   : > { %2002 = vmatpush.bf16.msrb.mxu1 %v4100_v9  ;;  %2015 = vmatpush.bf16.msrb.mxu2 %v4228_v10  ;;  %v4177_v49 = vld [vmem:[%s7888_s1 + $0x690] sm:$0xf0]  ;;  %v4052_v53 = vor.u32 %v5057_v45, %v4049_v47  ;;  %v5021_v55 = vld [vmem:[%s7888_s1 + $0x464] sm:$0xf]  ;;  %v4912_v45 = vld [vmem:[%s7888_s1 + $0xf4] sm:$0xf0] }
  0x77   : > { %2028 = vmatpush.bf16.msrb.mxu3 %v4356_v14  ;;  %v4305_v51 = vld [vmem:[%s7888_s1 + $0x790] sm:$0xf0]  ;;  %v4180_v54 = vor.u32 %v5089_v48, %v4177_v49  ;;  %v5053_v57 = vld [vmem:[%s7888_s1 + $0x564] sm:$0xf]  ;;  %v4944_v48 = vld [vmem:[%s7888_s1 + $0x1f4] sm:$0xf0] }
  0x78   : > { %1984 = vmatmul.bf16.vlgmr.msra.gmra.mxu3 %v5744_v20  ;;  %1990 = vmatpush.bf16.msrb.mxu0 %v3956_v24  ;;  %v3905_v56 = vld [vmem:[%s7888_s1 + $0x470] sm:$0xf0]  ;;  %v4308_v58 = vor.u32 %v5121_v50, %v4305_v51  ;;  %v5085_v60 = vld [vmem:[%s7888_s1 + $0x664] sm:$0xf]  ;;  %v3719_v49 = vld [vmem:[%s7888_s1 + $0x2e8] sm:$0xf] }
  0x79   : > { %v4033_v59 = vld [vmem:[%s7888_s1 + $0x570] sm:$0xf0]  ;;  %v5117_v62 = vld [vmem:[%s7888_s1 + $0x764] sm:$0xf]  ;;  %v3908_v0 = vor.u32 %v5021_v55, %v3905_v56  ;;  %v4976_v50 = vld [vmem:[%s7888_s1 + $0x2f4] sm:$0xf0]  ;;  %v3464_v56 = vor.u32 %v4912_v45, %v3463_v43 }
  0x7a   : > { %2003 = vmatpush.bf16.msrb.mxu1 %v4084_v25  ;;  %2016 = vmatpush.bf16.msrb.mxu2 %v4212_v26  ;;  %v4161_v61 = vld [vmem:[%s7888_s1 + $0x670] sm:$0xf0]  ;;  %v4036_v1 = vor.u32 %v5053_v57, %v4033_v59  ;;  %v5017_v3 = vld [vmem:[%s7888_s1 + $0x444] sm:$0xf]  ;;  %v3447_v59 = vld [vmem:[%s7888_s1 + $0xc8] sm:$0xf] }
  0x7b   : > { %2029 = vmatpush.bf16.msrb.mxu3 %v4340_v30  ;;  %v4289_v63 = vld [vmem:[%s7888_s1 + $0x770] sm:$0xf0]  ;;  %v4164_v2 = vor.u32 %v5085_v60, %v4161_v61  ;;  %v5049_v5 = vld [vmem:[%s7888_s1 + $0x544] sm:$0xf]  ;;  %v4908_v60 = vld [vmem:[%s7888_s1 + $0xd4] sm:$0xf0] }
  0x7c   : > { %1991 = vmatpush.bf16.msrb.mxu0 %v3940_v36  ;;  %v3889_v4 = vld [vmem:[%s7888_s1 + $0x450] sm:$0xf0]  ;;  %v4292_v6 = vor.u32 %v5117_v62, %v4289_v63  ;;  %v5081_v8 = vld [vmem:[%s7888_s1 + $0x644] sm:$0xf]  ;;  %v3575_v61 = vld [vmem:[%s7888_s1 + $0x1c8] sm:$0xf] }
  0x7d   : > { %v4017_v7 = vld [vmem:[%s7888_s1 + $0x550] sm:$0xf0]  ;;  %v5113_v10 = vld [vmem:[%s7888_s1 + $0x744] sm:$0xf]  ;;  %v3892_v12 = vor.u32 %v5017_v3, %v3889_v4  ;;  %v4940_v63 = vld [vmem:[%s7888_s1 + $0x1d4] sm:$0xf0]  ;;  %v3448_v4 = vor.u32 %v4908_v60, %v3447_v59 }
  0x7e   : > { %2004 = vmatpush.bf16.msrb.mxu1 %v4068_v37  ;;  %2017 = vmatpush.bf16.msrb.mxu2 %v4196_v39  ;;  %v4145_v9 = vld [vmem:[%s7888_s1 + $0x650] sm:$0xf0]  ;;  %v4020_v13 = vor.u32 %v5049_v5, %v4017_v7  ;;  %v5013_v15 = vld [vmem:[%s7888_s1 + $0x424] sm:$0xf]  ;;  %v5004_v3 = vld [vmem:[%s7888_s1 + $0x3d4] sm:$0xf0]  ;;  %v3576_v5 = vor.u32 %v4940_v63, %v3575_v61 }
  0x7f   : > { %2030 = vmatpush.bf16.msrb.mxu3 %v4324_v46  ;;  %v4273_v11 = vld [vmem:[%s7888_s1 + $0x750] sm:$0xf0]  ;;  %v4148_v14 = vor.u32 %v5081_v8, %v4145_v9  ;;  %v5045_v17 = vld [vmem:[%s7888_s1 + $0x524] sm:$0xf]  ;;  %v3591_v46 = vld [vmem:[%s7888_s1 + $0x1e8] sm:$0xf] }
  0x80   : > { %1992 = vmatpush.bf16.msrb.mxu0 %v3924_v52  ;;  %v3873_v16 = vld [vmem:[%s7888_s1 + $0x430] sm:$0xf0]  ;;  %v4276_v21 = vor.u32 %v5113_v10, %v4273_v11  ;;  %v5077_v24 = vld [vmem:[%s7888_s1 + $0x624] sm:$0xf]  ;;  %v3592_v57 = vor.u32 %v4944_v48, %v3591_v46  ;;  %v3431_v7 = vld [vmem:[%s7888_s1 + $0xa8] sm:$0xf] }
  0x81   : > { %v4001_v23 = vld [vmem:[%s7888_s1 + $0x530] sm:$0xf0]  ;;  %v5109_v26 = vld [vmem:[%s7888_s1 + $0x724] sm:$0xf]  ;;  %v3876_v28 = vor.u32 %v5013_v15, %v3873_v16  ;;  %v4904_v8 = vld [vmem:[%s7888_s1 + $0xb4] sm:$0xf0] }
  0x82   : > { %2005 = vmatpush.bf16.msrb.mxu1 %v4052_v53  ;;  %2018 = vmatpush.bf16.msrb.mxu2 %v4180_v54  ;;  %v4129_v25 = vld [vmem:[%s7888_s1 + $0x630] sm:$0xf0]  ;;  %v5009_v29 = vld [vmem:[%s7888_s1 + $0x404] sm:$0xf]  ;;  %v4004_v31 = vor.u32 %v5045_v17, %v4001_v23  ;;  %v3847_v53 = vld [vmem:[%s7888_s1 + $0x3e8] sm:$0xf]  ;;  %v3432_v16 = vor.u32 %v4904_v8, %v3431_v7 }
  0x83   : > { %2031 = vmatpush.bf16.msrb.mxu3 %v4308_v58  ;;  %v4257_v27 = vld [vmem:[%s7888_s1 + $0x730] sm:$0xf0]  ;;  %v4132_v32 = vor.u32 %v5077_v24, %v4129_v25  ;;  %v5041_v33 = vld [vmem:[%s7888_s1 + $0x504] sm:$0xf]  ;;  %v5008_v54 = vld [vmem:[%s7888_s1 + $0x3f4] sm:$0xf0]  ;;  %v3720_v58 = vor.u32 %v4976_v50, %v3719_v49 }
  0x84   : > { %1993 = vmatpush.bf16.msrb.mxu0 %v3908_v0  ;;  %v3857_v30 = vld [vmem:[%s7888_s1 + $0x410] sm:$0xf0]  ;;  %v5073_v35 = vld [vmem:[%s7888_s1 + $0x604] sm:$0xf]  ;;  %v4260_v36 = vor.u32 %v5109_v26, %v4257_v27  ;;  %v3848_v62 = vor.u32 %v5008_v54, %v3847_v53  ;;  %v3703_v0 = vld [vmem:[%s7888_s1 + $0x2c8] sm:$0xf] }
  0x85   : > { %v3985_v34 = vld [vmem:[%s7888_s1 + $0x510] sm:$0xf0]  ;;  %v5105_v39 = vld [vmem:[%s7888_s1 + $0x704] sm:$0xf]  ;;  %v3860_v47 = vor.u32 %v5009_v29, %v3857_v30  ;;  %v3559_v9 = vld [vmem:[%s7888_s1 + $0x1a8] sm:$0xf] }
  0x86   : > { %2006 = vmatpush.bf16.msrb.mxu1 %v4036_v1  ;;  %2019 = vmatpush.bf16.msrb.mxu2 %v4164_v2  ;;  %v4113_v37 = vld [vmem:[%s7888_s1 + $0x610] sm:$0xf0]  ;;  %v3988_v51 = vor.u32 %v5041_v33, %v3985_v34  ;;  %v4972_v1 = vld [vmem:[%s7888_s1 + $0x2d4] sm:$0xf0]  ;;  %v3831_v2 = vld [vmem:[%s7888_s1 + $0x3c8] sm:$0xf] }
  0x87   : > { %2032 = vmatpush.bf16.msrb.mxu3 %v4292_v6  ;;  %v4241_v40 = vld [vmem:[%s7888_s1 + $0x710] sm:$0xf0]  ;;  %v4116_v52 = vor.u32 %v5073_v35, %v4113_v37  ;;  %v3704_v6 = vor.u32 %v4972_v1, %v3703_v0  ;;  %v3832_v10 = vor.u32 %v5004_v3, %v3831_v2  ;;  %v4936_v11 = vld [vmem:[%s7888_s1 + $0x1b4] sm:$0xf0]  ;;  %v3415_v23 = vld [vmem:[%s7888_s1 + $0x88] sm:$0xf] }
  0x88   : > { %1994 = vmatpush.bf16.msrb.mxu0 %v3892_v12  ;;  %v4244_v55 = vor.u32 %v5105_v39, %v4241_v40  ;;  %v3687_v12 = vld [vmem:[%s7888_s1 + $0x2a8] sm:$0xf]  ;;  %v5000_v15 = vld [vmem:[%s7888_s1 + $0x3b4] sm:$0xf0]  ;;  %v3560_v17 = vor.u32 %v4936_v11, %v3559_v9 }
  0x89   : > { %v4900_v24 = vld [vmem:[%s7888_s1 + $0x94] sm:$0xf0]  ;;  %v3543_v25 = vld [vmem:[%s7888_s1 + $0x188] sm:$0xf] }
  0x8a   : > { %2007 = vmatpush.bf16.msrb.mxu1 %v4020_v13  ;;  %2020 = vmatpush.bf16.msrb.mxu2 %v4148_v14  ;;  %v4968_v13 = vld [vmem:[%s7888_s1 + $0x2b4] sm:$0xf0]  ;;  %v3815_v14 = vld [vmem:[%s7888_s1 + $0x3a8] sm:$0xf] }
  0x8b   : > { %2033 = vmatpush.bf16.msrb.mxu3 %v4276_v21  ;;  %v3688_v21 = vor.u32 %v4968_v13, %v3687_v12  ;;  %v3816_v26 = vor.u32 %v5000_v15, %v3815_v14  ;;  %v4932_v27 = vld [vmem:[%s7888_s1 + $0x194] sm:$0xf0]  ;;  %v3799_v30 = vld [vmem:[%s7888_s1 + $0x388] sm:$0xf] }
  0x8c   : > { %1995 = vmatpush.bf16.msrb.mxu0 %v3876_v28  ;;  %v3671_v28 = vld [vmem:[%s7888_s1 + $0x288] sm:$0xf]  ;;  %v4964_v29 = vld [vmem:[%s7888_s1 + $0x294] sm:$0xf0]  ;;  %v3544_v33 = vor.u32 %v4932_v27, %v3543_v25 }
  0x8d   : > { %v3672_v34 = vor.u32 %v4964_v29, %v3671_v28  ;;  %v3399_v35 = vld [vmem:[%s7888_s1 + $0x68] sm:$0xf]  ;;  %v4928_v40 = vld [vmem:[%s7888_s1 + $0x174] sm:$0xf0] }
  0x8e   : > { %2008 = vmatpush.bf16.msrb.mxu1 %v4004_v31  ;;  %2021 = vmatpush.bf16.msrb.mxu2 %v4132_v32  ;;  %v4996_v31 = vld [vmem:[%s7888_s1 + $0x394] sm:$0xf0]  ;;  %v3416_v32 = vor.u32 %v4900_v24, %v3415_v23  ;;  %v3527_v37 = vld [vmem:[%s7888_s1 + $0x168] sm:$0xf] }
  0x8f   : > { %2034 = vmatpush.bf16.msrb.mxu3 %v4260_v36  ;;  %v4896_v36 = vld [vmem:[%s7888_s1 + $0x74] sm:$0xf0]  ;;  %v3800_v39 = vor.u32 %v4996_v31, %v3799_v30  ;;  %v3655_v43 = vld [vmem:[%s7888_s1 + $0x268] sm:$0xf]  ;;  %v3528_v49 = vor.u32 %v4928_v40, %v3527_v37 }
  0x90   : > { %1996 = vmatpush.bf16.msrb.mxu0 %v3860_v47  ;;  %v4960_v45 = vld [vmem:[%s7888_s1 + $0x274] sm:$0xf0]  ;;  %v3783_v46 = vld [vmem:[%s7888_s1 + $0x368] sm:$0xf]  ;;  %v3400_v48 = vor.u32 %v4896_v36, %v3399_v35 }
  0x91   : > { %v4992_v47 = vld [vmem:[%s7888_s1 + $0x374] sm:$0xf0]  ;;  %v3656_v50 = vor.u32 %v4960_v45, %v3655_v43  ;;  %v3511_v53 = vld [vmem:[%s7888_s1 + $0x148] sm:$0xf] }
  0x92   : > { %2009 = vmatpush.bf16.msrb.mxu1 %v3988_v51  ;;  %2022 = vmatpush.bf16.msrb.mxu2 %v4116_v52  ;;  %v3383_v51 = vld [vmem:[%s7888_s1 + $0x48] sm:$0xf]  ;;  %v4892_v52 = vld [vmem:[%s7888_s1 + $0x54] sm:$0xf0]  ;;  %v3784_v54 = vor.u32 %v4992_v47, %v3783_v46 }
  0x93   : > { %2035 = vmatpush.bf16.msrb.mxu3 %v4244_v55  ;;  %1997 = vmatmul.bf16.vlgmr.msrb.gmra.mxu0 %v5900_v41  ;;  %v4924_v55 = vld [vmem:[%s7888_s1 + $0x154] sm:$0xf0]  ;;  %v3384_v60 = vor.u32 %v4892_v52, %v3383_v51  ;;  %v3367_v63 = vld [vmem:[%s7888_s1 + $0x28] sm:$0xf] }
  0x94   : > { %2041 = vmatpush.bf16.msra.mxu0 %v3464_v56  ;;  %v3639_v56 = vld [vmem:[%s7888_s1 + $0x248] sm:$0xf]  ;;  %v4988_v59 = vld [vmem:[%s7888_s1 + $0x354] sm:$0xf0]  ;;  %v3512_v61 = vor.u32 %v4924_v55, %v3511_v53 }
  0x95   : > { %2023 = vmatmul.bf16.vlgmr.msrb.gmra.mxu2 %v5892_v38  ;;  %2010 = vmatmul.bf16.vlgmr.msrb.gmra.mxu1 %v5904_v44  ;;  %v4888_v0 = vld [vmem:[%s7888_s1 + $0x34] sm:$0xf0]  ;;  %v3495_v1 = vld [vmem:[%s7888_s1 + $0x128] sm:$0xf] }
  0x96   : > { %2054 = vmatpush.bf16.msra.mxu1 %v3592_v57  ;;  %2067 = vmatpush.bf16.msra.mxu2 %v3720_v58  ;;  %v4956_v57 = vld [vmem:[%s7888_s1 + $0x254] sm:$0xf0]  ;;  %v3767_v58 = vld [vmem:[%s7888_s1 + $0x348] sm:$0xf]  ;;  %v3368_v8 = vor.u32 %v4888_v0, %v3367_v63 }
  0x97   : > { %2080 = vmatpush.bf16.msra.mxu3 %v3848_v62  ;;  %v3640_v62 = vor.u32 %v4956_v57, %v3639_v56  ;;  %v3768_v2 = vor.u32 %v4988_v59, %v3767_v58  ;;  %v4920_v3 = vld [vmem:[%s7888_s1 + $0x134] sm:$0xf0]  ;;  %v3351_v9 = vld [vmem:[%s7888_s1 + $0x8] sm:$0xf] }
  0x98   : > { %2036 = vmatmul.bf16.vlgmr.msrb.gmra.mxu3 %v5902_v42  ;;  %2042 = vmatpush.bf16.msra.mxu0 %v3448_v4  ;;  %v3623_v4 = vld [vmem:[%s7888_s1 + $0x228] sm:$0xf]  ;;  %v4984_v7 = vld [vmem:[%s7888_s1 + $0x334] sm:$0xf0]  ;;  %v3496_v11 = vor.u32 %v4920_v3, %v3495_v1 }
  0x99   : > { %v3479_v13 = vld [vmem:[%s7888_s1 + $0x108] sm:$0xf]  ;;  %v4916_v14 = vld [vmem:[%s7888_s1 + $0x114] sm:$0xf0] }
  0x9a   : > { %2055 = vmatpush.bf16.msra.mxu1 %v3576_v5  ;;  %2068 = vmatpush.bf16.msra.mxu2 %v3704_v6  ;;  %v4952_v5 = vld [vmem:[%s7888_s1 + $0x234] sm:$0xf0]  ;;  %v3751_v6 = vld [vmem:[%s7888_s1 + $0x328] sm:$0xf]  ;;  %v3480_v31 = vor.u32 %v4916_v14, %v3479_v13 }
  0x9b   : > { %2081 = vmatpush.bf16.msra.mxu3 %v3832_v10  ;;  %v4884_v10 = vld [vmem:[%s7888_s1 + $0x14] sm:$0xf0]  ;;  %v3624_v12 = vor.u32 %v4952_v5, %v3623_v4  ;;  %v3607_v15 = vld [vmem:[%s7888_s1 + $0x208] sm:$0xf] }
  0x9c   : > { %2043 = vmatpush.bf16.msra.mxu0 %v3432_v16  ;;  %v3752_v16 = vor.u32 %v4984_v7, %v3751_v6  ;;  %v4980_v23 = vld [vmem:[%s7888_s1 + $0x314] sm:$0xf0]  ;;  %v3975_v24 = vld [vmem:[%s7888_s1 + $0x4e8] sm:$0xf]  ;;  %v3352_v27 = vor.u32 %v4884_v10, %v3351_v9 }
  0x9d   : > { %v5040_v25 = vld [vmem:[%s7888_s1 + $0x4f4] sm:$0xf0]  ;;  %v4231_v29 = vld [vmem:[%s7888_s1 + $0x6e8] sm:$0xf] }
  0x9e   : > { %2056 = vmatpush.bf16.msra.mxu1 %v3560_v17  ;;  %2069 = vmatpush.bf16.msra.mxu2 %v3688_v21  ;;  %v4948_v17 = vld [vmem:[%s7888_s1 + $0x214] sm:$0xf0]  ;;  %v3735_v21 = vld [vmem:[%s7888_s1 + $0x308] sm:$0xf]  ;;  %v3976_v36 = vor.u32 %v5040_v25, %v3975_v24 }
  0x9f   : > { %2082 = vmatpush.bf16.msra.mxu3 %v3816_v26  ;;  %v4103_v26 = vld [vmem:[%s7888_s1 + $0x5e8] sm:$0xf]  ;;  %v5072_v28 = vld [vmem:[%s7888_s1 + $0x5f4] sm:$0xf0]  ;;  %v3736_v35 = vor.u32 %v4980_v23, %v3735_v21 }
  0xa0   : > { %2044 = vmatpush.bf16.msra.mxu0 %v3416_v32  ;;  %v5104_v30 = vld [vmem:[%s7888_s1 + $0x6f4] sm:$0xf0]  ;;  %v3608_v32 = vor.u32 %v4948_v17, %v3607_v15  ;;  %v4104_v37 = vor.u32 %v5072_v28, %v4103_v26  ;;  %v3959_v40 = vld [vmem:[%s7888_s1 + $0x4c8] sm:$0xf]  ;;  %v6564_v26 = vld [vmem:[#allocation2] sm:$0xf] }
  0xa1   : > { %v5036_v43 = vld [vmem:[%s7888_s1 + $0x4d4] sm:$0xf0]  ;;  %v4087_v45 = vld [vmem:[%s7888_s1 + $0x5c8] sm:$0xf] }
  0xa2   : > { %2057 = vmatpush.bf16.msra.mxu1 %v3544_v33  ;;  %2070 = vmatpush.bf16.msra.mxu2 %v3672_v34  ;;  %v4359_v33 = vld [vmem:[%s7888_s1 + $0x7e8] sm:$0xf]  ;;  %v5136_v34 = vld [vmem:[%s7888_s1 + $0x7f4] sm:$0xf0]  ;;  %v3960_v52 = vor.u32 %v5036_v43, %v3959_v40 }
  0xa3   : > { %2083 = vmatpush.bf16.msra.mxu3 %v3800_v39  ;;  %v4232_v39 = vor.u32 %v5104_v30, %v4231_v29  ;;  %v4360_v46 = vor.u32 %v5136_v34, %v4359_v33  ;;  %v5068_v47 = vld [vmem:[%s7888_s1 + $0x5d4] sm:$0xf0]  ;;  %v3943_v55 = vld [vmem:[%s7888_s1 + $0x4a8] sm:$0xf] }
  0xa4   : > { %2045 = vmatpush.bf16.msra.mxu0 %v3400_v48  ;;  %v4215_v48 = vld [vmem:[%s7888_s1 + $0x6c8] sm:$0xf]  ;;  %v5132_v51 = vld [vmem:[%s7888_s1 + $0x7d4] sm:$0xf0]  ;;  %v4088_v53 = vor.u32 %v5068_v47, %v4087_v45 }
  0xa5   : > { %v5032_v56 = vld [vmem:[%s7888_s1 + $0x4b4] sm:$0xf0]  ;;  %v4071_v57 = vld [vmem:[%s7888_s1 + $0x5a8] sm:$0xf] }
  0xa6   : > { %2058 = vmatpush.bf16.msra.mxu1 %v3528_v49  ;;  %2071 = vmatpush.bf16.msra.mxu2 %v3656_v50  ;;  %v5100_v49 = vld [vmem:[%s7888_s1 + $0x6d4] sm:$0xf0]  ;;  %v4343_v50 = vld [vmem:[%s7888_s1 + $0x7c8] sm:$0xf]  ;;  %v3944_v0 = vor.u32 %v5032_v56, %v3943_v55 }
  0xa7   : > { %2084 = vmatpush.bf16.msra.mxu3 %v3784_v54  ;;  %v4216_v54 = vor.u32 %v5100_v49, %v4215_v48  ;;  %v4344_v58 = vor.u32 %v5132_v51, %v4343_v50  ;;  %v5064_v59 = vld [vmem:[%s7888_s1 + $0x5b4] sm:$0xf0]  ;;  %v3927_v3 = vld [vmem:[%s7888_s1 + $0x488] sm:$0xf] }
  0xa8   : > { %2046 = vmatpush.bf16.msra.mxu0 %v3384_v60  ;;  %v4199_v60 = vld [vmem:[%s7888_s1 + $0x6a8] sm:$0xf]  ;;  %v5128_v63 = vld [vmem:[%s7888_s1 + $0x7b4] sm:$0xf0]  ;;  %v4072_v1 = vor.u32 %v5064_v59, %v4071_v57 }
  0xa9   : > { %v5028_v4 = vld [vmem:[%s7888_s1 + $0x494] sm:$0xf0]  ;;  %v4055_v5 = vld [vmem:[%s7888_s1 + $0x588] sm:$0xf] }
  0xaa   : > { %2059 = vmatpush.bf16.msra.mxu1 %v3512_v61  ;;  %2072 = vmatpush.bf16.msra.mxu2 %v3640_v62  ;;  %v5096_v61 = vld [vmem:[%s7888_s1 + $0x6b4] sm:$0xf0]  ;;  %v4327_v62 = vld [vmem:[%s7888_s1 + $0x7a8] sm:$0xf] }
  0xab   : > { %2085 = vmatpush.bf16.msra.mxu3 %v3768_v2  ;;  %v4200_v2 = vor.u32 %v5096_v61, %v4199_v60  ;;  %v4328_v6 = vor.u32 %v5128_v63, %v4327_v62  ;;  %v5060_v7 = vld [vmem:[%s7888_s1 + $0x594] sm:$0xf0]  ;;  %v4311_v10 = vld [vmem:[%s7888_s1 + $0x788] sm:$0xf] }
  0xac   : > { %2047 = vmatpush.bf16.msra.mxu0 %v3368_v8  ;;  %v4183_v8 = vld [vmem:[%s7888_s1 + $0x688] sm:$0xf]  ;;  %v5092_v9 = vld [vmem:[%s7888_s1 + $0x694] sm:$0xf0]  ;;  %v4056_v14 = vor.u32 %v5060_v7, %v4055_v5 }
  0xad   : > { %v3911_v13 = vld [vmem:[%s7888_s1 + $0x468] sm:$0xf]  ;;  %v4184_v15 = vor.u32 %v5092_v9, %v4183_v8  ;;  %v5056_v21 = vld [vmem:[%s7888_s1 + $0x574] sm:$0xf0] }
  0xae   : > { %2060 = vmatpush.bf16.msra.mxu1 %v3496_v11  ;;  %2073 = vmatpush.bf16.msra.mxu2 %v3624_v12  ;;  %v5124_v11 = vld [vmem:[%s7888_s1 + $0x794] sm:$0xf0]  ;;  %v3928_v12 = vor.u32 %v5028_v4, %v3927_v3  ;;  %v4039_v17 = vld [vmem:[%s7888_s1 + $0x568] sm:$0xf] }
  0xaf   : > { %2086 = vmatpush.bf16.msra.mxu3 %v3752_v16  ;;  %v5024_v16 = vld [vmem:[%s7888_s1 + $0x474] sm:$0xf0]  ;;  %v4312_v23 = vor.u32 %v5124_v11, %v4311_v10  ;;  %v4167_v24 = vld [vmem:[%s7888_s1 + $0x668] sm:$0xf] }
  0xb0   : > { %2048 = vmatpush.bf16.msra.mxu0 %v3352_v27  ;;  %v5088_v25 = vld [vmem:[%s7888_s1 + $0x674] sm:$0xf0]  ;;  %v4295_v27 = vld [vmem:[%s7888_s1 + $0x768] sm:$0xf]  ;;  %v3912_v29 = vor.u32 %v5024_v16, %v3911_v13  ;;  %v4910_v13 = vld [vmem:[%s7888_s1 + $0xec] sm:$0xf] }
  0xb1   : > { %v5120_v28 = vld [vmem:[%s7888_s1 + $0x774] sm:$0xf0]  ;;  %v3895_v30 = vld [vmem:[%s7888_s1 + $0x448] sm:$0xf] }
  0xb2   : > { %2061 = vmatpush.bf16.msra.mxu1 %v3480_v31  ;;  %2074 = vmatpush.bf16.msra.mxu2 %v3608_v32  ;;  %v4040_v31 = vor.u32 %v5056_v21, %v4039_v17  ;;  %v4168_v32 = vor.u32 %v5088_v25, %v4167_v24  ;;  %v5020_v33 = vld [vmem:[%s7888_s1 + $0x454] sm:$0xf0]  ;;  %v4023_v34 = vld [vmem:[%s7888_s1 + $0x548] sm:$0xf]  ;;  %v3593_v17 = vld [vmem:[%s7888_s1 + $0x1f8] sm:$0xf0] }
  0xb3   : > { %2087 = vmatpush.bf16.msra.mxu3 %v3736_v35  ;;  %2049 = vmatmul.bf16.vlgmr.msra.gmra.mxu0 %v5742_v19  ;;  %v517_v35 = vperm.slane %v6564_v26, 0  ;;  %v5084_v40 = vld [vmem:[%s7888_s1 + $0x654] sm:$0xf0]  ;;  %v4279_v43 = vld [vmem:[%s7888_s1 + $0x748] sm:$0xf] }
  0xb4   : > { %2093 = vmatpush.bf16.msrb.mxu0 %v3976_v36  ;;  %v4296_v36 = vor.u32 %v5120_v28, %v4295_v27  ;;  %v5116_v45 = vld [vmem:[%s7888_s1 + $0x754] sm:$0xf0]  ;;  %v3879_v50 = vld [vmem:[%s7888_s1 + $0x428] sm:$0xf]  ;;  %v4974_v21 = vld [vmem:[%s7888_s1 + $0x2ec] sm:$0xf] }
  0xb5   : > { %2075 = vmatmul.bf16.vlgmr.msra.gmra.mxu2 %v5740_v18  ;;  %2062 = vmatmul.bf16.vlgmr.msra.gmra.mxu1 %v5746_v22  ;;  %v5016_v51 = vld [vmem:[%s7888_s1 + $0x434] sm:$0xf0]  ;;  %v4280_v55 = vor.u32 %v5116_v45, %v4279_v43  ;;  %v4135_v57 = vld [vmem:[%s7888_s1 + $0x628] sm:$0xf]  ;;  %v3577_v43 = vld [vmem:[%s7888_s1 + $0x1d8] sm:$0xf0] }
  0xb6   : > { %2106 = vmatpush.bf16.msrb.mxu1 %v4104_v37  ;;  %2119 = vmatpush.bf16.msrb.mxu2 %v4232_v39  ;;  %v5052_v37 = vld [vmem:[%s7888_s1 + $0x554] sm:$0xf0]  ;;  %v4151_v39 = vld [vmem:[%s7888_s1 + $0x648] sm:$0xf]  ;;  %v3880_v62 = vor.u32 %v5016_v51, %v3879_v50  ;;  %v4970_v45 = vld [vmem:[%s7888_s1 + $0x2cc] sm:$0xf] }
  0xb7   : > { %2132 = vmatpush.bf16.msrb.mxu3 %v4360_v46  ;;  %v3896_v46 = vor.u32 %v5020_v33, %v3895_v30  ;;  %v4024_v48 = vor.u32 %v5052_v37, %v4023_v34  ;;  %v4152_v49 = vor.u32 %v5084_v40, %v4151_v39  ;;  %v5048_v56 = vld [vmem:[%s7888_s1 + $0x534] sm:$0xf0]  ;;  %v4263_v59 = vld [vmem:[%s7888_s1 + $0x728] sm:$0xf]  ;;  %v3849_v30 = vld [vmem:[%s7888_s1 + $0x3f8] sm:$0xf0] }
  0xb8   : > { %2088 = vmatmul.bf16.vlgmr.msra.gmra.mxu3 %v5744_v20  ;;  %2094 = vmatpush.bf16.msrb.mxu0 %v3960_v52  ;;  %v4007_v52 = vld [vmem:[%s7888_s1 + $0x528] sm:$0xf]  ;;  %v5112_v60 = vld [vmem:[%s7888_s1 + $0x734] sm:$0xf0]  ;;  %v3449_v37 = vld [vmem:[%s7888_s1 + $0xd8] sm:$0xf0] }
  0xb9   : > { %v3863_v63 = vld [vmem:[%s7888_s1 + $0x408] sm:$0xf]  ;;  %v5044_v4 = vld [vmem:[%s7888_s1 + $0x514] sm:$0xf0]  ;;  %v4264_v7 = vor.u32 %v5112_v60, %v4263_v59  ;;  %v4938_v39 = vld [vmem:[%s7888_s1 + $0x1cc] sm:$0xf] }
  0xba   : > { %2107 = vmatpush.bf16.msrb.mxu1 %v4088_v53  ;;  %2120 = vmatpush.bf16.msrb.mxu2 %v4216_v54  ;;  %v3991_v3 = vld [vmem:[%s7888_s1 + $0x508] sm:$0xf]  ;;  %v5076_v8 = vld [vmem:[%s7888_s1 + $0x614] sm:$0xf0]  ;;  %v4966_v59 = vld [vmem:[%s7888_s1 + $0x2ac] sm:$0xf] }
  0xbb   : > { %2133 = vmatpush.bf16.msrb.mxu3 %v4344_v58  ;;  %v5080_v58 = vld [vmem:[%s7888_s1 + $0x634] sm:$0xf0]  ;;  %v4119_v5 = vld [vmem:[%s7888_s1 + $0x608] sm:$0xf]  ;;  %v3992_v27 = vor.u32 %v5044_v4, %v3991_v3  ;;  %v3689_v60 = vld [vmem:[%s7888_s1 + $0x2b8] sm:$0xf0] }
  0xbc   : > { %2095 = vmatpush.bf16.msrb.mxu0 %v3944_v0  ;;  %v5012_v0 = vld [vmem:[%s7888_s1 + $0x414] sm:$0xf0]  ;;  %v4247_v9 = vld [vmem:[%s7888_s1 + $0x708] sm:$0xf]  ;;  %v4120_v28 = vor.u32 %v5076_v8, %v4119_v5  ;;  %v3417_v3 = vld [vmem:[%s7888_s1 + $0x98] sm:$0xf0] }
  0xbd   : > { %v5108_v10 = vld [vmem:[%s7888_s1 + $0x714] sm:$0xf0]  ;;  %v3864_v16 = vor.u32 %v5012_v0, %v3863_v63  ;;  %v4930_v4 = vld [vmem:[%s7888_s1 + $0x18c] sm:$0xf]  ;;  %v3673_v8 = vld [vmem:[%s7888_s1 + $0x298] sm:$0xf0] }
  0xbe   : > { %2108 = vmatpush.bf16.msrb.mxu1 %v4072_v1  ;;  %2121 = vmatpush.bf16.msrb.mxu2 %v4200_v2  ;;  %v1842_v47 = vpop.f32.mrf.mxu0  ;;  %v1855_v54 = vpop.f32.mrf.mxu1  ;;  %v4008_v1 = vor.u32 %v5048_v56, %v4007_v52  ;;  %v4136_v2 = vor.u32 %v5080_v58, %v4135_v57  ;;  %v3580_v52 = vor.u32 %v4938_v39, %v3577_v43  ;;  %v4934_v56 = vld [vmem:[%s7888_s1 + $0x1ac] sm:$0xf]  ;;  %v3561_v58 = vld [vmem:[%s7888_s1 + $0x1b8] sm:$0xf0] }
  0xbf   : > { %2134 = vmatpush.bf16.msrb.mxu3 %v4328_v6  ;;  %v1843_v53 = vadd.f32 %v1842_v47, %v517_v35  ;;  %v1868_v6 = vpop.f32.mrf.mxu2  ;;  %v5002_v47 = vld [vmem:[%s7888_s1 + $0x3cc] sm:$0xf]  ;;  %v3564_v0 = vor.u32 %v4934_v56, %v3561_v58  ;;  %v3513_v43 = vld [vmem:[%s7888_s1 + $0x158] sm:$0xf0] }
  0xc0   : > { %2096 = vmatpush.bf16.msrb.mxu0 %v3928_v12  ;;  %v1881_v12 = vpop.f32.mrf.mxu3  ;;  %v4886_v56 = vld [vmem:[%s7888_s1 + $0x2c] sm:$0xf] }
  0xc1   : > { %v1856_v61 = vadd.f32 %v1855_v54, %v1843_v53  ;;  %v4902_v54 = vld [vmem:[%s7888_s1 + $0xac] sm:$0xf] }
  0xc2   : > { %2109 = vmatpush.bf16.msrb.mxu1 %v4056_v14  ;;  %2122 = vmatpush.bf16.msrb.mxu2 %v4184_v15  ;;  %v3465_v14 = vld [vmem:[%s7888_s1 + $0xf8] sm:$0xf0]  ;;  %v4942_v15 = vld [vmem:[%s7888_s1 + $0x1ec] sm:$0xf] }
  0xc3   : > { %2135 = vmatpush.bf16.msrb.mxu3 %v4312_v23  ;;  %v1869_v11 = vadd.f32 %v1868_v6, %v1856_v61  ;;  %v3721_v23 = vld [vmem:[%s7888_s1 + $0x2f8] sm:$0xf0]  ;;  %v3468_v33 = vor.u32 %v4910_v13, %v3465_v14  ;;  %v3596_v34 = vor.u32 %v4942_v15, %v3593_v17  ;;  %v4998_v61 = vld [vmem:[%s7888_s1 + $0x3ac] sm:$0xf] }
  0xc4   : > { %2097 = vmatpush.bf16.msrb.mxu0 %v3912_v29  ;;  %v5006_v29 = vld [vmem:[%s7888_s1 + $0x3ec] sm:$0xf]  ;;  %v3724_v35 = vor.u32 %v4974_v21, %v3721_v23  ;;  %v3545_v6 = vld [vmem:[%s7888_s1 + $0x198] sm:$0xf0] }
  0xc5   : > { %v6663_v24 = vadd.f32 %v1881_v12, %v1869_v11  ;;  %v3852_v40 = vor.u32 %v5006_v29, %v3849_v30  ;;  %v3548_v13 = vor.u32 %v4930_v4, %v3545_v6  ;;  %v4894_v15 = vld [vmem:[%s7888_s1 + $0x6c] sm:$0xf]  ;;  %v3657_v29 = vld [vmem:[%s7888_s1 + $0x278] sm:$0xf0] }
  0xc6   : > { %2110 = vmatpush.bf16.msrb.mxu1 %v4040_v31  ;;  %2123 = vmatpush.bf16.msrb.mxu2 %v4168_v32  ;;  %v1844_v25 = vpop.f32.mrf.mxu0  ;;  %v1857_v31 = vpop.f32.mrf.mxu1  ;;  %v4248_v32 = vor.u32 %v5108_v10, %v4247_v9  ;;  %v4994_v9 = vld [vmem:[%s7888_s1 + $0x38c] sm:$0xf]  ;;  %v3801_v10 = vld [vmem:[%s7888_s1 + $0x398] sm:$0xf0] }
  0xc7   : > { %2136 = vmatpush.bf16.msrb.mxu3 %v4296_v36  ;;  %v4906_v36 = vld [vmem:[%s7888_s1 + $0xcc] sm:$0xf]  ;;  %v3804_v25 = vor.u32 %v4994_v9, %v3801_v10  ;;  %v3353_v4 = vld [vmem:[%s7888_s1 + $0x18] sm:$0xf0] }
  0xc8   : > { %2098 = vmatpush.bf16.msrb.mxu0 %v3896_v46  ;;  %v3705_v46 = vld [vmem:[%s7888_s1 + $0x2d8] sm:$0xf0]  ;;  %v3452_v50 = vor.u32 %v4906_v36, %v3449_v37  ;;  %v1883_v51 = vpop.f32.mrf.mxu3  ;;  %v4926_v17 = vld [vmem:[%s7888_s1 + $0x16c] sm:$0xf] }
  0xc9   : > { %v3708_v53 = vor.u32 %v4970_v45, %v3705_v46  ;;  %v4990_v30 = vld [vmem:[%s7888_s1 + $0x36c] sm:$0xf]  ;;  %v3385_v36 = vld [vmem:[%s7888_s1 + $0x58] sm:$0xf0] }
  0xca   : > { %2111 = vmatpush.bf16.msrb.mxu1 %v4024_v48  ;;  %2124 = vmatpush.bf16.msrb.mxu2 %v4152_v49  ;;  %v3833_v48 = vld [vmem:[%s7888_s1 + $0x3d8] sm:$0xf0]  ;;  %v1870_v49 = vpop.f32.mrf.mxu2  ;;  %v4922_v37 = vld [vmem:[%s7888_s1 + $0x14c] sm:$0xf] }
  0xcb   : > { %2137 = vmatpush.bf16.msrb.mxu3 %v4280_v55  ;;  %v3433_v55 = vld [vmem:[%s7888_s1 + $0xb8] sm:$0xf0]  ;;  %v3836_v57 = vor.u32 %v5002_v47, %v3833_v48  ;;  %v4954_v45 = vld [vmem:[%s7888_s1 + $0x24c] sm:$0xf] }
  0xcc   : > { %2099 = vmatpush.bf16.msrb.mxu0 %v3880_v62  ;;  %v3817_v62 = vld [vmem:[%s7888_s1 + $0x3b8] sm:$0xf0]  ;;  %v3436_v63 = vor.u32 %v4902_v54, %v3433_v55  ;;  %v4986_v49 = vld [vmem:[%s7888_s1 + $0x34c] sm:$0xf]  ;;  %v3516_v54 = vor.u32 %v4922_v37, %v3513_v43 }
  0xcd   : > { %v3820_v5 = vor.u32 %v4998_v61, %v3817_v62  ;;  %v3641_v46 = vld [vmem:[%s7888_s1 + $0x258] sm:$0xf0]  ;;  %v4918_v58 = vld [vmem:[%s7888_s1 + $0x12c] sm:$0xf] }
  0xce   : > { %2112 = vmatpush.bf16.msrb.mxu1 %v4008_v1  ;;  %2125 = vmatpush.bf16.msrb.mxu2 %v4136_v2  ;;  %v3692_v1 = vor.u32 %v4966_v59, %v3689_v60  ;;  %v4898_v2 = vld [vmem:[%s7888_s1 + $0x8c] sm:$0xf]  ;;  %v3644_v55 = vor.u32 %v4954_v45, %v3641_v46  ;;  %v3497_v61 = vld [vmem:[%s7888_s1 + $0x138] sm:$0xf0] }
  0xcf   : > { %2138 = vmatpush.bf16.msrb.mxu3 %v4264_v7  ;;  %v4962_v7 = vld [vmem:[%s7888_s1 + $0x28c] sm:$0xf]  ;;  %v3420_v11 = vor.u32 %v4898_v2, %v3417_v3  ;;  %v3961_v37 = vld [vmem:[%s7888_s1 + $0x4d8] sm:$0xf0] }
  0xd0   : > { %2100 = vmatpush.bf16.msrb.mxu0 %v3864_v16  ;;  %v3676_v14 = vor.u32 %v4962_v7, %v3673_v8  ;;  %v3401_v16 = vld [vmem:[%s7888_s1 + $0x78] sm:$0xf0]  ;;  %v4950_v62 = vld [vmem:[%s7888_s1 + $0x22c] sm:$0xf] }
  0xd1   : > { %v4882_v3 = vld [vmem:[%s7888_s1 + $0xc] sm:$0xf]  ;;  %v3481_v8 = vld [vmem:[%s7888_s1 + $0x118] sm:$0xf0] }
  0xd2   : > { %2113 = vmatpush.bf16.msrb.mxu1 %v3992_v27  ;;  %2126 = vmatpush.bf16.msrb.mxu2 %v4120_v28  ;;  %v1894_v12 = vpop.f32.mrf.mxu0  ;;  %v3529_v27 = vld [vmem:[%s7888_s1 + $0x178] sm:$0xf0]  ;;  %v4958_v28 = vld [vmem:[%s7888_s1 + $0x26c] sm:$0xf] }
  0xd3   : > { %2139 = vmatpush.bf16.msrb.mxu3 %v4248_v32  ;;  %2101 = vmatmul.bf16.vlgmr.msrb.gmra.mxu0 %v5900_v41  ;;  %v1895_v21 = vadd.f32 %v1894_v12, %v6663_v24  ;;  %v3785_v24 = vld [vmem:[%s7888_s1 + $0x378] sm:$0xf0]  ;;  %v3404_v32 = vor.u32 %v4894_v15, %v3401_v16  ;;  %v4914_v7 = vld [vmem:[%s7888_s1 + $0x10c] sm:$0xf] }
  0xd4   : > { %2145 = vmatpush.bf16.msra.mxu0 %v3468_v33  ;;  %v1907_v23 = vpop.f32.mrf.mxu1  ;;  %v3532_v33 = vor.u32 %v4926_v17, %v3529_v27  ;;  %v4946_v9 = vld [vmem:[%s7888_s1 + $0x20c] sm:$0xf]  ;;  %v3609_v12 = vld [vmem:[%s7888_s1 + $0x218] sm:$0xf0] }
  0xd5   : > { %2127 = vmatmul.bf16.vlgmr.msrb.gmra.mxu2 %v5892_v38  ;;  %2114 = vmatmul.bf16.vlgmr.msrb.gmra.mxu1 %v5904_v44  ;;  %v1908_v31 = vadd.f32 %v1907_v23, %v1895_v21  ;;  %v5038_v16 = vld [vmem:[%s7888_s1 + $0x4ec] sm:$0xf]  ;;  %v3977_v17 = vld [vmem:[%s7888_s1 + $0x4f8] sm:$0xf0]  ;;  %v3356_v23 = vor.u32 %v4882_v3, %v3353_v4 }
  0xd6   : > { %2158 = vmatpush.bf16.msra.mxu1 %v3596_v34  ;;  %2171 = vmatpush.bf16.msra.mxu2 %v3724_v35  ;;  %v3660_v34 = vor.u32 %v4958_v28, %v3657_v29  ;;  %v4890_v35 = vld [vmem:[%s7888_s1 + $0x4c] sm:$0xf]  ;;  %v4233_v28 = vld [vmem:[%s7888_s1 + $0x6f8] sm:$0xf0]  ;;  %v3484_v29 = vor.u32 %v4914_v7, %v3481_v8 }
  0xd7   : > { %2184 = vmatpush.bf16.msra.mxu3 %v3852_v40  ;;  %v3788_v40 = vor.u32 %v4990_v30, %v3785_v24  ;;  %v3388_v51 = vor.u32 %v4890_v35, %v3385_v36  ;;  %v5070_v21 = vld [vmem:[%s7888_s1 + $0x5ec] sm:$0xf]  ;;  %v3612_v30 = vor.u32 %v4946_v9, %v3609_v12  ;;  %v4089_v43 = vld [vmem:[%s7888_s1 + $0x5d8] sm:$0xf0] }
  0xd8   : > { %2140 = vmatmul.bf16.vlgmr.msrb.gmra.mxu3 %v5902_v42  ;;  %2146 = vmatpush.bf16.msra.mxu0 %v3452_v50  ;;  %v1920_v39 = vpop.f32.mrf.mxu2  ;;  %v3769_v50 = vld [vmem:[%s7888_s1 + $0x358] sm:$0xf0]  ;;  %v5102_v27 = vld [vmem:[%s7888_s1 + $0x6ec] sm:$0xf] }
  0xd9   : > { %v1921_v47 = vadd.f32 %v1920_v39, %v1908_v31  ;;  %v3772_v60 = vor.u32 %v4986_v49, %v3769_v50  ;;  %v5134_v24 = vld [vmem:[%s7888_s1 + $0x7ec] sm:$0xf]  ;;  %v4361_v31 = vld [vmem:[%s7888_s1 + $0x7f8] sm:$0xf0]  ;;  %v4236_v35 = vor.u32 %v5102_v27, %v4233_v28 }
  0xda   : > { %2159 = vmatpush.bf16.msra.mxu1 %v3580_v52  ;;  %2172 = vmatpush.bf16.msra.mxu2 %v3708_v53  ;;  %v1896_v53 = vpop.f32.mrf.mxu0  ;;  %v5034_v36 = vld [vmem:[%s7888_s1 + $0x4cc] sm:$0xf]  ;;  %v4217_v46 = vld [vmem:[%s7888_s1 + $0x6d8] sm:$0xf0] }
  0xdb   : > { %2185 = vmatpush.bf16.msra.mxu3 %v3836_v57  ;;  %v1933_v48 = vpop.f32.mrf.mxu3  ;;  %v3369_v57 = vld [vmem:[%s7888_s1 + $0x38] sm:$0xf0]  ;;  %v5066_v39 = vld [vmem:[%s7888_s1 + $0x5cc] sm:$0xf]  ;;  %v3964_v49 = vor.u32 %v5034_v36, %v3961_v37 }
  0xdc   : > { %2147 = vmatpush.bf16.msra.mxu0 %v3436_v63  ;;  %v6796_v52 = vadd.f32 %v1933_v48, %v1921_v47  ;;  %v1909_v59 = vpop.f32.mrf.mxu1  ;;  %v3625_v63 = vld [vmem:[%s7888_s1 + $0x238] sm:$0xf0]  ;;  %v3372_v2 = vor.u32 %v4886_v56, %v3369_v57  ;;  %v5098_v45 = vld [vmem:[%s7888_s1 + $0x6cc] sm:$0xf]  ;;  %v4092_v50 = vor.u32 %v5066_v39, %v4089_v43 }
  0xdd   : > { %v3628_v6 = vor.u32 %v4950_v62, %v3625_v63  ;;  %v5130_v47 = vld [vmem:[%s7888_s1 + $0x7cc] sm:$0xf]  ;;  %v4345_v48 = vld [vmem:[%s7888_s1 + $0x7d8] sm:$0xf0] }
  0xde   : > { %2160 = vmatpush.bf16.msra.mxu1 %v3564_v0  ;;  %2173 = vmatpush.bf16.msra.mxu2 %v3692_v1  ;;  %v4982_v0 = vld [vmem:[%s7888_s1 + $0x32c] sm:$0xf]  ;;  %v3753_v1 = vld [vmem:[%s7888_s1 + $0x338] sm:$0xf0]  ;;  %v4348_v56 = vor.u32 %v5130_v47, %v4345_v48 }
  0xdf   : > { %2186 = vmatpush.bf16.msra.mxu3 %v3820_v5  ;;  %v3500_v5 = vor.u32 %v4918_v58, %v3497_v61  ;;  %v5030_v53 = vld [vmem:[%s7888_s1 + $0x4ac] sm:$0xf]  ;;  %v4073_v57 = vld [vmem:[%s7888_s1 + $0x5b8] sm:$0xf0] }
  0xe0   : > { %2148 = vmatpush.bf16.msra.mxu0 %v3420_v11  ;;  %v1922_v10 = vpop.f32.mrf.mxu2  ;;  %v3756_v11 = vor.u32 %v4982_v0, %v3753_v1  ;;  %v5094_v58 = vld [vmem:[%s7888_s1 + $0x6ac] sm:$0xf]  ;;  %v4201_v59 = vld [vmem:[%s7888_s1 + $0x6b8] sm:$0xf0] }
  0xe1   : > { %v4204_v63 = vor.u32 %v5094_v58, %v4201_v59  ;;  %v5026_v0 = vld [vmem:[%s7888_s1 + $0x48c] sm:$0xf]  ;;  %v3929_v1 = vld [vmem:[%s7888_s1 + $0x498] sm:$0xf0]  ;;  %v518_v58 = vperm.slane %v6564_v26, 1 }
  0xe2   : > { %2161 = vmatpush.bf16.msra.mxu1 %v3548_v13  ;;  %2174 = vmatpush.bf16.msra.mxu2 %v3676_v14  ;;  %v4978_v13 = vld [vmem:[%s7888_s1 + $0x30c] sm:$0xf]  ;;  %v3737_v14 = vld [vmem:[%s7888_s1 + $0x318] sm:$0xf0] }
  0xe3   : > { %2187 = vmatpush.bf16.msra.mxu3 %v3804_v25  ;;  %v1935_v15 = vpop.f32.mrf.mxu3  ;;  %v4105_v25 = vld [vmem:[%s7888_s1 + $0x5f8] sm:$0xf0]  ;;  %v5122_v4 = vld [vmem:[%s7888_s1 + $0x78c] sm:$0xf] }
  0xe4   : > { %2149 = vmatpush.bf16.msra.mxu0 %v3404_v32  ;;  %v3740_v32 = vor.u32 %v4978_v13, %v3737_v14  ;;  %v4185_v3 = vld [vmem:[%s7888_s1 + $0x698] sm:$0xf0]  ;;  %v5022_v10 = vld [vmem:[%s7888_s1 + $0x46c] sm:$0xf] }
  0xe5   : > { %v5054_v12 = vld [vmem:[%s7888_s1 + $0x56c] sm:$0xf]  ;;  %v4041_v15 = vld [vmem:[%s7888_s1 + $0x578] sm:$0xf0] }
  0xe6   : > { %2162 = vmatpush.bf16.msra.mxu1 %v3532_v33  ;;  %2175 = vmatpush.bf16.msra.mxu2 %v3660_v34  ;;  %v3980_v33 = vor.u32 %v5038_v16, %v3977_v17  ;;  %v4108_v34 = vor.u32 %v5070_v21, %v4105_v25  ;;  %v5086_v16 = vld [vmem:[%s7888_s1 + $0x66c] sm:$0xf]  ;;  %v4169_v17 = vld [vmem:[%s7888_s1 + $0x678] sm:$0xf0]  ;;  %v4044_v27 = vor.u32 %v5054_v12, %v4041_v15 }
  0xe7   : > { %2188 = vmatpush.bf16.msra.mxu3 %v3788_v40  ;;  %v4364_v40 = vor.u32 %v5134_v24, %v4361_v31  ;;  %v5118_v21 = vld [vmem:[%s7888_s1 + $0x76c] sm:$0xf]  ;;  %v4172_v28 = vor.u32 %v5086_v16, %v4169_v17  ;;  %v4281_v39 = vld [vmem:[%s7888_s1 + $0x758] sm:$0xf0]  ;;  %v5231_v16 = vld [vmem:[%s7890_s3 + $0x2ec] sm:$0xf0] }
  0xe8   : > { %2150 = vmatpush.bf16.msra.mxu0 %v3388_v51  ;;  %v4220_v51 = vor.u32 %v5098_v45, %v4217_v46  ;;  %v5050_v24 = vld [vmem:[%s7888_s1 + $0x54c] sm:$0xf]  ;;  %v3881_v48 = vld [vmem:[%s7888_s1 + $0x438] sm:$0xf0] }
  0xe9   : > { %v5114_v37 = vld [vmem:[%s7888_s1 + $0x74c] sm:$0xf]  ;;  %v3993_v26 = vld [vmem:[%s7888_s1 + $0x518] sm:$0xf0] }
  0xea   : > { %2163 = vmatpush.bf16.msra.mxu1 %v3516_v54  ;;  %2176 = vmatpush.bf16.msra.mxu2 %v3644_v55  ;;  %v3945_v54 = vld [vmem:[%s7888_s1 + $0x4b8] sm:$0xf0]  ;;  %v5062_v55 = vld [vmem:[%s7888_s1 + $0x5ac] sm:$0xf] }
  0xeb   : > { %2189 = vmatpush.bf16.msra.mxu3 %v3772_v60  ;;  %v5126_v60 = vld [vmem:[%s7888_s1 + $0x7ac] sm:$0xf]  ;;  %v3948_v61 = vor.u32 %v5030_v53, %v3945_v54  ;;  %v4076_v62 = vor.u32 %v5062_v55, %v4073_v57  ;;  %v4009_v53 = vld [vmem:[%s7888_s1 + $0x538] sm:$0xf0] }
  0xec   : > { %2151 = vmatpush.bf16.msra.mxu0 %v3372_v2  ;;  %v5090_v2 = vld [vmem:[%s7888_s1 + $0x68c] sm:$0xf]  ;;  %v4137_v55 = vld [vmem:[%s7888_s1 + $0x638] sm:$0xf0] }
  0xed   : > { %v4188_v9 = vor.u32 %v5090_v2, %v4185_v3  ;;  %v5014_v47 = vld [vmem:[%s7888_s1 + $0x42c] sm:$0xf]  ;;  %v4265_v57 = vld [vmem:[%s7888_s1 + $0x738] sm:$0xf0] }
  0xee   : > { %2164 = vmatpush.bf16.msra.mxu1 %v3500_v5  ;;  %2177 = vmatpush.bf16.msra.mxu2 %v3628_v6  ;;  %v4313_v5 = vld [vmem:[%s7888_s1 + $0x798] sm:$0xf0]  ;;  %v3932_v6 = vor.u32 %v5026_v0, %v3929_v1  ;;  %v5078_v54 = vld [vmem:[%s7888_s1 + $0x62c] sm:$0xf]  ;;  %v3884_v59 = vor.u32 %v5014_v47, %v3881_v48  ;;  %v5187_v47 = vld [vmem:[%s7890_s3 + $0x18c] sm:$0xf0] }
  0xef   : > { %2190 = vmatpush.bf16.msra.mxu3 %v3756_v11  ;;  %v3913_v11 = vld [vmem:[%s7888_s1 + $0x478] sm:$0xf0]  ;;  %v4316_v14 = vor.u32 %v5122_v4, %v4313_v5  ;;  %v4479_v4 = vld [vmem:[%s7890_s3 + $0xe0] sm:$0xf]  ;;  %v5167_v5 = vld [vmem:[%s7890_s3 + $0xec] sm:$0xf0] }
  0xf0   : > { %2152 = vmatpush.bf16.msra.mxu0 %v3356_v23  ;;  %v6946_v7 = vpop.f32.mrf.mxu0  ;;  %v4297_v23 = vld [vmem:[%s7888_s1 + $0x778] sm:$0xf0]  ;;  %v3916_v25 = vor.u32 %v5022_v10, %v3913_v11  ;;  %v5199_v10 = vld [vmem:[%s7890_s3 + $0x1ec] sm:$0xf0]  ;;  %v4480_v15 = vor.u32 %v5167_v5, %v4479_v4 }
  0xf1   : > { %v4249_v3 = vld [vmem:[%s7888_s1 + $0x718] sm:$0xf0] }
  0xf2   : > { %2165 = vmatpush.bf16.msra.mxu1 %v3484_v29  ;;  %2178 = vmatpush.bf16.msra.mxu2 %v3612_v30  ;;  %v6957_v13 = vpop.f32.mrf.mxu1  ;;  %v5018_v29 = vld [vmem:[%s7888_s1 + $0x44c] sm:$0xf]  ;;  %v3897_v30 = vld [vmem:[%s7888_s1 + $0x458] sm:$0xf0] }
  0xf3   : > { %2191 = vmatpush.bf16.msra.mxu3 %v3740_v32  ;;  %2153 = vmatmul.bf16.vlgmr.msra.gmra.mxu0 %v5742_v19  ;;  %v5058_v19 = vld [vmem:[%s7888_s1 + $0x58c] sm:$0xf]  ;;  %v4300_v32 = vor.u32 %v5118_v21, %v4297_v23  ;;  %v4463_v23 = vld [vmem:[%s7890_s3 + $0xc0] sm:$0xf] }
  0xf4   : > { %2197 = vmatpush.bf16.msrb.mxu0 %v3980_v33  ;;  %v4025_v33 = vld [vmem:[%s7888_s1 + $0x558] sm:$0xf0] }
  0xf5   : > { %2179 = vmatmul.bf16.vlgmr.msra.gmra.mxu2 %v5740_v18  ;;  %v4329_v18 = vld [vmem:[%s7888_s1 + $0x7b8] sm:$0xf0]  ;;  %2166 = vmatmul.bf16.vlgmr.msra.gmra.mxu1 %v5746_v22  ;;  %v4028_v45 = vor.u32 %v5050_v24, %v4025_v33  ;;  %v5227_v24 = vld [vmem:[%s7890_s3 + $0x2cc] sm:$0xf0] }
  0xf6   : > { %2210 = vmatpush.bf16.msrb.mxu1 %v4108_v34  ;;  %2223 = vmatpush.bf16.msrb.mxu2 %v4236_v35  ;;  %v4057_v22 = vld [vmem:[%s7888_s1 + $0x598] sm:$0xf0]  ;;  %v5082_v34 = vld [vmem:[%s7888_s1 + $0x64c] sm:$0xf] }
  0xf7   : > { %2236 = vmatpush.bf16.msrb.mxu3 %v4364_v40  ;;  %v4060_v8 = vor.u32 %v5058_v19, %v4057_v22  ;;  %v4153_v35 = vld [vmem:[%s7888_s1 + $0x658] sm:$0xf0]  ;;  %v3900_v40 = vor.u32 %v5018_v29, %v3897_v30  ;;  %v5074_v19 = vld [vmem:[%s7888_s1 + $0x60c] sm:$0xf]  ;;  %v4719_v30 = vld [vmem:[%s7890_s3 + $0x2c0] sm:$0xf] }
  0xf8   : > { %2192 = vmatmul.bf16.vlgmr.msra.gmra.mxu3 %v5744_v20  ;;  %2198 = vmatpush.bf16.msrb.mxu0 %v3964_v49  ;;  %v4332_v20 = vor.u32 %v5126_v60, %v4329_v18  ;;  %v6983_v31 = vpop.f32.mrf.mxu2  ;;  %v1948_v43 = vpop.f32.mrf.mxu0  ;;  %v4156_v46 = vor.u32 %v5082_v34, %v4153_v35  ;;  %v5046_v49 = vld [vmem:[%s7888_s1 + $0x52c] sm:$0xf]  ;;  %v4447_v34 = vld [vmem:[%s7890_s3 + $0xa0] sm:$0xf]  ;;  %v5159_v35 = vld [vmem:[%s7890_s3 + $0xac] sm:$0xf0] }
  0xf9   : > { %v5010_v60 = vld [vmem:[%s7888_s1 + $0x40c] sm:$0xf]  ;;  %v4012_v18 = vor.u32 %v5046_v49, %v4009_v53 }
  0xfa   : > { %2211 = vmatpush.bf16.msrb.mxu1 %v4092_v50  ;;  %2224 = vmatpush.bf16.msrb.mxu2 %v4220_v51  ;;  %v1961_v50 = vpop.f32.mrf.mxu1  ;;  %v4284_v51 = vor.u32 %v5114_v37, %v4281_v39  ;;  %v5106_v22 = vld [vmem:[%s7888_s1 + $0x70c] sm:$0xf]  ;;  %v4575_v37 = vld [vmem:[%s7890_s3 + $0x1a0] sm:$0xf]  ;;  %v4448_v39 = vor.u32 %v5159_v35, %v4447_v34  ;;  %v5197_v35 = vld [vmem:[%s7890_s3 + $0x1e4] sm:$0xf] }
  0xfb   : > { %2237 = vmatpush.bf16.msrb.mxu3 %v4348_v56  ;;  %v6994_v36 = vpop.f32.mrf.mxu3  ;;  %v5110_v56 = vld [vmem:[%s7888_s1 + $0x72c] sm:$0xf]  ;;  %v4687_v50 = vld [vmem:[%s7890_s3 + $0x280] sm:$0xf] }
  0xfc   : > { %2199 = vmatpush.bf16.msrb.mxu0 %v3948_v61  ;;  %v4140_v61 = vor.u32 %v5078_v54, %v4137_v55  ;;  %v4268_v1 = vor.u32 %v5110_v56, %v4265_v57  ;;  %v4415_v54 = vld [vmem:[%s7890_s3 + $0x60] sm:$0xf]  ;;  %v5151_v55 = vld [vmem:[%s7890_s3 + $0x6c] sm:$0xf0] }
  0xfe   : > { %2212 = vmatpush.bf16.msrb.mxu1 %v4076_v62  ;;  %2225 = vmatpush.bf16.msrb.mxu2 %v4204_v63  ;;  %v3865_v62 = vld [vmem:[%s7888_s1 + $0x418] sm:$0xf0]  ;;  %v5042_v63 = vld [vmem:[%s7888_s1 + $0x50c] sm:$0xf] }
  0xff   : > { %2238 = vmatpush.bf16.msrb.mxu3 %v4332_v20  ;;  %v4121_v20 = vld [vmem:[%s7888_s1 + $0x618] sm:$0xf0]  ;;  %v3996_v11 = vor.u32 %v5042_v63, %v3993_v26  ;;  %v5215_v63 = vld [vmem:[%s7890_s3 + $0x26c] sm:$0xf0] }
 0x100   : > { %2200 = vmatpush.bf16.msrb.mxu0 %v3932_v6  ;;  %v1974_v0 = vpop.f32.mrf.mxu2  ;;  %v1947_v6 = vadd.f32 %v6946_v7, %v518_v58  ;;  %v4124_v12 = vor.u32 %v5074_v19, %v4121_v20  ;;  %v4735_v7 = vld [vmem:[%s7890_s3 + $0x2e0] sm:$0xf] }
 0x101   : > { %v4543_v58 = vld [vmem:[%s7890_s3 + $0x160] sm:$0xf] }
 0x102   : > { %2213 = vmatpush.bf16.msrb.mxu1 %v4060_v8  ;;  %2226 = vmatpush.bf16.msrb.mxu2 %v4188_v9  ;;  %v3868_v8 = vor.u32 %v5010_v60, %v3865_v62  ;;  %v4607_v9 = vld [vmem:[%s7890_s3 + $0x1e0] sm:$0xf]  ;;  %v1960_v21 = vadd.f32 %v6957_v13, %v1947_v6  ;;  %v4736_v13 = vor.u32 %v5231_v16, %v4735_v7  ;;  %v5175_v7 = vld [vmem:[%s7890_s3 + $0x12c] sm:$0xf0] }
 0x103   : > { %2239 = vmatpush.bf16.msrb.mxu3 %v4316_v14  ;;  %v1987_v2 = vpop.f32.mrf.mxu3  ;;  %v4252_v14 = vor.u32 %v5106_v22, %v4249_v3  ;;  %v4608_v17 = vor.u32 %v5199_v10, %v4607_v9  ;;  %v4671_v62 = vld [vmem:[%s7890_s3 + $0x260] sm:$0xf]  ;;  %v5179_v22 = vld [vmem:[%s7890_s3 + $0x14c] sm:$0xf0] }
 0x104   : > { %2201 = vmatpush.bf16.msrb.mxu0 %v3916_v25  ;;  %v5163_v25 = vld [vmem:[%s7890_s3 + $0xcc] sm:$0xf0]  ;;  %v1973_v33 = vadd.f32 %v6983_v31, %v1960_v21  ;;  %v4720_v31 = vor.u32 %v5227_v24, %v4719_v30  ;;  %v4399_v0 = vld [vmem:[%s7890_s3 + $0x40] sm:$0xf]  ;;  %v4672_v3 = vor.u32 %v5215_v63, %v4671_v62 }
 0x105   : > { %v4464_v29 = vor.u32 %v5163_v25, %v4463_v23  ;;  %v4527_v20 = vld [vmem:[%s7890_s3 + $0x140] sm:$0xf]  ;;  %v5211_v9 = vld [vmem:[%s7890_s3 + $0x24c] sm:$0xf0] }
 0x106   : > { %2214 = vmatpush.bf16.msrb.mxu1 %v4044_v27  ;;  %2227 = vmatpush.bf16.msrb.mxu2 %v4172_v28  ;;  %v4591_v27 = vld [vmem:[%s7890_s3 + $0x1c0] sm:$0xf]  ;;  %v5195_v28 = vld [vmem:[%s7890_s3 + $0x1cc] sm:$0xf0]  ;;  %v4528_v10 = vor.u32 %v5179_v22, %v4527_v20  ;;  %v4433_v20 = vld [vmem:[%s7890_s3 + $0x90] sm:$0xf0] }
 0x107   : > { %2240 = vmatpush.bf16.msrb.mxu3 %v4300_v32  ;;  %v4592_v32 = vor.u32 %v5195_v28, %v4591_v27  ;;  %v4639_v23 = vld [vmem:[%s7890_s3 + $0x220] sm:$0xf]  ;;  %v5207_v25 = vld [vmem:[%s7890_s3 + $0x22c] sm:$0xf0]  ;;  %v5185_v22 = vld [vmem:[%s7890_s3 + $0x184] sm:$0xf] }
 0x108   : > { %2202 = vmatpush.bf16.msrb.mxu0 %v3900_v40  ;;  %v1986_v40 = vadd.f32 %v6994_v36, %v1973_v33  ;;  %v4367_v28 = vld [vmem:[%s7890_s3] sm:$0xf]  ;;  %v5171_v24 = vld [vmem:[%s7890_s3 + $0x10c] sm:$0xf0]  ;;  %v4481_v33 = vld [vmem:[%s7890_s3 + $0xf0] sm:$0xf0] }
 0x10a   : > { %2215 = vmatpush.bf16.msrb.mxu1 %v4028_v45  ;;  %2228 = vmatpush.bf16.msrb.mxu2 %v4156_v46  ;;  %v5155_v45 = vld [vmem:[%s7890_s3 + $0x8c] sm:$0xf0]  ;;  %v4559_v46 = vld [vmem:[%s7890_s3 + $0x180] sm:$0xf] }
 0x10b   : > { %2241 = vmatpush.bf16.msrb.mxu3 %v4284_v51  ;;  %v5219_v51 = vld [vmem:[%s7890_s3 + $0x28c] sm:$0xf0]  ;;  %v4560_v53 = vor.u32 %v5187_v47, %v4559_v46  ;;  %v4737_v46 = vld [vmem:[%s7890_s3 + $0x2f0] sm:$0xf0] }
 0x10c   : > { %2203 = vmatpush.bf16.msrb.mxu0 %v3884_v59  ;;  %v5183_v59 = vld [vmem:[%s7890_s3 + $0x16c] sm:$0xf0]  ;;  %v4688_v60 = vor.u32 %v5219_v51, %v4687_v50 }
 0x10d   : > { %v4544_v26 = vor.u32 %v5183_v59, %v4543_v58  ;;  %v5157_v59 = vld [vmem:[%s7890_s3 + $0xa4] sm:$0xf] }
 0x10e   : > { %2216 = vmatpush.bf16.msrb.mxu1 %v4012_v18  ;;  %2229 = vmatpush.bf16.msrb.mxu2 %v4140_v61  ;;  %v4416_v18 = vor.u32 %v5151_v55, %v4415_v54 }
 0x10f   : > { %2242 = vmatpush.bf16.msrb.mxu3 %v4268_v1  ;;  %v5147_v1 = vld [vmem:[%s7890_s3 + $0x4c] sm:$0xf0] }
 0x110   : > { %2204 = vmatpush.bf16.msrb.mxu0 %v3868_v8  ;;  %v1998_v49 = vpop.f32.mrf.mxu0  ;;  %v4400_v4 = vor.u32 %v5147_v1, %v4399_v0  ;;  %v4655_v8 = vld [vmem:[%s7890_s3 + $0x240] sm:$0xf]  ;;  %v4705_v0 = vld [vmem:[%s7890_s3 + $0x2b0] sm:$0xf0] }
 0x111   : > { %v1999_v56 = vadd.f32 %v1998_v49, %v1986_v40  ;;  %v4656_v16 = vor.u32 %v5211_v9, %v4655_v8  ;;  %v2249_v40 = vmax.f32 %v6796_v52, 0.0  ;;  %v4465_v52 = vld [vmem:[%s7890_s3 + $0xd0] sm:$0xf0]  ;;  %v5149_v9 = vld [vmem:[%s7890_s3 + $0x64] sm:$0xf] }
 0x112   : > { %2217 = vmatpush.bf16.msrb.mxu1 %v3996_v11  ;;  %2230 = vmatpush.bf16.msrb.mxu2 %v4124_v12  ;;  %v2011_v57 = vpop.f32.mrf.mxu1  ;;  %v4383_v11 = vld [vmem:[%s7890_s3 + $0x20] sm:$0xf]  ;;  %v5143_v12 = vld [vmem:[%s7890_s3 + $0x2c] sm:$0xf0]  ;;  %v4593_v49 = vld [vmem:[%s7890_s3 + $0x1d0] sm:$0xf0] }
 0x113   : > { %2243 = vmatpush.bf16.msrb.mxu3 %v4252_v14  ;;  %2205 = vmatmul.bf16.vlgmr.msrb.gmra.mxu0 %v5900_v41  ;;  %v5191_v41 = vld [vmem:[%s7890_s3 + $0x1ac] sm:$0xf0]  ;;  %v2012_v61 = vadd.f32 %v2011_v57, %v1999_v56  ;;  %v4384_v21 = vor.u32 %v5143_v12, %v4383_v11  ;;  %v7236_v54 = vpack.c.bf16 %v2249_v40, %v2249_v40  ;;  %v5225_v56 = vld [vmem:[%s7890_s3 + $0x2c4] sm:$0xf]  ;;  %v4721_v57 = vld [vmem:[%s7890_s3 + $0x2d0] sm:$0xf0] }
 0x114   : > { %3035 = vmatpush.bf16.msra.mxu0 %v4480_v15  ;;  %v4576_v43 = vor.u32 %v5191_v41, %v4575_v37  ;;  %v4511_v15 = vld [vmem:[%s7890_s3 + $0x120] sm:$0xf]  ;;  %v4609_v37 = vld [vmem:[%s7890_s3 + $0x1f0] sm:$0xf0]  ;;  %v4640_v41 = vor.u32 %v5207_v25, %v4639_v23  ;;  %v4724_v62 = vor.u32 %v5225_v56, %v4721_v57  ;;  %v5181_v12 = vld [vmem:[%s7890_s3 + $0x164] sm:$0xf] }
 0x115   : > { %2218 = vmatmul.bf16.vlgmr.msrb.gmra.mxu1 %v5904_v44  ;;  %2231 = vmatmul.bf16.vlgmr.msrb.gmra.mxu2 %v5892_v38  ;;  %v4703_v44 = vld [vmem:[%s7890_s3 + $0x2a0] sm:$0xf]  ;;  %v5223_v38 = vld [vmem:[%s7890_s3 + $0x2ac] sm:$0xf0]  ;;  %v4512_v27 = vor.u32 %v5175_v7, %v4511_v15  ;;  %v4612_v47 = vor.u32 %v5197_v35, %v4609_v37  ;;  %v5145_v25 = vld [vmem:[%s7890_s3 + $0x44] sm:$0xf] }
 0x116   : > { %3048 = vmatpush.bf16.msra.mxu1 %v4608_v17  ;;  %2244 = vmatmul.bf16.vlgmr.msrb.gmra.mxu3 %v5902_v42  ;;  %v4431_v42 = vld [vmem:[%s7890_s3 + $0x80] sm:$0xf]  ;;  %v4704_v48 = vor.u32 %v5223_v38, %v4703_v44  ;;  %v5203_v38 = vld [vmem:[%s7890_s3 + $0x20c] sm:$0xf0]  ;;  %v5141_v37 = vld [vmem:[%s7890_s3 + $0x24] sm:$0xf] }
 0x117   : > { %3061 = vmatpush.bf16.msra.mxu2 %v4736_v13  ;;  %v4432_v36 = vor.u32 %v5155_v45, %v4431_v42  ;;  %v5139_v13 = vld [vmem:[%s7890_s3 + $0xc] sm:$0xf0]  ;;  %v4623_v44 = vld [vmem:[%s7890_s3 + $0x200] sm:$0xf]  ;;  %v5229_v45 = vld [vmem:[%s7890_s3 + $0x2e4] sm:$0xf] }
 0x118   : > { %3036 = vmatpush.bf16.msra.mxu0 %v4464_v29  ;;  %v2024_v19 = vpop.f32.mrf.mxu2  ;;  %v2000_v6 = vpop.f32.mrf.mxu0  ;;  %v4495_v29 = vld [vmem:[%s7890_s3 + $0x100] sm:$0xf]  ;;  %v4624_v50 = vor.u32 %v5203_v38, %v4623_v44  ;;  %v4513_v44 = vld [vmem:[%s7890_s3 + $0x130] sm:$0xf0]  ;;  %v4487_v56 = vld [vmem:[%s7890_s3 + $0xe8] sm:$0xf] }
 0x119   : > { %v2025_v5 = vadd.f32 %v2024_v19, %v2012_v61  ;;  %v4577_v61 = vld [vmem:[%s7890_s3 + $0x1b0] sm:$0xf0]  ;;  %v5153_v19 = vld [vmem:[%s7890_s3 + $0x84] sm:$0xf]  ;;  %v7336_v40 = vld [vmem:[#allocation2] sm:$0xf] }
 0x11a   : > { %3049 = vmatpush.bf16.msra.mxu1 %v4592_v32  ;;  %v2013_v14 = vpop.f32.mrf.mxu1  ;;  %v5165_v32 = vld [vmem:[%s7890_s3 + $0xe4] sm:$0xf]  ;;  %v4689_v6 = vld [vmem:[%s7890_s3 + $0x290] sm:$0xf0]  ;;  %v5168_v57 = vld [vmem:[%s7890_s3 + $0xf4] sm:$0xf0] }
 0x11b   : > { %3062 = vmatpush.bf16.msra.mxu2 %v4720_v31  ;;  %v2037_v2 = vpop.f32.mrf.mxu3  ;;  %v4484_v42 = vor.u32 %v5165_v32, %v4481_v33  ;;  %v4545_v14 = vld [vmem:[%s7890_s3 + $0x170] sm:$0xf0]  ;;  %v5209_v33 = vld [vmem:[%s7890_s3 + $0x244] sm:$0xf] }
 0x11c   : > { %3037 = vmatpush.bf16.msra.mxu0 %v4448_v39  ;;  %v2038_v17 = vadd.f32 %v2037_v2, %v2025_v5  ;;  %v4368_v39 = vor.u32 %v5139_v13, %v4367_v28  ;;  %v4561_v2 = vld [vmem:[%s7890_s3 + $0x190] sm:$0xf0]  ;;  %v5217_v5 = vld [vmem:[%s7890_s3 + $0x284] sm:$0xf]  ;;  %v4548_v23 = vor.u32 %v5181_v12, %v4545_v14  ;;  %v4831_v14 = vld [vmem:[%s7890_s3 + $0x3a0] sm:$0xf] }
 0x11d   : > { %v4564_v8 = vor.u32 %v5185_v22, %v4561_v2  ;;  %v4692_v7 = vor.u32 %v5217_v5, %v4689_v6  ;;  %v5177_v28 = vld [vmem:[%s7890_s3 + $0x144] sm:$0xf]  ;;  %v4529_v13 = vld [vmem:[%s7890_s3 + $0x150] sm:$0xf0]  ;;  %v4847_v22 = vld [vmem:[%s7890_s3 + $0x3c0] sm:$0xf] }
 0x11e   : > { %3050 = vmatpush.bf16.msra.mxu1 %v4576_v43  ;;  %v2250_v31 = vmax.f32 %v2038_v17, 0.0  ;;  %v4496_v43 = vor.u32 %v5171_v24, %v4495_v29  ;;  %v5213_v17 = vld [vmem:[%s7890_s3 + $0x264] sm:$0xf]  ;;  %v4532_v35 = vor.u32 %v5177_v28, %v4529_v13  ;;  %v5259_v2 = vld [vmem:[%s7890_s3 + $0x3cc] sm:$0xf0] }
 0x11f   : > { %3063 = vmatpush.bf16.msra.mxu2 %v4704_v48  ;;  %v5161_v48 = vld [vmem:[%s7890_s3 + $0xc4] sm:$0xf]  ;;  %v5164_v5 = vld [vmem:[%s7890_s3 + $0xd4] sm:$0xf0]  ;;  %v4848_v6 = vor.u32 %v5259_v2, %v4847_v22  ;;  %v4815_v13 = vld [vmem:[%s7890_s3 + $0x380] sm:$0xf] }
 0x120   : > { %3038 = vmatpush.bf16.msra.mxu0 %v4432_v36  ;;  %v2026_v30 = vpop.f32.mrf.mxu2  ;;  %v5193_v36 = vld [vmem:[%s7890_s3 + $0x1c4] sm:$0xf]  ;;  %v7234_v51 = vpack.c.bf16 %v2250_v31, %v2250_v31  ;;  %v4468_v55 = vor.u32 %v5161_v48, %v4465_v52  ;;  %v4641_v52 = vld [vmem:[%s7890_s3 + $0x230] sm:$0xf0]  ;;  %v4519_v22 = vld [vmem:[%s7890_s3 + $0x128] sm:$0xf] }
 0x121   : > { %v4596_v58 = vor.u32 %v5193_v36, %v4593_v49  ;;  %v5205_v48 = vld [vmem:[%s7890_s3 + $0x224] sm:$0xf] }
 0x122   : > { %3051 = vmatpush.bf16.msra.mxu1 %v4560_v53  ;;  %v4740_v53 = vor.u32 %v5229_v45, %v4737_v46  ;;  %v5169_v49 = vld [vmem:[%s7890_s3 + $0x104] sm:$0xf] }
 0x123   : > { %3064 = vmatpush.bf16.msra.mxu2 %v4688_v60  ;;  %v2039_v34 = vpop.f32.mrf.mxu3  ;;  %v4449_v60 = vld [vmem:[%s7890_s3 + $0xb0] sm:$0xf0] }
 0x124   : > { %3039 = vmatpush.bf16.msra.mxu0 %v4416_v18  ;;  %v5189_v18 = vld [vmem:[%s7890_s3 + $0x1a4] sm:$0xf]  ;;  %v4452_v63 = vor.u32 %v5157_v59, %v4449_v60  ;;  %v4657_v34 = vld [vmem:[%s7890_s3 + $0x250] sm:$0xf0]  ;;  %v4615_v60 = vld [vmem:[%s7890_s3 + $0x1e8] sm:$0xf] }
 0x125   : > { %v4580_v1 = vor.u32 %v5189_v18, %v4577_v61  ;;  %v4660_v45 = vor.u32 %v5209_v33, %v4657_v34  ;;  %v5200_v18 = vld [vmem:[%s7890_s3 + $0x1f4] sm:$0xf0]  ;;  %v4439_v33 = vld [vmem:[%s7890_s3 + $0x88] sm:$0xf] }
 0x126   : > { %3052 = vmatpush.bf16.msra.mxu1 %v4544_v26  ;;  %v5221_v26 = vld [vmem:[%s7890_s3 + $0x2a4] sm:$0xf] }
 0x127   : > { %3065 = vmatpush.bf16.msra.mxu2 %v4672_v3  ;;  %v4708_v3 = vor.u32 %v5221_v26, %v4705_v0  ;;  %v5201_v0 = vld [vmem:[%s7890_s3 + $0x204] sm:$0xf] }
 0x128   : > { %3040 = vmatpush.bf16.msra.mxu0 %v4400_v4  ;;  %v4436_v4 = vor.u32 %v5153_v19, %v4433_v20  ;;  %v4488_v20 = vor.u32 %v5168_v57, %v4487_v56  ;;  %v4407_v56 = vld [vmem:[%s7890_s3 + $0x48] sm:$0xf]  ;;  %v5148_v57 = vld [vmem:[%s7890_s3 + $0x54] sm:$0xf0] }
 0x12a   : > { %3053 = vmatpush.bf16.msra.mxu1 %v4528_v10  ;;  %v4417_v10 = vld [vmem:[%s7890_s3 + $0x70] sm:$0xf0] }
 0x12b   : > { %3066 = vmatpush.bf16.msra.mxu2 %v4656_v16  ;;  %v4420_v16 = vor.u32 %v5149_v9, %v4417_v10  ;;  %v5196_v9 = vld [vmem:[%s7890_s3 + $0x1d4] sm:$0xf0] }
 0x12c   : > { %3041 = vmatpush.bf16.msra.mxu0 %v4384_v21  ;;  %v4673_v21 = vld [vmem:[%s7890_s3 + $0x270] sm:$0xf0] }
 0x12d   : > { %v4676_v24 = vor.u32 %v5213_v17, %v4673_v21  ;;  %v4455_v17 = vld [vmem:[%s7890_s3 + $0xa8] sm:$0xf] }
 0x12e   : > { %3054 = vmatpush.bf16.msra.mxu1 %v4512_v27  ;;  %v4401_v27 = vld [vmem:[%s7890_s3 + $0x50] sm:$0xf0] }
 0x12f   : > { %3067 = vmatpush.bf16.msra.mxu2 %v4640_v41  ;;  %v4404_v32 = vor.u32 %v5145_v25, %v4401_v27  ;;  %v4385_v41 = vld [vmem:[%s7890_s3 + $0x30] sm:$0xf0]  ;;  %v5192_v25 = vld [vmem:[%s7890_s3 + $0x1b4] sm:$0xf0] }
 0x130   : > { %3042 = vmatpush.bf16.msra.mxu0 %v4368_v39  ;;  %v2050_v11 = vpop.f32.mrf.mxu0  ;;  %v5173_v39 = vld [vmem:[%s7890_s3 + $0x124] sm:$0xf]  ;;  %v4388_v46 = vor.u32 %v5141_v37, %v4385_v41  ;;  %v5188_v37 = vld [vmem:[%s7890_s3 + $0x194] sm:$0xf0] }
 0x131   : > { %v4516_v36 = vor.u32 %v5173_v39, %v4513_v44  ;;  %v4799_v39 = vld [vmem:[%s7890_s3 + $0x360] sm:$0xf]  ;;  %v5247_v44 = vld [vmem:[%s7890_s3 + $0x36c] sm:$0xf0] }
 0x132   : > { %3055 = vmatpush.bf16.msra.mxu1 %v4496_v43  ;;  %v7294_v15 = vpop.f32.mrf.mxu1  ;;  %v519_v43 = vperm.slane %v7336_v40, 2 }
 0x133   : > { %3043 = vmatmul.bf16.vlgmr.msra.gmra.mxu0 %v7236_v54  ;;  %3068 = vmatpush.bf16.msra.mxu2 %v4624_v50  ;;  %v4863_v50 = vld [vmem:[%s7890_s3 + $0x3e0] sm:$0xf] }
 0x134   : > { %3087 = vmatpush.bf16.msrb.mxu0 %v4484_v42  ;;  %v5137_v42 = vld [vmem:[%s7890_s3 + $0x4] sm:$0xf] }
 0x135   : > { %3056 = vmatmul.bf16.vlgmr.msra.gmra.mxu1 %v7234_v51 }
 0x136   : > { %3100 = vmatpush.bf16.msrb.mxu1 %v4612_v47  ;;  %v4369_v47 = vld [vmem:[%s7890_s3 + $0x10] sm:$0xf0] }
 0x137   : > { %3113 = vmatpush.bf16.msrb.mxu2 %v4740_v53  ;;  %v5263_v53 = vld [vmem:[%s7890_s3 + $0x3ec] sm:$0xf0]  ;;  %v4372_v26 = vor.u32 %v5137_v42, %v4369_v47  ;;  %v4800_v42 = vor.u32 %v5247_v44, %v4799_v39  ;;  %v5184_v47 = vld [vmem:[%s7890_s3 + $0x174] sm:$0xf0] }
 0x138   : > { %3088 = vmatpush.bf16.msrb.mxu0 %v4468_v55  ;;  %v7314_v29 = vpop.f32.mrf.mxu2  ;;  %v2052_v31 = vpop.f32.mrf.mxu0  ;;  %v4497_v55 = vld [vmem:[%s7890_s3 + $0x110] sm:$0xf0]  ;;  %v4864_v59 = vor.u32 %v5263_v53, %v4863_v50  ;;  %v5243_v50 = vld [vmem:[%s7890_s3 + $0x34c] sm:$0xf0] }
 0x139   : > { %v4500_v19 = vor.u32 %v5169_v49, %v4497_v55  ;;  %v4783_v49 = vld [vmem:[%s7890_s3 + $0x340] sm:$0xf] }
 0x13a   : > { %3101 = vmatpush.bf16.msrb.mxu1 %v4596_v58  ;;  %v2065_v38 = vpop.f32.mrf.mxu1  ;;  %3074 = vmatpush.bf16.msra.mxu3 %v4864_v59  ;;  %v4535_v59 = vld [vmem:[%s7890_s3 + $0x148] sm:$0xf] }
 0x13b   : > { %3114 = vmatpush.bf16.msrb.mxu2 %v4724_v62  ;;  %v7316_v30 = vpop.f32.mrf.mxu3  ;;  %v4644_v62 = vor.u32 %v5205_v48, %v4641_v52 }
 0x13c   : > { %3089 = vmatpush.bf16.msrb.mxu0 %v4452_v63  ;;  %v2051_v63 = vadd.f32 %v2050_v11, %v519_v43  ;;  %v4423_v43 = vld [vmem:[%s7890_s3 + $0x68] sm:$0xf] }
 0x13e   : > { %3102 = vmatpush.bf16.msrb.mxu1 %v4580_v1  ;;  %v4625_v1 = vld [vmem:[%s7890_s3 + $0x210] sm:$0xf0]  ;;  %v2064_v11 = vadd.f32 %v7294_v15, %v2051_v63  ;;  %3075 = vmatpush.bf16.msra.mxu3 %v4848_v6  ;;  %v5160_v15 = vld [vmem:[%s7890_s3 + $0xb4] sm:$0xf0]  ;;  %v4408_v63 = vor.u32 %v5148_v57, %v4407_v56 }
 0x13f   : > { %3115 = vmatpush.bf16.msrb.mxu2 %v4708_v3  ;;  %v4616_v3 = vor.u32 %v5200_v18, %v4615_v60  ;;  %v4628_v10 = vor.u32 %v5201_v0, %v4625_v1  ;;  %v4456_v28 = vor.u32 %v5160_v15, %v4455_v17  ;;  %v5180_v60 = vld [vmem:[%s7890_s3 + $0x154] sm:$0xf0]  ;;  %v5239_v0 = vld [vmem:[%s7890_s3 + $0x32c] sm:$0xf0]  ;;  %v4833_v56 = vld [vmem:[%s7890_s3 + $0x3b0] sm:$0xf0] }
 0x140   : > { %3090 = vmatpush.bf16.msrb.mxu0 %v4436_v4  ;;  %v2078_v58 = vpop.f32.mrf.mxu2  ;;  %v4471_v4 = vld [vmem:[%s7890_s3 + $0xc8] sm:$0xf]  ;;  %v2077_v27 = vadd.f32 %v7314_v29, %v2064_v11  ;;  %v5156_v29 = vld [vmem:[%s7890_s3 + $0x94] sm:$0xf0]  ;;  %v4536_v1 = vor.u32 %v5180_v60, %v4535_v59  ;;  %v5235_v17 = vld [vmem:[%s7890_s3 + $0x30c] sm:$0xf0] }
 0x141   : > { %v4472_v12 = vor.u32 %v5164_v5, %v4471_v4  ;;  %v4440_v31 = vor.u32 %v5156_v29, %v4439_v33  ;;  %v4784_v58 = vor.u32 %v5243_v50, %v4783_v49  ;;  %v5176_v4 = vld [vmem:[%s7890_s3 + $0x134] sm:$0xf0]  ;;  %v4743_v5 = vld [vmem:[%s7890_s3 + $0x2e8] sm:$0xf]  ;;  %v4865_v33 = vld [vmem:[%s7890_s3 + $0x3f0] sm:$0xf0] }
 0x142   : > { %3103 = vmatpush.bf16.msrb.mxu1 %v4564_v8  ;;  %v4599_v8 = vld [vmem:[%s7890_s3 + $0x1c8] sm:$0xf]  ;;  %v2090_v41 = vadd.f32 %v7316_v30, %v2077_v27  ;;  %v5152_v30 = vld [vmem:[%s7890_s3 + $0x74] sm:$0xf0]  ;;  %v4520_v15 = vor.u32 %v5176_v4, %v4519_v22  ;;  %v4617_v29 = vld [vmem:[%s7890_s3 + $0x1f8] sm:$0xf0] }
 0x143   : > { %3116 = vmatpush.bf16.msrb.mxu2 %v4692_v7  ;;  %v2091_v61 = vpop.f32.mrf.mxu3  ;;  %v5255_v7 = vld [vmem:[%s7890_s3 + $0x3ac] sm:$0xf0]  ;;  %v5232_v6 = vld [vmem:[%s7890_s3 + $0x2f4] sm:$0xf0]  ;;  %v5158_v59 = vld [vmem:[%s7890_s3 + $0xac] sm:$0xf] }
 0x144   : > { %3091 = vmatpush.bf16.msrb.mxu0 %v4420_v16  ;;  %v4600_v16 = vor.u32 %v5196_v9, %v4599_v8  ;;  %v4832_v21 = vor.u32 %v5255_v7, %v4831_v14  ;;  %v4375_v9 = vld [vmem:[%s7890_s3 + $0x8] sm:$0xf]  ;;  %v5224_v49 = vld [vmem:[%s7890_s3 + $0x2b4] sm:$0xf0]  ;;  %v4457_v60 = vld [vmem:[%s7890_s3 + $0xb8] sm:$0xf0] }
 0x145   : > { %v4503_v7 = vld [vmem:[%s7890_s3 + $0x108] sm:$0xf]  ;;  %v5186_v4 = vld [vmem:[%s7890_s3 + $0x18c] sm:$0xf] }
 0x146   : > { %3104 = vmatpush.bf16.msrb.mxu1 %v4548_v23  ;;  %v4583_v23 = vld [vmem:[%s7890_s3 + $0x1a8] sm:$0xf]  ;;  %3076 = vmatpush.bf16.msra.mxu3 %v4832_v21  ;;  %v4744_v21 = vor.u32 %v5232_v6, %v4743_v5  ;;  %v4569_v5 = vld [vmem:[%s7890_s3 + $0x198] sm:$0xf0] }
 0x147   : > { %3117 = vmatpush.bf16.msrb.mxu2 %v4676_v24  ;;  %v5251_v24 = vld [vmem:[%s7890_s3 + $0x38c] sm:$0xf0]  ;;  %v4679_v6 = vld [vmem:[%s7890_s3 + $0x268] sm:$0xf] }
 0x148   : > { %3092 = vmatpush.bf16.msrb.mxu0 %v4404_v32  ;;  %v4584_v32 = vor.u32 %v5192_v25, %v4583_v23  ;;  %v4816_v34 = vor.u32 %v5251_v24, %v4815_v13  ;;  %v5172_v23 = vld [vmem:[%s7890_s3 + $0x114] sm:$0xf0]  ;;  %v5166_v25 = vld [vmem:[%s7890_s3 + $0xec] sm:$0xf]  ;;  %v4489_v24 = vld [vmem:[%s7890_s3 + $0xf8] sm:$0xf0] }
 0x149   : > { %v4504_v44 = vor.u32 %v5172_v23, %v4503_v7  ;;  %v4663_v23 = vld [vmem:[%s7890_s3 + $0x248] sm:$0xf] }
 0x14a   : > { %3105 = vmatpush.bf16.msrb.mxu1 %v4532_v35  ;;  %v4567_v35 = vld [vmem:[%s7890_s3 + $0x188] sm:$0xf]  ;;  %3077 = vmatpush.bf16.msra.mxu3 %v4816_v34 }
 0x14b   : > { %3118 = vmatpush.bf16.msrb.mxu2 %v4660_v45  ;;  %v4568_v38 = vor.u32 %v5188_v37, %v4567_v35  ;;  %v4727_v34 = vld [vmem:[%s7890_s3 + $0x2c8] sm:$0xf]  ;;  %v5228_v35 = vld [vmem:[%s7890_s3 + $0x2d4] sm:$0xf0] }
 0x14c   : > { %3093 = vmatpush.bf16.msrb.mxu0 %v4388_v46  ;;  %v4551_v46 = vld [vmem:[%s7890_s3 + $0x168] sm:$0xf] }
 0x14d   : > { %v4552_v55 = vor.u32 %v5184_v47, %v4551_v46  ;;  %v5162_v46 = vld [vmem:[%s7890_s3 + $0xcc] sm:$0xf]  ;;  %v4473_v47 = vld [vmem:[%s7890_s3 + $0xd8] sm:$0xf0] }
 0x14e   : > { %3106 = vmatpush.bf16.msrb.mxu1 %v4516_v36  ;;  %3078 = vmatpush.bf16.msra.mxu3 %v4800_v42  ;;  %v4424_v36 = vor.u32 %v5152_v30, %v4423_v43  ;;  %v5257_v43 = vld [vmem:[%s7890_s3 + $0x3c4] sm:$0xf]  ;;  %v4849_v30 = vld [vmem:[%s7890_s3 + $0x3d0] sm:$0xf0] }
 0x14f   : > { %3119 = vmatpush.bf16.msrb.mxu2 %v4644_v62  ;;  %v4852_v50 = vor.u32 %v5257_v43, %v4849_v30 }
 0x150   : > { %3094 = vmatpush.bf16.msrb.mxu0 %v4372_v26  ;;  %v2102_v45 = vpop.f32.mrf.mxu0  ;;  %v4767_v26 = vld [vmem:[%s7890_s3 + $0x320] sm:$0xf] }
 0x151   : > { %v2103_v48 = vadd.f32 %v2102_v45, %v2090_v41  ;;  %v4768_v2 = vor.u32 %v5239_v0, %v4767_v26  ;;  %v4728_v45 = vor.u32 %v5228_v35, %v4727_v34  ;;  %v5249_v0 = vld [vmem:[%s7890_s3 + $0x384] sm:$0xf] }
 0x152   : > { %3107 = vmatpush.bf16.msrb.mxu1 %v4500_v19  ;;  %v2115_v52 = vpop.f32.mrf.mxu1  ;;  %3079 = vmatpush.bf16.msra.mxu3 %v4784_v58  ;;  %v4391_v19 = vld [vmem:[%s7890_s3 + $0x28] sm:$0xf] }
 0x153   : > { %3095 = vmatmul.bf16.vlgmr.msrb.gmra.mxu0 %v7236_v54  ;;  %3120 = vmatpush.bf16.msrb.mxu2 %v4628_v10  ;;  %v2116_v53 = vadd.f32 %v2115_v52, %v2103_v48  ;;  %v5140_v10 = vld [vmem:[%s7890_s3 + $0x14] sm:$0xf0]  ;;  %v5194_v48 = vld [vmem:[%s7890_s3 + $0x1cc] sm:$0xf]  ;;  %v4601_v52 = vld [vmem:[%s7890_s3 + $0x1d8] sm:$0xf0] }
 0x154   : > { %3139 = vmatpush.bf16.msra.mxu0 %v4488_v20  ;;  %v5144_v20 = vld [vmem:[%s7890_s3 + $0x34] sm:$0xf0]  ;;  %v4604_v57 = vor.u32 %v5194_v48, %v4601_v52 }
 0x155   : > { %3108 = vmatmul.bf16.vlgmr.msrb.gmra.mxu1 %v7234_v51  ;;  %v4392_v14 = vor.u32 %v5144_v20, %v4391_v19  ;;  %v4460_v19 = vor.u32 %v5158_v59, %v4457_v60  ;;  %v5230_v59 = vld [vmem:[%s7890_s3 + $0x2ec] sm:$0xf]  ;;  %v4745_v60 = vld [vmem:[%s7890_s3 + $0x2f8] sm:$0xf0] }
 0x156   : > { %3152 = vmatpush.bf16.msra.mxu1 %v4616_v3  ;;  %3080 = vmatpush.bf16.msra.mxu3 %v4768_v2  ;;  %v5154_v2 = vld [vmem:[%s7890_s3 + $0x8c] sm:$0xf] }
 0x158   : > { %3140 = vmatpush.bf16.msra.mxu0 %v4472_v12  ;;  %v2128_v18 = vpop.f32.mrf.mxu2  ;;  %v2104_v8 = vpop.f32.mrf.mxu0 }
 0x159   : > { %v2129_v61 = vadd.f32 %v2128_v18, %v2116_v53  ;;  %v4476_v53 = vor.u32 %v5162_v46, %v4473_v47  ;;  %v5190_v18 = vld [vmem:[%s7890_s3 + $0x1ac] sm:$0xf]  ;;  %v5216_v8 = vld [vmem:[%s7890_s3 + $0x274] sm:$0xf0]  ;;  %v4769_v46 = vld [vmem:[%s7890_s3 + $0x330] sm:$0xf0] }
 0x15a   : > { %3153 = vmatpush.bf16.msra.mxu1 %v4600_v16  ;;  %v2117_v11 = vpop.f32.mrf.mxu1  ;;  %v4751_v16 = vld [vmem:[%s7890_s3 + $0x300] sm:$0xf]  ;;  %v4680_v7 = vor.u32 %v5216_v8, %v4679_v6  ;;  %v4729_v6 = vld [vmem:[%s7890_s3 + $0x2d8] sm:$0xf0] }
 0x15b   : > { %v2141_v62 = vpop.f32.mrf.mxu3  ;;  %v4752_v27 = vor.u32 %v5235_v17, %v4751_v16  ;;  %v5245_v11 = vld [vmem:[%s7890_s3 + $0x364] sm:$0xf]  ;;  %v5150_v16 = vld [vmem:[%s7890_s3 + $0x6c] sm:$0xf]  ;;  %v4425_v17 = vld [vmem:[%s7890_s3 + $0x78] sm:$0xf0] }
 0x15c   : > { %3141 = vmatpush.bf16.msra.mxu0 %v4456_v28  ;;  %v2142_v3 = vadd.f32 %v2141_v62, %v2129_v61  ;;  %v5261_v28 = vld [vmem:[%s7890_s3 + $0x3e4] sm:$0xf]  ;;  %v4585_v61 = vld [vmem:[%s7890_s3 + $0x1b8] sm:$0xf0]  ;;  %v4695_v62 = vld [vmem:[%s7890_s3 + $0x288] sm:$0xf] }
 0x15d   : > { %3081 = vmatpush.bf16.msra.mxu3 %v4752_v27  ;;  %v4868_v41 = vor.u32 %v5261_v28, %v4865_v33  ;;  %v4588_v20 = vor.u32 %v5190_v18, %v4585_v61  ;;  %v5241_v33 = vld [vmem:[%s7890_s3 + $0x344] sm:$0xf] }
 0x15e   : > { %3154 = vmatpush.bf16.msra.mxu1 %v4584_v32  ;;  %v2251_v12 = vmax.f32 %v2142_v3, 0.0  ;;  %v5198_v32 = vld [vmem:[%s7890_s3 + $0x1ec] sm:$0xf]  ;;  %v4441_v3 = vld [vmem:[%s7890_s3 + $0x98] sm:$0xf0] }
 0x15f   : > { %v4620_v42 = vor.u32 %v5198_v32, %v4617_v29  ;;  %v4785_v29 = vld [vmem:[%s7890_s3 + $0x350] sm:$0xf0] }
 0x160   : > { %3142 = vmatpush.bf16.msra.mxu0 %v4440_v31  ;;  %v7524_v13 = vpack.c.bf16 %v2251_v12, %v2251_v12  ;;  %v2130_v37 = vpop.f32.mrf.mxu2  ;;  %v4376_v31 = vor.u32 %v5140_v10, %v4375_v9  ;;  %v4444_v10 = vor.u32 %v5154_v2, %v4441_v3  ;;  %v4801_v12 = vld [vmem:[%s7890_s3 + $0x370] sm:$0xf0]  ;;  %v4788_v43 = vor.u32 %v5241_v33, %v4785_v29  ;;  %v4505_v2 = vld [vmem:[%s7890_s3 + $0x118] sm:$0xf0] }
 0x161   : > { %3126 = vmatpush.bf16.msrb.mxu3 %v4868_v41  ;;  %v4804_v27 = vor.u32 %v5245_v11, %v4801_v12  ;;  %v5146_v37 = vld [vmem:[%s7890_s3 + $0x4c] sm:$0xf]  ;;  %v4409_v41 = vld [vmem:[%s7890_s3 + $0x58] sm:$0xf0] }
 0x162   : > { %3155 = vmatpush.bf16.msra.mxu1 %v4568_v38  ;;  %3069 = vmatmul.bf16.vlgmr.msra.gmra.mxu2 %v7524_v13  ;;  %v4492_v38 = vor.u32 %v5166_v25, %v4489_v24  ;;  %v5212_v25 = vld [vmem:[%s7890_s3 + $0x254] sm:$0xf0]  ;;  %v4428_v24 = vor.u32 %v5150_v16, %v4425_v17  ;;  %v4412_v30 = vor.u32 %v5146_v37, %v4409_v41  ;;  %v4665_v33 = vld [vmem:[%s7890_s3 + $0x258] sm:$0xf0]  ;;  %v5206_v37 = vld [vmem:[%s7890_s3 + $0x22c] sm:$0xf] }
 0x163   : > { %v2143_v39 = vpop.f32.mrf.mxu3  ;;  %3165 = vmatpush.bf16.msra.mxu2 %v4744_v21  ;;  %v4553_v21 = vld [vmem:[%s7890_s3 + $0x178] sm:$0xf0]  ;;  %v4664_v35 = vor.u32 %v5212_v25, %v4663_v23 }
 0x164   : > { %3143 = vmatpush.bf16.msra.mxu0 %v4424_v36  ;;  %v4711_v36 = vld [vmem:[%s7890_s3 + $0x2a8] sm:$0xf]  ;;  %v4537_v39 = vld [vmem:[%s7890_s3 + $0x158] sm:$0xf0] }
 0x165   : > { %v4712_v58 = vor.u32 %v5224_v49, %v4711_v36  ;;  %3127 = vmatpush.bf16.msrb.mxu3 %v4852_v50  ;;  %v5142_v36 = vld [vmem:[%s7890_s3 + $0x2c] sm:$0xf]  ;;  %v4393_v49 = vld [vmem:[%s7890_s3 + $0x38] sm:$0xf0] }
 0x166   : > { %3156 = vmatpush.bf16.msra.mxu1 %v4552_v55  ;;  %v5253_v55 = vld [vmem:[%s7890_s3 + $0x3a4] sm:$0xf]  ;;  %v5174_v50 = vld [vmem:[%s7890_s3 + $0x12c] sm:$0xf]  ;;  %v4396_v18 = vor.u32 %v5142_v36, %v4393_v49  ;;  %v4649_v41 = vld [vmem:[%s7890_s3 + $0x238] sm:$0xf0] }
 0x167   : > { %3166 = vmatpush.bf16.msra.mxu2 %v4728_v45  ;;  %v4836_v26 = vor.u32 %v5253_v55, %v4833_v56  ;;  %v5237_v45 = vld [vmem:[%s7890_s3 + $0x324] sm:$0xf]  ;;  %v4631_v55 = vld [vmem:[%s7890_s3 + $0x208] sm:$0xf]  ;;  %v5204_v56 = vld [vmem:[%s7890_s3 + $0x214] sm:$0xf0] }
 0x168   : > { %3144 = vmatpush.bf16.msra.mxu0 %v4408_v63  ;;  %v5220_v63 = vld [vmem:[%s7890_s3 + $0x294] sm:$0xf0] }
 0x169   : > { %v4696_v22 = vor.u32 %v5220_v63, %v4695_v62  ;;  %3128 = vmatpush.bf16.msrb.mxu3 %v4836_v26  ;;  %v5233_v62 = vld [vmem:[%s7890_s3 + $0x304] sm:$0xf]  ;;  %v4753_v63 = vld [vmem:[%s7890_s3 + $0x310] sm:$0xf0] }
 0x16a   : > { %3157 = vmatpush.bf16.msra.mxu1 %v4536_v1  ;;  %v4817_v1 = vld [vmem:[%s7890_s3 + $0x390] sm:$0xf0]  ;;  %v4756_v3 = vor.u32 %v5233_v62, %v4753_v63  ;;  %v4823_v62 = vld [vmem:[%s7890_s3 + $0x388] sm:$0xf]  ;;  %v5252_v63 = vld [vmem:[%s7890_s3 + $0x394] sm:$0xf0] }
 0x16b   : > { %3167 = vmatpush.bf16.msra.mxu2 %v4712_v58  ;;  %v4820_v9 = vor.u32 %v5249_v0, %v4817_v1  ;;  %v4632_v0 = vor.u32 %v5204_v56, %v4631_v55  ;;  %v5138_v1 = vld [vmem:[%s7890_s3 + $0xc] sm:$0xf]  ;;  %v4855_v55 = vld [vmem:[%s7890_s3 + $0x3c8] sm:$0xf]  ;;  %v5260_v56 = vld [vmem:[%s7890_s3 + $0x3d4] sm:$0xf0] }
 0x16c   : > { %3145 = vmatpush.bf16.msra.mxu0 %v4392_v14  ;;  %v4572_v14 = vor.u32 %v5186_v4, %v4569_v5  ;;  %v520_v4 = vperm.slane %v7336_v40, 3  ;;  %v5226_v5 = vld [vmem:[%s7890_s3 + $0x2cc] sm:$0xf] }
 0x16d   : > { %3129 = vmatpush.bf16.msrb.mxu3 %v4820_v9  ;;  %v4732_v12 = vor.u32 %v5226_v5, %v4729_v6 }
 0x16e   : > { %3158 = vmatpush.bf16.msra.mxu1 %v4520_v15  ;;  %v5182_v15 = vld [vmem:[%s7890_s3 + $0x16c] sm:$0xf] }
 0x16f   : > { %3168 = vmatpush.bf16.msra.mxu2 %v4696_v22  ;;  %v4556_v34 = vor.u32 %v5182_v15, %v4553_v21  ;;  %v5170_v22 = vld [vmem:[%s7890_s3 + $0x10c] sm:$0xf]  ;;  %v4697_v21 = vld [vmem:[%s7890_s3 + $0x298] sm:$0xf0] }
 0x170   : > { %3146 = vmatpush.bf16.msra.mxu0 %v4376_v31  ;;  %v7644_v28 = vpop.f32.mrf.mxu0  ;;  %v5178_v31 = vld [vmem:[%s7890_s3 + $0x14c] sm:$0xf] }
 0x171   : > { %3130 = vmatpush.bf16.msrb.mxu3 %v4804_v27  ;;  %v4540_v47 = vor.u32 %v5178_v31, %v4537_v39  ;;  %v2155_v40 = vadd.f32 %v7644_v28, %v520_v4  ;;  %v5218_v15 = vld [vmem:[%s7890_s3 + $0x28c] sm:$0xf] }
 0x172   : > { %3159 = vmatpush.bf16.msra.mxu1 %v4504_v44  ;;  %3121 = vmatmul.bf16.vlgmr.msrb.gmra.mxu2 %v7524_v13  ;;  %v7646_v32 = vpop.f32.mrf.mxu1  ;;  %v4647_v44 = vld [vmem:[%s7890_s3 + $0x228] sm:$0xf]  ;;  %v4700_v23 = vor.u32 %v5218_v15, %v4697_v21  ;;  %v5214_v27 = vld [vmem:[%s7890_s3 + $0x26c] sm:$0xf] }
 0x173   : > { %3147 = vmatmul.bf16.vlgmr.msra.gmra.mxu0 %v7236_v54  ;;  %3169 = vmatpush.bf16.msra.mxu2 %v4680_v7  ;;  %v4713_v7 = vld [vmem:[%s7890_s3 + $0x2b8] sm:$0xf0]  ;;  %v2168_v17 = vadd.f32 %v7646_v32, %v2155_v40  ;;  %v4759_v40 = vld [vmem:[%s7890_s3 + $0x308] sm:$0xf] }
 0x174   : > { %3191 = vmatpush.bf16.msrb.mxu0 %v4492_v38  ;;  %v5208_v38 = vld [vmem:[%s7890_s3 + $0x234] sm:$0xf0] }
 0x175   : > { %3160 = vmatmul.bf16.vlgmr.msra.gmra.mxu1 %v7234_v51  ;;  %v4648_v48 = vor.u32 %v5208_v38, %v4647_v44  ;;  %3131 = vmatpush.bf16.msrb.mxu3 %v4788_v43  ;;  %v4652_v44 = vor.u32 %v5206_v37, %v4649_v41 }
 0x176   : > { %3204 = vmatpush.bf16.msrb.mxu1 %v4620_v42 }
 0x177   : > { %3170 = vmatpush.bf16.msra.mxu2 %v4664_v35 }
 0x178   : > { %3192 = vmatpush.bf16.msrb.mxu0 %v4476_v53  ;;  %v7672_v42 = vpop.f32.mrf.mxu2  ;;  %v4521_v53 = vld [vmem:[%s7890_s3 + $0x138] sm:$0xf0]  ;;  %v2156_v58 = vpop.f32.mrf.mxu0 }
 0x179   : > { %v4524_v26 = vor.u32 %v5174_v50, %v4521_v53  ;;  %v2181_v25 = vadd.f32 %v7672_v42, %v2168_v17  ;;  %v5202_v42 = vld [vmem:[%s7890_s3 + $0x20c] sm:$0xf]  ;;  %v4873_v17 = vld [vmem:[%s7890_s3 + $0x3f8] sm:$0xf0] }
 0x17a   : > { %3205 = vmatpush.bf16.msrb.mxu1 %v4604_v57  ;;  %v4772_v57 = vor.u32 %v5237_v45, %v4769_v46  ;;  %v2169_v61 = vpop.f32.mrf.mxu1  ;;  %v4633_v45 = vld [vmem:[%s7890_s3 + $0x218] sm:$0xf0] }
 0x17b   : > { %v2193_v52 = vpop.f32.mrf.mxu3  ;;  %3171 = vmatpush.bf16.msra.mxu2 %v4648_v48  ;;  %v4871_v48 = vld [vmem:[%s7890_s3 + $0x3e8] sm:$0xf]  ;;  %v4636_v36 = vor.u32 %v5202_v42, %v4633_v45  ;;  %v5238_v42 = vld [vmem:[%s7890_s3 + $0x32c] sm:$0xf]  ;;  %v4777_v45 = vld [vmem:[%s7890_s3 + $0x338] sm:$0xf0] }
 0x17c   : > { %3193 = vmatpush.bf16.msrb.mxu0 %v4460_v19  ;;  %v4377_v19 = vld [vmem:[%s7890_s3 + $0x18] sm:$0xf0]  ;;  %3132 = vmatpush.bf16.msrb.mxu3 %v4772_v57 }
 0x17d   : > { %v4380_v8 = vor.u32 %v5138_v1, %v4377_v19  ;;  %v5248_v1 = vld [vmem:[%s7890_s3 + $0x374] sm:$0xf0] }
 0x17e   : > { %3206 = vmatpush.bf16.msrb.mxu1 %v4588_v20  ;;  %v4748_v20 = vor.u32 %v5230_v59, %v4745_v60  ;;  %v4856_v59 = vor.u32 %v5260_v56, %v4855_v55  ;;  %v4839_v60 = vld [vmem:[%s7890_s3 + $0x3a8] sm:$0xf] }
 0x17f   : > { %3172 = vmatpush.bf16.msra.mxu2 %v4632_v0  ;;  %v4807_v0 = vld [vmem:[%s7890_s3 + $0x368] sm:$0xf] }
 0x180   : > { %3194 = vmatpush.bf16.msrb.mxu0 %v4444_v10  ;;  %v2182_v9 = vpop.f32.mrf.mxu2  ;;  %v4508_v10 = vor.u32 %v5170_v22, %v4505_v2  ;;  %3133 = vmatpush.bf16.msrb.mxu3 %v4756_v3  ;;  %v4791_v2 = vld [vmem:[%s7890_s3 + $0x348] sm:$0xf]  ;;  %v5244_v3 = vld [vmem:[%s7890_s3 + $0x354] sm:$0xf0] }
 0x181   : > { %v4775_v9 = vld [vmem:[%s7890_s3 + $0x328] sm:$0xf] }
 0x182   : > { %3207 = vmatpush.bf16.msrb.mxu1 %v4572_v14  ;;  %v5222_v14 = vld [vmem:[%s7890_s3 + $0x2ac] sm:$0xf]  ;;  %3173 = vmatmul.bf16.vlgmr.msra.gmra.mxu2 %v7524_v13 }
 0x183   : > { %v2195_v11 = vpop.f32.mrf.mxu3  ;;  %3217 = vmatpush.bf16.msrb.mxu2 %v4748_v20  ;;  %v4716_v16 = vor.u32 %v5222_v14, %v4713_v7  ;;  %v4808_v20 = vor.u32 %v5248_v1, %v4807_v0  ;;  %v5236_v14 = vld [vmem:[%s7890_s3 + $0x314] sm:$0xf0] }
 0x184   : > { %3195 = vmatpush.bf16.msrb.mxu0 %v4428_v24  ;;  %v2194_v24 = vadd.f32 %v2193_v52, %v2181_v25  ;;  %v5264_v52 = vld [vmem:[%s7890_s3 + $0x3f4] sm:$0xf0]  ;;  %v4760_v15 = vor.u32 %v5236_v14, %v4759_v40  ;;  %v4857_v25 = vld [vmem:[%s7890_s3 + $0x3d8] sm:$0xf0] }
 0x185   : > { %v4872_v50 = vor.u32 %v5264_v52, %v4871_v48  ;;  %v5234_v48 = vld [vmem:[%s7890_s3 + $0x30c] sm:$0xf]  ;;  %v4761_v52 = vld [vmem:[%s7890_s3 + $0x318] sm:$0xf0] }
 0x186   : > { %3208 = vmatpush.bf16.msrb.mxu1 %v4556_v34 }
 0x187   : > { %3218 = vmatpush.bf16.msrb.mxu2 %v4732_v12 }
 0x188   : > { %3196 = vmatpush.bf16.msrb.mxu0 %v4412_v30 }
 0x18a   : > { %3209 = vmatpush.bf16.msrb.mxu1 %v4540_v47 }
 0x18b   : > { %3219 = vmatpush.bf16.msrb.mxu2 %v4716_v16  ;;  %v5262_v16 = vld [vmem:[%s7890_s3 + $0x3ec] sm:$0xf] }
 0x18c   : > { %3197 = vmatpush.bf16.msrb.mxu0 %v4396_v18  ;;  %v5256_v18 = vld [vmem:[%s7890_s3 + $0x3b4] sm:$0xf0]  ;;  %v4876_v21 = vor.u32 %v5262_v16, %v4873_v17 }
 0x18d   : > { %v4840_v61 = vor.u32 %v5256_v18, %v4839_v60 }
 0x18e   : > { %3210 = vmatpush.bf16.msrb.mxu1 %v4524_v26  ;;  %v7799_v26 = vld [vmem:[#allocation4] sm:$0xf] }
 0x18f   : > { %3220 = vmatpush.bf16.msrb.mxu2 %v4700_v23  ;;  %v2387_v19 = vperm.slane %v7799_v26, 0  ;;  %v5258_v23 = vld [vmem:[%s7890_s3 + $0x3cc] sm:$0xf]  ;;  %v2390_v0 = vperm.slane %v7799_v26, 3 }
 0x190   : > { %3198 = vmatpush.bf16.msrb.mxu0 %v4380_v8  ;;  %v2206_v32 = vpop.f32.mrf.mxu0  ;;  %v4792_v8 = vor.u32 %v5244_v3, %v4791_v2 }
 0x191   : > { %v2207_v34 = vadd.f32 %v2206_v32, %v2194_v24  ;;  %v5250_v32 = vld [vmem:[%s7890_s3 + $0x38c] sm:$0xf] }
 0x192   : > { %3211 = vmatpush.bf16.msrb.mxu1 %v4508_v10  ;;  %v2219_v29 = vpop.f32.mrf.mxu1  ;;  %v5240_v10 = vld [vmem:[%s7890_s3 + $0x334] sm:$0xf0] }
 0x193   : > { %3199 = vmatmul.bf16.vlgmr.msrb.gmra.mxu0 %v7236_v54  ;;  %v4681_v54 = vld [vmem:[%s7890_s3 + $0x278] sm:$0xf0]  ;;  %v2220_v31 = vadd.f32 %v2219_v29, %v2207_v34  ;;  %v4776_v11 = vor.u32 %v5240_v10, %v4775_v9  ;;  %v5246_v29 = vld [vmem:[%s7890_s3 + $0x36c] sm:$0xf] }
 0x194   : > { %v4684_v28 = vor.u32 %v5214_v27, %v4681_v54  ;;  %v4860_v27 = vor.u32 %v5258_v23, %v4857_v25  ;;  %v5254_v54 = vld [vmem:[%s7890_s3 + $0x3ac] sm:$0xf]  ;;  %v4809_v34 = vld [vmem:[%s7890_s3 + $0x378] sm:$0xf0] }
 0x195   : > { %3212 = vmatmul.bf16.vlgmr.msrb.gmra.mxu1 %v7234_v51  ;;  %v5210_v51 = vld [vmem:[%s7890_s3 + $0x24c] sm:$0xf]  ;;  %v4812_v37 = vor.u32 %v5246_v29, %v4809_v34 }
 0x196   : > { %3221 = vmatpush.bf16.msrb.mxu2 %v4684_v28  ;;  %v4668_v35 = vor.u32 %v5210_v51, %v4665_v33  ;;  %v4841_v28 = vld [vmem:[%s7890_s3 + $0x3b8] sm:$0xf0] }
 0x197   : > { %v4844_v24 = vor.u32 %v5254_v54, %v4841_v28  ;;  %v4825_v51 = vld [vmem:[%s7890_s3 + $0x398] sm:$0xf0] }
 0x198   : > { %v2232_v39 = vpop.f32.mrf.mxu2  ;;  %v2208_v30 = vpop.f32.mrf.mxu0  ;;  %v4828_v33 = vor.u32 %v5250_v32, %v4825_v51 }
 0x199   : > { %v2233_v38 = vadd.f32 %v2232_v39, %v2220_v31  ;;  %v2245_v43 = vpop.f32.mrf.mxu3  ;;  %v5242_v31 = vld [vmem:[%s7890_s3 + $0x34c] sm:$0xf]  ;;  %v4793_v39 = vld [vmem:[%s7890_s3 + $0x358] sm:$0xf0] }
 0x19a   : > { %3222 = vmatpush.bf16.msrb.mxu2 %v4668_v35  ;;  %v2221_v46 = vpop.f32.mrf.mxu1  ;;  %v2388_v35 = vperm.slane %v7799_v26, 1  ;;  %v4796_v30 = vor.u32 %v5242_v31, %v4793_v39 }
 0x19b   : > { %v2246_v47 = vadd.f32 %v2245_v43, %v2233_v38  ;;  %v4780_v46 = vor.u32 %v5238_v42, %v4777_v45 }
 0x19d   : > { %v2252_v49 = vmax.f32 %v2246_v47, 0.0 }
 0x19e   : > { %3223 = vmatpush.bf16.msrb.mxu2 %v4652_v44 }
 0x19f   : > { %v7777_v53 = vpack.c.bf16 %v2252_v49, %v2252_v49  ;;  %v4764_v49 = vor.u32 %v5234_v48, %v4761_v52 }
 0x1a0   : > { %v2234_v57 = vpop.f32.mrf.mxu2 }
 0x1a1   : > { %v2247_v58 = vpop.f32.mrf.mxu3  ;;  %3082 = vmatmul.bf16.vlgmr.msra.gmra.mxu3 %v7777_v53 }
 0x1a2   : > { %3224 = vmatpush.bf16.msrb.mxu2 %v4636_v36  ;;  %3178 = vmatpush.bf16.msra.mxu3 %v4872_v50  ;;  %v2389_v50 = vperm.slane %v7799_v26, 2 }
 0x1a5   : > { %3225 = vmatmul.bf16.vlgmr.msrb.gmra.mxu2 %v7524_v13  ;;  %v4824_v13 = vor.u32 %v5252_v63, %v4823_v62 }
 0x1a6   : > { %3179 = vmatpush.bf16.msra.mxu3 %v4856_v59 }
 0x1aa   : > { %3180 = vmatpush.bf16.msra.mxu3 %v4840_v61 }
 0x1ae   : > { %3181 = vmatpush.bf16.msra.mxu3 %v4824_v13 }
 0x1b0   : > { %v3044_v22 = vpop.f32.mrf.mxu0 }
 0x1b1   : > { %v3045_v4 = vadd.f32 %v3044_v22, %v2387_v19  ;;  %3134 = vmatmul.bf16.vlgmr.msrb.gmra.mxu3 %v7777_v53 }
 0x1b2   : > { %v3057_v5 = vpop.f32.mrf.mxu1  ;;  %3182 = vmatpush.bf16.msra.mxu3 %v4808_v20 }
 0x1b3   : > { %v3058_v6 = vadd.f32 %v3057_v5, %v3045_v4 }
 0x1b6   : > { %3183 = vmatpush.bf16.msra.mxu3 %v4792_v8 }
 0x1b8   : > { %v3046_v12 = vpop.f32.mrf.mxu0 }
 0x1ba   : > { %v3059_v7 = vpop.f32.mrf.mxu1  ;;  %3184 = vmatpush.bf16.msra.mxu3 %v4776_v11 }
 0x1be   : > { %3185 = vmatpush.bf16.msra.mxu3 %v4760_v15 }
 0x1c1   : > { %3186 = vmatmul.bf16.vlgmr.msra.gmra.mxu3 %v7777_v53 }
 0x1c2   : > { %3230 = vmatpush.bf16.msrb.mxu3 %v4876_v21 }
 0x1c6   : > { %3231 = vmatpush.bf16.msrb.mxu3 %v4860_v27 }
 0x1ca   : > { %3232 = vmatpush.bf16.msrb.mxu3 %v4844_v24 }
 0x1ce   : > { %3233 = vmatpush.bf16.msrb.mxu3 %v4828_v33 }
 0x1d0   : > { %v3096_v41 = vpop.f32.mrf.mxu0 }
 0x1d1   : > { %v3097_v44 = vadd.f32 %v3096_v41, %v2388_v35 }
 0x1d2   : > { %v3109_v38 = vpop.f32.mrf.mxu1  ;;  %3234 = vmatpush.bf16.msrb.mxu3 %v4812_v37 }
 0x1d3   : > { %v3110_v43 = vadd.f32 %v3109_v38, %v3097_v44 }
 0x1d6   : > { %3235 = vmatpush.bf16.msrb.mxu3 %v4796_v30 }
 0x1d8   : > { %v3098_v47 = vpop.f32.mrf.mxu0 }
 0x1da   : > { %v3111_v36 = vpop.f32.mrf.mxu1  ;;  %3236 = vmatpush.bf16.msrb.mxu3 %v4780_v46 }
 0x1de   : > { %3237 = vmatpush.bf16.msrb.mxu3 %v4764_v49 }
 0x1e1   : > { %3238 = vmatmul.bf16.vlgmr.msrb.gmra.mxu3 %v7777_v53 }
 0x1e5   : > { %v3070_v55 = vpop.f32.mrf.mxu2 }
 0x1e6   : > { %v3071_v57 = vadd.f32 %v3070_v55, %v3058_v6 }
 0x1ed   : > { %v3072_v18 = vpop.f32.mrf.mxu2 }
 0x1f0   : > { %v3148_v56 = vpop.f32.mrf.mxu0 }
 0x1f1   : > { %v3149_v58 = vadd.f32 %v3148_v56, %v2389_v50 }
 0x1f2   : > { %v3161_v59 = vpop.f32.mrf.mxu1 }
 0x1f3   : > { %v3162_v60 = vadd.f32 %v3161_v59, %v3149_v58 }
 0x1f5   : > { %v3122_v63 = vpop.f32.mrf.mxu2 }
 0x1f6   : > { %v3123_v11 = vadd.f32 %v3122_v63, %v3110_v43 }
 0x1f8   : > { %v3150_v61 = vpop.f32.mrf.mxu0 }
 0x1fa   : > { %v3163_v62 = vpop.f32.mrf.mxu1 }
 0x1fd   : > { %v3124_v13 = vpop.f32.mrf.mxu2 }
 0x205   : > { %v3174_v22 = vpop.f32.mrf.mxu2 }
 0x206   : > { %v3175_v2 = vadd.f32 %v3174_v22, %v3162_v60 }
 0x20d   : > { %v3176_v5 = vpop.f32.mrf.mxu2 }
 0x210   : > { %v3200_v1 = vpop.f32.mrf.mxu0 }
 0x211   : > { %v3201_v19 = vadd.f32 %v3200_v1, %v2390_v0 }
 0x212   : > { %v3213_v20 = vpop.f32.mrf.mxu1 }
 0x213   : > { %v3214_v53 = vadd.f32 %v3213_v20, %v3201_v19 }
 0x218   : > { %v3202_v3 = vpop.f32.mrf.mxu0 }
 0x21a   : > { %v3215_v4 = vpop.f32.mrf.mxu1 }
 0x224   : > { %v3083_v6 = vpop.f32.mrf.mxu3 }
 0x225   : > { %v3084_v12 = vadd.f32 %v3083_v6, %v3071_v57 }
 0x227   : > { %v3243_v26 = vmax.f32 %v3084_v12, 0.0 }
 0x228   : > { %v3226_v8 = vpop.f32.mrf.mxu2 }
 0x229   : > { %v3227_v23 = vadd.f32 %v3226_v8, %v3214_v53 }
 0x22c   : > { %v3085_v9 = vpop.f32.mrf.mxu3 }
 0x230   : > { %v3228_v10 = vpop.f32.mrf.mxu2 }
 0x234   : > { %v3135_v40 = vpop.f32.mrf.mxu3 }
 0x235   : > { %v3136_v14 = vadd.f32 %v3135_v40, %v3123_v11 }
 0x237   : > { %v3244_v7 = vmax.f32 %v3136_v14, 0.0 }
 0x239   : > { %v3247_v16 = vpack.c.bf16 %v3244_v7, %v3243_v26 }
 0x23b   : > { %3249 = vst [vmem:[%s254_s11] sm:$0xff] %v3247_v16 }
 0x23c   : > { %v3137_v17 = vpop.f32.mrf.mxu3 }
 0x244   : > { %v3187_v15 = vpop.f32.mrf.mxu3 }
 0x245   : > { %v3188_v25 = vadd.f32 %v3187_v15, %v3175_v2 }
 0x247   : > { %v3245_v28 = vmax.f32 %v3188_v25, 0.0 }
 0x24c   : > { %v3189_v21 = vpop.f32.mrf.mxu3 }
 0x264   : > { %v3239_v27 = vpop.f32.mrf.mxu3 }
 0x265   : > { %v3240_v54 = vadd.f32 %v3239_v27, %v3227_v23 }
 0x267   : > { %v3246_v24 = vmax.f32 %v3240_v54, 0.0 }
 0x269   : > { %v3248_v32 = vpack.c.bf16 %v3246_v24, %v3245_v28 }
 0x26b   : > { %3250 = vst [vmem:[%s254_s11 + $0x8] sm:$0xff] %v3248_v32 }
 0x26c   : > { %v3241_v51 = vpop.f32.mrf.mxu3 }
 0x26d PF: > { %s17_s18 = sadd.s32 1, %s5369_s18  }
 0x26e   : > { %p14_p7 = scmp.ge.s32.totalorder %s17_s18, 4  }
 0x270   :  { %16 = sbr.rel (!%p14_p7) target bundleno = 2 (0x2), region = 79 }
 0x275   :  { %3272 = vsyncpa [#allocation3], 1 }
 0x276   :  { %3274 = vsyncpa [#allocation3 + $0x1], 1 }
 0x277   :  { %3275 = vsyncpa [#allocation5], 1 }

// kernel: custom-call.14
= control target key start
LH: loop header
LB: loop body
LE: loop exit
PB: predicated region body
PF: predicated region fallthrough
CT: control target
= control target key end

     0   :  { %s6_s0 = inlined_call_operand.vmem [shape: f32[1792], index: 0, kind: output, shape index: {}]  }

// kernel: _lambda_.21
= control target key start
LH: loop header
LB: loop body
LE: loop exit
PB: predicated region body
PF: predicated region fallthrough
CT: control target
= control target key end

     0   :  { %s991_s0 = inlined_call_operand.vmem [shape: f32[2,8,128], index: 0, kind: input, shape index: {}]   ;;  %s992_s1 = inlined_call_operand.vmem [shape: f32[1,128], index: 1, kind: input, shape index: {}]   ;;  %s993_s2 = inlined_call_operand.<no memory space> [shape: f32[1,1], index: 2, kind: input, shape index: {}]   ;;  %s994_s3 = inlined_call_operand.vmem [shape: bf16[128,128], index: 3, kind: input, shape index: {}]   ;;  %s995_s4 = inlined_call_operand.vmem [shape: f32[1,128], index: 4, kind: input, shape index: {}]   ;;  %s996_s5 = inlined_call_operand.vmem [shape: f32[128,3], index: 5, kind: input, shape index: {}]   ;;  %s997_s6 = inlined_call_operand.vmem [shape: f32[1,3], index: 6, kind: input, shape index: {}]   ;;  %s998_s7 = inlined_call_operand.vmem [shape: f32[2,8,1], index: 7, kind: output, shape index: {0}]   ;;  %s999_s8 = inlined_call_operand.hbm [shape: f32[2,1,3], index: 8, kind: output, shape index: {1}]  }
   0x1   :  { %v14_v0 = vstv %s993_s2 }
   0x2   :  { %15 = vst [vmem:[#allocation2] sm:$0x1] %v14_v0 }
   0x3   :  { %16 = vsyncpa [#allocation4], 0 }
   0x4   :  { %18 = vsyncpa [#allocation4 + $0x1], 0  ;;  %s809_s29 = smov 0   ;;  %s811_s30 = smov 0  }
   0x5   :  { %s813_s9 = smov 0   ;;  %s815_s10 = smov 0  }
   0x6 LB: > { %s830_s2 = sadd.s32 4294967295, %s758_s10   ;;  %s597_s11 = sadd.s32 4294967294, %s758_s10   ;;  %s758_s10 = sphi %s815_s10, %s1005_s10   ;;  %s754_s9 = sphi %s813_s9, %s1004_s9   ;;  %s750_s30 = sphi %s811_s30, %s1003_s30   ;;  %s746_s29 = sphi %s809_s29, %s1002_s29  }
   0x7   : > { %s834_s12 = sadd.s32 1, %s758_s10   ;;  %s209_s13 = sadd.s32 1, %s754_s9 }
   0x8   : > { %s206_s14 = ssub.s32 %s758_s10, %s834_s12  ;;  %p219_p0 = scmp.ne.s32.totalorder %s754_s9, %s750_s30 }
   0x9   : > { %p207_p1 = scmp.eq.s32.totalorder %s206_s14, 0  ;;  %p220_p2 = scmp.eq.s32.totalorder %s830_s2, 1 }
   0xa   : > { %p225_p3 = scmp.ne.s32.totalorder %s750_s30, %s746_s29  ;;  %p226_p4 = scmp.eq.s32.totalorder %s597_s11, 1 }
   0xb   : > { %s845_s15 = scalar_select %p207_p1, %s754_s9, %s209_s13  }
   0xc   : > { %p847_p5 = por %p220_p2, %p219_p0  ;;  %p851_p6 = por %p226_p4, %p225_p3 }
   0xd   : > { %p600_p7 = scmp.ge.s32.totalorder %s758_s10, 1  ;;  %p269_p8 = scmp.lt.s32.totalorder %s758_s10, 3 }
   0xf   : > { %p270_p9 = pnand %p600_p7, %p269_p8 }
  0x10   : > { %p305_p10 = scmp.lt.s32.totalorder (!%p270_p9), %s830_s2, 1  ;;  %s303_s26 = sand.u32 (!%p270_p9), 1, %s750_s30  }
  0x11   : > { %273 = sbr.rel (%p270_p9) target bundleno = 710 (0x2c6), region = 48  ;;  %s304_s13 = scalar_lea.vmem (!%p270_p9), [#allocation3], %s303_s26 }
  0x12   : > { %s516_s14 = sshll.u32 (!%p270_p9), %s304_s13, 4  ;;  %s503_s20 = scalar_lea.sflag (!%p270_p9), [#allocation4], %s303_s26  ;;  %s517_s14 = int_to_ptr.vmem [resolvable:$true] %s516_s14 }
  0x13   : > { %s716_s23 = scalar_lea.hbm (!%p270_p9), %s999_s8, 2 }
  0x16   : > { %s859_s18 = scalar_select %p305_p10, %s830_s2, 1  ;;  %v687_v1 = vld [vmem:[%s992_s1] ss:$0 sm:$0xff]  ;;  %v760_v4 = vmov 0   ;;  %v645_v8 = vld [vmem:[%s994_s3 + $0x38] sm:$0xff]  ;;  %v644_v10 = vld [vmem:[%s994_s3 + $0x30] sm:$0xff] }
  0x17   : > { %686 = vset.pattern.permute.xlu0 %v760_v4  ;;  %v688_v5 = vld [vmem:[#allocation2] ss:$0 sm:$0xff]  ;;  %423 = vmatpush.bf16.msra.mxu0 %v645_v8  ;;  %v643_v11 = vld [vmem:[%s994_s3 + $0x28] sm:$0xff]  ;;  %v641_v15 = vld [vmem:[%s994_s3 + $0x18] sm:$0xff]  ;;  %vm346_vm4 = vcmask 7168   ;;  %vm481_vm5 = vcmask 16384  }
  0x18   : > { %s601_s21 = sshll.u32 %s859_s18, 3  ;;  %v642_v13 = vld [vmem:[%s994_s3 + $0x20] sm:$0xff]  ;;  %v640_v16 = vld [vmem:[%s994_s3 + $0x10] sm:$0xff]  ;;  %v639_v20 = vld [vmem:[%s994_s3 + $0x8] sm:$0xff] }
  0x19   : > { %s308_s24 = scalar_lea.vmem %s991_s0, %s601_s21  ;;  %s312_s11 = scalar_lea.vmem %s998_s7, %s601_s21  ;;  %v638_v29 = vld [vmem:[%s994_s3] sm:$0xff]  ;;  %v458_v30 = vld [vmem:[%s996_s5 + $0x78] sm:$0xff]  ;;  %v457_v31 = vld [vmem:[%s996_s5 + $0x70] sm:$0xff] }
  0x1a   : > { %v870_v2 = vld [vmem:[%s308_s24] sm:$0xff]  ;;  %460 = vmatpush.msra.mxu1 %v458_v30  ;;  %v456_v32 = vld [vmem:[%s996_s5 + $0x68] sm:$0xff]  ;;  %v454_v34 = vld [vmem:[%s996_s5 + $0x58] sm:$0xff] }
  0x1b   : > { %v318_v3 = vmul.f32 %v687_v1, %v870_v2  ;;  %424 = vmatpush.bf16.msra.mxu0 %v644_v10  ;;  %v455_v33 = vld [vmem:[%s996_s5 + $0x60] sm:$0xff]  ;;  %v453_v35 = vld [vmem:[%s996_s5 + $0x50] sm:$0xff]  ;;  %v452_v36 = vld [vmem:[%s996_s5 + $0x48] sm:$0xff] }
  0x1c   : > { %461 = vmatpush.msra.mxu1 %v457_v31  ;;  %v451_v40 = vld [vmem:[%s996_s5 + $0x40] sm:$0xff]  ;;  %v450_v41 = vld [vmem:[%s996_s5 + $0x38] sm:$0xff]  ;;  %v449_v42 = vld [vmem:[%s996_s5 + $0x30] sm:$0xff] }
  0x1d   : > { %319 = vadd.xlane.f32.xlu0 %v318_v3  ;;  %v448_v43 = vld [vmem:[%s996_s5 + $0x28] sm:$0xff]  ;;  %v447_v44 = vld [vmem:[%s996_s5 + $0x20] sm:$0xff]  ;;  %v446_v45 = vld [vmem:[%s996_s5 + $0x18] sm:$0xff] }
  0x1e   : > { %462 = vmatpush.msra.mxu1 %v456_v32  ;;  %v445_v46 = vld [vmem:[%s996_s5 + $0x10] sm:$0xff]  ;;  %v444_v47 = vld [vmem:[%s996_s5 + $0x8] sm:$0xff]  ;;  %v443_v48 = vld [vmem:[%s996_s5] sm:$0xff] }
  0x1f   : > { %425 = vmatpush.bf16.msra.mxu0 %v643_v11  ;;  %v689_v49 = vld [vmem:[%s995_s4] ss:$0 sm:$0xff] }
  0x20   : > { %463 = vmatpush.msra.mxu1 %v455_v33  ;;  %v459_v60 = vld [vmem:[%s997_s6] sm:$0x1] }
  0x22   : > { %464 = vmatpush.msra.mxu1 %v454_v34 }
  0x23   : > { %426 = vmatpush.bf16.msra.mxu0 %v642_v13 }
  0x24   : > { %465 = vmatpush.msra.mxu1 %v453_v35 }
  0x26   : > { %466 = vmatpush.msra.mxu1 %v452_v36 }
  0x27   : > { %427 = vmatpush.bf16.msra.mxu0 %v641_v15 }
  0x28   : > { %467 = vmatpush.msra.mxu1 %v451_v40 }
  0x2a   : > { %468 = vmatpush.msra.mxu1 %v450_v41 }
  0x2b   : > { %428 = vmatpush.bf16.msra.mxu0 %v640_v16 }
  0x2c   : > { %469 = vmatpush.msra.mxu1 %v449_v42 }
  0x2e   : > { %470 = vmatpush.msra.mxu1 %v448_v43 }
  0x2f   : > { %429 = vmatpush.bf16.msra.mxu0 %v639_v20 }
  0x30   : > { %471 = vmatpush.msra.mxu1 %v447_v44 }
  0x32   : > { %472 = vmatpush.msra.mxu1 %v446_v45 }
  0x33   : > { %430 = vmatpush.bf16.msra.mxu0 %v638_v29 }
  0x34   : > { %473 = vmatpush.msra.mxu1 %v445_v46 }
  0x36   : > { %474 = vmatpush.msra.mxu1 %v444_v47 }
  0x38   : > { %475 = vmatpush.msra.mxu1 %v443_v48 }
  0x90   : > { %v320_v6 = vpop.xlane.xlu0 %319 }
  0x91   : > { %v325_v7 = vadd.f32 %v688_v5, %v320_v6 }
  0x93   : > { %v603_v9 = vmul.f32 -1.442695, %v325_v7 }
  0x95   : > { %690 = vpow2.f32 %v603_v9 }
  0x9b   : > { %v691_v12 = vpop.eup %690 }
  0x9c   : > { %v329_v14 = vadd.f32 1.0, %v691_v12 }
  0x9e   : > { %692 = vrcp.f32 %v329_v14  ;;  %v341_v21 = vand.u32 2147483648, %v329_v14  ;;  %v339_v23 = vand.u32 2147483647, %v329_v14  ;;  %vm335_vm1 = vweird.f32 %v329_v14 }
  0xa0   : > { %v342_v25 = vor.u32 1.1754944e-38, %v341_v21  ;;  %vm340_vm3 = vcmp.eq.f32.partialorder %v339_v23, 8.507059e+37 }
  0xa4   : > { %v693_v17 = vpop.eup %692 }
  0xa5   : > { %v331_v18 = vmul.f32 %v693_v17, %v329_v14  ;;  %vm336_vm0 = vweird.f32 %v693_v17 }
  0xa6   : > { %vm337_vm2 = vmor %vm335_vm1, %vm336_vm0 }
  0xa7   : > { %v332_v19 = vsub.f32 1.0, %v331_v18 }
  0xa9   : > { %v333_v22 = vmul.f32 %v693_v17, %v332_v19 }
  0xab   : > { %v334_v24 = vadd.f32 %v693_v17, %v333_v22 }
  0xad   : > { %v338_v26 = vsel %vm337_vm2, %v693_v17, %v334_v24 }
  0xae   : > { %v343_v27 = vsel %vm340_vm3, %v342_v25, %v338_v26 }
  0xaf   : > { %v345_v28 = vadd.f32 0.01, %v343_v27 }
  0xb1   : > { %350 = vperm.xlu0 %686, %v345_v28   ;;  %347 = vst.msk [vmem:[%s312_s11] sm:$0xff] %vm346_vm4, %v345_v28  ;;  %s514_s11 = scalar_lea.hbm %s999_s8, %s830_s2 }
  0xb2   : > { %s518_s19 = sshll.u32 %s514_s11, 4  ;;  %s519_s19 = int_to_ptr.hbm [resolvable:$true] %s518_s19 }
  0xb3   : > { %s710_s22 = sshra.s32 %s519_s19, 4  ;;  %s711_s22 = int_to_ptr.hbm [resolvable:$true] %s710_s22 }
  0xb4   : > { %s712_s18 = scalar_lea.hbm %s711_s22, 1  ;;  %p717_p0 = scmp.lt.s32.totalorder %s711_s22, %s999_s8 }
  0xb5   : > { %p713_p11 = scmp.ne.s32.totalorder %s711_s22, %s712_s18  ;;  %p718_p1 = scmp.lt.s32.totalorder %s716_s23, %s712_s18 }
  0xb7   : > { %p714_p12 = pnand %p713_p11, %p847_p5  ;;  %p719_p2 = por %p718_p1, %p717_p0 }
  0xb9   : > { %p715_p13 = pneg %p714_p12 }
  0xbb   : > { %p720_p3 = pnand %p719_p2, %p715_p13 }
 0x123   : > { %v351_v37 = vpop.permute.xlu0 %350 }
 0x124   : > { %v353_v38 = vmul.f32 %v351_v37, %v870_v2 }
 0x126   : > { %v354_v39 = vpack.c.bf16 %v353_v38, %v353_v38 }
 0x128   : > { %431 = vmatmul.bf16.vlgmr.msra.gmra.mxu0 %v354_v39 }
 0x1a5   : > { %v432_v50 = vpop.f32.mrf.mxu0 }
 0x1a6   : > { %v433_v51 = vadd.f32 %v689_v49, %v432_v50 }
 0x1a8   : > { %v436_v52 = vmax.f32 %v433_v51, 0.0 }
 0x1aa   : > { %v437_v53 = vrot.slane %v436_v52, 4 }
 0x1ac   : > { %v438_v54 = vmax.f32 %v436_v52, %v437_v53 }
 0x1ad   : > { %v434_v55 = vpop.f32.mrf.mxu0 }
 0x1ae   : > { %v439_v56 = vrot.slane %v438_v54, 2 }
 0x1b0   : > { %v440_v57 = vmax.f32 %v438_v54, %v439_v56 }
 0x1b2   : > { %v441_v58 = vrot.slane %v440_v57, 1 }
 0x1b4   : > { %v442_v59 = vmax.f32 %v440_v57, %v441_v58 }
 0x1b6   : > { %476 = vmatmul.f32.vlgmr.msra.gmra.mxu1 %v442_v59 }
 0x233   : > { %v477_v61 = vpop.f32.mrf.mxu1 }
 0x234   : > { %v478_v62 = vadd.f32 %v477_v61, %v459_v60 }
 0x236   : > { %v480_v63 = vmul.f32 %v478_v62, %v478_v62 }
 0x238   : > { %v482_v0 = vsel %vm481_vm5, %v480_v63, 0.0 }
 0x239   : > { %483 = vadd.xlane.f32.xlu1 %v482_v0 }
 0x2ac   : > { %v484_v1 = vpop.xlane.xlu1 %483 }
 0x2ad   : > { %v485_v2 = vmax.f32 %v484_v1, 1e-24 }
 0x2af   : > { %694 = vrsqrt.f32 %v485_v2  ;;  %vm492_vm7 = vweird.f32 %v485_v2 }
 0x2b5   : > { %v695_v3 = vpop.eup %694 }
 0x2b6   : > { %v487_v4 = vmul.f32 %v695_v3, %v485_v2  ;;  %vm493_vm6 = vweird.f32 %v695_v3 }
 0x2b7   : > { %vm494_vm8 = vmor %vm492_vm7, %vm493_vm6 }
 0x2b8   : > { %v488_v5 = vmul.f32 %v695_v3, %v487_v4 }
 0x2ba   : > { %v489_v6 = vmul.f32 0.5, %v488_v5 }
 0x2bc   : > { %v490_v7 = vsub.f32 1.5, %v489_v6 }
 0x2be   : > { %v491_v8 = vmul.f32 %v695_v3, %v490_v7 }
 0x2c0   : > { %v495_v9 = vsel %vm494_vm8, %v695_v3, %v491_v8 }
 0x2c1   : > { %v496_v10 = vmul.f32 %v495_v9, %v478_v62 }
 0x2c3   : > { %497 = vst.msk [vmem:[%s304_s13] sm:$0x1] %vm481_vm5, %v496_v10 }
 0x2c4   : > { %723 = shalt.err (!%p720_p3)
}
 0x2c5   : > { %646 = dma.vmem_to_hbm [thread:$0]  (%p847_p5), %s517_s14, 16, %s519_s19, %s503_s20  }
 0x2c6 PF: > { %p652_p4 = scmp.ge.s32.totalorder %s758_s10, 2  ;;  %s537_s26 = sand.u32 1, %s746_s29  }
 0x2c7   : > { %s538_s27 = scalar_lea.sflag [#allocation4], %s537_s26 }
 0x2c8   : > { %p649_p7 = pnand %p652_p4, %p851_p6 }
 0x2ca   : > { %p650_p8 = pneg %p649_p7 }
 0x2cc   : > { %741 = dma.done.wait (%p650_p8), %s538_s27, 16  }
 0x2cd   : > { %743 = vsyncadd (%p650_p8), %s538_s27, 4294967280  ;;  %p21_p9 = scmp.ge.s32.totalorder %s834_s12, 4   ;;  %s1002_s29 = smov %s750_s30 }
 0x2ce   : > { %s1003_s30 = smov %s754_s9  ;;  %s1004_s9 = smov %s845_s15 }
 0x2cf   : > { %s1005_s10 = smov %s834_s12  ;;  %23 = sbr.rel (!%p21_p9) target bundleno = 6 (0x6), region = 95 }
 0x2d4   :  { %543 = vsyncpa [#allocation4], 1 }
 0x2d5   :  { %545 = vsyncpa [#allocation4 + $0x1], 1 }

// kernel: _lambda_.20
= control target key start
LH: loop header
LB: loop body
LE: loop exit
PB: predicated region body
PF: predicated region fallthrough
CT: control target
= control target key end

     0   :  { %s3653_s24 = smov 0   ;;  %s3655_s25 = smov 0   ;;  %s4675_s0 = inlined_call_operand.vmem [shape: bf16[8,16,3], index: 0, kind: input, shape index: {}]   ;;  %s4676_s1 = inlined_call_operand.vmem [shape: bf16[16,128], index: 1, kind: input, shape index: {}]   ;;  %s4677_s2 = inlined_call_operand.vmem [shape: bf16[3,64], index: 2, kind: input, shape index: {}]   ;;  %s4678_s3 = inlined_call_operand.vmem [shape: f32[1,64], index: 3, kind: input, shape index: {}]   ;;  %s4679_s4 = inlined_call_operand.vmem [shape: bf16[64,64], index: 4, kind: input, shape index: {}]   ;;  %s4680_s5 = inlined_call_operand.vmem [shape: f32[1,64], index: 5, kind: input, shape index: {}]   ;;  %s4681_s6 = inlined_call_operand.vmem [shape: bf16[3,128], index: 6, kind: input, shape index: {}]   ;;  %s4682_s7 = inlined_call_operand.vmem [shape: bf16[64,128], index: 7, kind: input, shape index: {}]   ;;  %s4683_s8 = inlined_call_operand.vmem [shape: f32[1,128], index: 8, kind: input, shape index: {}]   ;;  %s4684_s9 = inlined_call_operand.vmem [shape: bf16[128,1792], index: 9, kind: input, shape index: {}]   ;;  %s4685_s10 = inlined_call_operand.vmem [shape: f32[1,1792], index: 10, kind: input, shape index: {}]   ;;  %s4686_s11 = inlined_call_operand.vmem [shape: bf16[6,128,128], index: 11, kind: input, shape index: {}]   ;;  %s4687_s12 = inlined_call_operand.vmem [shape: f32[6,1,128], index: 12, kind: input, shape index: {}]   ;;  %s4688_s13 = inlined_call_operand.vmem [shape: bf16[128,128], index: 13, kind: input, shape index: {}]   ;;  %s4689_s14 = inlined_call_operand.vmem [shape: f32[1,128], index: 14, kind: input, shape index: {}]   ;;  %s4690_s15 = inlined_call_operand.vmem [shape: bf16[128,128], index: 15, kind: input, shape index: {}]   ;;  %s4691_s16 = inlined_call_operand.vmem [shape: f32[1,128], index: 16, kind: input, shape index: {}]   ;;  %s4692_s17 = inlined_call_operand.vmem [shape: f32[16,128], index: 17, kind: output, shape index: {}]  }
   0x1   :  { %4698 = sst [smem:[#allocation9_spill]] %s4675_s0  ;;  %s3657_s26 = smov 0  }
   0x2   :  { %4699 = sst [smem:[#allocation10_spill]] %s4676_s1  ;;  %s3659_s27 = smov 0  }
   0x3   :  { %4700 = sst [smem:[#allocation11_spill]] %s4688_s13  ;;  %s3661_s28 = smov 0  }
   0x4   :  { %4701 = sst [smem:[#allocation12_spill]] %s4689_s14 }
   0x5   :  { %4702 = sst [smem:[#allocation13_spill]] %s4690_s15 }
   0x6   :  { %4703 = sst [smem:[#allocation14_spill]] %s4691_s16 }
   0x7 LB: > { %4704 = sst [smem:[#allocation4_spill]] %s3551_s26  ;;  %s36_s29 = sadd.s32 1, %s3551_s26  ;;  %s3559_s28 = sphi %s3661_s28, %s27_s28   ;;  %s3555_s27 = sphi %s3659_s27, %s4719_s27   ;;  %s3551_s26 = sphi %s3657_s26, %s4718_s26   ;;  %s3547_s25 = sphi %s3655_s25, %s4717_s25   ;;  %s3543_s24 = sphi %s3653_s24, %s4716_s24  }
   0x8   : > { %4705 = sst [smem:[#allocation5_spill]] %s3555_s27  ;;  %s39_s0 = sadd.s32 1, %s3555_s27 }
   0x9   : > { %4706 = sst [smem:[#allocation6_spill]] %s3559_s28  ;;  %p37_p0 = scmp.ge.s32.totalorder %s36_s29, 8 }
   0xa   : > { %p2450_p1 = scmp.ge.s32.totalorder %s3559_s28, 1  ;;  %p513_p2 = scmp.lt.s32.totalorder %s3559_s28, 17 }
   0xb   : > { %s4721_s29 = smov (%p37_p0, %s36_s29), 0  ;;  %s4723_s0 = smov (!%p37_p0, %s39_s0), %s3555_s27 }
   0xc   : > { %4707 = sst [smem:[#allocation7_spill]] %s4721_s29  ;;  %p514_p3 = pnand %p2450_p1, %p513_p2 }
   0xd   : > { %p41_p4 = scmp.ge.s32.totalorder %s4723_s0, 2  ;;  %p571_p5 = scmp.lt.s32.totalorder (!%p514_p3), %s3543_s24, 7 }
   0xe   : > { %517 = sbr.rel (%p514_p3) target bundleno = 1850 (0x73a), region = 88  ;;  %p573_p6 = scmp.lt.s32.totalorder (!%p514_p3), %s3547_s25, 1 }
   0xf   : > { %s4725_s0 = smov (%p41_p4, %s4723_s0), 0  ;;  %s4709_s23 = sld [smem:[#allocation10_spill]] (!%p514_p3) }
  0x10   : > { %4708 = sst [smem:[#allocation8_spill]] %s4725_s0  ;;  %p2455_p7 = scmp.ne.s32.totalorder (!%p514_p3), %s3543_s24, 0 }
  0x11   : > { %s4710_s28 = sld [smem:[#allocation9_spill]] (!%p514_p3) }
  0x13   : > { %s572_s30 = scalar_select %p571_p5, %s3543_s24, 7 }
  0x14   : > { %s4727_s25 = smov (!%p573_p6, %s3547_s25), 1  ;;  %591 = sbr.rel (%p2455_p7) target bundleno = 290 (0x122), region = 92 }
  0x15   : > { %s2451_s18 = sshll.u32 %s572_s30, 1  ;;  %s2453_s1 = sshll.u32 %s4727_s25, 2 }
  0x16   : > { %s576_s19 = sadd.s32 %s2451_s18, %s4727_s25  ;;  %s3690_s29 = scalar_lea.vmem %s4709_s23, %s2453_s1 }
  0x17   : > { %s2452_s20 = sshll.u32 %s576_s19, 2  ;;  %s2454_s16 = sshll.u32 %s4727_s25, 3 }
  0x18   : > { %s3695_s0 = scalar_lea.vmem %s4710_s28, %s2452_s20  ;;  %s3700_s13 = scalar_lea.vmem %s4692_s17, %s2454_s16 }
  0x19   : > { %v2850_v0 = vld [vmem:[%s4684_s9 + $0x310] sm:$0xf]  ;;  %v3389_v1 = vld [vmem:[%s4684_s9 + $0x344] sm:$0xf0]  ;;  %v3382_v2 = vld [vmem:[%s4684_s9 + $0x314] sm:$0xf] }
  0x1a   : > { %v2851_v3 = vor.u32 %v3389_v1, %v2850_v0  ;;  %v2852_v4 = vld [vmem:[%s4684_s9 + $0x348] sm:$0xf0]  ;;  %v2794_v5 = vld [vmem:[%s4684_s9 + $0x2a0] sm:$0xf]  ;;  %v3375_v6 = vld [vmem:[%s4684_s9 + $0x2d4] sm:$0xf0] }
  0x1b   : > { %v2855_v7 = vor.u32 %v3382_v2, %v2852_v4  ;;  %v3368_v8 = vld [vmem:[%s4684_s9 + $0x2a4] sm:$0xf]  ;;  %v2796_v9 = vld [vmem:[%s4684_s9 + $0x2d8] sm:$0xf0]  ;;  %v2795_v10 = vor.u32 %v3375_v6, %v2794_v5  ;;  %v2738_v12 = vld [vmem:[%s4684_s9 + $0x230] sm:$0xf] }
  0x1c   : > { %1297 = vmatpush.bf16.msra.mxu0 %v2851_v3  ;;  %v2799_v11 = vor.u32 %v3368_v8, %v2796_v9  ;;  %v3361_v13 = vld [vmem:[%s4684_s9 + $0x264] sm:$0xf0]  ;;  %v3354_v14 = vld [vmem:[%s4684_s9 + $0x234] sm:$0xf]  ;;  %v2740_v15 = vld [vmem:[%s4684_s9 + $0x268] sm:$0xf0] }
  0x1d   : > { %1310 = vmatpush.bf16.msra.mxu1 %v2855_v7  ;;  %v2858_v16 = vld [vmem:[%s4684_s9 + $0x318] sm:$0xf]  ;;  %v3390_v17 = vld [vmem:[%s4684_s9 + $0x34c] sm:$0xf0]  ;;  %v3383_v19 = vld [vmem:[%s4684_s9 + $0x31c] sm:$0xf]  ;;  %v2739_v21 = vor.u32 %v3361_v13, %v2738_v12  ;;  %v2743_v25 = vor.u32 %v3354_v14, %v2740_v15 }
  0x1e   : > { %v2859_v18 = vor.u32 %v3390_v17, %v2858_v16  ;;  %v2860_v20 = vld [vmem:[%s4684_s9 + $0x350] sm:$0xf0]  ;;  %v2682_v22 = vld [vmem:[%s4684_s9 + $0x1c0] sm:$0xf]  ;;  %v3347_v23 = vld [vmem:[%s4684_s9 + $0x1f4] sm:$0xf0] }
  0x1f   : > { %v2863_v24 = vor.u32 %v3383_v19, %v2860_v20  ;;  %v2802_v26 = vld [vmem:[%s4684_s9 + $0x2a8] sm:$0xf]  ;;  %v3376_v27 = vld [vmem:[%s4684_s9 + $0x2dc] sm:$0xf0]  ;;  %v3369_v28 = vld [vmem:[%s4684_s9 + $0x2ac] sm:$0xf]  ;;  %v2683_v35 = vor.u32 %v3347_v23, %v2682_v22 }
  0x20   : > { %1298 = vmatpush.bf16.msra.mxu0 %v2795_v10  ;;  %1323 = vmatpush.bf16.msra.mxu2 %v2859_v18  ;;  %v3340_v29 = vld [vmem:[%s4684_s9 + $0x1c4] sm:$0xf]  ;;  %v2684_v30 = vld [vmem:[%s4684_s9 + $0x1f8] sm:$0xf0]  ;;  %v2803_v31 = vor.u32 %v3376_v27, %v2802_v26  ;;  %v2746_v34 = vld [vmem:[%s4684_s9 + $0x238] sm:$0xf] }
  0x21   : > { %1311 = vmatpush.bf16.msra.mxu1 %v2799_v11  ;;  %1336 = vmatpush.bf16.msra.mxu3 %v2863_v24  ;;  %v2804_v32 = vld [vmem:[%s4684_s9 + $0x2e0] sm:$0xf0]  ;;  %v3362_v36 = vld [vmem:[%s4684_s9 + $0x26c] sm:$0xf0]  ;;  %v3355_v37 = vld [vmem:[%s4684_s9 + $0x23c] sm:$0xf]  ;;  %v2687_v39 = vor.u32 %v3340_v29, %v2684_v30 }
  0x22   : > { %v2807_v33 = vor.u32 %v3369_v28, %v2804_v32  ;;  %v2748_v38 = vld [vmem:[%s4684_s9 + $0x270] sm:$0xf0]  ;;  %v2626_v40 = vld [vmem:[%s4684_s9 + $0x150] sm:$0xf]  ;;  %v3333_v41 = vld [vmem:[%s4684_s9 + $0x184] sm:$0xf0]  ;;  %v2747_v43 = vor.u32 %v3362_v36, %v2746_v34 }
  0x23   : > { %v3326_v42 = vld [vmem:[%s4684_s9 + $0x154] sm:$0xf]  ;;  %v2628_v44 = vld [vmem:[%s4684_s9 + $0x188] sm:$0xf0]  ;;  %v2751_v45 = vor.u32 %v3355_v37, %v2748_v38  ;;  %v2690_v46 = vld [vmem:[%s4684_s9 + $0x1c8] sm:$0xf]  ;;  %v2627_v50 = vor.u32 %v3333_v41, %v2626_v40 }
  0x24   : > { %1299 = vmatpush.bf16.msra.mxu0 %v2739_v21  ;;  %1324 = vmatpush.bf16.msra.mxu2 %v2803_v31  ;;  %v3348_v47 = vld [vmem:[%s4684_s9 + $0x1fc] sm:$0xf0]  ;;  %v3341_v48 = vld [vmem:[%s4684_s9 + $0x1cc] sm:$0xf]  ;;  %v2692_v49 = vld [vmem:[%s4684_s9 + $0x200] sm:$0xf0]  ;;  %v2631_v51 = vor.u32 %v3326_v42, %v2628_v44 }
  0x25   : > { %1312 = vmatpush.bf16.msra.mxu1 %v2743_v25  ;;  %1337 = vmatpush.bf16.msra.mxu3 %v2807_v33  ;;  %v2570_v52 = vld [vmem:[%s4684_s9 + $0xe0] sm:$0xf]  ;;  %v3319_v53 = vld [vmem:[%s4684_s9 + $0x114] sm:$0xf0]  ;;  %v3312_v54 = vld [vmem:[%s4684_s9 + $0xe4] sm:$0xf]  ;;  %v2691_v55 = vor.u32 %v3348_v47, %v2690_v46  ;;  %v2695_v57 = vor.u32 %v3341_v48, %v2692_v49 }
  0x26   : > { %v2572_v56 = vld [vmem:[%s4684_s9 + $0x118] sm:$0xf0]  ;;  %v2634_v58 = vld [vmem:[%s4684_s9 + $0x158] sm:$0xf]  ;;  %v3334_v59 = vld [vmem:[%s4684_s9 + $0x18c] sm:$0xf0]  ;;  %v2571_v62 = vor.u32 %v3319_v53, %v2570_v52 }
  0x27   : > { %v3327_v60 = vld [vmem:[%s4684_s9 + $0x15c] sm:$0xf]  ;;  %v2636_v61 = vld [vmem:[%s4684_s9 + $0x190] sm:$0xf0]  ;;  %v2575_v63 = vor.u32 %v3312_v54, %v2572_v56  ;;  %v2514_v0 = vld [vmem:[%s4684_s9 + $0x70] sm:$0xf]  ;;  %v2635_v3 = vor.u32 %v3334_v59, %v2634_v58 }
  0x28   : > { %1300 = vmatpush.bf16.msra.mxu0 %v2683_v35  ;;  %1325 = vmatpush.bf16.msra.mxu2 %v2747_v43  ;;  %v3305_v1 = vld [vmem:[%s4684_s9 + $0xa4] sm:$0xf0]  ;;  %v3298_v2 = vld [vmem:[%s4684_s9 + $0x74] sm:$0xf]  ;;  %v2516_v4 = vld [vmem:[%s4684_s9 + $0xa8] sm:$0xf0]  ;;  %v2639_v5 = vor.u32 %v3327_v60, %v2636_v61 }
  0x29   : > { %1313 = vmatpush.bf16.msra.mxu1 %v2687_v39  ;;  %1338 = vmatpush.bf16.msra.mxu3 %v2751_v45  ;;  %v2578_v6 = vld [vmem:[%s4684_s9 + $0xe8] sm:$0xf]  ;;  %v3320_v7 = vld [vmem:[%s4684_s9 + $0x11c] sm:$0xf0]  ;;  %v3313_v8 = vld [vmem:[%s4684_s9 + $0xec] sm:$0xf]  ;;  %v2515_v10 = vor.u32 %v3305_v1, %v2514_v0  ;;  %v2519_v12 = vor.u32 %v3298_v2, %v2516_v4 }
  0x2a   : > { %v2580_v9 = vld [vmem:[%s4684_s9 + $0x120] sm:$0xf0]  ;;  %v2458_v11 = vld [vmem:[%s4684_s9] sm:$0xf]  ;;  %v3291_v13 = vld [vmem:[%s4684_s9 + $0x34] sm:$0xf0]  ;;  %v2579_v16 = vor.u32 %v3320_v7, %v2578_v6 }
  0x2b   : > { %v3284_v14 = vld [vmem:[%s4684_s9 + $0x4] sm:$0xf]  ;;  %v2460_v15 = vld [vmem:[%s4684_s9 + $0x38] sm:$0xf0]  ;;  %v2866_v17 = vld [vmem:[%s4684_s9 + $0x320] sm:$0xf]  ;;  %v2583_v20 = vor.u32 %v3313_v8, %v2580_v9  ;;  %v2459_v24 = vor.u32 %v3291_v13, %v2458_v11 }
  0x2c   : > { %1301 = vmatpush.bf16.msra.mxu0 %v2627_v50  ;;  %1326 = vmatpush.bf16.msra.mxu2 %v2691_v55  ;;  %v3391_v18 = vld [vmem:[%s4684_s9 + $0x354] sm:$0xf0]  ;;  %v3384_v19 = vld [vmem:[%s4684_s9 + $0x324] sm:$0xf]  ;;  %v2868_v21 = vld [vmem:[%s4684_s9 + $0x358] sm:$0xf0]  ;;  %v2463_v27 = vor.u32 %v3284_v14, %v2460_v15 }
  0x2d   : > { %1314 = vmatpush.bf16.msra.mxu1 %v2631_v51  ;;  %1339 = vmatpush.bf16.msra.mxu3 %v2695_v57  ;;  %v2522_v22 = vld [vmem:[%s4684_s9 + $0x78] sm:$0xf]  ;;  %v3306_v23 = vld [vmem:[%s4684_s9 + $0xac] sm:$0xf0]  ;;  %v3299_v25 = vld [vmem:[%s4684_s9 + $0x7c] sm:$0xf]  ;;  %v2867_v28 = vor.u32 %v3391_v18, %v2866_v17  ;;  %v2871_v30 = vor.u32 %v3384_v19, %v2868_v21 }
  0x2e   : > { %v2524_v26 = vld [vmem:[%s4684_s9 + $0xb0] sm:$0xf0]  ;;  %v2810_v29 = vld [vmem:[%s4684_s9 + $0x2b0] sm:$0xf]  ;;  %v3377_v31 = vld [vmem:[%s4684_s9 + $0x2e4] sm:$0xf0]  ;;  %v2523_v34 = vor.u32 %v3306_v23, %v2522_v22 }
  0x2f   : > { %v3370_v32 = vld [vmem:[%s4684_s9 + $0x2b4] sm:$0xf]  ;;  %v2812_v33 = vld [vmem:[%s4684_s9 + $0x2e8] sm:$0xf0]  ;;  %v2527_v35 = vor.u32 %v3299_v25, %v2524_v26  ;;  %v2466_v36 = vld [vmem:[%s4684_s9 + $0x8] sm:$0xf]  ;;  %v2811_v42 = vor.u32 %v3377_v31, %v2810_v29 }
  0x30   : > { %1302 = vmatpush.bf16.msra.mxu0 %v2571_v62  ;;  %1327 = vmatpush.bf16.msra.mxu2 %v2635_v3  ;;  %v3292_v37 = vld [vmem:[%s4684_s9 + $0x3c] sm:$0xf0]  ;;  %v3285_v38 = vld [vmem:[%s4684_s9 + $0xc] sm:$0xf]  ;;  %v2468_v39 = vld [vmem:[%s4684_s9 + $0x40] sm:$0xf0]  ;;  %v2815_v46 = vor.u32 %v3370_v32, %v2812_v33 }
  0x31   : > { %1315 = vmatpush.bf16.msra.mxu1 %v2575_v63  ;;  %1340 = vmatpush.bf16.msra.mxu3 %v2639_v5  ;;  %v2874_v40 = vld [vmem:[%s4684_s9 + $0x328] sm:$0xf]  ;;  %v3392_v41 = vld [vmem:[%s4684_s9 + $0x35c] sm:$0xf0]  ;;  %v3385_v43 = vld [vmem:[%s4684_s9 + $0x32c] sm:$0xf]  ;;  %v2467_v49 = vor.u32 %v3292_v37, %v2466_v36  ;;  %v2471_v52 = vor.u32 %v3285_v38, %v2468_v39 }
  0x32   : > { %v2876_v44 = vld [vmem:[%s4684_s9 + $0x360] sm:$0xf0]  ;;  %v3932_v45 = vld [vmem:[%s3690_s29] sm:$0xf]  ;;  %v3363_v48 = vld [vmem:[%s4684_s9 + $0x274] sm:$0xf0]  ;;  %v2875_v53 = vor.u32 %v3392_v41, %v2874_v40 }
  0x33   : > { %v2754_v47 = vld [vmem:[%s4684_s9 + $0x240] sm:$0xf]  ;;  %v3356_v50 = vld [vmem:[%s4684_s9 + $0x244] sm:$0xf]  ;;  %v2756_v51 = vld [vmem:[%s4684_s9 + $0x278] sm:$0xf0]  ;;  %v2879_v54 = vor.u32 %v3385_v43, %v2876_v44 }
  0x34   : > { %1303 = vmatpush.bf16.msra.mxu0 %v2515_v10  ;;  %1328 = vmatpush.bf16.msra.mxu2 %v2579_v16  ;;  %v2818_v55 = vld [vmem:[%s4684_s9 + $0x2b8] sm:$0xf]  ;;  %v3378_v56 = vld [vmem:[%s4684_s9 + $0x2ec] sm:$0xf0]  ;;  %v2755_v57 = vor.u32 %v3363_v48, %v2754_v47  ;;  %v3371_v58 = vld [vmem:[%s4684_s9 + $0x2bc] sm:$0xf]  ;;  %v2759_v60 = vor.u32 %v3356_v50, %v2756_v51 }
  0x35   : > { %1316 = vmatpush.bf16.msra.mxu1 %v2519_v12  ;;  %1341 = vmatpush.bf16.msra.mxu3 %v2583_v20  ;;  %v2820_v59 = vld [vmem:[%s4684_s9 + $0x2f0] sm:$0xf0]  ;;  %v2698_v61 = vld [vmem:[%s4684_s9 + $0x1d0] sm:$0xf]  ;;  %v3349_v62 = vld [vmem:[%s4684_s9 + $0x204] sm:$0xf0]  ;;  %v2819_v1 = vor.u32 %v3378_v56, %v2818_v55 }
  0x36   : > { %v3342_v63 = vld [vmem:[%s4684_s9 + $0x1d4] sm:$0xf]  ;;  %v2700_v0 = vld [vmem:[%s4684_s9 + $0x208] sm:$0xf0]  ;;  %v2823_v2 = vor.u32 %v3371_v58, %v2820_v59  ;;  %v2762_v3 = vld [vmem:[%s4684_s9 + $0x248] sm:$0xf]  ;;  %v2699_v5 = vor.u32 %v3349_v62, %v2698_v61 }
  0x37   : > { %v3364_v4 = vld [vmem:[%s4684_s9 + $0x27c] sm:$0xf0]  ;;  %v3357_v6 = vld [vmem:[%s4684_s9 + $0x24c] sm:$0xf]  ;;  %v2764_v7 = vld [vmem:[%s4684_s9 + $0x280] sm:$0xf0]  ;;  %v2703_v8 = vor.u32 %v3342_v63, %v2700_v0 }
  0x38   : > { %1304 = vmatpush.bf16.msra.mxu0 %v2459_v24  ;;  %1329 = vmatpush.bf16.msra.mxu2 %v2523_v34  ;;  %v2642_v9 = vld [vmem:[%s4684_s9 + $0x160] sm:$0xf]  ;;  %v3335_v10 = vld [vmem:[%s4684_s9 + $0x194] sm:$0xf0]  ;;  %v3328_v11 = vld [vmem:[%s4684_s9 + $0x164] sm:$0xf]  ;;  %v2763_v13 = vor.u32 %v3364_v4, %v2762_v3  ;;  %v2767_v14 = vor.u32 %v3357_v6, %v2764_v7 }
  0x39   : > { %1317 = vmatpush.bf16.msra.mxu1 %v2463_v27  ;;  %1342 = vmatpush.bf16.msra.mxu3 %v2527_v35  ;;  %v2644_v12 = vld [vmem:[%s4684_s9 + $0x198] sm:$0xf0]  ;;  %v2706_v15 = vld [vmem:[%s4684_s9 + $0x1d8] sm:$0xf]  ;;  %v3350_v16 = vld [vmem:[%s4684_s9 + $0x20c] sm:$0xf0]  ;;  %v2643_v17 = vor.u32 %v3335_v10, %v2642_v9 }
  0x3a   : > { %v3343_v18 = vld [vmem:[%s4684_s9 + $0x1dc] sm:$0xf]  ;;  %v2708_v19 = vld [vmem:[%s4684_s9 + $0x210] sm:$0xf0]  ;;  %v2647_v20 = vor.u32 %v3328_v11, %v2644_v12  ;;  %v2586_v21 = vld [vmem:[%s4684_s9 + $0xf0] sm:$0xf]  ;;  %v2707_v25 = vor.u32 %v3350_v16, %v2706_v15 }
  0x3b   : > { %1305 = vmatmul.bf16.vlgmr.msra.gmra.mxu0 %v3932_v45  ;;  %v3321_v22 = vld [vmem:[%s4684_s9 + $0x124] sm:$0xf0]  ;;  %v3314_v23 = vld [vmem:[%s4684_s9 + $0xf4] sm:$0xf]  ;;  %v2588_v24 = vld [vmem:[%s4684_s9 + $0x128] sm:$0xf0]  ;;  %v2711_v26 = vor.u32 %v3343_v18, %v2708_v19 }
  0x3c   : > { %1349 = vmatpush.bf16.msrb.mxu0 %v2867_v28  ;;  %1318 = vmatmul.bf16.vlgmr.msra.gmra.mxu1 %v3932_v45  ;;  %v2650_v27 = vld [vmem:[%s4684_s9 + $0x168] sm:$0xf]  ;;  %v3336_v28 = vld [vmem:[%s4684_s9 + $0x19c] sm:$0xf0]  ;;  %v2587_v29 = vor.u32 %v3321_v22, %v2586_v21  ;;  %v2652_v31 = vld [vmem:[%s4684_s9 + $0x1a0] sm:$0xf0]  ;;  %v2591_v32 = vor.u32 %v3314_v23, %v2588_v24 }
  0x3d   : > { %1362 = vmatpush.bf16.msrb.mxu1 %v2871_v30  ;;  %1330 = vmatpush.bf16.msra.mxu2 %v2467_v49  ;;  %v3329_v30 = vld [vmem:[%s4684_s9 + $0x16c] sm:$0xf]  ;;  %v2530_v33 = vld [vmem:[%s4684_s9 + $0x80] sm:$0xf]  ;;  %v3307_v34 = vld [vmem:[%s4684_s9 + $0xb4] sm:$0xf0]  ;;  %v2651_v37 = vor.u32 %v3336_v28, %v2650_v27 }
  0x3e   : > { %1343 = vmatpush.bf16.msra.mxu3 %v2471_v52  ;;  %v3300_v35 = vld [vmem:[%s4684_s9 + $0x84] sm:$0xf]  ;;  %v2532_v36 = vld [vmem:[%s4684_s9 + $0xb8] sm:$0xf0]  ;;  %v2655_v38 = vor.u32 %v3329_v30, %v2652_v31  ;;  %v2594_v39 = vld [vmem:[%s4684_s9 + $0xf8] sm:$0xf]  ;;  %v2531_v41 = vor.u32 %v3307_v34, %v2530_v33 }
  0x3f   : > { %v3322_v40 = vld [vmem:[%s4684_s9 + $0x12c] sm:$0xf0]  ;;  %v3315_v43 = vld [vmem:[%s4684_s9 + $0xfc] sm:$0xf]  ;;  %v2596_v44 = vld [vmem:[%s4684_s9 + $0x130] sm:$0xf0] }
  0x40   : > { %1350 = vmatpush.bf16.msrb.mxu0 %v2811_v42  ;;  %1331 = vmatmul.bf16.vlgmr.msra.gmra.mxu2 %v3932_v45  ;;  %v2474_v42 = vld [vmem:[%s4684_s9 + $0x10] sm:$0xf]  ;;  %v3293_v47 = vld [vmem:[%s4684_s9 + $0x44] sm:$0xf0]  ;;  %v3286_v48 = vld [vmem:[%s4684_s9 + $0x14] sm:$0xf]  ;;  %v2599_v55 = vor.u32 %v3315_v43, %v2596_v44 }
  0x41   : > { %1363 = vmatpush.bf16.msrb.mxu1 %v2815_v46  ;;  %1375 = vmatpush.bf16.msrb.mxu2 %v2875_v53  ;;  %v2535_v46 = vor.u32 %v3300_v35, %v2532_v36  ;;  %v2476_v49 = vld [vmem:[%s4684_s9 + $0x48] sm:$0xf0]  ;;  %v2882_v50 = vld [vmem:[%s4684_s9 + $0x330] sm:$0xf]  ;;  %v3393_v51 = vld [vmem:[%s4684_s9 + $0x364] sm:$0xf0]  ;;  %v2595_v53 = vor.u32 %v3322_v40, %v2594_v39  ;;  %v2475_v58 = vor.u32 %v3293_v47, %v2474_v42 }
  0x42   : > { %1388 = vmatpush.bf16.msrb.mxu3 %v2879_v54  ;;  %v3386_v52 = vld [vmem:[%s4684_s9 + $0x334] sm:$0xf]  ;;  %v2884_v54 = vld [vmem:[%s4684_s9 + $0x368] sm:$0xf0]  ;;  %v2538_v56 = vld [vmem:[%s4684_s9 + $0x88] sm:$0xf]  ;;  %v2479_v61 = vor.u32 %v3286_v48, %v2476_v49  ;;  %v2883_v62 = vor.u32 %v3393_v51, %v2882_v50 }
  0x43   : > { %1344 = vmatmul.bf16.vlgmr.msra.gmra.mxu3 %v3932_v45  ;;  %v3301_v59 = vld [vmem:[%s4684_s9 + $0x8c] sm:$0xf]  ;;  %v2826_v63 = vld [vmem:[%s4684_s9 + $0x2c0] sm:$0xf]  ;;  %v2887_v0 = vor.u32 %v3386_v52, %v2884_v54  ;;  %v2828_v3 = vld [vmem:[%s4684_s9 + $0x2f8] sm:$0xf0] }
  0x44   : > { %1351 = vmatpush.bf16.msrb.mxu0 %v2755_v57  ;;  %v3308_v57 = vld [vmem:[%s4684_s9 + $0xbc] sm:$0xf0]  ;;  %v2482_v6 = vld [vmem:[%s4684_s9 + $0x18] sm:$0xf]  ;;  %v3294_v7 = vld [vmem:[%s4684_s9 + $0x4c] sm:$0xf0] }
  0x45   : > { %1364 = vmatpush.bf16.msrb.mxu1 %v2759_v60  ;;  %1376 = vmatpush.bf16.msrb.mxu2 %v2819_v1  ;;  %v2540_v60 = vld [vmem:[%s4684_s9 + $0xc0] sm:$0xf0]  ;;  %v3379_v1 = vld [vmem:[%s4684_s9 + $0x2f4] sm:$0xf0]  ;;  %v2539_v4 = vor.u32 %v3308_v57, %v2538_v56  ;;  %v2484_v9 = vld [vmem:[%s4684_s9 + $0x50] sm:$0xf0]  ;;  %v2483_v18 = vor.u32 %v3294_v7, %v2482_v6 }
  0x46   : > { %1389 = vmatpush.bf16.msrb.mxu3 %v2823_v2  ;;  %v3372_v2 = vld [vmem:[%s4684_s9 + $0x2c4] sm:$0xf]  ;;  %v2890_v10 = vld [vmem:[%s4684_s9 + $0x338] sm:$0xf]  ;;  %v3394_v11 = vld [vmem:[%s4684_s9 + $0x36c] sm:$0xf0]  ;;  %v2827_v12 = vor.u32 %v3379_v1, %v2826_v63 }
  0x47   : > { %v2831_v15 = vor.u32 %v3372_v2, %v2828_v3  ;;  %v2770_v16 = vld [vmem:[%s4684_s9 + $0x250] sm:$0xf]  ;;  %v3358_v19 = vld [vmem:[%s4684_s9 + $0x254] sm:$0xf]  ;;  %v2891_v22 = vor.u32 %v3394_v11, %v2890_v10  ;;  %v2834_v24 = vld [vmem:[%s4684_s9 + $0x2c8] sm:$0xf] }
  0x48   : > { %1352 = vmatpush.bf16.msrb.mxu0 %v2699_v5  ;;  %v2543_v5 = vor.u32 %v3301_v59, %v2540_v60  ;;  %v3373_v27 = vld [vmem:[%s4684_s9 + $0x2cc] sm:$0xf]  ;;  %v2836_v28 = vld [vmem:[%s4684_s9 + $0x300] sm:$0xf0]  ;;  %v2714_v30 = vld [vmem:[%s4684_s9 + $0x1e0] sm:$0xf] }
  0x49   : > { %1365 = vmatpush.bf16.msrb.mxu1 %v2703_v8  ;;  %1377 = vmatpush.bf16.msrb.mxu2 %v2763_v13  ;;  %v3287_v8 = vld [vmem:[%s4684_s9 + $0x1c] sm:$0xf]  ;;  %v3351_v31 = vld [vmem:[%s4684_s9 + $0x214] sm:$0xf0]  ;;  %v2839_v35 = vor.u32 %v3373_v27, %v2836_v28  ;;  %v2780_v40 = vld [vmem:[%s4684_s9 + $0x290] sm:$0xf0] }
  0x4a   : > { %1390 = vmatpush.bf16.msrb.mxu3 %v2767_v14  ;;  %v3387_v13 = vld [vmem:[%s4684_s9 + $0x33c] sm:$0xf]  ;;  %v2892_v14 = vld [vmem:[%s4684_s9 + $0x370] sm:$0xf0]  ;;  %v2487_v21 = vor.u32 %v3287_v8, %v2484_v9  ;;  %v2778_v36 = vld [vmem:[%s4684_s9 + $0x258] sm:$0xf] }
  0x4b   : > { %v2895_v23 = vor.u32 %v3387_v13, %v2892_v14  ;;  %v2716_v33 = vld [vmem:[%s4684_s9 + $0x218] sm:$0xf0]  ;;  %v2658_v42 = vld [vmem:[%s4684_s9 + $0x170] sm:$0xf]  ;;  %v3337_v43 = vld [vmem:[%s4684_s9 + $0x1a4] sm:$0xf0] }
  0x4c   : > { %1353 = vmatpush.bf16.msrb.mxu0 %v2643_v17  ;;  %v3365_v17 = vld [vmem:[%s4684_s9 + $0x284] sm:$0xf0]  ;;  %v3359_v39 = vld [vmem:[%s4684_s9 + $0x25c] sm:$0xf]  ;;  %v3330_v44 = vld [vmem:[%s4684_s9 + $0x174] sm:$0xf]  ;;  %v2659_v51 = vor.u32 %v3337_v43, %v2658_v42 }
  0x4d   : > { %1366 = vmatpush.bf16.msrb.mxu1 %v2647_v20  ;;  %1378 = vmatpush.bf16.msrb.mxu2 %v2707_v25  ;;  %v2772_v20 = vld [vmem:[%s4684_s9 + $0x288] sm:$0xf0]  ;;  %v3380_v25 = vld [vmem:[%s4684_s9 + $0x2fc] sm:$0xf0]  ;;  %v2783_v48 = vor.u32 %v3359_v39, %v2780_v40  ;;  %v2722_v49 = vld [vmem:[%s4684_s9 + $0x1e8] sm:$0xf] }
  0x4e   : > { %1391 = vmatpush.bf16.msrb.mxu3 %v2711_v26  ;;  %v2771_v26 = vor.u32 %v3365_v17, %v2770_v16  ;;  %v2835_v34 = vor.u32 %v3380_v25, %v2834_v24  ;;  %v3352_v50 = vld [vmem:[%s4684_s9 + $0x21c] sm:$0xf0]  ;;  %v3345_v52 = vld [vmem:[%s4684_s9 + $0x1ec] sm:$0xf]  ;;  %v3323_v56 = vld [vmem:[%s4684_s9 + $0x134] sm:$0xf0] }
  0x4f   : > { %v3316_v57 = vld [vmem:[%s4684_s9 + $0x104] sm:$0xf]  ;;  %v2723_v59 = vor.u32 %v3352_v50, %v2722_v49  ;;  %v2668_v1 = vld [vmem:[%s4684_s9 + $0x1b0] sm:$0xf0]  ;;  %v2546_v3 = vld [vmem:[%s4684_s9 + $0x90] sm:$0xf] }
  0x50   : > { %1354 = vmatpush.bf16.msrb.mxu0 %v2587_v29  ;;  %v2775_v29 = vor.u32 %v3358_v19, %v2772_v20  ;;  %v2548_v6 = vld [vmem:[%s4684_s9 + $0xc8] sm:$0xf0]  ;;  %v2610_v9 = vld [vmem:[%s4684_s9 + $0x108] sm:$0xf]  ;;  %v3324_v10 = vld [vmem:[%s4684_s9 + $0x13c] sm:$0xf0] }
  0x51   : > { %1367 = vmatpush.bf16.msrb.mxu1 %v2591_v32  ;;  %1379 = vmatpush.bf16.msrb.mxu2 %v2651_v37  ;;  %v3344_v32 = vld [vmem:[%s4684_s9 + $0x1e4] sm:$0xf]  ;;  %v3366_v37 = vld [vmem:[%s4684_s9 + $0x28c] sm:$0xf0]  ;;  %v3317_v13 = vld [vmem:[%s4684_s9 + $0x10c] sm:$0xf] }
  0x52   : > { %1392 = vmatpush.bf16.msrb.mxu3 %v2655_v38  ;;  %v2715_v38 = vor.u32 %v3351_v31, %v2714_v30  ;;  %v2779_v47 = vor.u32 %v3366_v37, %v2778_v36  ;;  %v2612_v14 = vld [vmem:[%s4684_s9 + $0x140] sm:$0xf0]  ;;  %v3295_v16 = vld [vmem:[%s4684_s9 + $0x54] sm:$0xf0]  ;;  %v2898_v19 = vld [vmem:[%s4684_s9 + $0x340] sm:$0xf] }
  0x53   : > { %v3288_v17 = vld [vmem:[%s4684_s9 + $0x24] sm:$0xf]  ;;  %v3395_v20 = vld [vmem:[%s4684_s9 + $0x374] sm:$0xf0]  ;;  %v2615_v24 = vor.u32 %v3317_v13, %v2612_v14  ;;  %v3303_v28 = vld [vmem:[%s4684_s9 + $0x9c] sm:$0xf] }
  0x54   : > { %1355 = vmatpush.bf16.msrb.mxu0 %v2531_v41  ;;  %v2719_v41 = vor.u32 %v3344_v32, %v2716_v33  ;;  %v2554_v25 = vld [vmem:[%s4684_s9 + $0x98] sm:$0xf]  ;;  %v2899_v31 = vor.u32 %v3395_v20, %v2898_v19  ;;  %v2842_v33 = vld [vmem:[%s4684_s9 + $0x2d0] sm:$0xf]  ;;  %v2844_v37 = vld [vmem:[%s4684_s9 + $0x308] sm:$0xf0] }
  0x55   : > { %1368 = vmatpush.bf16.msrb.mxu1 %v2535_v46  ;;  %1380 = vmatpush.bf16.msrb.mxu2 %v2595_v53  ;;  %v2660_v46 = vld [vmem:[%s4684_s9 + $0x1a8] sm:$0xf0]  ;;  %v2724_v53 = vld [vmem:[%s4684_s9 + $0x220] sm:$0xf0]  ;;  %v2498_v39 = vld [vmem:[%s4684_s9 + $0x28] sm:$0xf] }
  0x56   : > { %1393 = vmatpush.bf16.msrb.mxu3 %v2599_v55  ;;  %v2663_v54 = vor.u32 %v3330_v44, %v2660_v46  ;;  %v2602_v55 = vld [vmem:[%s4684_s9 + $0x100] sm:$0xf]  ;;  %v2727_v60 = vor.u32 %v3345_v52, %v2724_v53  ;;  %v2500_v42 = vld [vmem:[%s4684_s9 + $0x60] sm:$0xf0]  ;;  %v2788_v50 = vld [vmem:[%s4684_s9 + $0x298] sm:$0xf0] }
  0x57   : > { %v2603_v63 = vor.u32 %v3323_v56, %v2602_v55  ;;  %v3296_v40 = vld [vmem:[%s4684_s9 + $0x5c] sm:$0xf0]  ;;  %v3360_v49 = vld [vmem:[%s4684_s9 + $0x264] sm:$0xf]  ;;  %v3353_v55 = vld [vmem:[%s4684_s9 + $0x224] sm:$0xf0] }
  0x58   : > { %1356 = vmatpush.bf16.msrb.mxu0 %v2475_v58  ;;  %v2604_v58 = vld [vmem:[%s4684_s9 + $0x138] sm:$0xf0]  ;;  %v2786_v46 = vld [vmem:[%s4684_s9 + $0x260] sm:$0xf]  ;;  %v2791_v53 = vor.u32 %v3360_v49, %v2788_v50  ;;  %v3346_v56 = vld [vmem:[%s4684_s9 + $0x1f4] sm:$0xf] }
  0x59   : > { %1369 = vmatpush.bf16.msrb.mxu1 %v2479_v61  ;;  %1381 = vmatpush.bf16.msrb.mxu2 %v2539_v4  ;;  %v2666_v61 = vld [vmem:[%s4684_s9 + $0x178] sm:$0xf]  ;;  %v2607_v2 = vor.u32 %v3316_v57, %v2604_v58  ;;  %v3309_v4 = vld [vmem:[%s4684_s9 + $0xc4] sm:$0xf0]  ;;  %v2732_v57 = vld [vmem:[%s4684_s9 + $0x228] sm:$0xf0] }
  0x5a   : > { %1394 = vmatpush.bf16.msrb.mxu3 %v2543_v5  ;;  %v3302_v5 = vld [vmem:[%s4684_s9 + $0x94] sm:$0xf]  ;;  %v2547_v11 = vor.u32 %v3309_v4, %v2546_v3  ;;  %v3325_v3 = vld [vmem:[%s4684_s9 + $0x144] sm:$0xf0]  ;;  %v2506_v14 = vld [vmem:[%s4684_s9 + $0x30] sm:$0xf] }
  0x5b   : > { %1357 = vmatmul.bf16.vlgmr.msrb.gmra.mxu0 %v3932_v45  ;;  %v3318_v4 = vld [vmem:[%s4684_s9 + $0x114] sm:$0xf]  ;;  %v705_v20 = vld [vmem:[%s4685_s10] sm:$0xff] }
  0x5c   : > { %1401 = vmatpush.bf16.msra.mxu0 %v2883_v62  ;;  %1370 = vmatmul.bf16.vlgmr.msrb.gmra.mxu1 %v3932_v45  ;;  %v3338_v62 = vld [vmem:[%s4684_s9 + $0x1ac] sm:$0xf0] }
  0x5d   : > { %1414 = vmatpush.bf16.msra.mxu1 %v2887_v0  ;;  %1382 = vmatpush.bf16.msrb.mxu2 %v2483_v18  ;;  %v3331_v0 = vld [vmem:[%s4684_s9 + $0x17c] sm:$0xf]  ;;  %v2667_v7 = vor.u32 %v3338_v62, %v2666_v61  ;;  %v3339_v61 = vld [vmem:[%s4684_s9 + $0x1b4] sm:$0xf0]  ;;  %v3332_v62 = vld [vmem:[%s4684_s9 + $0x184] sm:$0xf] }
  0x5e   : > { %1395 = vmatpush.bf16.msrb.mxu3 %v2487_v21  ;;  %v2671_v8 = vor.u32 %v3331_v0, %v2668_v1  ;;  %v2492_v18 = vld [vmem:[%s4684_s9 + $0x58] sm:$0xf0]  ;;  %v3388_v21 = vld [vmem:[%s4684_s9 + $0x344] sm:$0xf] }
  0x5f   : > { %v2495_v30 = vor.u32 %v3288_v17, %v2492_v18  ;;  %v2508_v17 = vld [vmem:[%s4684_s9 + $0x68] sm:$0xf0] }
  0x60   : > { %1402 = vmatpush.bf16.msra.mxu0 %v2827_v12  ;;  %1383 = vmatmul.bf16.vlgmr.msrb.gmra.mxu2 %v3932_v45  ;;  %v2490_v12 = vld [vmem:[%s4684_s9 + $0x20] sm:$0xf] }
  0x61   : > { %1415 = vmatpush.bf16.msra.mxu1 %v2831_v15  ;;  %1427 = vmatpush.bf16.msra.mxu2 %v2891_v22  ;;  %v2551_v15 = vor.u32 %v3302_v5, %v2548_v6  ;;  %v2611_v22 = vor.u32 %v3324_v10, %v2610_v9  ;;  %v2491_v27 = vor.u32 %v3295_v16, %v2490_v12  ;;  %v2620_v5 = vld [vmem:[%s4684_s9 + $0x148] sm:$0xf0]  ;;  %v3311_v9 = vld [vmem:[%s4684_s9 + $0xd4] sm:$0xf0]  ;;  %v3304_v10 = vld [vmem:[%s4684_s9 + $0xa4] sm:$0xf] }
  0x62   : > { %1440 = vmatpush.bf16.msra.mxu3 %v2895_v23  ;;  %v2900_v23 = vld [vmem:[%s4684_s9 + $0x378] sm:$0xf0]  ;;  %v3290_v16 = vld [vmem:[%s4684_s9 + $0x34] sm:$0xf] }
  0x63   : > { %1396 = vmatmul.bf16.vlgmr.msrb.gmra.mxu3 %v3932_v45  ;;  %v2903_v32 = vor.u32 %v3388_v21, %v2900_v23  ;;  %v2511_v19 = vor.u32 %v3290_v16, %v2508_v17  ;;  %v709_v21 = vperm.slane %v705_v20, 0 }
  0x64   : > { %1403 = vmatpush.bf16.msra.mxu0 %v2771_v26  ;;  %v3310_v26 = vld [vmem:[%s4684_s9 + $0xcc] sm:$0xf0] }
  0x65   : > { %1416 = vmatpush.bf16.msra.mxu1 %v2775_v29  ;;  %1428 = vmatpush.bf16.msra.mxu2 %v2835_v34  ;;  %v2556_v29 = vld [vmem:[%s4684_s9 + $0xd0] sm:$0xf0]  ;;  %v3381_v34 = vld [vmem:[%s4684_s9 + $0x304] sm:$0xf0]  ;;  %v2555_v36 = vor.u32 %v3310_v26, %v2554_v25 }
  0x66   : > { %1441 = vmatpush.bf16.msra.mxu3 %v2839_v35  ;;  %v3374_v35 = vld [vmem:[%s4684_s9 + $0x2d4] sm:$0xf]  ;;  %v2843_v43 = vor.u32 %v3381_v34, %v2842_v33 }
  0x67   : > { %v2847_v44 = vor.u32 %v3374_v35, %v2844_v37  ;;  %v714_v37 = vperm.slane %v705_v20, 5 }
  0x68   : > { %1404 = vmatpush.bf16.msra.mxu0 %v2715_v38  ;;  %v2559_v38 = vor.u32 %v3303_v28, %v2556_v29  ;;  %v711_v29 = vperm.slane %v705_v20, 2 }
  0x69   : > { %1417 = vmatpush.bf16.msra.mxu1 %v2719_v41  ;;  %1429 = vmatpush.bf16.msra.mxu2 %v2779_v47  ;;  %v3289_v41 = vld [vmem:[%s4684_s9 + $0x2c] sm:$0xf]  ;;  %v3367_v47 = vld [vmem:[%s4684_s9 + $0x294] sm:$0xf0] }
  0x6a   : > { %1442 = vmatpush.bf16.msra.mxu3 %v2783_v48  ;;  %v2499_v48 = vor.u32 %v3296_v40, %v2498_v39  ;;  %v2787_v52 = vor.u32 %v3367_v47, %v2786_v46  ;;  %v716_v46 = vperm.slane %v705_v20, 7 }
  0x6c   : > { %1405 = vmatpush.bf16.msra.mxu0 %v2659_v51  ;;  %v2503_v51 = vor.u32 %v3289_v41, %v2500_v42 }
  0x6d   : > { %1418 = vmatpush.bf16.msra.mxu1 %v2663_v54  ;;  %1430 = vmatpush.bf16.msra.mxu2 %v2723_v59  ;;  %v2730_v54 = vld [vmem:[%s4684_s9 + $0x1f0] sm:$0xf]  ;;  %v2735_v59 = vor.u32 %v3346_v56, %v2732_v57 }
  0x6e   : > { %1443 = vmatpush.bf16.msra.mxu3 %v2727_v60  ;;  %v2731_v58 = vor.u32 %v3353_v55, %v2730_v54  ;;  %v2674_v60 = vld [vmem:[%s4684_s9 + $0x180] sm:$0xf] }
  0x6f   : > { %v2675_v0 = vor.u32 %v3339_v61, %v2674_v60  ;;  %v3561_v60 = vmov -inf  }
  0x70   : > { %1406 = vmatpush.bf16.msra.mxu0 %v2603_v63  ;;  %v2676_v63 = vld [vmem:[%s4684_s9 + $0x1b8] sm:$0xf0]  ;;  %1493 = vst [vmem:[#allocation3] sm:$0xff] %v3561_v60 }
  0x71   : > { %1419 = vmatpush.bf16.msra.mxu1 %v2607_v2  ;;  %1431 = vmatpush.bf16.msra.mxu2 %v2667_v7  ;;  %v2679_v1 = vor.u32 %v3332_v62, %v2676_v63  ;;  %v2618_v2 = vld [vmem:[%s4684_s9 + $0x110] sm:$0xf]  ;;  %v2623_v7 = vor.u32 %v3318_v4, %v2620_v5 }
  0x72   : > { %1444 = vmatpush.bf16.msra.mxu3 %v2671_v8  ;;  %v2619_v6 = vor.u32 %v3325_v3, %v2618_v2  ;;  %v2562_v8 = vld [vmem:[%s4684_s9 + $0xa0] sm:$0xf] }
  0x73   : > { %v2563_v12 = vor.u32 %v3311_v9, %v2562_v8 }
  0x74   : > { %1407 = vmatpush.bf16.msra.mxu0 %v2547_v11  ;;  %v2564_v11 = vld [vmem:[%s4684_s9 + $0xd8] sm:$0xf0] }
  0x75   : > { %1420 = vmatpush.bf16.msra.mxu1 %v2551_v15  ;;  %1432 = vmatpush.bf16.msra.mxu2 %v2611_v22  ;;  %v2567_v13 = vor.u32 %v3304_v10, %v2564_v11  ;;  %v3297_v15 = vld [vmem:[%s4684_s9 + $0x64] sm:$0xf0]  ;;  %v710_v22 = vperm.slane %v705_v20, 1 }
  0x76   : > { %1445 = vmatpush.bf16.msra.mxu3 %v2615_v24  ;;  %v2507_v18 = vor.u32 %v3297_v15, %v2506_v14 }
  0x78   : > { %1408 = vmatpush.bf16.msra.mxu0 %v2491_v27 }
  0x79   : > { %1421 = vmatpush.bf16.msra.mxu1 %v2495_v30  ;;  %1433 = vmatpush.bf16.msra.mxu2 %v2555_v36  ;;  %v712_v30 = vperm.slane %v705_v20, 3  ;;  %v713_v36 = vperm.slane %v705_v20, 4 }
  0x7a   : > { %1446 = vmatpush.bf16.msra.mxu3 %v2559_v38 }
  0x7b   : > { %1409 = vmatmul.bf16.vlgmr.msra.gmra.mxu0 %v3932_v45 }
  0x7c   : > { %1453 = vmatpush.bf16.msrb.mxu0 %v2899_v31  ;;  %1422 = vmatmul.bf16.vlgmr.msra.gmra.mxu1 %v3932_v45 }
  0x7d   : > { %1466 = vmatpush.bf16.msrb.mxu1 %v2903_v32  ;;  %1434 = vmatpush.bf16.msra.mxu2 %v2499_v48 }
  0x7e   : > { %1447 = vmatpush.bf16.msra.mxu3 %v2503_v51 }
  0x80   : > { %1454 = vmatpush.bf16.msrb.mxu0 %v2843_v43  ;;  %1435 = vmatmul.bf16.vlgmr.msra.gmra.mxu2 %v3932_v45 }
  0x81   : > { %1467 = vmatpush.bf16.msrb.mxu1 %v2847_v44  ;;  %1448 = vmatmul.bf16.vlgmr.msra.gmra.mxu3 %v3932_v45  ;;  %v715_v44 = vperm.slane %v705_v20, 6 }
  0x84   : > { %1455 = vmatpush.bf16.msrb.mxu0 %v2787_v52 }
  0x85   : > { %1468 = vmatpush.bf16.msrb.mxu1 %v2791_v53  ;;  %v706_v53 = vld [vmem:[%s4685_s10 + $0x8] sm:$0x3f] }
  0x86   : > { %v717_v54 = vperm.slane %v706_v53, 0  ;;  %v718_v55 = vperm.slane %v706_v53, 1  ;;  %v719_v63 = vperm.slane %v706_v53, 2  ;;  %v722_v8 = vperm.slane %v706_v53, 5 }
  0x88   : > { %1456 = vmatpush.bf16.msrb.mxu0 %v2731_v58 }
  0x89   : > { %1469 = vmatpush.bf16.msrb.mxu1 %v2735_v59 }
  0x8c   : > { %1457 = vmatpush.bf16.msrb.mxu0 %v2675_v0  ;;  %v720_v0 = vperm.slane %v706_v53, 3 }
  0x8d   : > { %1470 = vmatpush.bf16.msrb.mxu1 %v2679_v1 }
  0x90   : > { %1458 = vmatpush.bf16.msrb.mxu0 %v2619_v6 }
  0x91   : > { %1471 = vmatpush.bf16.msrb.mxu1 %v2623_v7  ;;  %v721_v7 = vperm.slane %v706_v53, 4 }
  0x94   : > { %1459 = vmatpush.bf16.msrb.mxu0 %v2563_v12 }
  0x95   : > { %1472 = vmatpush.bf16.msrb.mxu1 %v2567_v13 }
  0x98   : > { %1460 = vmatpush.bf16.msrb.mxu0 %v2507_v18 }
  0x99   : > { %1473 = vmatpush.bf16.msrb.mxu1 %v2511_v19 }
  0x9b   : > { %1461 = vmatmul.bf16.vlgmr.msrb.gmra.mxu0 %v3932_v45 }
  0x9c   : > { %1474 = vmatmul.bf16.vlgmr.msrb.gmra.mxu1 %v3932_v45 }
  0xb8   : > { %v1306_v23 = vpop.f32.mrf.mxu0 }
  0xb9   : > { %v1307_v24 = vadd.f32 %v1306_v23, %v709_v21  ;;  %v1319_v25 = vpop.f32.mrf.mxu1 }
  0xba   : > { %v1320_v26 = vadd.f32 %v1319_v25, %v710_v22 }
  0xbb   : > { %1479 = vst [vmem:[#allocation2 + $0x30] sm:$0xff] %v1307_v24 }
  0xbc   : > { %1480 = vst [vmem:[#allocation2] sm:$0xff] %v1320_v26 }
  0xc0   : > { %v1308_v27 = vpop.f32.mrf.mxu0 }
  0xc1   : > { %v1321_v28 = vpop.f32.mrf.mxu1 }
  0xc3   : > { %v1332_v31 = vpop.f32.mrf.mxu2 }
  0xc4   : > { %v1333_v32 = vadd.f32 %v1332_v31, %v711_v29 }
  0xc6   : > { %v1345_v33 = vpop.f32.mrf.mxu3  ;;  %1481 = vst [vmem:[#allocation2 + $0x58] sm:$0xff] %v1333_v32 }
  0xc7   : > { %v1346_v45 = vadd.f32 %v1345_v33, %v712_v30 }
  0xc9   : > { %1482 = vst [vmem:[#allocation2 + $0x18] sm:$0xff] %v1346_v45 }
  0xcb   : > { %v1334_v34 = vpop.f32.mrf.mxu2 }
  0xce   : > { %v1347_v35 = vpop.f32.mrf.mxu3 }
  0xd8   : > { %v1358_v38 = vpop.f32.mrf.mxu0 }
  0xd9   : > { %v1359_v39 = vadd.f32 %v1358_v38, %v713_v36  ;;  %v1371_v40 = vpop.f32.mrf.mxu1 }
  0xda   : > { %v1372_v41 = vadd.f32 %v1371_v40, %v714_v37 }
  0xdb   : > { %1483 = vst [vmem:[#allocation2 + $0x50] sm:$0xff] %v1359_v39 }
  0xdc   : > { %1484 = vst [vmem:[#allocation2 + $0x68] sm:$0xff] %v1372_v41 }
  0xe0   : > { %v1360_v42 = vpop.f32.mrf.mxu0 }
  0xe1   : > { %v1373_v43 = vpop.f32.mrf.mxu1 }
  0xe3   : > { %v1384_v47 = vpop.f32.mrf.mxu2 }
  0xe4   : > { %v1385_v48 = vadd.f32 %v1384_v47, %v715_v44 }
  0xe6   : > { %v1397_v49 = vpop.f32.mrf.mxu3  ;;  %1485 = vst [vmem:[#allocation2 + $0x8] sm:$0xff] %v1385_v48 }
  0xe7   : > { %v1398_v50 = vadd.f32 %v1397_v49, %v716_v46 }
  0xe9   : > { %1486 = vst [vmem:[#allocation2 + $0x48] sm:$0xff] %v1398_v50 }
  0xeb   : > { %v1386_v51 = vpop.f32.mrf.mxu2 }
  0xee   : > { %v1399_v52 = vpop.f32.mrf.mxu3 }
  0xf8   : > { %v1410_v56 = vpop.f32.mrf.mxu0 }
  0xf9   : > { %v1411_v57 = vadd.f32 %v1410_v56, %v717_v54  ;;  %v1423_v58 = vpop.f32.mrf.mxu1 }
  0xfa   : > { %v1424_v59 = vadd.f32 %v1423_v58, %v718_v55 }
  0xfb   : > { %1487 = vst [vmem:[#allocation2 + $0x40] sm:$0xff] %v1411_v57 }
  0xfc   : > { %1488 = vst [vmem:[#allocation2 + $0x20] sm:$0xff] %v1424_v59 }
 0x100   : > { %v1412_v61 = vpop.f32.mrf.mxu0 }
 0x101   : > { %v1425_v62 = vpop.f32.mrf.mxu1 }
 0x103   : > { %v1436_v1 = vpop.f32.mrf.mxu2 }
 0x104   : > { %v1437_v2 = vadd.f32 %v1436_v1, %v719_v63  ;;  %v1449_v3 = vpop.f32.mrf.mxu3 }
 0x105   : > { %v1450_v4 = vadd.f32 %v1449_v3, %v720_v0 }
 0x106   : > { %1489 = vst [vmem:[#allocation2 + $0x10] sm:$0xff] %v1437_v2 }
 0x107   : > { %1490 = vst [vmem:[#allocation2 + $0x38] sm:$0xff] %v1450_v4 }
 0x10b   : > { %v1438_v5 = vpop.f32.mrf.mxu2 }
 0x10c   : > { %v1451_v6 = vpop.f32.mrf.mxu3 }
 0x118   : > { %v1462_v9 = vpop.f32.mrf.mxu0 }
 0x119   : > { %v1463_v10 = vadd.f32 %v1462_v9, %v721_v7  ;;  %v1475_v11 = vpop.f32.mrf.mxu1 }
 0x11a   : > { %v1476_v12 = vadd.f32 %v1475_v11, %v722_v8 }
 0x11b   : > { %1491 = vst [vmem:[#allocation2 + $0x60] sm:$0xff] %v1463_v10 }
 0x11c   : > { %1492 = vst [vmem:[#allocation2 + $0x28] sm:$0xff] %v1476_v12 }
 0x120   : > { %v1464_v13 = vpop.f32.mrf.mxu0 }
 0x121   : > { %v1477_v14 = vpop.f32.mrf.mxu1 }
 0x122 PF: > { %v1495_v15 = vld [vmem:[%s4677_s2] sm:$0x3]  ;;  %vm1504_vm0 = vcmask 1040384   ;;  %vm1505_vm1 = vcmask 1041408   ;;  %v3562_v16 = vmov 65535   ;;  %v3399_v18 = vld [vmem:[%s4679_s4 + $0x18] sm:$0xff] }
 0x123   : > { %v1506_v17 = vsel %vm1504_vm0, 4294967295, %v3562_v16  ;;  %vm1500_vm2 = vcmask 23552   ;;  %v3398_v20 = vld [vmem:[%s4679_s4 + $0x10] sm:$0xff]  ;;  %v1494_v22 = vld [vmem:[%s3695_s0] sm:$0xf]  ;;  %1570 = vmatpush.bf16.msra.mxu2 %v3399_v18  ;;  %v3397_v23 = vld [vmem:[%s4679_s4 + $0x8] sm:$0xff] }
 0x124   : > { %v1507_v19 = vsel %vm1505_vm1, %v1506_v17, 0  ;;  %v3396_v24 = vld [vmem:[%s4679_s4] sm:$0xff]  ;;  %v3403_v25 = vld [vmem:[%s4682_s7 + $0x18] sm:$0xff]  ;;  %v3402_v28 = vld [vmem:[%s4682_s7 + $0x10] sm:$0xff]  ;;  %vm1562_vm3 = vcmask 523264   ;;  %s4711_s29 = sld [smem:[#allocation11_spill]] }
 0x125   : > { %v1509_v21 = vand.u32 %v1507_v19, %v1495_v15  ;;  %v1579_v26 = vld [vmem:[%s4681_s6] sm:$0x3]  ;;  %v3401_v29 = vld [vmem:[%s4682_s7 + $0x8] sm:$0xff]  ;;  %v3411_v36 = vld [vmem:[%s4686_s11 + $0x38] sm:$0xff]  ;;  %s4712_s23 = sld [smem:[#allocation12_spill]]  ;;  %p3249_p8 = scmp.ne.s32.totalorder %s3543_s24, 7 }
 0x126   : > { %v1630_v27 = vand.u32 %v1579_v26, %v1507_v19  ;;  %v3510_v30 = vld [vmem:[%s4678_s3] ss:$0 sm:$0xff]  ;;  %v3410_v38 = vld [vmem:[%s4686_s11 + $0x30] sm:$0xff]  ;;  %v3409_v39 = vld [vmem:[%s4686_s11 + $0x28] sm:$0xff]  ;;  %s4713_s19 = sld [smem:[#allocation13_spill]] (!%p3249_p8) }
 0x127   : > { %1518 = vmatpush.bf16.msra.mxu0 %v1509_v21  ;;  %1571 = vmatpush.bf16.msra.mxu2 %v3398_v20  ;;  %v3400_v35 = vld [vmem:[%s4682_s7] sm:$0xff]  ;;  %v3407_v42 = vld [vmem:[%s4686_s11 + $0x18] sm:$0xff]  ;;  %v3406_v49 = vld [vmem:[%s4686_s11 + $0x10] sm:$0xff]  ;;  %s4714_s1 = sld [smem:[#allocation14_spill]] (!%p3249_p8) }
 0x128   : > { %1639 = vmatpush.bf16.msra.mxu3 %v1630_v27  ;;  %v3408_v41 = vld [vmem:[%s4686_s11 + $0x20] sm:$0xff]  ;;  %v3405_v50 = vld [vmem:[%s4686_s11 + $0x8] sm:$0xff]  ;;  %v3419_v52 = vld [vmem:[%s4686_s11 + $0x78] sm:$0xff] }
 0x129   : > { %v3511_v43 = vld [vmem:[%s4680_s5] ss:$0 sm:$0xff]  ;;  %v3418_v53 = vld [vmem:[%s4686_s11 + $0x70] sm:$0xff]  ;;  %v3417_v54 = vld [vmem:[%s4686_s11 + $0x68] sm:$0xff] }
 0x12a   : > { %2904 = vmatmul.msk.bf16.vlgmr.msra.gmra.mxu0 %vm1500_vm2, %v1494_v22  ;;  %v3404_v51 = vld [vmem:[%s4686_s11] sm:$0xff]  ;;  %v3415_v56 = vld [vmem:[%s4686_s11 + $0x58] sm:$0xff]  ;;  %v1650_v60 = vld [vmem:[#allocation2 + $0x30] sm:$0xff] }
 0x12b   : > { %1572 = vmatpush.bf16.msra.mxu2 %v3397_v23  ;;  %2939 = vmatmul.msk.bf16.vlgmr.msra.gmra.mxu3 %vm1500_vm2, %v1494_v22  ;;  %v3416_v55 = vld [vmem:[%s4686_s11 + $0x60] sm:$0xff]  ;;  %v3414_v4 = vld [vmem:[%s4686_s11 + $0x50] sm:$0xff]  ;;  %v3413_v5 = vld [vmem:[%s4686_s11 + $0x48] sm:$0xff] }
 0x12c   : > { %1724 = vmatpush.bf16.msrb.mxu0 %v3411_v36  ;;  %1813 = vmatpush.bf16.msrb.mxu3 %v3419_v52  ;;  %v3512_v57 = vld [vmem:[%s4683_s8] ss:$0 sm:$0xff]  ;;  %v3427_v7 = vld [vmem:[%s4686_s11 + $0xb8] sm:$0xff]  ;;  %v3426_v8 = vld [vmem:[%s4686_s11 + $0xb0] sm:$0xff] }
 0x12d   : > { %v1652_v62 = vld [vmem:[#allocation2] sm:$0xff]  ;;  %1903 = vmatpush.bf16.msra.mxu1 %v3427_v7  ;;  %v3425_v9 = vld [vmem:[%s4686_s11 + $0xa8] sm:$0xff]  ;;  %v3423_v11 = vld [vmem:[%s4686_s11 + $0x98] sm:$0xff] }
 0x12e   : > { %v3412_v6 = vld [vmem:[%s4686_s11 + $0x40] sm:$0xff]  ;;  %v1737_v14 = vld [vmem:[#allocation2 + $0x58] sm:$0xff]  ;;  %v3422_v22 = vld [vmem:[%s4686_s11 + $0x90] sm:$0xff] }
 0x12f   : > { %1573 = vmatpush.bf16.msra.mxu2 %v3396_v24  ;;  %v3424_v10 = vld [vmem:[%s4686_s11 + $0xa0] sm:$0xff]  ;;  %v1739_v16 = vld [vmem:[#allocation2 + $0x18] sm:$0xff]  ;;  %v3421_v23 = vld [vmem:[%s4686_s11 + $0x88] sm:$0xff] }
 0x130   : > { %1725 = vmatpush.bf16.msrb.mxu0 %v3410_v38  ;;  %1814 = vmatpush.bf16.msrb.mxu3 %v3418_v53  ;;  %v3513_v12 = vld [vmem:[%s4687_s12] ss:$0 sm:$0xff]  ;;  %v3434_v26 = vld [vmem:[%s4686_s11 + $0xf0] sm:$0xff]  ;;  %v3433_v27 = vld [vmem:[%s4686_s11 + $0xe8] sm:$0xff] }
 0x131   : > { %1904 = vmatpush.bf16.msra.mxu1 %v3426_v8  ;;  %v3420_v24 = vld [vmem:[%s4686_s11 + $0x80] sm:$0xff]  ;;  %v1918_v53 = vld [vmem:[#allocation2 + $0x48] sm:$0xff] }
 0x132   : > { %v2008_v8 = vld [vmem:[#allocation2 + $0x20] sm:$0xff] }
 0x133   : > { %1620 = vmatpush.bf16.msrb.mxu2 %v3403_v25  ;;  %v3435_v25 = vld [vmem:[%s4686_s11 + $0xf8] sm:$0xff] }
 0x134   : > { %1726 = vmatpush.bf16.msrb.mxu0 %v3409_v39  ;;  %1815 = vmatpush.bf16.msrb.mxu3 %v3417_v54 }
 0x135   : > { %1905 = vmatpush.bf16.msra.mxu1 %v3425_v9 }
 0x137   : > { %1621 = vmatpush.bf16.msrb.mxu2 %v3402_v28  ;;  %v3432_v28 = vld [vmem:[%s4686_s11 + $0xe0] sm:$0xff] }
 0x138   : > { %1727 = vmatpush.bf16.msrb.mxu0 %v3408_v41  ;;  %1816 = vmatpush.bf16.msrb.mxu3 %v3416_v55  ;;  %v3429_v41 = vld [vmem:[%s4686_s11 + $0xc8] sm:$0xff] }
 0x139   : > { %1906 = vmatpush.bf16.msra.mxu1 %v3424_v10 }
 0x13b   : > { %1622 = vmatpush.bf16.msrb.mxu2 %v3401_v29  ;;  %v3431_v29 = vld [vmem:[%s4686_s11 + $0xd8] sm:$0xff] }
 0x13c   : > { %1728 = vmatpush.bf16.msrb.mxu0 %v3407_v42  ;;  %1817 = vmatpush.bf16.msrb.mxu3 %v3415_v56  ;;  %v3428_v42 = vld [vmem:[%s4686_s11 + $0xc0] sm:$0xff] }
 0x13d   : > { %1907 = vmatpush.bf16.msra.mxu1 %v3423_v11 }
 0x13f   : > { %1623 = vmatpush.bf16.msrb.mxu2 %v3400_v35 }
 0x140   : > { %1729 = vmatpush.bf16.msrb.mxu0 %v3406_v49  ;;  %1818 = vmatpush.bf16.msrb.mxu3 %v3414_v4  ;;  %v3515_v49 = vld [vmem:[%s4687_s12 + $0x2] ss:$0 sm:$0xff] }
 0x141   : > { %1908 = vmatpush.bf16.msra.mxu1 %v3422_v22  ;;  %v3517_v22 = vld [vmem:[%s4687_s12 + $0x4] ss:$0 sm:$0xff] }
 0x144   : > { %1730 = vmatpush.bf16.msrb.mxu0 %v3405_v50  ;;  %1819 = vmatpush.bf16.msrb.mxu3 %v3413_v5 }
 0x145   : > { %1909 = vmatpush.bf16.msra.mxu1 %v3421_v23 }
 0x148   : > { %1731 = vmatpush.bf16.msrb.mxu0 %v3404_v51  ;;  %1820 = vmatpush.bf16.msrb.mxu3 %v3412_v6  ;;  %v1916_v51 = vld [vmem:[#allocation2 + $0x8] sm:$0xff]  ;;  %v2006_v6 = vld [vmem:[#allocation2 + $0x40] sm:$0xff] }
 0x149   : > { %1910 = vmatpush.bf16.msra.mxu1 %v3420_v24  ;;  %v2095_v24 = vld [vmem:[#allocation2 + $0x10] sm:$0xff] }
 0x1a7   : > { %v1520_v31 = vpop.f32.mrf.mxu0 }
 0x1a8   : > { %v1521_v32 = vadd.f32 %v3510_v30, %v1520_v31  ;;  %v3514_v30 = vld [vmem:[%s4687_s12 + $0x1] ss:$0 sm:$0xff] }
 0x1aa   : > { %v1524_v33 = vmax.f32 %v1521_v32, 0.0 }
 0x1ac   : > { %v1525_v45 = vpack.c.bf16 %v1524_v33, %v1524_v33  ;;  %v1827_v33 = vld [vmem:[#allocation2 + $0x50] sm:$0xff] }
 0x1ae   : > { %2921 = vmatmul.msk.bf16.vlgmr.msra.gmra.mxu2 %vm1562_vm3, %v1525_v45  ;;  %v1641_v37 = vpop.f32.mrf.mxu3 }
 0x1af   : > { %v1522_v34 = vpop.f32.mrf.mxu0  ;;  %1992 = vmatpush.bf16.msra.mxu2 %v3435_v25 }
 0x1b0   : > { %v1829_v34 = vld [vmem:[#allocation2 + $0x68] sm:$0xff] }
 0x1b3   : > { %1993 = vmatpush.bf16.msra.mxu2 %v3434_v26  ;;  %v2097_v26 = vld [vmem:[#allocation2 + $0x38] sm:$0xff] }
 0x1b6   : > { %v1643_v40 = vpop.f32.mrf.mxu3 }
 0x1b7   : > { %1994 = vmatpush.bf16.msra.mxu2 %v3433_v27  ;;  %v3430_v40 = vld [vmem:[%s4686_s11 + $0xd0] sm:$0xff] }
 0x1bb   : > { %1995 = vmatpush.bf16.msra.mxu2 %v3432_v28 }
 0x1bf   : > { %1996 = vmatpush.bf16.msra.mxu2 %v3431_v29 }
 0x1c3   : > { %1997 = vmatpush.bf16.msra.mxu2 %v3430_v40 }
 0x1c7   : > { %1998 = vmatpush.bf16.msra.mxu2 %v3429_v41 }
 0x1cb   : > { %1999 = vmatpush.bf16.msra.mxu2 %v3428_v42 }
 0x231   : > { %v1575_v44 = vpop.f32.mrf.mxu2 }
 0x232   : > { %v1576_v46 = vadd.f32 %v3511_v43, %v1575_v44  ;;  %v3443_v43 = vld [vmem:[%s4686_s11 + $0x138] sm:$0xff]  ;;  %v3442_v44 = vld [vmem:[%s4686_s11 + $0x130] sm:$0xff] }
 0x233   : > { %2082 = vmatpush.bf16.msra.mxu0 %v3443_v43 }
 0x234   : > { %v1580_v47 = vpack.c.bf16 %v1576_v46, %v1576_v46  ;;  %v3441_v46 = vld [vmem:[%s4686_s11 + $0x128] sm:$0xff] }
 0x236   : > { %2938 = vmatmul.msk.bf16.vlgmr.msrb.gmra.mxu2 %vm1562_vm3, %v1580_v47  ;;  %v3440_v47 = vld [vmem:[%s4686_s11 + $0x120] sm:$0xff] }
 0x237   : > { %2083 = vmatpush.bf16.msra.mxu0 %v3442_v44 }
 0x239   : > { %v1577_v48 = vpop.f32.mrf.mxu2 }
 0x23a   : > { %v3439_v48 = vld [vmem:[%s4686_s11 + $0x118] sm:$0xff] }
 0x23b   : > { %2084 = vmatpush.bf16.msra.mxu0 %v3441_v46  ;;  %v3519_v46 = vld [vmem:[%s4712_s23] ss:$0 sm:$0xff] }
 0x23f   : > { %2085 = vmatpush.bf16.msra.mxu0 %v3440_v47 }
 0x243   : > { %2086 = vmatpush.bf16.msra.mxu0 %v3439_v48  ;;  %v2272_v48 = vld [vmem:[#allocation3] sm:$0xff] }
 0x2b9   : > { %v1625_v58 = vpop.f32.mrf.mxu2 }
 0x2ba   : > { %v1642_v59 = vadd.f32 %v1641_v37, %v1625_v58 }
 0x2bc   : > { %v1649_v61 = vadd.f32 %v3512_v57, %v1642_v59  ;;  %v3438_v59 = vld [vmem:[%s4686_s11 + $0x110] sm:$0xff] }
 0x2bd   : > { %2087 = vmatpush.bf16.msra.mxu0 %v3438_v59 }
 0x2be   : > { %v1651_v63 = vmul.f32 %v1650_v60, %v1649_v61  ;;  %v3437_v60 = vld [vmem:[%s4686_s11 + $0x108] sm:$0xff] }
 0x2c0   : > { %v1653_v0 = vadd.f32 %v1652_v62, %v1651_v63  ;;  %v3451_v62 = vld [vmem:[%s4686_s11 + $0x178] sm:$0xff]  ;;  %v3450_v63 = vld [vmem:[%s4686_s11 + $0x170] sm:$0xff] }
 0x2c1   : > { %v1627_v1 = vpop.f32.mrf.mxu2  ;;  %2088 = vmatpush.bf16.msra.mxu0 %v3437_v60  ;;  %2171 = vmatpush.bf16.msra.mxu3 %v3451_v62 }
 0x2c2   : > { %v1654_v2 = vmax.f32 %v1653_v0, 0.0  ;;  %v3449_v0 = vld [vmem:[%s4686_s11 + $0x168] sm:$0xff]  ;;  %v3448_v1 = vld [vmem:[%s4686_s11 + $0x160] sm:$0xff] }
 0x2c4   : > { %v1655_v3 = vpack.c.bf16 %v1654_v2, %v1654_v2  ;;  %v3447_v2 = vld [vmem:[%s4686_s11 + $0x158] sm:$0xff] }
 0x2c5   : > { %2172 = vmatpush.bf16.msra.mxu3 %v3450_v63 }
 0x2c6   : > { %1732 = vmatmul.bf16.vlgmr.msrb.gmra.mxu0 %v1655_v3  ;;  %v3516_v3 = vld [vmem:[%s4687_s12 + $0x3] ss:$0 sm:$0xff] }
 0x2c9   : > { %2173 = vmatpush.bf16.msra.mxu3 %v3449_v0 }
 0x2cd   : > { %2174 = vmatpush.bf16.msra.mxu3 %v3448_v1 }
 0x2d1   : > { %2175 = vmatpush.bf16.msra.mxu3 %v3447_v2 }
 0x343   : > { %v1733_v13 = vpop.f32.mrf.mxu0 }
 0x344   : > { %v1734_v15 = vadd.f32 %v3513_v12, %v1733_v13 }
 0x346   : > { %v1738_v17 = vmul.f32 %v1737_v14, %v1734_v15  ;;  %v3446_v14 = vld [vmem:[%s4686_s11 + $0x150] sm:$0xff]  ;;  %v3445_v15 = vld [vmem:[%s4686_s11 + $0x148] sm:$0xff] }
 0x347   : > { %2176 = vmatpush.bf16.msra.mxu3 %v3446_v14 }
 0x348   : > { %v1740_v18 = vadd.f32 %v1739_v16, %v1738_v17  ;;  %v3444_v16 = vld [vmem:[%s4686_s11 + $0x140] sm:$0xff]  ;;  %v3459_v17 = vld [vmem:[%s4711_s29 + $0x38] sm:$0xff] }
 0x349   : > { %2259 = vmatpush.bf16.msrb.mxu1 %v3459_v17 }
 0x34a   : > { %v1741_v19 = vmax.f32 %v1740_v18, 0.0  ;;  %v3458_v18 = vld [vmem:[%s4711_s29 + $0x30] sm:$0xff] }
 0x34b   : > { %v1735_v20 = vpop.f32.mrf.mxu0  ;;  %2177 = vmatpush.bf16.msra.mxu3 %v3445_v15 }
 0x34c   : > { %v1742_v21 = vpack.c.bf16 %v1741_v19, %v1741_v19  ;;  %v3457_v19 = vld [vmem:[%s4711_s29 + $0x28] sm:$0xff]  ;;  %v3456_v20 = vld [vmem:[%s4711_s29 + $0x20] sm:$0xff] }
 0x34d   : > { %2260 = vmatpush.bf16.msrb.mxu1 %v3458_v18 }
 0x34e   : > { %1821 = vmatmul.bf16.vlgmr.msrb.gmra.mxu3 %v1742_v21  ;;  %v3455_v21 = vld [vmem:[%s4711_s29 + $0x18] sm:$0xff] }
 0x34f   : > { %2178 = vmatpush.bf16.msra.mxu3 %v3444_v16 }
 0x351   : > { %2261 = vmatpush.bf16.msrb.mxu1 %v3457_v19 }
 0x355   : > { %2262 = vmatpush.bf16.msrb.mxu1 %v3456_v20 }
 0x359   : > { %2263 = vmatpush.bf16.msrb.mxu1 %v3455_v21 }
 0x3d1   : > { %v1822_v31 = vpop.f32.mrf.mxu3 }
 0x3d2   : > { %v1823_v32 = vadd.f32 %v3514_v30, %v1822_v31 }
 0x3d4   : > { %v1826_v45 = vadd.f32 %v1823_v32, %v1649_v61  ;;  %v3436_v61 = vld [vmem:[%s4686_s11 + $0x100] sm:$0xff]  ;;  %v3454_v32 = vld [vmem:[%s4711_s29 + $0x10] sm:$0xff] }
 0x3d5   : > { %2089 = vmatpush.bf16.msra.mxu0 %v3436_v61  ;;  %2264 = vmatpush.bf16.msrb.mxu1 %v3454_v32 }
 0x3d6   : > { %v1828_v35 = vmul.f32 %v1827_v33, %v1826_v45  ;;  %v3453_v33 = vld [vmem:[%s4711_s29 + $0x8] sm:$0xff] }
 0x3d8   : > { %v1830_v36 = vadd.f32 %v1829_v34, %v1828_v35  ;;  %v3518_v34 = vld [vmem:[%s4687_s12 + $0x5] ss:$0 sm:$0xff] }
 0x3d9   : > { %v1824_v37 = vpop.f32.mrf.mxu3  ;;  %2265 = vmatpush.bf16.msrb.mxu1 %v3453_v33 }
 0x3da   : > { %v1831_v38 = vmax.f32 %v1830_v36, 0.0  ;;  %v2185_v37 = vld [vmem:[#allocation2 + $0x60] sm:$0xff] }
 0x3dc   : > { %v1832_v39 = vpack.c.bf16 %v1831_v38, %v1831_v38 }
 0x3de   : > { %1911 = vmatmul.bf16.vlgmr.msra.gmra.mxu1 %v1832_v39  ;;  %v2187_v39 = vld [vmem:[#allocation2 + $0x28] sm:$0xff] }
 0x45b   : > { %v1912_v50 = vpop.f32.mrf.mxu1 }
 0x45c   : > { %v1913_v52 = vadd.f32 %v3515_v49, %v1912_v50 }
 0x45e   : > { %v1917_v54 = vmul.f32 %v1916_v51, %v1913_v52 }
 0x460   : > { %v1919_v55 = vadd.f32 %v1918_v53, %v1917_v54 }
 0x462   : > { %v1920_v56 = vmax.f32 %v1919_v55, 0.0 }
 0x463   : > { %v1914_v57 = vpop.f32.mrf.mxu1 }
 0x464   : > { %v1921_v58 = vpack.c.bf16 %v1920_v56, %v1920_v56 }
 0x466   : > { %2000 = vmatmul.bf16.vlgmr.msra.gmra.mxu2 %v1921_v58 }
 0x4e9   : > { %v2001_v4 = vpop.f32.mrf.mxu2 }
 0x4ea   : > { %v2002_v5 = vadd.f32 %v3516_v3, %v2001_v4 }
 0x4ec   : > { %v2005_v7 = vadd.f32 %v2002_v5, %v1826_v45  ;;  %v3452_v45 = vld [vmem:[%s4711_s29] sm:$0xff] }
 0x4ed   : > { %2266 = vmatpush.bf16.msrb.mxu1 %v3452_v45 }
 0x4ee   : > { %v2007_v9 = vmul.f32 %v2006_v6, %v2005_v7 }
 0x4f0   : > { %v2009_v10 = vadd.f32 %v2008_v8, %v2007_v9 }
 0x4f1   : > { %v2003_v11 = vpop.f32.mrf.mxu2 }
 0x4f2   : > { %v2010_v12 = vmax.f32 %v2009_v10, 0.0 }
 0x4f4   : > { %v2011_v13 = vpack.c.bf16 %v2010_v12, %v2010_v12 }
 0x4f6   : > { %2090 = vmatmul.bf16.vlgmr.msra.gmra.mxu0 %v2011_v13 }
 0x573   : > { %v2091_v23 = vpop.f32.mrf.mxu0 }
 0x574   : > { %v2092_v25 = vadd.f32 %v3517_v22, %v2091_v23 }
 0x576   : > { %v2096_v27 = vmul.f32 %v2095_v24, %v2092_v25 }
 0x578   : > { %v2098_v28 = vadd.f32 %v2097_v26, %v2096_v27 }
 0x57a   : > { %v2099_v29 = vmax.f32 %v2098_v28, 0.0 }
 0x57b   : > { %v2093_v30 = vpop.f32.mrf.mxu0 }
 0x57c   : > { %v2100_v31 = vpack.c.bf16 %v2099_v29, %v2099_v29 }
 0x57e   : > { %2179 = vmatmul.bf16.vlgmr.msra.gmra.mxu3 %v2100_v31 }
 0x601   : > { %v2180_v35 = vpop.f32.mrf.mxu3 }
 0x602   : > { %v2181_v36 = vadd.f32 %v3518_v34, %v2180_v35 }
 0x604   : > { %v2184_v38 = vadd.f32 %v2181_v36, %v2005_v7 }
 0x606   : > { %v2186_v40 = vmul.f32 %v2185_v37, %v2184_v38 }
 0x608   : > { %v2188_v41 = vadd.f32 %v2187_v39, %v2186_v40 }
 0x609   : > { %v2182_v42 = vpop.f32.mrf.mxu3 }
 0x60a   : > { %v2189_v43 = vmax.f32 %v2188_v41, 0.0 }
 0x60c   : > { %v2190_v44 = vpack.c.bf16 %v2189_v43, %v2189_v43 }
 0x60e   : > { %2267 = vmatmul.bf16.vlgmr.msrb.gmra.mxu1 %v2190_v44 }
 0x68b   : > { %v2268_v47 = vpop.f32.mrf.mxu1 }
 0x68c   : > { %v2269_v49 = vadd.f32 %v3519_v46, %v2268_v47 }
 0x68e   : > { %v2273_v50 = vmax.f32 %v2272_v48, %v2269_v49 }
 0x68f   : > { %2278 = sbr.rel (%p3249_p8) target bundleno = 1850 (0x73a), region = 96 }
 0x690   : > { %2274 = vst [vmem:[#allocation3] sm:$0xff] %v2273_v50 }
 0x693   : > { %v2270_v51 = vpop.f32.mrf.mxu1 }
 0x694   : > { %v3467_v52 = vld [vmem:[%s4713_s19 + $0x38] sm:$0xff]  ;;  %v3466_v53 = vld [vmem:[%s4713_s19 + $0x30] sm:$0xff]  ;;  %v3465_v54 = vld [vmem:[%s4713_s19 + $0x28] sm:$0xff] }
 0x695   : > { %2349 = vmatpush.bf16.msra.mxu0 %v3467_v52  ;;  %v3464_v55 = vld [vmem:[%s4713_s19 + $0x20] sm:$0xff]  ;;  %v3463_v56 = vld [vmem:[%s4713_s19 + $0x18] sm:$0xff]  ;;  %v3462_v57 = vld [vmem:[%s4713_s19 + $0x10] sm:$0xff] }
 0x696   : > { %v3461_v58 = vld [vmem:[%s4713_s19 + $0x8] sm:$0xff]  ;;  %v3460_v59 = vld [vmem:[%s4713_s19] sm:$0xff] }
 0x697   : > { %v2279_v60 = vld [vmem:[#allocation3] sm:$0xff]  ;;  %v3520_v62 = vld [vmem:[%s4714_s1] ss:$0 sm:$0xff] }
 0x698   : > { %v2280_v61 = vpack.c.bf16 %v2279_v60, %v2279_v60 }
 0x699   : > { %2350 = vmatpush.bf16.msra.mxu0 %v3466_v53 }
 0x69d   : > { %2351 = vmatpush.bf16.msra.mxu0 %v3465_v54 }
 0x6a1   : > { %2352 = vmatpush.bf16.msra.mxu0 %v3464_v55 }
 0x6a5   : > { %2353 = vmatpush.bf16.msra.mxu0 %v3463_v56 }
 0x6a9   : > { %2354 = vmatpush.bf16.msra.mxu0 %v3462_v57 }
 0x6ad   : > { %2355 = vmatpush.bf16.msra.mxu0 %v3461_v58 }
 0x6b1   : > { %2356 = vmatpush.bf16.msra.mxu0 %v3460_v59 }
 0x6b4   : > { %2357 = vmatmul.bf16.vlgmr.msra.gmra.mxu0 %v2280_v61 }
 0x731   : > { %v2358_v63 = vpop.f32.mrf.mxu0 }
 0x732   : > { %v2359_v0 = vadd.f32 %v3520_v62, %v2358_v63 }
 0x734   : > { %v2362_v1 = vmax.f32 %v2359_v0, 0.0 }
 0x736   : > { %2363 = vst [vmem:[%s3700_s13] sm:$0xff] %v2362_v1 }
 0x739   : > { %v2360_v2 = vpop.f32.mrf.mxu0 }
 0x73a PF: > { %s4715_s26 = sld [smem:[#allocation6_spill]] }
 0x73b   : > { %s4716_s24 = sld [smem:[#allocation4_spill]] }
 0x73c   : > { %s4717_s25 = sld [smem:[#allocation5_spill]] }
 0x73d   : > { %s4719_s27 = sld [smem:[#allocation8_spill]] }
 0x740   : > { %s27_s28 = sadd.s32 1, %s4715_s26   ;;  %s4718_s26 = sld [smem:[#allocation7_spill]] }
 0x741   : > { %p24_p9 = scmp.ge.s32.totalorder %s27_s28, 18  }
 0x743   :  { %26 = sbr.rel (!%p24_p9) target bundleno = 7 (0x7), region = 139 }

</bundles_post_ra>
